<compile_context>
chip_gen: v5e
topology: v5e:2x2
jax: 0.10.0
libtpu: 0.0.40
codegen_flags: <defaults>
</compile_context>

<pallas_src>
import numpy as np

import jax
import jax.numpy as jnp
from jax.experimental import pallas as pl
from jax.experimental.pallas import tpu as pltpu


def _round_up(n, m):
    return ((n + m - 1) // m) * m


def vae_kernel(x_ref, eps_ref,
               w1_ref, wh_ref, w3_ref, w4_ref, bias_ref,
               recon_ref, heads_ref):
    hid = w1_ref.shape[1]          # padded hidden width (512)
    half = wh_ref.shape[1] // 2    # packed head half-width (64)
    out_dim = w4_ref.shape[1]      # input_dim (1024)

    # Lane-packed bias slab: [b1 | bh | b3 | b4], all 128-aligned static slices.
    b1 = bias_ref[:, 0:hid]
    bh = bias_ref[:, hid:hid + 2 * half]
    b3 = bias_ref[:, hid + 2 * half:2 * hid + 2 * half]
    b4 = bias_ref[:, 2 * hid + 2 * half:2 * hid + 2 * half + out_dim]

    x = x_ref[...].astype(jnp.bfloat16)
    eps = eps_ref[...]                                   # f32, zero in padded lanes

    # ---- encode ----
    h1 = jnp.dot(x, w1_ref[...], preferred_element_type=jnp.float32) + b1
    h1 = jnp.maximum(h1, 0.0)                            # ReLU (f32)

    # fused, lane-packed mu|logvar head: one MXU pass, one 128-lane result
    heads = (jnp.dot(h1.astype(jnp.bfloat16), wh_ref[...],
                     preferred_element_type=jnp.float32) + bh)
    mu = heads[:, :half]                                 # lanes 0..63
    logvar = heads[:, half:]                             # lanes 64..127

    # ---- reparameterize ----
    # padded logvar lanes are 0 -> std=1 there, but eps is 0 there, so z stays 0.
    z = mu + eps * jnp.exp(0.5 * logvar)                 # [B, half]

    # ---- decode ----
    h3 = (jnp.dot(z.astype(jnp.bfloat16), w3_ref[...],
                  preferred_element_type=jnp.float32) + b3)
    h3 = jnp.maximum(h3, 0.0)                            # ReLU (f32)

    logits = (jnp.dot(h3.astype(jnp.bfloat16), w4_ref[...],
                      preferred_element_type=jnp.float32) + b4)
    # exact sigmoid via a single EUP tanh (no approx-reciprocal error)
    recon = 0.5 * jnp.tanh(0.5 * logits) + 0.5

    recon_ref[...] = recon.astype(recon_ref.dtype)
    heads_ref[...] = heads.astype(heads_ref.dtype)       # packed [B, 2*half] (lane-dense)


def vae_forward(x, eps, params, *, latent_dim, block_b=None, batch_parallel=None):
    """VAE forward. x: [B, input_dim] f32, eps: [B, latent_dim] f32 (reparam noise).

    Returns (recon [B, input_dim], mu [B, latent_dim], logvar [B, latent_dim])."""
    B, input_dim = x.shape
    hid = params["w1"].shape[1]
    half = params["wh"].shape[1] // 2
    assert input_dim % 128 == 0, "input_dim must be lane-aligned (multiple of 128)"
    assert latent_dim <= half

    if block_b is None:
        # Hardware-sized batch tile: amortize the resident-weight fetch over many
        # MXU rows per step and give the pipeliner real batch blocks to overlap.
        block_b = 128 if (B % 128 == 0 and B > 128) else B
    assert B % block_b == 0, "batch must be a multiple of block_b"
    grid = (B // block_b,)

    # zero-pad eps into the packed head half-width
    eps_pad = jnp.zeros((B, half), jnp.float32).at[:, :latent_dim].set(
        eps.astype(jnp.float32))

    if batch_parallel is None:
        # Weight-DMA-bound -> "arbitrary" (don't duplicate the weight fetch across
        # TensorCores); "parallel" once per-TC activation traffic dominates.
        weight_bytes = sum(int(params[k].nbytes)
                           for k in ("w1", "wh", "w3", "w4", "bias"))
        act_bytes = B * (2 * input_dim + 3 * half) * 4     # x + recon + eps + heads
        batch_parallel = act_bytes > 2 * weight_bytes
    batch_sem = "parallel" if batch_parallel else "arbitrary"

    def batched(width):
        return pl.BlockSpec((block_b, width), lambda i: (i, 0))

    def resident(arr):
        # constant index_map -> weights DMA'd once, VMEM-resident across grid steps
        return pl.BlockSpec(arr.shape, lambda i: (0, 0))

    in_specs = [
        batched(input_dim),                              # x
        batched(half),                                   # eps (packed/padded)
        resident(params["w1"]),
        resident(params["wh"]),
        resident(params["w3"]),
        resident(params["w4"]),
        resident(params["bias"]),                        # all biases, one DMA
    ]
    out_specs = [
        batched(input_dim),                              # recon
        batched(2 * half),                               # packed mu|logvar
    ]
    out_shape = [
        jax.ShapeDtypeStruct((B, input_dim), jnp.float32),
        jax.ShapeDtypeStruct((B, 2 * half), jnp.float32),
    ]

    recon, heads = pl.pallas_call(
        vae_kernel,
        grid_spec=pltpu.PrefetchScalarGridSpec(
            num_scalar_prefetch=0,
            grid=grid,
            in_specs=in_specs,
            out_specs=out_specs,
        ),
        out_shape=out_shape,
        compiler_params=pltpu.CompilerParams(
            dimension_semantics=(batch_sem,),
        ),
    )(x, eps_pad,
      params["w1"], params["wh"], params["w3"], params["w4"], params["bias"])

    mu = heads[:, :latent_dim]
    logvar = heads[:, half:half + latent_dim]
    return recon, mu, logvar


def init_params(key, input_dim, hidden_dim, latent_dim):
    """PyTorch-Linear-style init (uniform +/- 1/sqrt(fan_in)); weights stored as
    (in_features, out_features), zero-padded/packed to lane-dense shapes, cast to bf16.
    mu|logvar head packed into a single 128-lane matrix; biases concatenated into one
    lane-packed f32 array."""
    hid_pad = _round_up(hidden_dim, 128)                 # 400 -> 512
    half = _round_up(latent_dim, 64)                     # 20  -> 64 (packed head half)
    assert input_dim % 128 == 0

    def linear(k, fan_in, fan_out):
        kw, kb = jax.random.split(k)
        bound = 1.0 / float(np.sqrt(fan_in))
        w = jax.random.uniform(kw, (fan_in, fan_out), jnp.float32, -bound, bound)
        b = jax.random.uniform(kb, (fan_out,), jnp.float32, -bound, bound)
        return w, b

    k1, k2, k3, k4, k5 = jax.random.split(key, 5)
    w1, b1 = linear(k1, input_dim, hidden_dim)           # fc1
    wmu, bmu = linear(k2, hidden_dim, latent_dim)        # fc2_mu
    wlv, blv = linear(k3, hidden_dim, latent_dim)        # fc2_logvar
    w3, b3 = linear(k4, latent_dim, hidden_dim)          # fc3
    w4, b4 = linear(k5, hidden_dim, input_dim)           # fc4

    w1p = jnp.zeros((input_dim, hid_pad), jnp.float32).at[:, :hidden_dim].set(w1)
    whp = (jnp.zeros((hid_pad, 2 * half), jnp.float32)
           .at[:hidden_dim, :latent_dim].set(wmu)
           .at[:hidden_dim, half:half + latent_dim].set(wlv))
    w3p = jnp.zeros((half, hid_pad), jnp.float32).at[:latent_dim, :hidden_dim].set(w3)
    w4p = jnp.zeros((hid_pad, input_dim), jnp.float32).at[:hidden_dim, :].set(w4)

    b1p = jnp.zeros((hid_pad,), jnp.float32).at[:hidden_dim].set(b1)
    bhp = (jnp.zeros((2 * half,), jnp.float32)
           .at[:latent_dim].set(bmu)
           .at[half:half + latent_dim].set(blv))
    b3p = jnp.zeros((hid_pad,), jnp.float32).at[:hidden_dim].set(b3)
    bias = jnp.concatenate([b1p, bhp, b3p, b4])[None, :]  # (1, 2*hid_pad+2*half+input)

    bf16 = jnp.bfloat16
    return dict(
        w1=w1p.astype(bf16),
        wh=whp.astype(bf16),
        w3=w3p.astype(bf16),
        w4=w4p.astype(bf16),
        bias=bias,                                       # f32
    )


def vae_forward_ref(x, eps, params, *, latent_dim):
    """Pure-JAX reference with identical numerics (bf16 matmul inputs, f32 accum)."""
    hid = params["w1"].shape[1]
    half = params["wh"].shape[1] // 2
    out_dim = params["w4"].shape[1]
    B = x.shape[0]
    eps_pad = jnp.zeros((B, half), jnp.float32).at[:, :latent_dim].set(
        eps.astype(jnp.float32))

    bias = params["bias"]
    b1 = bias[:, 0:hid]
    bh = bias[:, hid:hid + 2 * half]
    b3 = bias[:, hid + 2 * half:2 * hid + 2 * half]
    b4 = bias[:, 2 * hid + 2 * half:2 * hid + 2 * half + out_dim]

    bf16 = jnp.bfloat16
    h1 = jnp.maximum(jnp.dot(x.astype(bf16), params["w1"],
                             preferred_element_type=jnp.float32) + b1, 0.0)
    heads = jnp.dot(h1.astype(bf16), params["wh"],
                    preferred_element_type=jnp.float32) + bh
    mu, logvar = heads[:, :half], heads[:, half:]
    z = mu + eps_pad * jnp.exp(0.5 * logvar)
    h3 = jnp.maximum(jnp.dot(z.astype(bf16), params["w3"],
                             preferred_element_type=jnp.float32) + b3, 0.0)
    logits = jnp.dot(h3.astype(bf16), params["w4"],
                     preferred_element_type=jnp.float32) + b4
    recon = jax.nn.sigmoid(logits)
    return recon, mu[:, :latent_dim], logvar[:, :latent_dim]


if __name__ == "__main__":
    INPUT_DIM = 32 * 32   # 1024
    HIDDEN_DIM = 400      # padded to 512 internally
    LATENT_DIM = 20       # packed mu|logvar head: 64 lanes each
    BATCH = 256           # block_b=128 -> grid=(2,), weights fetched once, batch pipelined

    key = jax.random.PRNGKey(0)
    kx, keps, kp = jax.random.split(key, 3)

    x = jax.random.uniform(kx, (BATCH, INPUT_DIM), jnp.float32)       # "image" in [0,1)
    eps = jax.random.normal(keps, (BATCH, LATENT_DIM), jnp.float32)   # reparam noise
    params = init_params(kp, INPUT_DIM, HIDDEN_DIM, LATENT_DIM)

    recon, mu, logvar = vae_forward(x, eps, params, latent_dim=LATENT_DIM)
    jax.block_until_ready((recon, mu, logvar))

    # sanity check vs pure-JAX reference (same bf16-weight / f32-accum math)
    r_ref, mu_ref, lv_ref = vae_forward_ref(x, eps, params, latent_dim=LATENT_DIM)
    assert recon.shape == (BATCH, INPUT_DIM)
    assert mu.shape == (BATCH, LATENT_DIM) and logvar.shape == (BATCH, LATENT_DIM)
    assert jnp.allclose(mu, mu_ref, atol=1e-4, rtol=1e-4)
    assert jnp.allclose(logvar, lv_ref, atol=1e-4, rtol=1e-4)
    assert jnp.allclose(recon, r_ref, atol=1e-4, rtol=1e-4)

    print("KERNEL_OK")
</pallas_src>

<mosaic_0001>
module attributes {stable_mosaic.version = 11 : i64} {
  func.func @vae_kernel(%arg0: i32, %arg1: memref<128x1024xf32, #tpu.memory_space<vmem>>, %arg2: memref<128x64xf32, #tpu.memory_space<vmem>>, %arg3: memref<1024x512xbf16, #tpu.memory_space<vmem>>, %arg4: memref<512x128xbf16, #tpu.memory_space<vmem>>, %arg5: memref<64x512xbf16, #tpu.memory_space<vmem>>, %arg6: memref<512x1024xbf16, #tpu.memory_space<vmem>>, %arg7: memref<1x2176xf32, #tpu.memory_space<vmem>>, %arg8: memref<128x1024xf32, #tpu.memory_space<vmem>>, %arg9: memref<128x128xf32, #tpu.memory_space<vmem>>) attributes {dimension_semantics = [#tpu.dimension_semantics<arbitrary>], iteration_bounds = array<i64: 2>, scalar_prefetch = 0 : i64, scratch_operands = 0 : i64, tpu.core_type = #tpu.core_type<tc>, window_params = [{transform_indices = @transform_0, window_bounds = array<i64: 128, 1024>}, {transform_indices = @transform_1, window_bounds = array<i64: 128, 64>}, {pipeline_mode = #tpu.pipeline_mode<synchronous>, transform_indices = @transform_2, window_bounds = array<i64: 1024, 512>}, {pipeline_mode = #tpu.pipeline_mode<synchronous>, transform_indices = @transform_3, window_bounds = array<i64: 512, 128>}, {pipeline_mode = #tpu.pipeline_mode<synchronous>, transform_indices = @transform_4, window_bounds = array<i64: 64, 512>}, {pipeline_mode = #tpu.pipeline_mode<synchronous>, transform_indices = @transform_5, window_bounds = array<i64: 512, 1024>}, {pipeline_mode = #tpu.pipeline_mode<synchronous>, transform_indices = @transform_6, window_bounds = array<i64: 1, 2176>}, {transform_indices = @transform_7, window_bounds = array<i64: 128, 1024>}, {transform_indices = @transform_8, window_bounds = array<i64: 128, 128>}]} {
    %c0 = arith.constant 0 : index
    %c0_0 = arith.constant 0 : index
    %0 = vector.load %arg7[%c0, %c0_0] : memref<1x2176xf32, #tpu.memory_space<vmem>>, vector<1x512xf32>
    %c0_1 = arith.constant 0 : index
    %c512 = arith.constant 512 : index
    %1 = vector.load %arg7[%c0_1, %c512] : memref<1x2176xf32, #tpu.memory_space<vmem>>, vector<1x128xf32>
    %c0_2 = arith.constant 0 : index
    %c640 = arith.constant 640 : index
    %2 = vector.load %arg7[%c0_2, %c640] : memref<1x2176xf32, #tpu.memory_space<vmem>>, vector<1x512xf32>
    %c0_3 = arith.constant 0 : index
    %c1152 = arith.constant 1152 : index
    %3 = vector.load %arg7[%c0_3, %c1152] : memref<1x2176xf32, #tpu.memory_space<vmem>>, vector<1x1024xf32>
    %c0_4 = arith.constant 0 : index
    %c0_5 = arith.constant 0 : index
    %4 = vector.load %arg1[%c0_4, %c0_5] : memref<128x1024xf32, #tpu.memory_space<vmem>>, vector<128x1024xf32>
    %5 = arith.truncf %4 : vector<128x1024xf32> to vector<128x1024xbf16>
    %c0_6 = arith.constant 0 : index
    %c0_7 = arith.constant 0 : index
    %6 = vector.load %arg2[%c0_6, %c0_7] : memref<128x64xf32, #tpu.memory_space<vmem>>, vector<128x64xf32>
    %c0_8 = arith.constant 0 : index
    %c0_9 = arith.constant 0 : index
    %7 = vector.load %arg3[%c0_8, %c0_9] : memref<1024x512xbf16, #tpu.memory_space<vmem>>, vector<1024x512xbf16>
    %cst = arith.constant dense<0.000000e+00> : vector<128x512xf32>
    %8 = tpu.matmul %5, %7, %cst {dimension_numbers = #tpu.dot_dimension_numbers<[1], [0], [0], [1], [0, 0, 1, 1], [], []>} : vector<128x1024xbf16>, vector<1024x512xbf16>, vector<128x512xf32> -> vector<128x512xf32>
    %9 = vector.broadcast %0 : vector<1x512xf32> to vector<128x512xf32>
    %10 = arith.addf %8, %9 : vector<128x512xf32>
    %cst_10 = arith.constant 0.000000e+00 : f32
    %11 = vector.broadcast %cst_10 : f32 to vector<128x512xf32>
    %12 = arith.maximumf %10, %11 : vector<128x512xf32>
    %13 = arith.truncf %12 : vector<128x512xf32> to vector<128x512xbf16>
    %c0_11 = arith.constant 0 : index
    %c0_12 = arith.constant 0 : index
    %14 = vector.load %arg4[%c0_11, %c0_12] : memref<512x128xbf16, #tpu.memory_space<vmem>>, vector<512x128xbf16>
    %cst_13 = arith.constant dense<0.000000e+00> : vector<128x128xf32>
    %15 = tpu.matmul %13, %14, %cst_13 {dimension_numbers = #tpu.dot_dimension_numbers<[1], [0], [0], [1], [0, 0, 1, 1], [], []>} : vector<128x512xbf16>, vector<512x128xbf16>, vector<128x128xf32> -> vector<128x128xf32>
    %16 = vector.broadcast %1 : vector<1x128xf32> to vector<128x128xf32>
    %17 = arith.addf %15, %16 : vector<128x128xf32>
    %18 = vector.extract_strided_slice %17 {offsets = [0, 0], sizes = [128, 64], strides = [1, 1]} : vector<128x128xf32> to vector<128x64xf32>
    %19 = vector.extract_strided_slice %17 {offsets = [0, 64], sizes = [128, 64], strides = [1, 1]} : vector<128x128xf32> to vector<128x64xf32>
    %cst_14 = arith.constant 5.000000e-01 : f32
    %20 = vector.broadcast %cst_14 : f32 to vector<128x64xf32>
    %21 = arith.mulf %20, %19 : vector<128x64xf32>
    %22 = math.exp %21 : vector<128x64xf32>
    %23 = arith.mulf %6, %22 : vector<128x64xf32>
    %24 = arith.addf %18, %23 : vector<128x64xf32>
    %25 = arith.truncf %24 : vector<128x64xf32> to vector<128x64xbf16>
    %c0_15 = arith.constant 0 : index
    %c0_16 = arith.constant 0 : index
    %26 = vector.load %arg5[%c0_15, %c0_16] : memref<64x512xbf16, #tpu.memory_space<vmem>>, vector<64x512xbf16>
    %cst_17 = arith.constant dense<0.000000e+00> : vector<128x512xf32>
    %27 = tpu.matmul %25, %26, %cst_17 {dimension_numbers = #tpu.dot_dimension_numbers<[1], [0], [0], [1], [0, 0, 1, 1], [], []>} : vector<128x64xbf16>, vector<64x512xbf16>, vector<128x512xf32> -> vector<128x512xf32>
    %28 = vector.broadcast %2 : vector<1x512xf32> to vector<128x512xf32>
    %29 = arith.addf %27, %28 : vector<128x512xf32>
    %cst_18 = arith.constant 0.000000e+00 : f32
    %30 = vector.broadcast %cst_18 : f32 to vector<128x512xf32>
    %31 = arith.maximumf %29, %30 : vector<128x512xf32>
    %32 = arith.truncf %31 : vector<128x512xf32> to vector<128x512xbf16>
    %c0_19 = arith.constant 0 : index
    %c0_20 = arith.constant 0 : index
    %33 = vector.load %arg6[%c0_19, %c0_20] : memref<512x1024xbf16, #tpu.memory_space<vmem>>, vector<512x1024xbf16>
    %cst_21 = arith.constant dense<0.000000e+00> : vector<128x1024xf32>
    %34 = tpu.matmul %32, %33, %cst_21 {dimension_numbers = #tpu.dot_dimension_numbers<[1], [0], [0], [1], [0, 0, 1, 1], [], []>} : vector<128x512xbf16>, vector<512x1024xbf16>, vector<128x1024xf32> -> vector<128x1024xf32>
    %35 = vector.broadcast %3 : vector<1x1024xf32> to vector<128x1024xf32>
    %36 = arith.addf %34, %35 : vector<128x1024xf32>
    %cst_22 = arith.constant 5.000000e-01 : f32
    %37 = vector.broadcast %cst_22 : f32 to vector<128x1024xf32>
    %38 = arith.mulf %37, %36 : vector<128x1024xf32>
    %39 = math.tanh %38 : vector<128x1024xf32>
    %cst_23 = arith.constant 5.000000e-01 : f32
    %40 = vector.broadcast %cst_23 : f32 to vector<128x1024xf32>
    %41 = arith.mulf %40, %39 : vector<128x1024xf32>
    %cst_24 = arith.constant 5.000000e-01 : f32
    %42 = vector.broadcast %cst_24 : f32 to vector<128x1024xf32>
    %43 = arith.addf %41, %42 : vector<128x1024xf32>
    %c0_25 = arith.constant 0 : index
    %c0_26 = arith.constant 0 : index
    %44 = vector.load %arg8[%c0_25, %c0_26] : memref<128x1024xf32, #tpu.memory_space<vmem>>, vector<128x1024xf32>
    tpu.vector_store %arg8[%c0_25, %c0_26], %43 {strides = array<i32>} : memref<128x1024xf32, #tpu.memory_space<vmem>>, vector<128x1024xf32>,
    %c0_27 = arith.constant 0 : index
    %c0_28 = arith.constant 0 : index
    %45 = vector.load %arg9[%c0_27, %c0_28] : memref<128x128xf32, #tpu.memory_space<vmem>>, vector<128x128xf32>
    tpu.vector_store %arg9[%c0_27, %c0_28], %17 {strides = array<i32>} : memref<128x128xf32, #tpu.memory_space<vmem>>, vector<128x128xf32>,
    return
  }
  func.func @transform_0(%arg0: i32) -> (i32, i32) {
    %c0_i32 = arith.constant 0 : i32
    %c0_i32_0 = arith.constant 0 : i32
    return %arg0, %c0_i32 : i32, i32
  }
  func.func @transform_1(%arg0: i32) -> (i32, i32) {
    %c0_i32 = arith.constant 0 : i32
    %c0_i32_0 = arith.constant 0 : i32
    return %arg0, %c0_i32 : i32, i32
  }
  func.func @transform_2(%arg0: i32) -> (i32, i32) {
    %c0_i32 = arith.constant 0 : i32
    %c0_i32_0 = arith.constant 0 : i32
    %c0_i32_1 = arith.constant 0 : i32
    return %c0_i32, %c0_i32_0 : i32, i32
  }
  func.func @transform_3(%arg0: i32) -> (i32, i32) {
    %c0_i32 = arith.constant 0 : i32
    %c0_i32_0 = arith.constant 0 : i32
    %c0_i32_1 = arith.constant 0 : i32
    return %c0_i32, %c0_i32_0 : i32, i32
  }
  func.func @transform_4(%arg0: i32) -> (i32, i32) {
    %c0_i32 = arith.constant 0 : i32
    %c0_i32_0 = arith.constant 0 : i32
    %c0_i32_1 = arith.constant 0 : i32
    return %c0_i32, %c0_i32_0 : i32, i32
  }
  func.func @transform_5(%arg0: i32) -> (i32, i32) {
    %c0_i32 = arith.constant 0 : i32
    %c0_i32_0 = arith.constant 0 : i32
    %c0_i32_1 = arith.constant 0 : i32
    return %c0_i32, %c0_i32_0 : i32, i32
  }
  func.func @transform_6(%arg0: i32) -> (i32, i32) {
    %c0_i32 = arith.constant 0 : i32
    %c0_i32_0 = arith.constant 0 : i32
    %c0_i32_1 = arith.constant 0 : i32
    return %c0_i32, %c0_i32_0 : i32, i32
  }
  func.func @transform_7(%arg0: i32) -> (i32, i32) {
    %c0_i32 = arith.constant 0 : i32
    %c0_i32_0 = arith.constant 0 : i32
    return %arg0, %c0_i32 : i32, i32
  }
  func.func @transform_8(%arg0: i32) -> (i32, i32) {
    %c0_i32 = arith.constant 0 : i32
    %c0_i32_0 = arith.constant 0 : i32
    return %arg0, %c0_i32 : i32, i32
  }
}

</mosaic_0001>

<bundles_post_ra>
// kernel: tpu_custom_call.1
= control target key start
LH: loop header
LB: loop body
LE: loop exit
PB: predicated region body
PF: predicated region fallthrough
CT: control target
= control target key end

     0   :  { %s14468_s0 = inlined_call_operand.hbm [shape: f32[256,1024], index: 0, kind: input, shape index: {}]   ;;  %s14469_s1 = inlined_call_operand.vmem [shape: f32[256,64], index: 1, kind: input, shape index: {}]   ;;  %s14470_s2 = inlined_call_operand.hbm [shape: bf16[1024,512], index: 2, kind: input, shape index: {}]   ;;  %s14471_s3 = inlined_call_operand.vmem [shape: bf16[512,128], index: 3, kind: input, shape index: {}]   ;;  %s14472_s4 = inlined_call_operand.vmem [shape: bf16[64,512], index: 4, kind: input, shape index: {}]   ;;  %s14473_s5 = inlined_call_operand.hbm [shape: bf16[512,1024], index: 5, kind: input, shape index: {}]   ;;  %s14474_s6 = inlined_call_operand.hbm [shape: f32[1,2176], index: 6, kind: input, shape index: {}]   ;;  %s14475_s7 = inlined_call_operand.hbm [shape: f32[256,1024], index: 7, kind: output, shape index: {0}]   ;;  %s14476_s8 = inlined_call_operand.hbm [shape: f32[256,128], index: 8, kind: output, shape index: {1}]  }
   0x1   :  { %14554 = sst [smem:[#allocation70_spill]] %s14470_s2 }
   0x2   :  { %14555 = sst [smem:[#allocation71_spill]] %s14473_s5 }
   0x3   :  { %14 = vsyncpa [#allocation3], 0 }
   0x4   :  { %16 = vsyncpa [#allocation3 + $0x1], 0 }
   0x5   :  { %17 = vsyncpa [#allocation6], 0 }
   0x6   :  { %18 = vsyncpa [#allocation9], 0 }
   0x7   :  { %19 = vsyncpa [#allocation4], 0 }
   0x8   :  { %21 = vsyncpa [#allocation4 + $0x1], 0 }
   0x9   :  { %22 = vsyncpa [#allocation12], 0 }
   0xa   :  { %24 = vsyncpa [#allocation12 + $0x1], 0  ;;  %s12363_s27 = smov 0   ;;  %s12365_s28 = smov 0  }
   0xb   :  { %s12367_s29 = smov 0   ;;  %s12369_s30 = smov 0  }
   0xc LB: > { %s12384_s9 = sadd.s32 4294967295, %s12303_s30   ;;  %s8825_s10 = sadd.s32 4294967294, %s12303_s30   ;;  %s12303_s30 = sphi %s12369_s30, %s14747_s30   ;;  %s12299_s29 = sphi %s12367_s29, %s14746_s29   ;;  %s12295_s28 = sphi %s12365_s28, %s14745_s28   ;;  %s12291_s27 = sphi %s12363_s27, %s14744_s27  }
   0xd   : > { %p50_p0 = scmp.ne.s32.totalorder %s12295_s28, %s12291_s27  ;;  %p51_p1 = scmp.eq.s32.totalorder %s12384_s9, 0 }
   0xe   : > { %p205_p2 = scmp.eq.s32.totalorder %s12384_s9, 1  ;;  %p211_p3 = scmp.eq.s32.totalorder %s8825_s10, 1 }
   0xf   : > { %p12393_p4 = por %p51_p1, %p50_p0  ;;  %p8826_p5 = scmp.ge.s32.totalorder %s12303_s30, 1 }
  0x10   : > { %p12398_p6 = por %p211_p3, %p50_p0  ;;  %p244_p7 = scmp.lt.s32.totalorder %s12303_s30, 3 }
  0x11   : > { %s14558_s2 = sld [smem:[#allocation70_spill]]  ;;  %s12305_s17 = smov [#allocation5]  }
  0x12   : > { %p12406_p8 = pnand %p8826_p5, %p244_p7  ;;  %s257_s18 = sshll.u32 %s12305_s17, 4  ;;  %s258_s18 = int_to_ptr.vmem [resolvable:$true] %s257_s18 }
  0x13   : > { %s14561_s5 = sld [smem:[#allocation71_spill]]  ;;  %s12306_s23 = smov 256  }
  0x14   : > { %p11708_p9 = pneg %p12406_p8  ;;  %s12307_s24 = smov 16  }
  0x15   : > { %s12308_s25 = smov [#allocation7]   ;;  %s12309_s10 = smov 512  }
  0x16   : > { %p12414_p10 = pnand %p11708_p9, %p51_p1  ;;  %s277_s26 = sshll.u32 %s12308_s25, 4  ;;  %s278_s26 = int_to_ptr.vmem [resolvable:$true] %s277_s26 }
  0x17   : > { %s255_s15 = sshll.u32 %s14558_s2, 4  ;;  %s12310_s13 = smov 32   ;;  %s256_s15 = int_to_ptr.hbm [resolvable:$true] %s255_s15 }
  0x18   : > { %11711 = dma.hbm_to_vmem [thread:$0]  (!%p12414_p10), %s256_s15, 32768, %s258_s18, [#allocation6], %s12306_s23, %s12306_s23, %s12307_s24  }
  0x19   : > { %s275_s22 = sshll.u32 %s14561_s5, 4  ;;  %s290_s20 = sshll.u32 %s14474_s6, 4  ;;  %s276_s22 = int_to_ptr.hbm [resolvable:$true] %s275_s22  ;;  %s291_s20 = int_to_ptr.hbm [resolvable:$true] %s290_s20 }
  0x1a   : > { %11714 = dma.hbm_to_vmem [thread:$0]  (!%p12414_p10), %s276_s22, 32768, %s278_s26, [#allocation6], %s12309_s10, %s12309_s10, %s12310_s13  }
  0x1b   : > { %s12311_s15 = smov [#allocation8]   ;;  %s12432_s21 = sadd.s32 1, %s12303_s30  }
  0x1c   : > { %s292_s18 = sshll.u32 %s12311_s15, 4  ;;  %s34_s23 = ssub.s32 %s12303_s30, %s12432_s21  ;;  %s293_s18 = int_to_ptr.vmem [resolvable:$true] %s292_s18 }
  0x1d   : > { %11717 = dma.hbm_to_vmem [thread:$0]  (!%p12414_p10), %s291_s20, 272, %s293_s18, [#allocation9]  }
  0x1e   : > { %s37_s24 = sadd.s32 1, %s12299_s29  ;;  %p35_p12 = scmp.eq.s32.totalorder %s34_s23, 0 }
  0x1f   : > { %p44_p13 = scmp.ne.s32.totalorder %s12299_s29, %s12295_s28  ;;  %p45_p0 = scmp.eq.s32.totalorder %s12303_s30, 0 }
  0x20   : > { %p11732_p3 = scmp.lt.s32.totalorder %s12303_s30, 2  ;;  %s303_s19 = sand.u32 1, %s12299_s29  }
  0x21   : > { %s12442_s22 = scalar_select %p35_p12, %s12299_s29, %s37_s24  }
  0x22   : > { %p46_p5 = por %p45_p0, %p44_p13  ;;  %p12446_p7 = por %p205_p2, %p44_p13 }
  0x23   : > { %s11126_s26 = sshll.u32 %s12303_s30, 10  ;;  %s8831_s10 = sshll.u32 %s303_s19, 10 }
  0x24   : > { %s313_s17 = scalar_lea.hbm %s14468_s0, %s11126_s26  ;;  %s307_s15 = scalar_lea.vmem [#allocation2], %s8831_s10 }
  0x25   : > { %s314_s20 = sshll.u32 %s313_s17, 4  ;;  %s316_s18 = sshll.u32 %s307_s15, 4  ;;  %s315_s20 = int_to_ptr.hbm [resolvable:$true] %s314_s20  ;;  %s317_s18 = int_to_ptr.vmem [resolvable:$true] %s316_s18 }
  0x26   : > { %p12457_p9 = pnand %p11732_p3, %p46_p5  ;;  %s304_s24 = scalar_lea.sflag [#allocation3], %s303_s19 }
  0x27   : > { %s12167_s2 = sshra.s32 %s315_s20, 4  ;;  %s12174_s13 = scalar_lea.hbm %s14468_s0, 2048  ;;  %s12168_s2 = int_to_ptr.hbm [resolvable:$true] %s12167_s2 }
  0x28   : > { %s12169_s5 = scalar_lea.hbm %s12168_s2, 1024  ;;  %p12171_p10 = pneg %p12457_p9 }
  0x29   : > { %p12170_p2 = scmp.ne.s32.totalorder %s12168_s2, %s12169_s5  ;;  %p12175_p0 = scmp.lt.s32.totalorder %s12168_s2, %s14468_s0 }
  0x2a   : > { %p12176_p3 = scmp.lt.s32.totalorder %s12174_s13, %s12169_s5 }
  0x2b   : > { %p12172_p12 = pnand %p12171_p10, %p12170_p2 }
  0x2c   : > { %p12177_p5 = por %p12176_p3, %p12175_p0 }
  0x2d   : > { %p12173_p13 = pneg %p12172_p12 }
  0x2f   : > { %p12178_p11 = pnand %p12177_p5, %p12173_p13 }
  0x31   : > { %12181 = shalt.err (!%p12178_p11)
}
  0x32   : > { %s12312_s19 = smov 1024   ;;  %s12313_s15 = smov 64  }
  0x33   : > { %11721 = dma.hbm_to_vmem [thread:$0]  (!%p12457_p9), %s315_s20, 16384, %s317_s18, %s304_s24, %s12312_s19, %s12312_s19, %s12313_s15  }
  0x34   : > { %337 = sbr.rel (%p12406_p8) target bundleno = 2737 (0xab1), region = 48 }
  0x39   : > { %s12474_s26 = sand.u32 1, %s12295_s28  }
  0x3a   : > { %s8836_s2 = sshll.u32 %s12474_s26, 10  ;;  %s340_s5 = scalar_lea.sflag [#allocation3], %s12474_s26 }
  0x3b   : > { %s12480_s10 = scalar_lea.vmem [#allocation2], %s8836_s2 }
  0x3c   : > { %12270 = dma.done.wait (%p12393_p4), %s340_s5, 16384  }
  0x3d   : > { %12272 = vsyncadd (%p12393_p4), %s340_s5, 4294950912 }
  0x3e   : > { %12274 = dma.done.wait (%p51_p1), [#allocation6], 65536  }
  0x3f   : > { %12276 = vsyncadd (%p51_p1), [#allocation6], 4294901760 }
  0x40   : > { %12278 = dma.done.wait (%p51_p1), [#allocation9], 272  }
  0x41   : > { %12280 = vsyncadd (%p51_p1), [#allocation9], 4294967024  ;;  %v8958_v0 = vld [vmem:[#allocation5 + $0xe0] sm:$0xf]  ;;  %v11157_v1 = vld [vmem:[#allocation5 + $0xec] sm:$0xf0] }
  0x42   : > { %v9086_v2 = vld [vmem:[#allocation5 + $0x1e0] sm:$0xf]  ;;  %v8959_v3 = vor.u32 %v11157_v1, %v8958_v0  ;;  %v11189_v4 = vld [vmem:[#allocation5 + $0x1ec] sm:$0xf0]  ;;  %s8841_s5 = sshll.u32 %s12474_s26, 7  ;;  %s12314_s23 = smov 64  }
  0x43   : > { %v9214_v5 = vld [vmem:[#allocation5 + $0x2e0] sm:$0xf]  ;;  %v11221_v6 = vld [vmem:[#allocation5 + $0x2ec] sm:$0xf0]  ;;  %v9087_v7 = vor.u32 %v11189_v4, %v9086_v2  ;;  %s13482_s18 = scalar_lea.vmem [#allocation11], %s8841_s5  ;;  %s8842_s19 = sshll.u32 %s12384_s9, 4 }
  0x44   : > { %v9215_v8 = vor.u32 %v11221_v6, %v9214_v5  ;;  %v9342_v9 = vld [vmem:[#allocation5 + $0x3e0] sm:$0xf]  ;;  %v11253_v10 = vld [vmem:[#allocation5 + $0x3ec] sm:$0xf0]  ;;  %2169 = vmatpush.bf16.msra.mxu0 %v8959_v3  ;;  %p404_p1 = scmp.lt.s32.totalorder %s8842_s19, 31  ;;  %vm4545_vm0 = vcmask 523264  }
  0x45   : > { %v8942_v11 = vld [vmem:[#allocation5 + $0xc0] sm:$0xf]  ;;  %v9343_v12 = vor.u32 %v11253_v10, %v9342_v9  ;;  %v11153_v13 = vld [vmem:[#allocation5 + $0xcc] sm:$0xf0]  ;;  %2218 = vmatpush.bf16.msra.mxu1 %v9087_v7  ;;  %s13919_s16 = scalar_lea.vmem [#allocation10], %s8836_s2  ;;  %s11689_s2 = sshll.u32 %s12384_s9, 7 }
  0x46   : > { %v9070_v14 = vld [vmem:[#allocation5 + $0x1c0] sm:$0xf]  ;;  %v11185_v15 = vld [vmem:[#allocation5 + $0x1cc] sm:$0xf0]  ;;  %2267 = vmatpush.bf16.msra.mxu2 %v9215_v8  ;;  %v8943_v16 = vor.u32 %v11153_v13, %v8942_v11  ;;  %s14749_s19 = smov (!%p404_p1, %s8842_s19), 31  ;;  %s8674_s13 = scalar_lea.hbm %s14476_s8, %s11689_s2 }
  0x47   : > { %v9071_v17 = vor.u32 %v11185_v15, %v9070_v14  ;;  %v9198_v18 = vld [vmem:[#allocation5 + $0x2c0] sm:$0xf]  ;;  %v11217_v19 = vld [vmem:[#allocation5 + $0x2cc] sm:$0xf0]  ;;  %2316 = vmatpush.bf16.msra.mxu3 %v9343_v12  ;;  %s8843_s15 = sshll.u32 %s14749_s19, 3  ;;  %s8675_s14 = sshll.u32 %s13482_s18, 4  ;;  %s8676_s14 = int_to_ptr.vmem [resolvable:$true] %s8675_s14 }
  0x48   : > { %v9326_v20 = vld [vmem:[#allocation5 + $0x3c0] sm:$0xf]  ;;  %v9199_v21 = vor.u32 %v11217_v19, %v9198_v18  ;;  %v11249_v22 = vld [vmem:[#allocation5 + $0x3cc] sm:$0xf0]  ;;  %2170 = vmatpush.bf16.msra.mxu0 %v8943_v16  ;;  %s13666_s11 = scalar_lea.vmem %s14469_s1, %s8843_s15  ;;  %s8677_s17 = sshll.u32 %s8674_s13, 4  ;;  %s8678_s17 = int_to_ptr.hbm [resolvable:$true] %s8677_s17 }
  0x49   : > { %v8926_v23 = vld [vmem:[#allocation5 + $0xa0] sm:$0xf]  ;;  %v11149_v24 = vld [vmem:[#allocation5 + $0xac] sm:$0xf0]  ;;  %v9327_v25 = vor.u32 %v11249_v22, %v9326_v20  ;;  %2219 = vmatpush.bf16.msra.mxu1 %v9071_v17  ;;  %s8645_s19 = scalar_lea.sflag [#allocation12], %s12474_s26  ;;  %s12211_s15 = sshra.s32 %s8678_s17, 4  ;;  %s12212_s15 = int_to_ptr.hbm [resolvable:$true] %s12211_s15 }
  0x4a   : > { %v9054_v26 = vld [vmem:[#allocation5 + $0x1a0] sm:$0xf]  ;;  %v11181_v27 = vld [vmem:[#allocation5 + $0x1ac] sm:$0xf0]  ;;  %v8927_v29 = vor.u32 %v11149_v24, %v8926_v23  ;;  %2268 = vmatpush.bf16.msra.mxu2 %v9199_v21  ;;  %s12213_s5 = scalar_lea.hbm %s12212_s15, 128  ;;  %p12218_p9 = scmp.lt.s32.totalorder %s12212_s15, %s14476_s8 }
  0x4b   : > { %v9182_v28 = vld [vmem:[#allocation5 + $0x2a0] sm:$0xf]  ;;  %v11213_v30 = vld [vmem:[#allocation5 + $0x2ac] sm:$0xf0]  ;;  %v9055_v33 = vor.u32 %v11181_v27, %v9054_v26  ;;  %2317 = vmatpush.bf16.msra.mxu3 %v9327_v25  ;;  %p12214_p4 = scmp.ne.s32.totalorder %s12212_s15, %s12213_s5 }
  0x4c   : > { %v9310_v31 = vld [vmem:[#allocation5 + $0x3a0] sm:$0xf]  ;;  %v11245_v32 = vld [vmem:[#allocation5 + $0x3ac] sm:$0xf0]  ;;  %v9183_v34 = vor.u32 %v11213_v30, %v9182_v28  ;;  %2171 = vmatpush.bf16.msra.mxu0 %v8927_v29  ;;  %v417_v30 = vld [vmem:[%s12480_s10 + $0x8] sm:$0xff] }
  0x4d   : > { %v8910_v35 = vld [vmem:[#allocation5 + $0x80] sm:$0xf]  ;;  %v11145_v36 = vld [vmem:[#allocation5 + $0x8c] sm:$0xf0]  ;;  %v9311_v38 = vor.u32 %v11245_v32, %v9310_v31  ;;  %2220 = vmatpush.bf16.msra.mxu1 %v9055_v33  ;;  %v425_v31 = vld [vmem:[%s12480_s10 + $0x48] sm:$0xff]  ;;  %p12215_p8 = pnand %p12214_p4, %p12446_p7 }
  0x4e   : > { %v9038_v37 = vld [vmem:[#allocation5 + $0x180] sm:$0xf]  ;;  %v11177_v39 = vld [vmem:[#allocation5 + $0x18c] sm:$0xf0]  ;;  %v8911_v44 = vor.u32 %v11145_v36, %v8910_v35  ;;  %2269 = vmatpush.bf16.msra.mxu2 %v9183_v34 }
  0x4f   : > { %v9166_v40 = vld [vmem:[#allocation5 + $0x280] sm:$0xf]  ;;  %v11209_v41 = vld [vmem:[#allocation5 + $0x28c] sm:$0xf0]  ;;  %v9039_v45 = vor.u32 %v11177_v39, %v9038_v37  ;;  %2318 = vmatpush.bf16.msra.mxu3 %v9311_v38  ;;  %p12216_p11 = pneg %p12215_p8 }
  0x50   : > { %v9294_v42 = vld [vmem:[#allocation5 + $0x380] sm:$0xf]  ;;  %v11241_v43 = vld [vmem:[#allocation5 + $0x38c] sm:$0xf0]  ;;  %v9167_v46 = vor.u32 %v11209_v41, %v9166_v40  ;;  %2172 = vmatpush.bf16.msra.mxu0 %v8911_v44  ;;  %v419_v41 = vld [vmem:[%s12480_s10 + $0x18] sm:$0xff] }
  0x51   : > { %v8894_v47 = vld [vmem:[#allocation5 + $0x60] sm:$0xf]  ;;  %v11141_v48 = vld [vmem:[#allocation5 + $0x6c] sm:$0xf0]  ;;  %v9295_v50 = vor.u32 %v11241_v43, %v9294_v42  ;;  %2221 = vmatpush.bf16.msra.mxu1 %v9039_v45  ;;  %v427_v42 = vld [vmem:[%s12480_s10 + $0x58] sm:$0xff] }
  0x52   : > { %v9022_v49 = vld [vmem:[#allocation5 + $0x160] sm:$0xf]  ;;  %v11173_v51 = vld [vmem:[#allocation5 + $0x16c] sm:$0xf0]  ;;  %v8895_v56 = vor.u32 %v11141_v48, %v8894_v47  ;;  %2270 = vmatpush.bf16.msra.mxu2 %v9167_v46 }
  0x53   : > { %v9150_v52 = vld [vmem:[#allocation5 + $0x260] sm:$0xf]  ;;  %v11205_v53 = vld [vmem:[#allocation5 + $0x26c] sm:$0xf0]  ;;  %v9023_v57 = vor.u32 %v11173_v51, %v9022_v49  ;;  %2319 = vmatpush.bf16.msra.mxu3 %v9295_v50 }
  0x54   : > { %v9278_v54 = vld [vmem:[#allocation5 + $0x360] sm:$0xf]  ;;  %v11237_v55 = vld [vmem:[#allocation5 + $0x36c] sm:$0xf0]  ;;  %v9151_v58 = vor.u32 %v11205_v53, %v9150_v52  ;;  %2173 = vmatpush.bf16.msra.mxu0 %v8895_v56  ;;  %v12504_v53 = vpack.c.bf16 %v425_v31, %v417_v30 }
  0x55   : > { %v8878_v59 = vld [vmem:[#allocation5 + $0x40] sm:$0xf]  ;;  %v11137_v60 = vld [vmem:[#allocation5 + $0x4c] sm:$0xf0]  ;;  %v9279_v62 = vor.u32 %v11237_v55, %v9278_v54  ;;  %2222 = vmatpush.bf16.msra.mxu1 %v9023_v57  ;;  %v12508_v57 = vpack.c.bf16 %v427_v42, %v419_v41  ;;  %v449_v42 = vld [vmem:[%s12480_s10 + $0x108] sm:$0xff] }
  0x56   : > { %v9006_v61 = vld [vmem:[#allocation5 + $0x140] sm:$0xf]  ;;  %v11169_v63 = vld [vmem:[#allocation5 + $0x14c] sm:$0xf0]  ;;  %v8879_v4 = vor.u32 %v11137_v60, %v8878_v59  ;;  %2271 = vmatpush.bf16.msra.mxu2 %v9151_v58 }
  0x57   : > { %v9134_v0 = vld [vmem:[#allocation5 + $0x240] sm:$0xf]  ;;  %v11201_v1 = vld [vmem:[#allocation5 + $0x24c] sm:$0xf0]  ;;  %v9007_v5 = vor.u32 %v11169_v63, %v9006_v61  ;;  %2320 = vmatpush.bf16.msra.mxu3 %v9279_v62  ;;  %14565 = vst [vmem:[#allocation19_spill] sm:$0xff] %v12508_v57 }
  0x58   : > { %v9262_v2 = vld [vmem:[#allocation5 + $0x340] sm:$0xf]  ;;  %v11233_v3 = vld [vmem:[#allocation5 + $0x34c] sm:$0xf0]  ;;  %v9135_v6 = vor.u32 %v11201_v1, %v9134_v0  ;;  %2174 = vmatpush.bf16.msra.mxu0 %v8879_v4 }
  0x59   : > { %v8862_v7 = vld [vmem:[#allocation5 + $0x20] sm:$0xf]  ;;  %v11133_v8 = vld [vmem:[#allocation5 + $0x2c] sm:$0xf0]  ;;  %v9263_v10 = vor.u32 %v11233_v3, %v9262_v2  ;;  %2223 = vmatpush.bf16.msra.mxu1 %v9007_v5 }
  0x5a   : > { %v8990_v9 = vld [vmem:[#allocation5 + $0x120] sm:$0xf]  ;;  %v11165_v11 = vld [vmem:[#allocation5 + $0x12c] sm:$0xf0]  ;;  %v8863_v17 = vor.u32 %v11133_v8, %v8862_v7  ;;  %2272 = vmatpush.bf16.msra.mxu2 %v9135_v6 }
  0x5b   : > { %v9118_v12 = vld [vmem:[#allocation5 + $0x220] sm:$0xf]  ;;  %v11197_v13 = vld [vmem:[#allocation5 + $0x22c] sm:$0xf0]  ;;  %v8991_v21 = vor.u32 %v11165_v11, %v8990_v9  ;;  %2321 = vmatpush.bf16.msra.mxu3 %v9263_v10 }
  0x5c   : > { %v9246_v14 = vld [vmem:[#allocation5 + $0x320] sm:$0xf]  ;;  %v11229_v15 = vld [vmem:[#allocation5 + $0x32c] sm:$0xf0]  ;;  %v9119_v22 = vor.u32 %v11197_v13, %v9118_v12  ;;  %2175 = vmatpush.bf16.msra.mxu0 %v8863_v17 }
  0x5d   : > { %v8846_v16 = vld [vmem:[#allocation5] sm:$0xf]  ;;  %v11129_v18 = vld [vmem:[#allocation5 + $0xc] sm:$0xf0]  ;;  %v9247_v26 = vor.u32 %v11229_v15, %v9246_v14  ;;  %2224 = vmatpush.bf16.msra.mxu1 %v8991_v21 }
  0x5e   : > { %v8974_v19 = vld [vmem:[#allocation5 + $0x100] sm:$0xf]  ;;  %v11161_v20 = vld [vmem:[#allocation5 + $0x10c] sm:$0xf0]  ;;  %v8847_v34 = vor.u32 %v11129_v18, %v8846_v16  ;;  %2273 = vmatpush.bf16.msra.mxu2 %v9119_v22  ;;  %v433_v18 = vld [vmem:[%s12480_s10 + $0x88] sm:$0xff] }
  0x5f   : > { %v9102_v23 = vld [vmem:[#allocation5 + $0x200] sm:$0xf]  ;;  %v11193_v24 = vld [vmem:[#allocation5 + $0x20c] sm:$0xf0]  ;;  %v8975_v38 = vor.u32 %v11161_v20, %v8974_v19  ;;  %2322 = vmatpush.bf16.msra.mxu3 %v9247_v26  ;;  %v441_v19 = vld [vmem:[%s12480_s10 + $0xc8] sm:$0xff] }
  0x60   : > { %v9230_v25 = vld [vmem:[#allocation5 + $0x300] sm:$0xf]  ;;  %v11225_v27 = vld [vmem:[#allocation5 + $0x30c] sm:$0xf0]  ;;  %v9103_v39 = vor.u32 %v11193_v24, %v9102_v23  ;;  %2176 = vmatpush.bf16.msra.mxu0 %v8847_v34  ;;  %v435_v22 = vld [vmem:[%s12480_s10 + $0x98] sm:$0xff] }
  0x61   : > { %v416_v28 = vld [vmem:[%s12480_s10] sm:$0xff]  ;;  %v11349_v33 = vld [vmem:[#allocation5 + $0x6ec] sm:$0xf0]  ;;  %v9231_v43 = vor.u32 %v11225_v27, %v9230_v25  ;;  %2225 = vmatpush.bf16.msra.mxu1 %v8975_v38  ;;  %v443_v23 = vld [vmem:[%s12480_s10 + $0xd8] sm:$0xff]  ;;  %v12524_v25 = vpack.c.bf16 %v441_v19, %v433_v18 }
  0x62   : > { %v424_v29 = vld [vmem:[%s12480_s10 + $0x40] sm:$0xff]  ;;  %v418_v35 = vld [vmem:[%s12480_s10 + $0x10] sm:$0xff]  ;;  %2274 = vmatpush.bf16.msra.mxu2 %v9103_v39  ;;  %v12528_v27 = vpack.c.bf16 %v443_v23, %v435_v22 }
  0x63   : > { %v9726_v32 = vld [vmem:[#allocation5 + $0x6e0] sm:$0xf]  ;;  %v11381_v37 = vld [vmem:[#allocation5 + $0x7ec] sm:$0xf0]  ;;  %v12502_v48 = vpack.c.bf16 %v424_v29, %v416_v28  ;;  %2323 = vmatpush.bf16.msra.mxu3 %v9231_v43  ;;  %v457_v43 = vld [vmem:[%s12480_s10 + $0x148] sm:$0xff] }
  0x64   : > { %v9854_v36 = vld [vmem:[#allocation5 + $0x7e0] sm:$0xf]  ;;  %v426_v40 = vld [vmem:[%s12480_s10 + $0x50] sm:$0xff]  ;;  %v9727_v44 = vor.u32 %v11349_v33, %v9726_v32  ;;  %2226 = vmatmul.bf16.vlgmr.msra.gmra.mxu1 %v12504_v53 }
  0x65   : > { %v9470_v45 = vld [vmem:[#allocation5 + $0x4e0] sm:$0xf]  ;;  %v11285_v46 = vld [vmem:[#allocation5 + $0x4ec] sm:$0xf0]  ;;  %v9855_v49 = vor.u32 %v11381_v37, %v9854_v36  ;;  %v12506_v54 = vpack.c.bf16 %v426_v40, %v418_v35  ;;  %2177 = vmatmul.bf16.vlgmr.msra.gmra.mxu0 %v12502_v48 }
  0x66   : > { %v9598_v47 = vld [vmem:[#allocation5 + $0x5e0] sm:$0xf]  ;;  %v11317_v50 = vld [vmem:[#allocation5 + $0x5ec] sm:$0xf0]  ;;  %v9471_v58 = vor.u32 %v11285_v46, %v9470_v45  ;;  %2463 = vmatpush.bf16.msrb.mxu2 %v9727_v44  ;;  %2324 = vmatmul.bf16.vlgmr.msra.gmra.mxu3 %v12508_v57  ;;  %v451_v46 = vld [vmem:[%s12480_s10 + $0x118] sm:$0xff] }
  0x67   : > { %v9710_v51 = vld [vmem:[#allocation5 + $0x6c0] sm:$0xf]  ;;  %v11345_v52 = vld [vmem:[#allocation5 + $0x6cc] sm:$0xf0]  ;;  %14564 = vst [vmem:[#allocation18_spill] sm:$0xff] %v12506_v54  ;;  %v9599_v59 = vor.u32 %v11317_v50, %v9598_v47  ;;  %2512 = vmatpush.bf16.msrb.mxu3 %v9855_v49  ;;  %2275 = vmatmul.bf16.vlgmr.msra.gmra.mxu2 %v12506_v54  ;;  %v459_v47 = vld [vmem:[%s12480_s10 + $0x158] sm:$0xff]  ;;  %v12544_v50 = vpack.c.bf16 %v457_v43, %v449_v42 }
  0x68   : > { %v9838_v55 = vld [vmem:[#allocation5 + $0x7c0] sm:$0xf]  ;;  %v11377_v56 = vld [vmem:[#allocation5 + $0x7cc] sm:$0xf0]  ;;  %v9711_v60 = vor.u32 %v11345_v52, %v9710_v51  ;;  %2365 = vmatpush.bf16.msrb.mxu0 %v9471_v58  ;;  %v12548_v52 = vpack.c.bf16 %v459_v47, %v451_v46 }
  0x69   : > { %v9454_v61 = vld [vmem:[#allocation5 + $0x4c0] sm:$0xf]  ;;  %v11281_v62 = vld [vmem:[#allocation5 + $0x4cc] sm:$0xf0]  ;;  %v9839_v63 = vor.u32 %v11377_v56, %v9838_v55  ;;  %2414 = vmatpush.bf16.msrb.mxu1 %v9599_v59 }
  0x6a   : > { %v9582_v0 = vld [vmem:[#allocation5 + $0x5c0] sm:$0xf]  ;;  %v11313_v1 = vld [vmem:[#allocation5 + $0x5cc] sm:$0xf0]  ;;  %v9455_v2 = vor.u32 %v11281_v62, %v9454_v61  ;;  %2464 = vmatpush.bf16.msrb.mxu2 %v9711_v60 }
  0x6b   : > { %v9694_v3 = vld [vmem:[#allocation5 + $0x6a0] sm:$0xf]  ;;  %v11341_v4 = vld [vmem:[#allocation5 + $0x6ac] sm:$0xf0]  ;;  %v9583_v6 = vor.u32 %v11313_v1, %v9582_v0  ;;  %2513 = vmatpush.bf16.msrb.mxu3 %v9839_v63 }
  0x6c   : > { %v9438_v5 = vld [vmem:[#allocation5 + $0x4a0] sm:$0xf]  ;;  %v9695_v7 = vor.u32 %v11341_v4, %v9694_v3  ;;  %v11277_v8 = vld [vmem:[#allocation5 + $0x4ac] sm:$0xf0]  ;;  %2366 = vmatpush.bf16.msrb.mxu0 %v9455_v2 }
  0x6d   : > { %v9822_v9 = vld [vmem:[#allocation5 + $0x7a0] sm:$0xf]  ;;  %v11373_v10 = vld [vmem:[#allocation5 + $0x7ac] sm:$0xf0]  ;;  %v9439_v14 = vor.u32 %v11277_v8, %v9438_v5  ;;  %2415 = vmatpush.bf16.msrb.mxu1 %v9583_v6  ;;  %v465_v6 = vld [vmem:[%s12480_s10 + $0x188] sm:$0xff] }
  0x6e   : > { %v9823_v11 = vor.u32 %v11373_v10, %v9822_v9  ;;  %v9566_v12 = vld [vmem:[#allocation5 + $0x5a0] sm:$0xf]  ;;  %v11309_v13 = vld [vmem:[#allocation5 + $0x5ac] sm:$0xf0]  ;;  %2465 = vmatpush.bf16.msrb.mxu2 %v9695_v7  ;;  %v473_v7 = vld [vmem:[%s12480_s10 + $0x1c8] sm:$0xff] }
  0x6f   : > { %v9567_v15 = vor.u32 %v11309_v13, %v9566_v12  ;;  %v432_v16 = vld [vmem:[%s12480_s10 + $0x80] sm:$0xff]  ;;  %v434_v20 = vld [vmem:[%s12480_s10 + $0x90] sm:$0xff]  ;;  %v467_v10 = vld [vmem:[%s12480_s10 + $0x198] sm:$0xff]  ;;  %v12564_v13 = vpack.c.bf16 %v473_v7, %v465_v6 }
  0x70   : > { %2514 = vmatpush.bf16.msrb.mxu3 %v9823_v11  ;;  %v440_v17 = vld [vmem:[%s12480_s10 + $0xc0] sm:$0xff]  ;;  %v442_v21 = vld [vmem:[%s12480_s10 + $0xd0] sm:$0xff]  ;;  %2367 = vmatpush.bf16.msrb.mxu0 %v9439_v14  ;;  %v475_v11 = vld [vmem:[%s12480_s10 + $0x1d8] sm:$0xff] }
  0x71   : > { %2416 = vmatpush.bf16.msrb.mxu1 %v9567_v15  ;;  %v12522_v24 = vpack.c.bf16 %v440_v17, %v432_v16  ;;  %v12526_v26 = vpack.c.bf16 %v442_v21, %v434_v20  ;;  %v9678_v28 = vld [vmem:[#allocation5 + $0x680] sm:$0xf]  ;;  %v11337_v29 = vld [vmem:[#allocation5 + $0x68c] sm:$0xf0]  ;;  %v12568_v15 = vpack.c.bf16 %v475_v11, %v467_v10  ;;  %v499_v6 = vld [vmem:[%s12480_s10 + $0x298] sm:$0xff] }
  0x72   : > { %v9422_v30 = vld [vmem:[#allocation5 + $0x480] sm:$0xf]  ;;  %v9679_v31 = vor.u32 %v11337_v29, %v9678_v28  ;;  %v11273_v32 = vld [vmem:[#allocation5 + $0x48c] sm:$0xf0]  ;;  %v507_v7 = vld [vmem:[%s12480_s10 + $0x2d8] sm:$0xff] }
  0x73   : > { %v9806_v33 = vld [vmem:[#allocation5 + $0x780] sm:$0xf]  ;;  %v11369_v34 = vld [vmem:[#allocation5 + $0x78c] sm:$0xf0]  ;;  %v9423_v35 = vor.u32 %v11273_v32, %v9422_v30  ;;  %v12608_v11 = vpack.c.bf16 %v507_v7, %v499_v6  ;;  %v529_v6 = vld [vmem:[%s12480_s10 + $0x388] sm:$0xff] }
  0x74   : > { %2231 = vmatmul.bf16.gmra.mxu1 %v12524_v25  ;;  %v9807_v36 = vor.u32 %v11369_v34, %v9806_v33  ;;  %v9550_v37 = vld [vmem:[#allocation5 + $0x580] sm:$0xf]  ;;  %v11305_v38 = vld [vmem:[#allocation5 + $0x58c] sm:$0xf0]  ;;  %2466 = vmatpush.bf16.msrb.mxu2 %v9679_v31  ;;  %v481_v34 = vld [vmem:[%s12480_s10 + $0x208] sm:$0xff] }
  0x75   : > { %2182 = vmatmul.bf16.gmra.mxu0 %v12522_v24  ;;  %v9551_v39 = vor.u32 %v11305_v38, %v9550_v37  ;;  %v448_v40 = vld [vmem:[%s12480_s10 + $0x100] sm:$0xff]  ;;  %v450_v44 = vld [vmem:[%s12480_s10 + $0x110] sm:$0xff]  ;;  %v483_v38 = vld [vmem:[%s12480_s10 + $0x218] sm:$0xff] }
  0x76   : > { %2329 = vmatmul.bf16.gmra.mxu3 %v12528_v27  ;;  %2368 = vmatpush.bf16.msrb.mxu0 %v9423_v35  ;;  %v456_v41 = vld [vmem:[%s12480_s10 + $0x140] sm:$0xff]  ;;  %v458_v45 = vld [vmem:[%s12480_s10 + $0x150] sm:$0xff]  ;;  %v489_v35 = vld [vmem:[%s12480_s10 + $0x248] sm:$0xff] }
  0x77   : > { %2280 = vmatmul.bf16.gmra.mxu2 %v12526_v26  ;;  %2515 = vmatpush.bf16.msrb.mxu3 %v9807_v36  ;;  %v12542_v49 = vpack.c.bf16 %v456_v41, %v448_v40  ;;  %v12546_v51 = vpack.c.bf16 %v458_v45, %v450_v44  ;;  %v9662_v55 = vld [vmem:[#allocation5 + $0x660] sm:$0xf]  ;;  %v11333_v56 = vld [vmem:[#allocation5 + $0x66c] sm:$0xf0]  ;;  %v12584_v41 = vpack.c.bf16 %v489_v35, %v481_v34  ;;  %v513_v34 = vld [vmem:[%s12480_s10 + $0x308] sm:$0xff] }
  0x78   : > { %2417 = vmatpush.bf16.msrb.mxu1 %v9551_v39  ;;  %v9406_v58 = vld [vmem:[#allocation5 + $0x460] sm:$0xf]  ;;  %v9663_v59 = vor.u32 %v11333_v56, %v9662_v55  ;;  %v11269_v60 = vld [vmem:[#allocation5 + $0x46c] sm:$0xf0]  ;;  %v491_v39 = vld [vmem:[%s12480_s10 + $0x258] sm:$0xff] }
  0x79   : > { %v9790_v61 = vld [vmem:[#allocation5 + $0x760] sm:$0xf]  ;;  %v11365_v62 = vld [vmem:[#allocation5 + $0x76c] sm:$0xf0]  ;;  %v9407_v63 = vor.u32 %v11269_v60, %v9406_v58  ;;  %v12588_v43 = vpack.c.bf16 %v491_v39, %v483_v38  ;;  %v521_v35 = vld [vmem:[%s12480_s10 + $0x348] sm:$0xff] }
  0x7a   : > { %v9791_v0 = vor.u32 %v11365_v62, %v9790_v61  ;;  %v9534_v1 = vld [vmem:[#allocation5 + $0x560] sm:$0xf]  ;;  %v11301_v2 = vld [vmem:[#allocation5 + $0x56c] sm:$0xf0]  ;;  %2467 = vmatpush.bf16.msrb.mxu2 %v9663_v59  ;;  %v515_v38 = vld [vmem:[%s12480_s10 + $0x318] sm:$0xff] }
  0x7b   : > { %v9535_v3 = vor.u32 %v11301_v2, %v9534_v1  ;;  %2369 = vmatpush.bf16.msrb.mxu0 %v9407_v63  ;;  %v464_v4 = vld [vmem:[%s12480_s10 + $0x180] sm:$0xff]  ;;  %v466_v8 = vld [vmem:[%s12480_s10 + $0x190] sm:$0xff]  ;;  %v497_v2 = vld [vmem:[%s12480_s10 + $0x288] sm:$0xff] }
  0x7c   : > { %2516 = vmatpush.bf16.msrb.mxu3 %v9791_v0  ;;  %v472_v5 = vld [vmem:[%s12480_s10 + $0x1c0] sm:$0xff]  ;;  %v474_v9 = vld [vmem:[%s12480_s10 + $0x1d0] sm:$0xff]  ;;  %v523_v39 = vld [vmem:[%s12480_s10 + $0x358] sm:$0xff] }
  0x7d   : > { %2418 = vmatpush.bf16.msrb.mxu1 %v9535_v3  ;;  %v12562_v12 = vpack.c.bf16 %v472_v5, %v464_v4  ;;  %v12566_v14 = vpack.c.bf16 %v474_v9, %v466_v8  ;;  %v9646_v16 = vld [vmem:[#allocation5 + $0x640] sm:$0xf]  ;;  %v11329_v17 = vld [vmem:[#allocation5 + $0x64c] sm:$0xf0]  ;;  %v505_v3 = vld [vmem:[%s12480_s10 + $0x2c8] sm:$0xff] }
  0x7e   : > { %v9390_v18 = vld [vmem:[#allocation5 + $0x440] sm:$0xf]  ;;  %v9647_v19 = vor.u32 %v11329_v17, %v9646_v16  ;;  %v11265_v20 = vld [vmem:[#allocation5 + $0x44c] sm:$0xf0]  ;;  %v12604_v9 = vpack.c.bf16 %v505_v3, %v497_v2  ;;  %v9088_v2 = vld [vmem:[#allocation5 + $0x1f0] sm:$0xf0] }
  0x7f   : > { %v9774_v21 = vld [vmem:[#allocation5 + $0x740] sm:$0xf]  ;;  %v11361_v22 = vld [vmem:[#allocation5 + $0x74c] sm:$0xf0]  ;;  %v9391_v23 = vor.u32 %v11265_v20, %v9390_v18  ;;  %v537_v7 = vld [vmem:[%s12480_s10 + $0x3c8] sm:$0xff] }
  0x80   : > { %v9775_v28 = vor.u32 %v11361_v22, %v9774_v21  ;;  %v9518_v29 = vld [vmem:[#allocation5 + $0x540] sm:$0xf]  ;;  %v11297_v30 = vld [vmem:[#allocation5 + $0x54c] sm:$0xf0]  ;;  %2468 = vmatpush.bf16.msrb.mxu2 %v9647_v19 }
  0x81   : > { %v9519_v31 = vor.u32 %v11297_v30, %v9518_v29  ;;  %2370 = vmatpush.bf16.msrb.mxu0 %v9391_v23  ;;  %v480_v32 = vld [vmem:[%s12480_s10 + $0x200] sm:$0xff]  ;;  %v482_v36 = vld [vmem:[%s12480_s10 + $0x210] sm:$0xff] }
  0x82   : > { %2517 = vmatpush.bf16.msrb.mxu3 %v9775_v28  ;;  %v488_v33 = vld [vmem:[%s12480_s10 + $0x240] sm:$0xff]  ;;  %v490_v37 = vld [vmem:[%s12480_s10 + $0x250] sm:$0xff] }
  0x83   : > { %2419 = vmatpush.bf16.msrb.mxu1 %v9519_v31  ;;  %v12582_v40 = vpack.c.bf16 %v488_v33, %v480_v32  ;;  %v12586_v42 = vpack.c.bf16 %v490_v37, %v482_v36  ;;  %v9630_v44 = vld [vmem:[#allocation5 + $0x620] sm:$0xf]  ;;  %v11325_v45 = vld [vmem:[#allocation5 + $0x62c] sm:$0xf0] }
  0x84   : > { %2236 = vmatmul.bf16.gmra.mxu1 %v12544_v50  ;;  %v9374_v46 = vld [vmem:[#allocation5 + $0x420] sm:$0xf]  ;;  %v9631_v47 = vor.u32 %v11325_v45, %v9630_v44  ;;  %v11261_v55 = vld [vmem:[#allocation5 + $0x42c] sm:$0xf0]  ;;  %v12624_v45 = vpack.c.bf16 %v521_v35, %v513_v34  ;;  %v9328_v34 = vld [vmem:[#allocation5 + $0x3d0] sm:$0xf0] }
  0x85   : > { %2187 = vmatmul.bf16.gmra.mxu0 %v12542_v49  ;;  %v9758_v56 = vld [vmem:[#allocation5 + $0x720] sm:$0xf]  ;;  %v11357_v58 = vld [vmem:[#allocation5 + $0x72c] sm:$0xf0]  ;;  %v9375_v59 = vor.u32 %v11261_v55, %v9374_v46  ;;  %v11219_v55 = vld [vmem:[#allocation5 + $0x2e4] sm:$0xf] }
  0x86   : > { %2334 = vmatmul.bf16.gmra.mxu3 %v12548_v52  ;;  %v9759_v60 = vor.u32 %v11357_v58, %v9758_v56  ;;  %v9502_v61 = vld [vmem:[#allocation5 + $0x520] sm:$0xf]  ;;  %v11293_v62 = vld [vmem:[#allocation5 + $0x52c] sm:$0xf0]  ;;  %2469 = vmatpush.bf16.msrb.mxu2 %v9631_v47  ;;  %v12628_v47 = vpack.c.bf16 %v523_v39, %v515_v38  ;;  %v9216_v56 = vld [vmem:[#allocation5 + $0x2f0] sm:$0xf0] }
  0x87   : > { %2285 = vmatmul.bf16.gmra.mxu2 %v12546_v51  ;;  %v9503_v63 = vor.u32 %v11293_v62, %v9502_v61  ;;  %2371 = vmatpush.bf16.msrb.mxu0 %v9375_v59  ;;  %v496_v0 = vld [vmem:[%s12480_s10 + $0x280] sm:$0xff]  ;;  %v498_v4 = vld [vmem:[%s12480_s10 + $0x290] sm:$0xff]  ;;  %v9219_v59 = vor.u32 %v11219_v55, %v9216_v56 }
  0x88   : > { %2518 = vmatpush.bf16.msrb.mxu3 %v9759_v60  ;;  %v504_v1 = vld [vmem:[%s12480_s10 + $0x2c0] sm:$0xff]  ;;  %v506_v5 = vld [vmem:[%s12480_s10 + $0x2d0] sm:$0xff]  ;;  %14566 = vst [vmem:[#allocation20_spill] sm:$0xff] %v12628_v47 }
  0x89   : > { %2420 = vmatpush.bf16.msrb.mxu1 %v9503_v63  ;;  %v12602_v8 = vpack.c.bf16 %v504_v1, %v496_v0  ;;  %v12606_v10 = vpack.c.bf16 %v506_v5, %v498_v4  ;;  %v9614_v16 = vld [vmem:[#allocation5 + $0x600] sm:$0xf]  ;;  %v11321_v17 = vld [vmem:[#allocation5 + $0x60c] sm:$0xf0]  ;;  %v11155_v58 = vld [vmem:[#allocation5 + $0xe4] sm:$0xf] }
  0x8a   : > { %v9358_v18 = vld [vmem:[#allocation5 + $0x400] sm:$0xf]  ;;  %v9615_v19 = vor.u32 %v11321_v17, %v9614_v16  ;;  %v11257_v20 = vld [vmem:[#allocation5 + $0x40c] sm:$0xf0]  ;;  %v8960_v60 = vld [vmem:[#allocation5 + $0xf0] sm:$0xf0] }
  0x8b   : > { %v9742_v21 = vld [vmem:[#allocation5 + $0x700] sm:$0xf]  ;;  %v11353_v22 = vld [vmem:[#allocation5 + $0x70c] sm:$0xf0]  ;;  %v9359_v23 = vor.u32 %v11257_v20, %v9358_v18  ;;  %v11251_v61 = vld [vmem:[#allocation5 + $0x3e4] sm:$0xf]  ;;  %v8963_v63 = vor.u32 %v11155_v58, %v8960_v60 }
  0x8c   : > { %v9743_v28 = vor.u32 %v11353_v22, %v9742_v21  ;;  %v9486_v29 = vld [vmem:[#allocation5 + $0x500] sm:$0xf]  ;;  %v11289_v30 = vld [vmem:[#allocation5 + $0x50c] sm:$0xf0]  ;;  %2470 = vmatpush.bf16.msrb.mxu2 %v9615_v19  ;;  %v9344_v62 = vld [vmem:[#allocation5 + $0x3f0] sm:$0xf0]  ;;  %v12644_v21 = vpack.c.bf16 %v537_v7, %v529_v6 }
  0x8d   : > { %v9487_v31 = vor.u32 %v11289_v30, %v9486_v29  ;;  %2372 = vmatpush.bf16.msrb.mxu0 %v9359_v23  ;;  %v512_v32 = vld [vmem:[%s12480_s10 + $0x300] sm:$0xff]  ;;  %v514_v36 = vld [vmem:[%s12480_s10 + $0x310] sm:$0xff]  ;;  %v9347_v0 = vor.u32 %v11251_v61, %v9344_v62  ;;  %v531_v18 = vld [vmem:[%s12480_s10 + $0x398] sm:$0xff] }
  0x8e   : > { %2519 = vmatpush.bf16.msrb.mxu3 %v9743_v28  ;;  %v520_v33 = vld [vmem:[%s12480_s10 + $0x340] sm:$0xff]  ;;  %v522_v37 = vld [vmem:[%s12480_s10 + $0x350] sm:$0xff]  ;;  %v539_v19 = vld [vmem:[%s12480_s10 + $0x3d8] sm:$0xff]  ;;  %14568 = vst [vmem:[#allocation22_spill] sm:$0xff] %v12644_v21 }
  0x8f   : > { %2421 = vmatpush.bf16.msrb.mxu1 %v9487_v31  ;;  %v12622_v44 = vpack.c.bf16 %v520_v33, %v512_v32  ;;  %v12626_v46 = vpack.c.bf16 %v522_v37, %v514_v36  ;;  %v11187_v1 = vld [vmem:[#allocation5 + $0x1e4] sm:$0xf]  ;;  %v530_v16 = vld [vmem:[%s12480_s10 + $0x390] sm:$0xff]  ;;  %v12648_v23 = vpack.c.bf16 %v539_v19, %v531_v18  ;;  %v412_v37 = vld [vmem:[#allocation8] sm:$0xf] }
  0x90   : > { %2659 = vmatpush.bf16.msra.mxu2 %v9219_v59  ;;  %v9091_v3 = vor.u32 %v11187_v1, %v9088_v2  ;;  %v528_v4 = vld [vmem:[%s12480_s10 + $0x380] sm:$0xff]  ;;  %v538_v17 = vld [vmem:[%s12480_s10 + $0x3d0] sm:$0xff]  ;;  %v421_v59 = vld [vmem:[%s12480_s10 + $0x28] sm:$0xff]  ;;  %v12657_v60 = vperm.slane %v412_v37, 0 }
  0x91   : > { %2561 = vmatpush.bf16.msra.mxu0 %v8963_v63  ;;  %v536_v5 = vld [vmem:[%s12480_s10 + $0x3c0] sm:$0xff]  ;;  %v12646_v22 = vpack.c.bf16 %v538_v17, %v530_v16  ;;  %14570 = vst [vmem:[#allocation24_spill] sm:$0xff] %v12648_v23  ;;  %v9200_v29 = vld [vmem:[#allocation5 + $0x2d0] sm:$0xf0]  ;;  %v429_v61 = vld [vmem:[%s12480_s10 + $0x68] sm:$0xff] }
  0x92   : > { %2708 = vmatpush.bf16.msra.mxu3 %v9347_v0  ;;  %v12642_v20 = vpack.c.bf16 %v536_v5, %v528_v4  ;;  %v11215_v28 = vld [vmem:[#allocation5 + $0x2c4] sm:$0xf]  ;;  %v8944_v32 = vld [vmem:[#allocation5 + $0xd0] sm:$0xf0]  ;;  %v423_v0 = vld [vmem:[%s12480_s10 + $0x38] sm:$0xff]  ;;  %v12666_v4 = vpack.c.bf16 %v429_v61, %v421_v59 }
  0x93   : > { %2610 = vmatpush.bf16.msra.mxu1 %v9091_v3  ;;  %14569 = vst [vmem:[#allocation23_spill] sm:$0xff] %v12646_v22  ;;  %v11151_v30 = vld [vmem:[#allocation5 + $0xc4] sm:$0xf]  ;;  %v9203_v31 = vor.u32 %v11215_v28, %v9200_v29  ;;  %v9072_v39 = vld [vmem:[#allocation5 + $0x1d0] sm:$0xf0]  ;;  %v431_v1 = vld [vmem:[%s12480_s10 + $0x78] sm:$0xff] }
  0x94   : > { %2241 = vmatmul.bf16.gmra.mxu1 %v12564_v13  ;;  %14567 = vst [vmem:[#allocation21_spill] sm:$0xff] %v12642_v20  ;;  %v11247_v33 = vld [vmem:[#allocation5 + $0x3c4] sm:$0xf]  ;;  %v8947_v35 = vor.u32 %v11151_v30, %v8944_v32  ;;  %v422_v62 = vld [vmem:[%s12480_s10 + $0x30] sm:$0xff]  ;;  %v12671_v16 = vpack.c.bf16 %v431_v1, %v423_v0  ;;  %v437_v1 = vld [vmem:[%s12480_s10 + $0xa8] sm:$0xff] }
  0x95   : > { %2192 = vmatmul.bf16.gmra.mxu0 %v12562_v12  ;;  %v9331_v36 = vor.u32 %v11247_v33, %v9328_v34  ;;  %2660 = vmatpush.bf16.msra.mxu2 %v9203_v31  ;;  %v11183_v38 = vld [vmem:[#allocation5 + $0x1c4] sm:$0xf]  ;;  %v430_v63 = vld [vmem:[%s12480_s10 + $0x70] sm:$0xff]  ;;  %14572 = vst [vmem:[#allocation26_spill] sm:$0xff] %v12666_v4 }
  0x96   : > { %2339 = vmatmul.bf16.gmra.mxu3 %v12568_v15  ;;  %2562 = vmatpush.bf16.msra.mxu0 %v8947_v35  ;;  %v9075_v55 = vor.u32 %v11183_v38, %v9072_v39  ;;  %v420_v56 = vld [vmem:[%s12480_s10 + $0x20] sm:$0xff]  ;;  %v12668_v5 = vpack.c.bf16 %v430_v63, %v422_v62  ;;  %14574 = vst [vmem:[#allocation28_spill] sm:$0xff] %v12671_v16  ;;  %v9184_v19 = vld [vmem:[#allocation5 + $0x2b0] sm:$0xf0] }
  0x97   : > { %2290 = vmatmul.bf16.gmra.mxu2 %v12566_v14  ;;  %2709 = vmatpush.bf16.msra.mxu3 %v9331_v36  ;;  %v428_v58 = vld [vmem:[%s12480_s10 + $0x60] sm:$0xff]  ;;  %v8928_v30 = vld [vmem:[#allocation5 + $0xb0] sm:$0xf0] }
  0x98   : > { %2611 = vmatpush.bf16.msra.mxu1 %v9075_v55  ;;  %v12664_v2 = vpack.c.bf16 %v428_v58, %v420_v56  ;;  %14573 = vst [vmem:[#allocation27_spill] sm:$0xff] %v12668_v5  ;;  %v11211_v18 = vld [vmem:[#allocation5 + $0x2a4] sm:$0xf]  ;;  %v9312_v32 = vld [vmem:[#allocation5 + $0x3b0] sm:$0xf0] }
  0x99   : > { %v11147_v28 = vld [vmem:[#allocation5 + $0xa4] sm:$0xf]  ;;  %v9187_v29 = vor.u32 %v11211_v18, %v9184_v19  ;;  %v9056_v59 = vld [vmem:[#allocation5 + $0x1b0] sm:$0xf0]  ;;  %v447_v18 = vld [vmem:[%s12480_s10 + $0xf8] sm:$0xff] }
  0x9a   : > { %14571 = vst [vmem:[#allocation25_spill] sm:$0xff] %v12664_v2  ;;  %v11243_v31 = vld [vmem:[#allocation5 + $0x3a4] sm:$0xf]  ;;  %v8931_v34 = vor.u32 %v11147_v28, %v8928_v30 }
  0x9b   : > { %v9315_v35 = vor.u32 %v11243_v31, %v9312_v32  ;;  %2661 = vmatpush.bf16.msra.mxu2 %v9187_v29  ;;  %v11179_v58 = vld [vmem:[#allocation5 + $0x1a4] sm:$0xf] }
  0x9c   : > { %2563 = vmatpush.bf16.msra.mxu0 %v8931_v34  ;;  %v9059_v62 = vor.u32 %v11179_v58, %v9056_v59  ;;  %v436_v63 = vld [vmem:[%s12480_s10 + $0xa0] sm:$0xff] }
  0x9d   : > { %2710 = vmatpush.bf16.msra.mxu3 %v9315_v35  ;;  %v444_v0 = vld [vmem:[%s12480_s10 + $0xe0] sm:$0xff] }
  0x9e   : > { %2612 = vmatpush.bf16.msra.mxu1 %v9059_v62  ;;  %v12688_v28 = vpack.c.bf16 %v444_v0, %v436_v63  ;;  %v11143_v58 = vld [vmem:[#allocation5 + $0x84] sm:$0xf]  ;;  %v9296_v63 = vld [vmem:[#allocation5 + $0x390] sm:$0xf0] }
  0x9f   : > { %v11239_v62 = vld [vmem:[#allocation5 + $0x384] sm:$0xf] }
  0xa0   : > { %14575 = vst [vmem:[#allocation29_spill] sm:$0xff] %v12688_v28 }
  0xa4   : > { %2246 = vmatmul.bf16.gmra.mxu1 %v12584_v41 }
  0xa5   : > { %2197 = vmatmul.bf16.gmra.mxu0 %v12582_v40 }
  0xa6   : > { %2344 = vmatmul.bf16.gmra.mxu3 %v12588_v43 }
  0xa7   : > { %2295 = vmatmul.bf16.gmra.mxu2 %v12586_v42 }
  0xb4   : > { %2251 = vmatmul.bf16.gmra.mxu1 %v12604_v9 }
  0xb5   : > { %2202 = vmatmul.bf16.gmra.mxu0 %v12602_v8 }
  0xb6   : > { %2349 = vmatmul.bf16.gmra.mxu3 %v12608_v11 }
  0xb7   : > { %2300 = vmatmul.bf16.gmra.mxu2 %v12606_v10 }
  0xc4   : > { %2256 = vmatmul.bf16.gmra.mxu1 %v12624_v45 }
  0xc5   : > { %2207 = vmatmul.bf16.gmra.mxu0 %v12622_v44 }
  0xc6   : > { %2354 = vmatmul.bf16.gmra.mxu3 %v12628_v47 }
  0xc7   : > { %2305 = vmatmul.bf16.gmra.mxu2 %v12626_v46 }
  0xd4   : > { %2261 = vmatmul.bf16.gmra.mxu1 %v12644_v21 }
  0xd5   : > { %2212 = vmatmul.bf16.gmra.mxu0 %v12642_v20 }
  0xd6   : > { %2359 = vmatmul.bf16.gmra.mxu3 %v12648_v23 }
  0xd7   : > { %2310 = vmatmul.bf16.gmra.mxu2 %v12646_v22 }
  0xe1   : > { %v2227_v7 = vpop.f32.mrf.mxu1 }
  0xe2   : > { %v2178_v3 = vpop.f32.mrf.mxu0 }
  0xe3   : > { %v2179_v6 = vadd.f32 %v2178_v3, %v12657_v60  ;;  %v445_v3 = vld [vmem:[%s12480_s10 + $0xe8] sm:$0xff] }
  0xe4   : > { %2422 = vmatmul.bf16.vlgmr.msrb.gmra.mxu1 %v12666_v4  ;;  %v12690_v32 = vpack.c.bf16 %v445_v3, %v437_v1  ;;  %v9299_v3 = vor.u32 %v11239_v62, %v9296_v63  ;;  %v462_v62 = vld [vmem:[%s12480_s10 + $0x170] sm:$0xff]  ;;  %v463_v63 = vld [vmem:[%s12480_s10 + $0x178] sm:$0xff] }
  0xe5   : > { %v2228_v17 = vadd.f32 %v2227_v7, %v2179_v6  ;;  %2373 = vmatmul.bf16.vlgmr.msrb.gmra.mxu0 %v12664_v2  ;;  %v438_v6 = vld [vmem:[%s12480_s10 + $0xb0] sm:$0xff] }
  0xe6   : > { %2520 = vmatmul.bf16.vlgmr.msrb.gmra.mxu3 %v12671_v16  ;;  %v446_v7 = vld [vmem:[%s12480_s10 + $0xf0] sm:$0xff]  ;;  %14576 = vst [vmem:[#allocation30_spill] sm:$0xff] %v12690_v32 }
  0xe7   : > { %2471 = vmatmul.bf16.vlgmr.msrb.gmra.mxu2 %v12668_v5  ;;  %2711 = vmatpush.bf16.msra.mxu3 %v9299_v3 }
  0xe9   : > { %v2325_v37 = vpop.f32.mrf.mxu3  ;;  %v2229_v55 = vpop.f32.mrf.mxu1 }
  0xea   : > { %v2276_v33 = vpop.f32.mrf.mxu2  ;;  %v2180_v38 = vpop.f32.mrf.mxu0 }
  0xeb   : > { %v2277_v36 = vadd.f32 %v2276_v33, %v2228_v17  ;;  %v2181_v39 = vadd.f32 %v2180_v38, %v12657_v60  ;;  %v439_v17 = vld [vmem:[%s12480_s10 + $0xb8] sm:$0xff]  ;;  %v12692_v33 = vpack.c.bf16 %v446_v7, %v438_v6 }
  0xed   : > { %v12678_v56 = vadd.f32 %v2325_v37, %v2277_v36  ;;  %v2230_v61 = vadd.f32 %v2229_v55, %v2181_v39  ;;  %14577 = vst [vmem:[#allocation31_spill] sm:$0xff] %v12692_v33  ;;  %v12695_v36 = vpack.c.bf16 %v447_v18, %v439_v17  ;;  %v11207_v39 = vld [vmem:[#allocation5 + $0x284] sm:$0xf]  ;;  %v9168_v55 = vld [vmem:[#allocation5 + $0x290] sm:$0xf0] }
  0xee   : > { %v9171_v59 = vor.u32 %v11207_v39, %v9168_v55  ;;  %v460_v39 = vld [vmem:[%s12480_s10 + $0x160] sm:$0xff]  ;;  %v453_v55 = vld [vmem:[%s12480_s10 + $0x128] sm:$0xff] }
  0xef   : > { %14578 = vst [vmem:[#allocation32_spill] sm:$0xff] %v12695_v36 }
  0xf0   : > { %2662 = vmatpush.bf16.msra.mxu2 %v9171_v59  ;;  %v455_v59 = vld [vmem:[%s12480_s10 + $0x138] sm:$0xff] }
  0xf1   : > { %v2327_v30 = vpop.f32.mrf.mxu3  ;;  %v2232_v35 = vpop.f32.mrf.mxu1 }
  0xf2   : > { %v2278_v19 = vpop.f32.mrf.mxu2  ;;  %v2183_v31 = vpop.f32.mrf.mxu0 }
  0xf3   : > { %v2279_v29 = vadd.f32 %v2278_v19, %v2230_v61  ;;  %v2184_v34 = vadd.f32 %v2183_v31, %v12657_v60  ;;  %v8912_v61 = vld [vmem:[#allocation5 + $0x90] sm:$0xf0] }
  0xf4   : > { %2427 = vmatmul.bf16.gmra.mxu1 %v12690_v32  ;;  %v8915_v1 = vor.u32 %v11143_v58, %v8912_v61  ;;  %v9040_v31 = vld [vmem:[#allocation5 + $0x190] sm:$0xf0]  ;;  %v461_v58 = vld [vmem:[%s12480_s10 + $0x168] sm:$0xff] }
  0xf5   : > { %v12697_v37 = vadd.f32 %v2327_v30, %v2279_v29  ;;  %v2233_v38 = vadd.f32 %v2232_v35, %v2184_v34  ;;  %2378 = vmatmul.bf16.gmra.mxu0 %v12688_v28  ;;  %v11175_v30 = vld [vmem:[#allocation5 + $0x184] sm:$0xf]  ;;  %v454_v61 = vld [vmem:[%s12480_s10 + $0x130] sm:$0xff] }
  0xf6   : > { %2525 = vmatmul.bf16.gmra.mxu3 %v12695_v36  ;;  %2564 = vmatpush.bf16.msra.mxu0 %v8915_v1  ;;  %v9043_v35 = vor.u32 %v11175_v30, %v9040_v31  ;;  %v12718_v36 = vpack.c.bf16 %v462_v62, %v454_v61  ;;  %v12721_v30 = vpack.c.bf16 %v463_v63, %v455_v59  ;;  %v11235_v61 = vld [vmem:[#allocation5 + $0x364] sm:$0xf]  ;;  %v9280_v62 = vld [vmem:[#allocation5 + $0x370] sm:$0xf0] }
  0xf7   : > { %2476 = vmatmul.bf16.gmra.mxu2 %v12692_v33 }
  0xf8   : > { %2613 = vmatpush.bf16.msra.mxu1 %v9043_v35  ;;  %14581 = vst [vmem:[#allocation35_spill] sm:$0xff] %v12718_v36 }
  0xf9   : > { %v2330_v7 = vpop.f32.mrf.mxu3  ;;  %v2234_v19 = vpop.f32.mrf.mxu1  ;;  %14582 = vst [vmem:[#allocation36_spill] sm:$0xff] %v12721_v30 }
  0xfa   : > { %v2281_v0 = vpop.f32.mrf.mxu2  ;;  %v2185_v17 = vpop.f32.mrf.mxu0 }
  0xfb   : > { %v2282_v6 = vadd.f32 %v2281_v0, %v2233_v38  ;;  %v2186_v18 = vadd.f32 %v2185_v17, %v12657_v60  ;;  %v452_v38 = vld [vmem:[%s12480_s10 + $0x120] sm:$0xff] }
  0xfc   : > { %v12714_v17 = vpack.c.bf16 %v460_v39, %v452_v38  ;;  %v9152_v38 = vld [vmem:[#allocation5 + $0x270] sm:$0xf0]  ;;  %v11139_v39 = vld [vmem:[#allocation5 + $0x64] sm:$0xf] }
  0xfd   : > { %v12704_v29 = vadd.f32 %v2330_v7, %v2282_v6  ;;  %v2235_v34 = vadd.f32 %v2234_v19, %v2186_v18  ;;  %v12716_v7 = vpack.c.bf16 %v461_v58, %v453_v55  ;;  %v8896_v58 = vld [vmem:[#allocation5 + $0x70] sm:$0xf0] }
  0xfe   : > { %14579 = vst [vmem:[#allocation33_spill] sm:$0xff] %v12714_v17  ;;  %v8899_v63 = vor.u32 %v11139_v39, %v8896_v58  ;;  %v9024_v39 = vld [vmem:[#allocation5 + $0x170] sm:$0xf0] }
  0xff   : > { %14580 = vst [vmem:[#allocation34_spill] sm:$0xff] %v12716_v7 }
 0x100   : > { %2565 = vmatpush.bf16.msra.mxu0 %v8899_v63 }
 0x101   : > { %v2332_v3 = vpop.f32.mrf.mxu3  ;;  %v2237_v19 = vpop.f32.mrf.mxu1 }
 0x102   : > { %v2283_v0 = vpop.f32.mrf.mxu2  ;;  %v2188_v6 = vpop.f32.mrf.mxu0 }
 0x103   : > { %v2284_v1 = vadd.f32 %v2283_v0, %v2235_v34  ;;  %v2189_v18 = vadd.f32 %v2188_v6, %v12657_v60  ;;  %v11203_v34 = vld [vmem:[#allocation5 + $0x264] sm:$0xf]  ;;  %v9283_v0 = vor.u32 %v11235_v61, %v9280_v62 }
 0x104   : > { %2432 = vmatmul.bf16.gmra.mxu1 %v12716_v7  ;;  %v9155_v55 = vor.u32 %v11203_v34, %v9152_v38  ;;  %v11171_v38 = vld [vmem:[#allocation5 + $0x164] sm:$0xf]  ;;  %v478_v7 = vld [vmem:[%s12480_s10 + $0x1f0] sm:$0xff] }
 0x105   : > { %v12723_v31 = vadd.f32 %v2332_v3, %v2284_v1  ;;  %v2238_v35 = vadd.f32 %v2237_v19, %v2189_v18  ;;  %2383 = vmatmul.bf16.gmra.mxu0 %v12714_v17  ;;  %2712 = vmatpush.bf16.msra.mxu3 %v9283_v0  ;;  %v9027_v61 = vor.u32 %v11171_v38, %v9024_v39  ;;  %v476_v62 = vld [vmem:[%s12480_s10 + $0x1e0] sm:$0xff] }
 0x106   : > { %2530 = vmatmul.bf16.gmra.mxu3 %v12721_v30  ;;  %2663 = vmatpush.bf16.msra.mxu2 %v9155_v55  ;;  %v477_v30 = vld [vmem:[%s12480_s10 + $0x1e8] sm:$0xff]  ;;  %v471_v55 = vld [vmem:[%s12480_s10 + $0x1b8] sm:$0xff] }
 0x107   : > { %2481 = vmatmul.bf16.gmra.mxu2 %v12718_v36  ;;  %v470_v36 = vld [vmem:[%s12480_s10 + $0x1b0] sm:$0xff]  ;;  %2614 = vmatpush.bf16.msra.mxu1 %v9027_v61 }
 0x108   : > { %v12744_v32 = vpack.c.bf16 %v478_v7, %v470_v36  ;;  %v11135_v36 = vld [vmem:[#allocation5 + $0x44] sm:$0xf] }
 0x109   : > { %v2335_v3 = vpop.f32.mrf.mxu3  ;;  %v2239_v19 = vpop.f32.mrf.mxu1 }
 0x10a   : > { %v2286_v59 = vpop.f32.mrf.mxu2  ;;  %v2190_v6 = vpop.f32.mrf.mxu0  ;;  %14585 = vst [vmem:[#allocation39_spill] sm:$0xff] %v12744_v32 }
 0x10b   : > { %v2287_v1 = vadd.f32 %v2286_v59, %v2238_v35  ;;  %v2191_v18 = vadd.f32 %v2190_v6, %v12657_v60  ;;  %v468_v35 = vld [vmem:[%s12480_s10 + $0x1a0] sm:$0xff]  ;;  %v469_v59 = vld [vmem:[%s12480_s10 + $0x1a8] sm:$0xff]  ;;  %v479_v6 = vld [vmem:[%s12480_s10 + $0x1f8] sm:$0xff] }
 0x10c   : > { %v12740_v33 = vpack.c.bf16 %v476_v62, %v468_v35  ;;  %v12747_v38 = vpack.c.bf16 %v479_v6, %v471_v55  ;;  %v11231_v35 = vld [vmem:[#allocation5 + $0x344] sm:$0xf]  ;;  %v9264_v62 = vld [vmem:[#allocation5 + $0x350] sm:$0xf0] }
 0x10d   : > { %v12730_v34 = vadd.f32 %v2335_v3, %v2287_v1  ;;  %v2240_v58 = vadd.f32 %v2239_v19, %v2191_v18  ;;  %v12742_v3 = vpack.c.bf16 %v477_v30, %v469_v59  ;;  %v9136_v30 = vld [vmem:[#allocation5 + $0x250] sm:$0xf0]  ;;  %v9267_v6 = vor.u32 %v11231_v35, %v9264_v62  ;;  %v492_v62 = vld [vmem:[%s12480_s10 + $0x260] sm:$0xff] }
 0x10e   : > { %14583 = vst [vmem:[#allocation37_spill] sm:$0xff] %v12740_v33 }
 0x10f   : > { %14584 = vst [vmem:[#allocation38_spill] sm:$0xff] %v12742_v3  ;;  %2713 = vmatpush.bf16.msra.mxu3 %v9267_v6 }
 0x110   : > { %14586 = vst [vmem:[#allocation40_spill] sm:$0xff] %v12747_v38 }
 0x111   : > { %v2337_v0 = vpop.f32.mrf.mxu3  ;;  %v2242_v19 = vpop.f32.mrf.mxu1 }
 0x112   : > { %v2288_v17 = vpop.f32.mrf.mxu2  ;;  %v2193_v1 = vpop.f32.mrf.mxu0 }
 0x113   : > { %v2289_v63 = vadd.f32 %v2288_v17, %v2240_v58  ;;  %v2194_v18 = vadd.f32 %v2193_v1, %v12657_v60  ;;  %v11199_v17 = vld [vmem:[#allocation5 + $0x244] sm:$0xf]  ;;  %v8880_v58 = vld [vmem:[#allocation5 + $0x50] sm:$0xf0] }
 0x114   : > { %2437 = vmatmul.bf16.gmra.mxu1 %v12742_v3  ;;  %v9139_v7 = vor.u32 %v11199_v17, %v9136_v30  ;;  %v8883_v55 = vor.u32 %v11135_v36, %v8880_v58  ;;  %v11167_v30 = vld [vmem:[#allocation5 + $0x144] sm:$0xf]  ;;  %v9008_v36 = vld [vmem:[#allocation5 + $0x150] sm:$0xf0] }
 0x115   : > { %v12749_v39 = vadd.f32 %v2337_v0, %v2289_v63  ;;  %v2243_v61 = vadd.f32 %v2242_v19, %v2194_v18  ;;  %2388 = vmatmul.bf16.gmra.mxu0 %v12740_v33  ;;  %v9011_v35 = vor.u32 %v11167_v30, %v9008_v36  ;;  %v494_v3 = vld [vmem:[%s12480_s10 + $0x270] sm:$0xff] }
 0x116   : > { %2535 = vmatmul.bf16.gmra.mxu3 %v12747_v38  ;;  %2664 = vmatpush.bf16.msra.mxu2 %v9139_v7  ;;  %v493_v38 = vld [vmem:[%s12480_s10 + $0x268] sm:$0xff]  ;;  %v487_v7 = vld [vmem:[%s12480_s10 + $0x238] sm:$0xff] }
 0x117   : > { %2486 = vmatmul.bf16.gmra.mxu2 %v12744_v32  ;;  %2566 = vmatpush.bf16.msra.mxu0 %v8883_v55  ;;  %v486_v32 = vld [vmem:[%s12480_s10 + $0x230] sm:$0xff] }
 0x118   : > { %2615 = vmatpush.bf16.msra.mxu1 %v9011_v35  ;;  %v12770_v16 = vpack.c.bf16 %v494_v3, %v486_v32  ;;  %v11131_v32 = vld [vmem:[#allocation5 + $0x24] sm:$0xf] }
 0x119   : > { %v2340_v0 = vpop.f32.mrf.mxu3  ;;  %v2244_v19 = vpop.f32.mrf.mxu1 }
 0x11a   : > { %v2291_v59 = vpop.f32.mrf.mxu2  ;;  %v2195_v1 = vpop.f32.mrf.mxu0  ;;  %14589 = vst [vmem:[#allocation43_spill] sm:$0xff] %v12770_v16 }
 0x11b   : > { %v2292_v63 = vadd.f32 %v2291_v59, %v2243_v61  ;;  %v2196_v18 = vadd.f32 %v2195_v1, %v12657_v60  ;;  %v484_v61 = vld [vmem:[%s12480_s10 + $0x220] sm:$0xff]  ;;  %v485_v59 = vld [vmem:[%s12480_s10 + $0x228] sm:$0xff]  ;;  %v495_v1 = vld [vmem:[%s12480_s10 + $0x278] sm:$0xff] }
 0x11c   : > { %v12766_v28 = vpack.c.bf16 %v492_v62, %v484_v61  ;;  %v12773_v30 = vpack.c.bf16 %v495_v1, %v487_v7  ;;  %v11227_v61 = vld [vmem:[#allocation5 + $0x324] sm:$0xf]  ;;  %v9248_v62 = vld [vmem:[#allocation5 + $0x330] sm:$0xf0] }
 0x11d   : > { %v12756_v17 = vadd.f32 %v2340_v0, %v2292_v63  ;;  %v2245_v58 = vadd.f32 %v2244_v19, %v2196_v18  ;;  %v12768_v0 = vpack.c.bf16 %v493_v38, %v485_v59  ;;  %v9120_v38 = vld [vmem:[#allocation5 + $0x230] sm:$0xf0]  ;;  %v9251_v1 = vor.u32 %v11227_v61, %v9248_v62  ;;  %v508_v62 = vld [vmem:[%s12480_s10 + $0x2e0] sm:$0xff] }
 0x11e   : > { %14587 = vst [vmem:[#allocation41_spill] sm:$0xff] %v12766_v28 }
 0x11f   : > { %14588 = vst [vmem:[#allocation42_spill] sm:$0xff] %v12768_v0  ;;  %2714 = vmatpush.bf16.msra.mxu3 %v9251_v1 }
 0x120   : > { %14590 = vst [vmem:[#allocation44_spill] sm:$0xff] %v12773_v30 }
 0x121   : > { %v2342_v6 = vpop.f32.mrf.mxu3  ;;  %v2247_v19 = vpop.f32.mrf.mxu1 }
 0x122   : > { %v2293_v33 = vpop.f32.mrf.mxu2  ;;  %v2198_v63 = vpop.f32.mrf.mxu0 }
 0x123   : > { %v2294_v55 = vadd.f32 %v2293_v33, %v2245_v58  ;;  %v2199_v18 = vadd.f32 %v2198_v63, %v12657_v60  ;;  %v11195_v33 = vld [vmem:[#allocation5 + $0x224] sm:$0xf]  ;;  %v8864_v58 = vld [vmem:[#allocation5 + $0x30] sm:$0xf0] }
 0x124   : > { %2442 = vmatmul.bf16.gmra.mxu1 %v12768_v0  ;;  %v9123_v3 = vor.u32 %v11195_v33, %v9120_v38  ;;  %v8867_v7 = vor.u32 %v11131_v32, %v8864_v58  ;;  %v11163_v38 = vld [vmem:[#allocation5 + $0x124] sm:$0xf]  ;;  %v8992_v32 = vld [vmem:[#allocation5 + $0x130] sm:$0xf0] }
 0x125   : > { %v12775_v36 = vadd.f32 %v2342_v6, %v2294_v55  ;;  %v2248_v35 = vadd.f32 %v2247_v19, %v2199_v18  ;;  %2393 = vmatmul.bf16.gmra.mxu0 %v12766_v28  ;;  %v8995_v61 = vor.u32 %v11163_v38, %v8992_v32  ;;  %v510_v0 = vld [vmem:[%s12480_s10 + $0x2f0] sm:$0xff] }
 0x126   : > { %2540 = vmatmul.bf16.gmra.mxu3 %v12773_v30  ;;  %2665 = vmatpush.bf16.msra.mxu2 %v9123_v3  ;;  %v509_v30 = vld [vmem:[%s12480_s10 + $0x2e8] sm:$0xff]  ;;  %v503_v3 = vld [vmem:[%s12480_s10 + $0x2b8] sm:$0xff] }
 0x127   : > { %2491 = vmatmul.bf16.gmra.mxu2 %v12770_v16  ;;  %2567 = vmatpush.bf16.msra.mxu0 %v8867_v7  ;;  %v502_v16 = vld [vmem:[%s12480_s10 + $0x2b0] sm:$0xff] }
 0x128   : > { %2616 = vmatpush.bf16.msra.mxu1 %v8995_v61  ;;  %v12796_v4 = vpack.c.bf16 %v510_v0, %v502_v16  ;;  %v11127_v16 = vld [vmem:[#allocation5 + $0x4] sm:$0xf] }
 0x129   : > { %v2345_v6 = vpop.f32.mrf.mxu3  ;;  %v2249_v19 = vpop.f32.mrf.mxu1 }
 0x12a   : > { %v2296_v59 = vpop.f32.mrf.mxu2  ;;  %v2200_v63 = vpop.f32.mrf.mxu0  ;;  %14593 = vst [vmem:[#allocation47_spill] sm:$0xff] %v12796_v4 }
 0x12b   : > { %v2297_v55 = vadd.f32 %v2296_v59, %v2248_v35  ;;  %v2201_v18 = vadd.f32 %v2200_v63, %v12657_v60  ;;  %v500_v35 = vld [vmem:[%s12480_s10 + $0x2a0] sm:$0xff]  ;;  %v501_v59 = vld [vmem:[%s12480_s10 + $0x2a8] sm:$0xff]  ;;  %v511_v63 = vld [vmem:[%s12480_s10 + $0x2f8] sm:$0xff] }
 0x12c   : > { %v12792_v5 = vpack.c.bf16 %v508_v62, %v500_v35  ;;  %v12799_v38 = vpack.c.bf16 %v511_v63, %v503_v3  ;;  %v11223_v35 = vld [vmem:[#allocation5 + $0x304] sm:$0xf]  ;;  %v9232_v62 = vld [vmem:[#allocation5 + $0x310] sm:$0xf0] }
 0x12d   : > { %v12782_v33 = vadd.f32 %v2345_v6, %v2297_v55  ;;  %v2250_v58 = vadd.f32 %v2249_v19, %v2201_v18  ;;  %v12794_v6 = vpack.c.bf16 %v509_v30, %v501_v59  ;;  %v9104_v30 = vld [vmem:[#allocation5 + $0x210] sm:$0xf0]  ;;  %v9235_v63 = vor.u32 %v11223_v35, %v9232_v62  ;;  %v524_v62 = vld [vmem:[%s12480_s10 + $0x360] sm:$0xff] }
 0x12e   : > { %14591 = vst [vmem:[#allocation45_spill] sm:$0xff] %v12792_v5 }
 0x12f   : > { %14592 = vst [vmem:[#allocation46_spill] sm:$0xff] %v12794_v6  ;;  %2715 = vmatpush.bf16.msra.mxu3 %v9235_v63 }
 0x130   : > { %14594 = vst [vmem:[#allocation48_spill] sm:$0xff] %v12799_v38 }
 0x131   : > { %v2347_v1 = vpop.f32.mrf.mxu3  ;;  %v2252_v19 = vpop.f32.mrf.mxu1 }
 0x132   : > { %v2298_v28 = vpop.f32.mrf.mxu2  ;;  %v2203_v55 = vpop.f32.mrf.mxu0 }
 0x133   : > { %v2299_v7 = vadd.f32 %v2298_v28, %v2250_v58  ;;  %v2204_v18 = vadd.f32 %v2203_v55, %v12657_v60  ;;  %v11191_v28 = vld [vmem:[#allocation5 + $0x204] sm:$0xf]  ;;  %v8848_v58 = vld [vmem:[#allocation5 + $0x10] sm:$0xf0] }
 0x134   : > { %2447 = vmatmul.bf16.gmra.mxu1 %v12794_v6  ;;  %v9107_v0 = vor.u32 %v11191_v28, %v9104_v30  ;;  %v8851_v3 = vor.u32 %v11127_v16, %v8848_v58  ;;  %v11159_v30 = vld [vmem:[#allocation5 + $0x104] sm:$0xf]  ;;  %v8976_v16 = vld [vmem:[#allocation5 + $0x110] sm:$0xf0] }
 0x135   : > { %v12801_v32 = vadd.f32 %v2347_v1, %v2299_v7  ;;  %v2253_v61 = vadd.f32 %v2252_v19, %v2204_v18  ;;  %2398 = vmatmul.bf16.gmra.mxu0 %v12792_v5  ;;  %v8979_v35 = vor.u32 %v11159_v30, %v8976_v16  ;;  %v526_v6 = vld [vmem:[%s12480_s10 + $0x370] sm:$0xff] }
 0x136   : > { %2545 = vmatmul.bf16.gmra.mxu3 %v12799_v38  ;;  %2666 = vmatpush.bf16.msra.mxu2 %v9107_v0  ;;  %v525_v38 = vld [vmem:[%s12480_s10 + $0x368] sm:$0xff]  ;;  %v519_v0 = vld [vmem:[%s12480_s10 + $0x338] sm:$0xff] }
 0x137   : > { %2496 = vmatmul.bf16.gmra.mxu2 %v12796_v4  ;;  %2568 = vmatpush.bf16.msra.mxu0 %v8851_v3  ;;  %v518_v4 = vld [vmem:[%s12480_s10 + $0x330] sm:$0xff] }
 0x138   : > { %2617 = vmatpush.bf16.msra.mxu1 %v8979_v35  ;;  %v12822_v23 = vpack.c.bf16 %v526_v6, %v518_v4  ;;  %v11283_v4 = vld [vmem:[#allocation5 + $0x4e4] sm:$0xf] }
 0x139   : > { %v2350_v1 = vpop.f32.mrf.mxu3  ;;  %v2254_v19 = vpop.f32.mrf.mxu1 }
 0x13a   : > { %v2301_v59 = vpop.f32.mrf.mxu2  ;;  %v2205_v55 = vpop.f32.mrf.mxu0  ;;  %14597 = vst [vmem:[#allocation51_spill] sm:$0xff] %v12822_v23 }
 0x13b   : > { %v2302_v7 = vadd.f32 %v2301_v59, %v2253_v61  ;;  %v2206_v18 = vadd.f32 %v2205_v55, %v12657_v60  ;;  %v516_v61 = vld [vmem:[%s12480_s10 + $0x320] sm:$0xff]  ;;  %v517_v59 = vld [vmem:[%s12480_s10 + $0x328] sm:$0xff]  ;;  %v527_v55 = vld [vmem:[%s12480_s10 + $0x378] sm:$0xff] }
 0x13c   : > { %v12818_v2 = vpack.c.bf16 %v524_v62, %v516_v61  ;;  %v12825_v30 = vpack.c.bf16 %v527_v55, %v519_v0  ;;  %v11379_v61 = vld [vmem:[#allocation5 + $0x7e4] sm:$0xf]  ;;  %v9856_v62 = vld [vmem:[#allocation5 + $0x7f0] sm:$0xf0] }
 0x13d   : > { %v12808_v28 = vadd.f32 %v2350_v1, %v2302_v7  ;;  %v2255_v58 = vadd.f32 %v2254_v19, %v2206_v18  ;;  %v12820_v1 = vpack.c.bf16 %v525_v38, %v517_v59  ;;  %v9728_v38 = vld [vmem:[#allocation5 + $0x6f0] sm:$0xf0]  ;;  %v9859_v55 = vor.u32 %v11379_v61, %v9856_v62  ;;  %v11315_v61 = vld [vmem:[#allocation5 + $0x5e4] sm:$0xf]  ;;  %v541_v62 = vld [vmem:[%s12480_s10 + $0x3e8] sm:$0xff] }
 0x13e   : > { %14595 = vst [vmem:[#allocation49_spill] sm:$0xff] %v12818_v2 }
 0x13f   : > { %14596 = vst [vmem:[#allocation50_spill] sm:$0xff] %v12820_v1  ;;  %2904 = vmatpush.bf16.msrb.mxu3 %v9859_v55 }
 0x140   : > { %14598 = vst [vmem:[#allocation52_spill] sm:$0xff] %v12825_v30 }
 0x141   : > { %v2352_v63 = vpop.f32.mrf.mxu3  ;;  %v2257_v19 = vpop.f32.mrf.mxu1 }
 0x142   : > { %v2303_v5 = vpop.f32.mrf.mxu2  ;;  %v2208_v7 = vpop.f32.mrf.mxu0 }
 0x143   : > { %v2304_v3 = vadd.f32 %v2303_v5, %v2255_v58  ;;  %v2209_v18 = vadd.f32 %v2208_v7, %v12657_v60  ;;  %v11347_v5 = vld [vmem:[#allocation5 + $0x6e4] sm:$0xf]  ;;  %v9472_v58 = vld [vmem:[#allocation5 + $0x4f0] sm:$0xf0] }
 0x144   : > { %2452 = vmatmul.bf16.gmra.mxu1 %v12820_v1  ;;  %v9731_v6 = vor.u32 %v11347_v5, %v9728_v38  ;;  %v9475_v0 = vor.u32 %v11283_v4, %v9472_v58  ;;  %v540_v4 = vld [vmem:[%s12480_s10 + $0x3e0] sm:$0xff]  ;;  %v533_v58 = vld [vmem:[%s12480_s10 + $0x3a8] sm:$0xff] }
 0x145   : > { %v12827_v16 = vadd.f32 %v2352_v63, %v2304_v3  ;;  %v2258_v35 = vadd.f32 %v2257_v19, %v2209_v18  ;;  %2403 = vmatmul.bf16.gmra.mxu0 %v12818_v2  ;;  %v543_v2 = vld [vmem:[%s12480_s10 + $0x3f8] sm:$0xff] }
 0x146   : > { %2550 = vmatmul.bf16.gmra.mxu3 %v12825_v30  ;;  %2855 = vmatpush.bf16.msrb.mxu2 %v9731_v6  ;;  %v532_v30 = vld [vmem:[%s12480_s10 + $0x3a0] sm:$0xff]  ;;  %v535_v6 = vld [vmem:[%s12480_s10 + $0x3b8] sm:$0xff] }
 0x147   : > { %2501 = vmatmul.bf16.gmra.mxu2 %v12822_v23  ;;  %2757 = vmatpush.bf16.msrb.mxu0 %v9475_v0  ;;  %v542_v23 = vld [vmem:[%s12480_s10 + $0x3f0] sm:$0xff]  ;;  %v12851_v20 = vpack.c.bf16 %v543_v2, %v535_v6 }
 0x148   : > { %v9840_v2 = vld [vmem:[#allocation5 + $0x7d0] sm:$0xf0] }
 0x149   : > { %v2355_v63 = vpop.f32.mrf.mxu3  ;;  %v2259_v19 = vpop.f32.mrf.mxu1  ;;  %14602 = vst [vmem:[#allocation56_spill] sm:$0xff] %v12851_v20 }
 0x14a   : > { %v2306_v59 = vpop.f32.mrf.mxu2  ;;  %v2210_v7 = vpop.f32.mrf.mxu0 }
 0x14b   : > { %v2307_v3 = vadd.f32 %v2306_v59, %v2258_v35  ;;  %v2211_v18 = vadd.f32 %v2210_v7, %v12657_v60  ;;  %v9600_v35 = vld [vmem:[#allocation5 + $0x5f0] sm:$0xf0]  ;;  %v12844_v7 = vpack.c.bf16 %v540_v4, %v532_v30 }
 0x14c   : > { %v534_v59 = vld [vmem:[%s12480_s10 + $0x3b0] sm:$0xff]  ;;  %v9603_v1 = vor.u32 %v11315_v61, %v9600_v35 }
 0x14d   : > { %v12834_v5 = vadd.f32 %v2355_v63, %v2307_v3  ;;  %v2260_v38 = vadd.f32 %v2259_v19, %v2211_v18  ;;  %14599 = vst [vmem:[#allocation53_spill] sm:$0xff] %v12844_v7  ;;  %v12846_v63 = vpack.c.bf16 %v541_v62, %v533_v58  ;;  %v12848_v18 = vpack.c.bf16 %v542_v23, %v534_v59  ;;  %v11279_v23 = vld [vmem:[#allocation5 + $0x4c4] sm:$0xf]  ;;  %v9456_v4 = vld [vmem:[#allocation5 + $0x4d0] sm:$0xf0] }
 0x14e   : > { %2806 = vmatpush.bf16.msrb.mxu1 %v9603_v1  ;;  %v9712_v1 = vld [vmem:[#allocation5 + $0x6d0] sm:$0xf0]  ;;  %v11375_v58 = vld [vmem:[#allocation5 + $0x7c4] sm:$0xf] }
 0x14f   : > { %14600 = vst [vmem:[#allocation54_spill] sm:$0xff] %v12846_v63  ;;  %v9843_v6 = vor.u32 %v11375_v58, %v9840_v2 }
 0x150   : > { %14601 = vst [vmem:[#allocation55_spill] sm:$0xff] %v12848_v18 }
 0x151   : > { %v2357_v55 = vpop.f32.mrf.mxu3  ;;  %v2262_v21 = vpop.f32.mrf.mxu1  ;;  %2905 = vmatpush.bf16.msrb.mxu3 %v9843_v6 }
 0x152   : > { %v2308_v22 = vpop.f32.mrf.mxu2  ;;  %v2213_v3 = vpop.f32.mrf.mxu0 }
 0x153   : > { %v2309_v0 = vadd.f32 %v2308_v22, %v2260_v38  ;;  %v2214_v19 = vadd.f32 %v2213_v3, %v12657_v60  ;;  %v11343_v22 = vld [vmem:[#allocation5 + $0x6c4] sm:$0xf] }
 0x154   : > { %2457 = vmatmul.bf16.gmra.mxu1 %v12846_v63  ;;  %v9715_v38 = vor.u32 %v11343_v22, %v9712_v1 }
 0x155   : > { %v12853_v47 = vadd.f32 %v2357_v55, %v2309_v0  ;;  %v2263_v61 = vadd.f32 %v2262_v21, %v2214_v19  ;;  %2408 = vmatmul.bf16.gmra.mxu0 %v12844_v7  ;;  %v9459_v21 = vor.u32 %v11279_v23, %v9456_v4 }
 0x156   : > { %2555 = vmatmul.bf16.gmra.mxu3 %v12851_v20  ;;  %2856 = vmatpush.bf16.msrb.mxu2 %v9715_v38  ;;  %v11311_v20 = vld [vmem:[#allocation5 + $0x5c4] sm:$0xf] }
 0x157   : > { %2506 = vmatmul.bf16.gmra.mxu2 %v12848_v18  ;;  %2758 = vmatpush.bf16.msrb.mxu0 %v9459_v21  ;;  %v9584_v18 = vld [vmem:[#allocation5 + $0x5d0] sm:$0xf0]  ;;  %v11275_v38 = vld [vmem:[#allocation5 + $0x4a4] sm:$0xf] }
 0x158   : > { %v9587_v22 = vor.u32 %v11311_v20, %v9584_v18  ;;  %v11339_v20 = vld [vmem:[#allocation5 + $0x6a4] sm:$0xf]  ;;  %v9696_v18 = vld [vmem:[#allocation5 + $0x6b0] sm:$0xf0] }
 0x159   : > { %v2360_v62 = vpop.f32.mrf.mxu3  ;;  %v2264_v55 = vpop.f32.mrf.mxu1  ;;  %v9699_v2 = vor.u32 %v11339_v20, %v9696_v18 }
 0x15a   : > { %v2311_v30 = vpop.f32.mrf.mxu2  ;;  %v2215_v59 = vpop.f32.mrf.mxu0  ;;  %2807 = vmatpush.bf16.msrb.mxu1 %v9587_v22 }
 0x15b   : > { %v2312_v35 = vadd.f32 %v2311_v30, %v2263_v61  ;;  %v2216_v0 = vadd.f32 %v2215_v59, %v12657_v60  ;;  %v9824_v59 = vld [vmem:[#allocation5 + $0x7b0] sm:$0xf0]  ;;  %2857 = vmatpush.bf16.msrb.mxu2 %v9699_v2 }
 0x15d   : > { %v12860_v3 = vadd.f32 %v2360_v62, %v2312_v35  ;;  %v2265_v19 = vadd.f32 %v2264_v55, %v2216_v0  ;;  %v9440_v35 = vld [vmem:[#allocation5 + $0x4b0] sm:$0xf0]  ;;  %v11371_v62 = vld [vmem:[#allocation5 + $0x7a4] sm:$0xf] }
 0x15e   : > { %v9443_v21 = vor.u32 %v11275_v38, %v9440_v35 }
 0x160   : > { %2759 = vmatpush.bf16.msrb.mxu0 %v9443_v21  ;;  %v9680_v21 = vld [vmem:[#allocation5 + $0x690] sm:$0xf0] }
 0x161   : > { %v2362_v61 = vpop.f32.mrf.mxu3  ;;  %v2423_v4 = vpop.f32.mrf.mxu1 }
 0x162   : > { %v2313_v1 = vpop.f32.mrf.mxu2  ;;  %v2374_v30 = vpop.f32.mrf.mxu0 }
 0x163   : > { %v2314_v63 = vadd.f32 %v2313_v1, %v2265_v19  ;;  %v2375_v23 = vadd.f32 %v2374_v30, %v12678_v56  ;;  %v11307_v30 = vld [vmem:[#allocation5 + $0x5a4] sm:$0xf] }
 0x164   : > { %2618 = vmatmul.bf16.vlgmr.msra.gmra.mxu1 %v12504_v53 }
 0x165   : > { %v12863_v58 = vadd.f32 %v2362_v61, %v2314_v63  ;;  %v2424_v60 = vadd.f32 %v2423_v4, %v2375_v23  ;;  %2569 = vmatmul.bf16.vlgmr.msra.gmra.mxu0 %v12502_v48  ;;  %v9827_v63 = vor.u32 %v11371_v62, %v9824_v59  ;;  %v9568_v23 = vld [vmem:[#allocation5 + $0x5b0] sm:$0xf0] }
 0x166   : > { %2716 = vmatmul.bf16.vlgmr.msra.gmra.mxu3 %v12508_v57  ;;  %v9571_v4 = vor.u32 %v11307_v30, %v9568_v23 }
 0x167   : > { %2667 = vmatmul.bf16.vlgmr.msra.gmra.mxu2 %v12506_v54  ;;  %2906 = vmatpush.bf16.msrb.mxu3 %v9827_v63  ;;  %v11271_v63 = vld [vmem:[#allocation5 + $0x484] sm:$0xf] }
 0x168   : > { %2808 = vmatpush.bf16.msrb.mxu1 %v9571_v4 }
 0x169   : > { %v2521_v0 = vpop.f32.mrf.mxu3  ;;  %v2425_v22 = vpop.f32.mrf.mxu1 }
 0x16a   : > { %v2472_v56 = vpop.f32.mrf.mxu2  ;;  %v2376_v55 = vpop.f32.mrf.mxu0 }
 0x16b   : > { %v2473_v6 = vadd.f32 %v2472_v56, %v2424_v60  ;;  %v2377_v19 = vadd.f32 %v2376_v55, %v12697_v37  ;;  %v11335_v56 = vld [vmem:[#allocation5 + $0x684] sm:$0xf] }
 0x16c   : > { %v11367_v55 = vld [vmem:[#allocation5 + $0x784] sm:$0xf] }
 0x16d   : > { %v2522_v1 = vadd.f32 %v2521_v0, %v2473_v6  ;;  %v2426_v61 = vadd.f32 %v2425_v22, %v2377_v19  ;;  %v9683_v0 = vor.u32 %v11335_v56, %v9680_v21 }
 0x16f   : > { %v3737_v37 = vmax.f32 %v2522_v1, 0.0  ;;  %2858 = vmatpush.bf16.msrb.mxu2 %v9683_v0 }
 0x171   : > { %v2523_v57 = vpop.f32.mrf.mxu3  ;;  %v2428_v35 = vpop.f32.mrf.mxu1 }
 0x172   : > { %v2474_v20 = vpop.f32.mrf.mxu2  ;;  %v2379_v38 = vpop.f32.mrf.mxu0 }
 0x173   : > { %v2475_v18 = vadd.f32 %v2474_v20, %v2426_v61  ;;  %v2380_v60 = vadd.f32 %v2379_v38, %v12704_v29  ;;  %v9424_v29 = vld [vmem:[#allocation5 + $0x490] sm:$0xf0] }
 0x174   : > { %2623 = vmatmul.bf16.gmra.mxu1 %v12524_v25  ;;  %v9427_v22 = vor.u32 %v11271_v63, %v9424_v29 }
 0x175   : > { %v2524_v62 = vadd.f32 %v2523_v57, %v2475_v18  ;;  %v2429_v2 = vadd.f32 %v2428_v35, %v2380_v60  ;;  %2574 = vmatmul.bf16.gmra.mxu0 %v12522_v24  ;;  %v9808_v57 = vld [vmem:[#allocation5 + $0x790] sm:$0xf0]  ;;  %v11303_v60 = vld [vmem:[#allocation5 + $0x584] sm:$0xf] }
 0x176   : > { %2721 = vmatmul.bf16.gmra.mxu3 %v12528_v27  ;;  %v9811_v61 = vor.u32 %v11367_v55, %v9808_v57  ;;  %2760 = vmatpush.bf16.msrb.mxu0 %v9427_v22  ;;  %v9552_v35 = vld [vmem:[#allocation5 + $0x590] sm:$0xf0]  ;;  %v11331_v57 = vld [vmem:[#allocation5 + $0x664] sm:$0xf] }
 0x177   : > { %v3741_v59 = vmax.f32 %v2524_v62, 0.0  ;;  %2672 = vmatmul.bf16.gmra.mxu2 %v12526_v26  ;;  %v9555_v62 = vor.u32 %v11303_v60, %v9552_v35  ;;  %v11267_v22 = vld [vmem:[#allocation5 + $0x464] sm:$0xf] }
 0x178   : > { %2907 = vmatpush.bf16.msrb.mxu3 %v9811_v61 }
 0x179   : > { %v12875_v6 = vpack.c.bf16 %v3741_v59, %v3737_v37  ;;  %v2526_v30 = vpop.f32.mrf.mxu3  ;;  %v2430_v20 = vpop.f32.mrf.mxu1  ;;  %2809 = vmatpush.bf16.msrb.mxu1 %v9555_v62 }
 0x17a   : > { %v2477_v19 = vpop.f32.mrf.mxu2  ;;  %v2381_v23 = vpop.f32.mrf.mxu0 }
 0x17b   : > { %14603 = vst [vmem:[#allocation57_spill] sm:$0xff] %v12875_v6  ;;  %v2478_v1 = vadd.f32 %v2477_v19, %v2429_v2  ;;  %v2382_v4 = vadd.f32 %v2381_v23, %v12723_v31  ;;  %v9664_v19 = vld [vmem:[#allocation5 + $0x670] sm:$0xf0] }
 0x17c   : > { %v9667_v61 = vor.u32 %v11331_v57, %v9664_v19 }
 0x17d   : > { %v2527_v18 = vadd.f32 %v2526_v30, %v2478_v1  ;;  %v2431_v38 = vadd.f32 %v2430_v20, %v2382_v4  ;;  %v9408_v1 = vld [vmem:[#allocation5 + $0x470] sm:$0xf0]  ;;  %v11363_v30 = vld [vmem:[#allocation5 + $0x764] sm:$0xf] }
 0x17e   : > { %v9411_v20 = vor.u32 %v11267_v22, %v9408_v1  ;;  %2859 = vmatpush.bf16.msrb.mxu2 %v9667_v61 }
 0x17f   : > { %v3745_v31 = vmax.f32 %v2527_v18, 0.0 }
 0x180   : > { %2761 = vmatpush.bf16.msrb.mxu0 %v9411_v20 }
 0x181   : > { %v2528_v56 = vpop.f32.mrf.mxu3  ;;  %v2433_v63 = vpop.f32.mrf.mxu1 }
 0x182   : > { %v2479_v37 = vpop.f32.mrf.mxu2  ;;  %v2384_v21 = vpop.f32.mrf.mxu0 }
 0x183   : > { %v2480_v59 = vadd.f32 %v2479_v37, %v2431_v38  ;;  %v2385_v2 = vadd.f32 %v2384_v21, %v12730_v34  ;;  %v9792_v34 = vld [vmem:[#allocation5 + $0x770] sm:$0xf0]  ;;  %v11299_v21 = vld [vmem:[#allocation5 + $0x564] sm:$0xf] }
 0x184   : > { %2628 = vmatmul.bf16.gmra.mxu1 %v12544_v50  ;;  %v9795_v38 = vor.u32 %v11363_v30, %v9792_v34  ;;  %v11327_v30 = vld [vmem:[#allocation5 + $0x644] sm:$0xf]  ;;  %v9648_v34 = vld [vmem:[#allocation5 + $0x650] sm:$0xf0] }
 0x185   : > { %v2529_v29 = vadd.f32 %v2528_v56, %v2480_v59  ;;  %v2434_v0 = vadd.f32 %v2433_v63, %v2385_v2  ;;  %2579 = vmatmul.bf16.gmra.mxu0 %v12542_v49  ;;  %v9536_v2 = vld [vmem:[#allocation5 + $0x570] sm:$0xf0]  ;;  %v9651_v20 = vor.u32 %v11327_v30, %v9648_v34 }
 0x186   : > { %2726 = vmatmul.bf16.gmra.mxu3 %v12548_v52  ;;  %v9539_v63 = vor.u32 %v11299_v21, %v9536_v2 }
 0x187   : > { %v3749_v55 = vmax.f32 %v2529_v29, 0.0  ;;  %2677 = vmatmul.bf16.gmra.mxu2 %v12546_v51  ;;  %2908 = vmatpush.bf16.msrb.mxu3 %v9795_v38  ;;  %v9392_v38 = vld [vmem:[#allocation5 + $0x450] sm:$0xf0] }
 0x188   : > { %2810 = vmatpush.bf16.msrb.mxu1 %v9539_v63  ;;  %2860 = vmatpush.bf16.msrb.mxu2 %v9651_v20 }
 0x189   : > { %v12883_v23 = vpack.c.bf16 %v3749_v55, %v3745_v31  ;;  %v2531_v60 = vpop.f32.mrf.mxu3  ;;  %v2435_v37 = vpop.f32.mrf.mxu1 }
 0x18a   : > { %v2482_v4 = vpop.f32.mrf.mxu2  ;;  %v2386_v35 = vpop.f32.mrf.mxu0 }
 0x18b   : > { %14604 = vst [vmem:[#allocation58_spill] sm:$0xff] %v12883_v23  ;;  %v2483_v18 = vadd.f32 %v2482_v4, %v2434_v0  ;;  %v2387_v62 = vadd.f32 %v2386_v35, %v12749_v39  ;;  %v11263_v4 = vld [vmem:[#allocation5 + $0x444] sm:$0xf] }
 0x18d   : > { %v2532_v59 = vadd.f32 %v2531_v60, %v2483_v18  ;;  %v2436_v56 = vadd.f32 %v2435_v37, %v2387_v62  ;;  %v11359_v18 = vld [vmem:[#allocation5 + $0x744] sm:$0xf]  ;;  %v9395_v62 = vor.u32 %v11263_v4, %v9392_v38 }
 0x18e   : > { %v11323_v38 = vld [vmem:[#allocation5 + $0x624] sm:$0xf] }
 0x18f   : > { %v3753_v39 = vmax.f32 %v2532_v59, 0.0  ;;  %2762 = vmatpush.bf16.msrb.mxu0 %v9395_v62  ;;  %v9376_v62 = vld [vmem:[#allocation5 + $0x430] sm:$0xf0] }
 0x191   : > { %v2533_v55 = vpop.f32.mrf.mxu3  ;;  %v2438_v19 = vpop.f32.mrf.mxu1 }
 0x192   : > { %v2484_v29 = vpop.f32.mrf.mxu2  ;;  %v2389_v57 = vpop.f32.mrf.mxu0 }
 0x193   : > { %v2485_v31 = vadd.f32 %v2484_v29, %v2436_v56  ;;  %v2390_v0 = vadd.f32 %v2389_v57, %v12756_v17  ;;  %v9776_v17 = vld [vmem:[#allocation5 + $0x750] sm:$0xf0] }
 0x194   : > { %2633 = vmatmul.bf16.gmra.mxu1 %v12564_v13  ;;  %v9779_v37 = vor.u32 %v11359_v18, %v9776_v17  ;;  %v9520_v57 = vld [vmem:[#allocation5 + $0x550] sm:$0xf0]  ;;  %v11259_v17 = vld [vmem:[#allocation5 + $0x424] sm:$0xf] }
 0x195   : > { %v2534_v22 = vadd.f32 %v2533_v55, %v2485_v31  ;;  %v2439_v61 = vadd.f32 %v2438_v19, %v2390_v0  ;;  %2584 = vmatmul.bf16.gmra.mxu0 %v12562_v12  ;;  %v11295_v55 = vld [vmem:[#allocation5 + $0x544] sm:$0xf]  ;;  %v9632_v18 = vld [vmem:[#allocation5 + $0x630] sm:$0xf0] }
 0x196   : > { %2731 = vmatmul.bf16.gmra.mxu3 %v12568_v15  ;;  %v9523_v0 = vor.u32 %v11295_v55, %v9520_v57 }
 0x197   : > { %v3757_v1 = vmax.f32 %v2534_v22, 0.0  ;;  %2682 = vmatmul.bf16.gmra.mxu2 %v12566_v14  ;;  %2909 = vmatpush.bf16.msrb.mxu3 %v9779_v37  ;;  %v11355_v37 = vld [vmem:[#allocation5 + $0x724] sm:$0xf] }
 0x198   : > { %2811 = vmatpush.bf16.msrb.mxu1 %v9523_v0 }
 0x199   : > { %v12891_v60 = vpack.c.bf16 %v3757_v1, %v3753_v39  ;;  %v2536_v56 = vpop.f32.mrf.mxu3  ;;  %v2440_v63 = vpop.f32.mrf.mxu1 }
 0x19a   : > { %v2487_v35 = vpop.f32.mrf.mxu2  ;;  %v2391_v21 = vpop.f32.mrf.mxu0 }
 0x19b   : > { %14605 = vst [vmem:[#allocation59_spill] sm:$0xff] %v12891_v60  ;;  %v2488_v59 = vadd.f32 %v2487_v35, %v2439_v61  ;;  %v2392_v2 = vadd.f32 %v2391_v21, %v12775_v36  ;;  %v9635_v35 = vor.u32 %v11323_v38, %v9632_v18  ;;  %v9379_v21 = vor.u32 %v11259_v17, %v9376_v62  ;;  %v9616_v62 = vld [vmem:[#allocation5 + $0x610] sm:$0xf0]  ;;  %v11178_v60 = vld [vmem:[#allocation5 + $0x194] sm:$0xf0] }
 0x19d   : > { %v2537_v29 = vadd.f32 %v2536_v56, %v2488_v59  ;;  %v2441_v31 = vadd.f32 %v2440_v63, %v2392_v2  ;;  %2861 = vmatpush.bf16.msrb.mxu2 %v9635_v35  ;;  %2763 = vmatpush.bf16.msrb.mxu0 %v9379_v21  ;;  %v11319_v35 = vld [vmem:[#allocation5 + $0x604] sm:$0xf] }
 0x19e   : > { %v11351_v21 = vld [vmem:[#allocation5 + $0x704] sm:$0xf] }
 0x19f   : > { %v3761_v36 = vmax.f32 %v2537_v29, 0.0 }
 0x1a1   : > { %v2538_v39 = vpop.f32.mrf.mxu3  ;;  %v2443_v30 = vpop.f32.mrf.mxu1 }
 0x1a2   : > { %v2489_v19 = vpop.f32.mrf.mxu2  ;;  %v2394_v1 = vpop.f32.mrf.mxu0 }
 0x1a3   : > { %v2490_v22 = vadd.f32 %v2489_v19, %v2441_v31  ;;  %v2395_v61 = vadd.f32 %v2394_v1, %v12782_v33  ;;  %v9760_v33 = vld [vmem:[#allocation5 + $0x730] sm:$0xf0] }
 0x1a4   : > { %2638 = vmatmul.bf16.gmra.mxu1 %v12584_v41  ;;  %v9763_v2 = vor.u32 %v11355_v37, %v9760_v33  ;;  %v11255_v37 = vld [vmem:[#allocation5 + $0x404] sm:$0xf]  ;;  %v9619_v33 = vor.u32 %v11319_v35, %v9616_v62 }
 0x1a5   : > { %v2539_v34 = vadd.f32 %v2538_v39, %v2490_v22  ;;  %v2444_v4 = vadd.f32 %v2443_v30, %v2395_v61  ;;  %2589 = vmatmul.bf16.gmra.mxu0 %v12582_v40  ;;  %v11291_v22 = vld [vmem:[#allocation5 + $0x524] sm:$0xf]  ;;  %v9504_v39 = vld [vmem:[#allocation5 + $0x530] sm:$0xf0] }
 0x1a6   : > { %2736 = vmatmul.bf16.gmra.mxu3 %v12588_v43  ;;  %v9507_v1 = vor.u32 %v11291_v22, %v9504_v39  ;;  %2862 = vmatpush.bf16.msrb.mxu2 %v9619_v33  ;;  %v9222_v33 = vld [vmem:[#allocation5 + $0x2e8] sm:$0xf] }
 0x1a7   : > { %v3765_v20 = vmax.f32 %v2539_v34, 0.0  ;;  %2687 = vmatmul.bf16.gmra.mxu2 %v12586_v42  ;;  %2910 = vmatpush.bf16.msrb.mxu3 %v9763_v2 }
 0x1a8   : > { %2812 = vmatpush.bf16.msrb.mxu1 %v9507_v1 }
 0x1a9   : > { %v12899_v59 = vpack.c.bf16 %v3765_v20, %v3761_v36  ;;  %v2541_v29 = vpop.f32.mrf.mxu3  ;;  %v2445_v57 = vpop.f32.mrf.mxu1 }
 0x1aa   : > { %v2492_v56 = vpop.f32.mrf.mxu2  ;;  %v2396_v31 = vpop.f32.mrf.mxu0 }
 0x1ab   : > { %14606 = vst [vmem:[#allocation60_spill] sm:$0xff] %v12899_v59  ;;  %v2493_v63 = vadd.f32 %v2492_v56, %v2444_v4  ;;  %v2397_v55 = vadd.f32 %v2396_v31, %v12801_v32  ;;  %v9360_v56 = vld [vmem:[#allocation5 + $0x410] sm:$0xf0]  ;;  %v9046_v59 = vld [vmem:[#allocation5 + $0x188] sm:$0xf] }
 0x1ad   : > { %v2542_v0 = vadd.f32 %v2541_v29, %v2493_v63  ;;  %v2446_v19 = vadd.f32 %v2445_v57, %v2397_v55  ;;  %v9363_v29 = vor.u32 %v11255_v37, %v9360_v56  ;;  %v14608_v37 = vld [vmem:[#allocation20_spill] sm:$0xff]  ;;  %v11222_v56 = vld [vmem:[#allocation5 + $0x2f4] sm:$0xf0] }
 0x1af   : > { %v3769_v32 = vmax.f32 %v2542_v0, 0.0  ;;  %2764 = vmatpush.bf16.msrb.mxu0 %v9363_v29  ;;  %v9350_v29 = vld [vmem:[#allocation5 + $0x3e8] sm:$0xf] }
 0x1b1   : > { %v2543_v34 = vpop.f32.mrf.mxu3  ;;  %v2448_v20 = vpop.f32.mrf.mxu1 }
 0x1b2   : > { %v2494_v61 = vpop.f32.mrf.mxu2  ;;  %v2399_v36 = vpop.f32.mrf.mxu0 }
 0x1b3   : > { %v2495_v30 = vadd.f32 %v2494_v61, %v2446_v19  ;;  %v2400_v4 = vadd.f32 %v2399_v36, %v12808_v28  ;;  %v9744_v28 = vld [vmem:[#allocation5 + $0x710] sm:$0xf0]  ;;  %v11287_v61 = vld [vmem:[#allocation5 + $0x504] sm:$0xf] }
 0x1b4   : > { %2643 = vmatmul.bf16.gmra.mxu1 %v12604_v9  ;;  %v9747_v31 = vor.u32 %v11351_v21, %v9744_v28  ;;  %v8966_v21 = vld [vmem:[#allocation5 + $0xe8] sm:$0xf]  ;;  %v9223_v28 = vor.u32 %v11222_v56, %v9222_v33 }
 0x1b5   : > { %v2544_v38 = vadd.f32 %v2543_v34, %v2495_v30  ;;  %v2449_v18 = vadd.f32 %v2448_v20, %v2400_v4  ;;  %2594 = vmatmul.bf16.gmra.mxu0 %v12602_v8  ;;  %v9488_v30 = vld [vmem:[#allocation5 + $0x510] sm:$0xf0]  ;;  %v14610_v56 = vld [vmem:[#allocation21_spill] sm:$0xff] }
 0x1b6   : > { %2741 = vmatmul.bf16.gmra.mxu3 %v12608_v11  ;;  %v9491_v34 = vor.u32 %v11287_v61, %v9488_v30  ;;  %3051 = vmatpush.bf16.msra.mxu2 %v9223_v28  ;;  %v14611_v28 = vld [vmem:[#allocation22_spill] sm:$0xff] }
 0x1b7   : > { %v3773_v17 = vmax.f32 %v2544_v38, 0.0  ;;  %2692 = vmatmul.bf16.gmra.mxu2 %v12606_v10  ;;  %2911 = vmatpush.bf16.msrb.mxu3 %v9747_v31 }
 0x1b8   : > { %2813 = vmatpush.bf16.msrb.mxu1 %v9491_v34  ;;  %v9094_v34 = vld [vmem:[#allocation5 + $0x1e8] sm:$0xf] }
 0x1b9   : > { %v12907_v2 = vpack.c.bf16 %v3773_v17, %v3769_v32  ;;  %v2546_v57 = vpop.f32.mrf.mxu3  ;;  %v2450_v22 = vpop.f32.mrf.mxu1 }
 0x1ba   : > { %v2497_v63 = vpop.f32.mrf.mxu2  ;;  %v2401_v0 = vpop.f32.mrf.mxu0 }
 0x1bb   : > { %14607 = vst [vmem:[#allocation61_spill] sm:$0xff] %v12907_v2  ;;  %v2498_v55 = vadd.f32 %v2497_v63, %v2449_v18  ;;  %v2402_v19 = vadd.f32 %v2401_v0, %v12827_v16  ;;  %v11158_v63 = vld [vmem:[#allocation5 + $0xf4] sm:$0xf0] }
 0x1bd   : > { %v2547_v39 = vadd.f32 %v2546_v57, %v2498_v55  ;;  %v2451_v1 = vadd.f32 %v2450_v22, %v2402_v19  ;;  %v8967_v57 = vor.u32 %v11158_v63, %v8966_v21  ;;  %v14612_v63 = vld [vmem:[#allocation23_spill] sm:$0xff] }
 0x1bf   : > { %v3777_v16 = vmax.f32 %v2547_v39, 0.0  ;;  %2953 = vmatpush.bf16.msra.mxu0 %v8967_v57  ;;  %v8950_v57 = vld [vmem:[#allocation5 + $0xc8] sm:$0xf] }
 0x1c1   : > { %v2548_v20 = vpop.f32.mrf.mxu3  ;;  %v2453_v32 = vpop.f32.mrf.mxu1 }
 0x1c2   : > { %v2499_v36 = vpop.f32.mrf.mxu2  ;;  %v2404_v38 = vpop.f32.mrf.mxu0 }
 0x1c3   : > { %v2500_v4 = vadd.f32 %v2499_v36, %v2451_v1  ;;  %v2405_v18 = vadd.f32 %v2404_v38, %v12834_v5  ;;  %v11254_v5 = vld [vmem:[#allocation5 + $0x3f4] sm:$0xf0] }
 0x1c4   : > { %2648 = vmatmul.bf16.gmra.mxu1 %v12624_v45  ;;  %v9351_v0 = vor.u32 %v11254_v5, %v9350_v29  ;;  %v11190_v36 = vld [vmem:[#allocation5 + $0x1f4] sm:$0xf0]  ;;  %v14613_v29 = vld [vmem:[#allocation24_spill] sm:$0xff] }
 0x1c5   : > { %v2549_v17 = vadd.f32 %v2548_v20, %v2500_v4  ;;  %v2454_v35 = vadd.f32 %v2453_v32, %v2405_v18  ;;  %2599 = vmatmul.bf16.gmra.mxu0 %v12622_v44  ;;  %v9095_v20 = vor.u32 %v11190_v36, %v9094_v34  ;;  %v9206_v5 = vld [vmem:[#allocation5 + $0x2c8] sm:$0xf] }
 0x1c6   : > { %2746 = vmatmul.bf16.gmra.mxu3 %v14608_v37 }
 0x1c7   : > { %v3781_v62 = vmax.f32 %v2549_v17, 0.0  ;;  %2697 = vmatmul.bf16.gmra.mxu2 %v12626_v46  ;;  %3100 = vmatpush.bf16.msra.mxu3 %v9351_v0 }
 0x1c8   : > { %3002 = vmatpush.bf16.msra.mxu1 %v9095_v20 }
 0x1c9   : > { %v12915_v31 = vpack.c.bf16 %v3781_v62, %v3777_v16  ;;  %v2551_v22 = vpop.f32.mrf.mxu3  ;;  %v2455_v61 = vpop.f32.mrf.mxu1 }
 0x1ca   : > { %v2502_v55 = vpop.f32.mrf.mxu2  ;;  %v2406_v39 = vpop.f32.mrf.mxu0 }
 0x1cb   : > { %14609 = vst [vmem:[#allocation20_spill] sm:$0xff] %v12915_v31  ;;  %v2503_v19 = vadd.f32 %v2502_v55, %v2454_v35  ;;  %v2407_v1 = vadd.f32 %v2406_v39, %v12853_v47  ;;  %v11218_v55 = vld [vmem:[#allocation5 + $0x2d4] sm:$0xf0] }
 0x1cc   : > { %v9207_v0 = vor.u32 %v11218_v55, %v9206_v5 }
 0x1cd   : > { %v2552_v30 = vadd.f32 %v2551_v22, %v2503_v19  ;;  %v2456_v4 = vadd.f32 %v2455_v61, %v2407_v1  ;;  %v11154_v19 = vld [vmem:[#allocation5 + $0xd4] sm:$0xf0]  ;;  %v9334_v22 = vld [vmem:[#allocation5 + $0x3c8] sm:$0xf] }
 0x1ce   : > { %v8951_v61 = vor.u32 %v11154_v19, %v8950_v57  ;;  %3052 = vmatpush.bf16.msra.mxu2 %v9207_v0 }
 0x1cf   : > { %v3785_v47 = vmax.f32 %v2552_v30, 0.0 }
 0x1d0   : > { %2954 = vmatpush.bf16.msra.mxu0 %v8951_v61  ;;  %v14616_v61 = vld [vmem:[#allocation26_spill] sm:$0xff] }
 0x1d1   : > { %v2553_v32 = vpop.f32.mrf.mxu3  ;;  %v2458_v16 = vpop.f32.mrf.mxu1 }
 0x1d2   : > { %v2504_v38 = vpop.f32.mrf.mxu2  ;;  %v2409_v17 = vpop.f32.mrf.mxu0 }
 0x1d3   : > { %v2505_v18 = vadd.f32 %v2504_v38, %v2456_v4  ;;  %v2410_v35 = vadd.f32 %v2409_v17, %v12860_v3  ;;  %v11250_v3 = vld [vmem:[#allocation5 + $0x3d4] sm:$0xf0] }
 0x1d4   : > { %2653 = vmatmul.bf16.gmra.mxu1 %v14611_v28  ;;  %v9335_v34 = vor.u32 %v11250_v3, %v9334_v22  ;;  %v11186_v17 = vld [vmem:[#allocation5 + $0x1d4] sm:$0xf0]  ;;  %v14615_v22 = vld [vmem:[#allocation25_spill] sm:$0xff] }
 0x1d5   : > { %v2554_v62 = vadd.f32 %v2553_v32, %v2505_v18  ;;  %v2459_v33 = vadd.f32 %v2458_v16, %v2410_v35  ;;  %2604 = vmatmul.bf16.gmra.mxu0 %v14610_v56  ;;  %v9078_v32 = vld [vmem:[#allocation5 + $0x1c8] sm:$0xf] }
 0x1d6   : > { %2751 = vmatmul.bf16.gmra.mxu3 %v14613_v29  ;;  %v9079_v16 = vor.u32 %v11186_v17, %v9078_v32  ;;  %v11150_v32 = vld [vmem:[#allocation5 + $0xb4] sm:$0xf0]  ;;  %v9318_v17 = vld [vmem:[#allocation5 + $0x3a8] sm:$0xf] }
 0x1d7   : > { %v3789_v21 = vmax.f32 %v2554_v62, 0.0  ;;  %2702 = vmatmul.bf16.gmra.mxu2 %v14612_v63  ;;  %3101 = vmatpush.bf16.msra.mxu3 %v9335_v34  ;;  %v12071_v62 = vld [vmem:[#allocation8] sm:$0xf] }
 0x1d8   : > { %3003 = vmatpush.bf16.msra.mxu1 %v9079_v16  ;;  %v14617_v34 = vld [vmem:[#allocation27_spill] sm:$0xff] }
 0x1d9   : > { %v12923_v39 = vpack.c.bf16 %v3789_v21, %v3785_v47  ;;  %v2556_v36 = vpop.f32.mrf.mxu3  ;;  %v2460_v38 = vpop.f32.mrf.mxu1  ;;  %v12926_v47 = vperm.slane %v12071_v62, 1 }
 0x1da   : > { %v2507_v1 = vpop.f32.mrf.mxu2  ;;  %v2411_v4 = vpop.f32.mrf.mxu0 }
 0x1db   : > { %14614 = vst [vmem:[#allocation21_spill] sm:$0xff] %v12923_v39  ;;  %v2508_v30 = vadd.f32 %v2507_v1, %v2459_v33  ;;  %v2412_v20 = vadd.f32 %v2411_v4, %v12863_v58  ;;  %v11214_v4 = vld [vmem:[#allocation5 + $0x2b4] sm:$0xf0] }
 0x1dd   : > { %v2557_v18 = vadd.f32 %v2556_v36, %v2508_v30  ;;  %v2461_v35 = vadd.f32 %v2460_v38, %v2412_v20  ;;  %v14618_v30 = vld [vmem:[#allocation28_spill] sm:$0xff] }
 0x1de   : > { %v9190_v36 = vld [vmem:[#allocation5 + $0x2a8] sm:$0xf] }
 0x1df   : > { %v3793_v3 = vmax.f32 %v2557_v18, 0.0  ;;  %v8934_v20 = vld [vmem:[#allocation5 + $0xa8] sm:$0xf]  ;;  %v9191_v38 = vor.u32 %v11214_v4, %v9190_v36  ;;  %v11182_v4 = vld [vmem:[#allocation5 + $0x1b4] sm:$0xf0] }
 0x1e0   : > { %v9062_v36 = vld [vmem:[#allocation5 + $0x1a8] sm:$0xf] }
 0x1e1   : > { %v2558_v33 = vpop.f32.mrf.mxu3  ;;  %v2619_v0 = vpop.f32.mrf.mxu1  ;;  %3053 = vmatpush.bf16.msra.mxu2 %v9191_v38  ;;  %v9063_v31 = vor.u32 %v11182_v4, %v9062_v36  ;;  %v11242_v36 = vld [vmem:[#allocation5 + $0x394] sm:$0xf0] }
 0x1e2   : > { %v2509_v21 = vpop.f32.mrf.mxu2  ;;  %v2570_v55 = vpop.f32.mrf.mxu0 }
 0x1e3   : > { %v2510_v5 = vadd.f32 %v2509_v21, %v2461_v35  ;;  %v2571_v57 = vadd.f32 %v2570_v55, %v12926_v47  ;;  %v11246_v35 = vld [vmem:[#allocation5 + $0x3b4] sm:$0xf0]  ;;  %v8935_v21 = vor.u32 %v11150_v32, %v8934_v20  ;;  %3004 = vmatpush.bf16.msra.mxu1 %v9063_v31 }
 0x1e4   : > { %2814 = vmatmul.bf16.vlgmr.msrb.gmra.mxu1 %v14616_v61  ;;  %v11210_v31 = vld [vmem:[#allocation5 + $0x294] sm:$0xf0] }
 0x1e5   : > { %v2559_v58 = vadd.f32 %v2558_v33, %v2510_v5  ;;  %v2620_v19 = vadd.f32 %v2619_v0, %v2571_v57  ;;  %2765 = vmatmul.bf16.vlgmr.msrb.gmra.mxu0 %v14615_v22  ;;  %v9319_v5 = vor.u32 %v11246_v35, %v9318_v17 }
 0x1e6   : > { %2912 = vmatmul.bf16.vlgmr.msrb.gmra.mxu3 %v14618_v30  ;;  %2955 = vmatpush.bf16.msra.mxu0 %v8935_v21  ;;  %v14621_v21 = vld [vmem:[#allocation30_spill] sm:$0xff] }
 0x1e7   : > { %v3797_v1 = vmax.f32 %v2559_v58, 0.0  ;;  %2863 = vmatmul.bf16.vlgmr.msrb.gmra.mxu2 %v14617_v34  ;;  %3102 = vmatpush.bf16.msra.mxu3 %v9319_v5  ;;  %v14622_v5 = vld [vmem:[#allocation31_spill] sm:$0xff] }
 0x1e9   : > { %v12933_v16 = vpack.c.bf16 %v3797_v1, %v3793_v3  ;;  %v2717_v33 = vpop.f32.mrf.mxu3  ;;  %v2621_v0 = vpop.f32.mrf.mxu1 }
 0x1ea   : > { %v2668_v62 = vpop.f32.mrf.mxu2  ;;  %v2572_v55 = vpop.f32.mrf.mxu0 }
 0x1eb   : > { %14619 = vst [vmem:[#allocation62_spill] sm:$0xff] %v12933_v16  ;;  %v2669_v18 = vadd.f32 %v2668_v62, %v2620_v19  ;;  %v2573_v57 = vadd.f32 %v2572_v55, %v12926_v47  ;;  %v14620_v62 = vld [vmem:[#allocation29_spill] sm:$0xff] }
 0x1ec   : > { %v8918_v55 = vld [vmem:[#allocation5 + $0x88] sm:$0xf] }
 0x1ed   : > { %v12936_v58 = vadd.f32 %v2717_v33, %v2669_v18  ;;  %v2622_v39 = vadd.f32 %v2621_v0, %v2573_v57  ;;  %v14623_v18 = vld [vmem:[#allocation32_spill] sm:$0xff]  ;;  %v11146_v57 = vld [vmem:[#allocation5 + $0x94] sm:$0xf0] }
 0x1ee   : > { %v9174_v33 = vld [vmem:[#allocation5 + $0x288] sm:$0xf] }
 0x1ef   : > { %v9302_v0 = vld [vmem:[#allocation5 + $0x388] sm:$0xf] }
 0x1f1   : > { %v2719_v20 = vpop.f32.mrf.mxu3  ;;  %v2624_v17 = vpop.f32.mrf.mxu1 }
 0x1f2   : > { %v2670_v3 = vpop.f32.mrf.mxu2  ;;  %v2575_v32 = vpop.f32.mrf.mxu0 }
 0x1f3   : > { %v2671_v1 = vadd.f32 %v2670_v3, %v2622_v39  ;;  %v2576_v19 = vadd.f32 %v2575_v32, %v12926_v47  ;;  %v9175_v39 = vor.u32 %v11210_v31, %v9174_v33  ;;  %v8919_v3 = vor.u32 %v11146_v57, %v8918_v55 }
 0x1f4   : > { %2819 = vmatmul.bf16.gmra.mxu1 %v14621_v21  ;;  %v9047_v31 = vor.u32 %v11178_v60, %v9046_v59  ;;  %v9158_v60 = vld [vmem:[#allocation5 + $0x268] sm:$0xf]  ;;  %v11206_v59 = vld [vmem:[#allocation5 + $0x274] sm:$0xf0] }
 0x1f5   : > { %v12939_v38 = vadd.f32 %v2719_v20, %v2671_v1  ;;  %v2625_v35 = vadd.f32 %v2624_v17, %v2576_v19  ;;  %2770 = vmatmul.bf16.gmra.mxu0 %v14620_v62  ;;  %v9303_v1 = vor.u32 %v11242_v36, %v9302_v0  ;;  %3054 = vmatpush.bf16.msra.mxu2 %v9175_v39 }
 0x1f6   : > { %2917 = vmatmul.bf16.gmra.mxu3 %v14623_v18  ;;  %2956 = vmatpush.bf16.msra.mxu0 %v8919_v3  ;;  %v14625_v3 = vld [vmem:[#allocation34_spill] sm:$0xff] }
 0x1f7   : > { %2868 = vmatmul.bf16.gmra.mxu2 %v14622_v5  ;;  %3103 = vmatpush.bf16.msra.mxu3 %v9303_v1  ;;  %v14626_v1 = vld [vmem:[#allocation35_spill] sm:$0xff] }
 0x1f8   : > { %3005 = vmatpush.bf16.msra.mxu1 %v9047_v31 }
 0x1f9   : > { %v2722_v32 = vpop.f32.mrf.mxu3  ;;  %v2626_v16 = vpop.f32.mrf.mxu1 }
 0x1fa   : > { %v2673_v4 = vpop.f32.mrf.mxu2  ;;  %v2577_v19 = vpop.f32.mrf.mxu0 }
 0x1fb   : > { %v2674_v20 = vadd.f32 %v2673_v4, %v2625_v35  ;;  %v2578_v17 = vadd.f32 %v2577_v19, %v12926_v47  ;;  %v14624_v4 = vld [vmem:[#allocation33_spill] sm:$0xff] }
 0x1fc   : > { %v9286_v19 = vld [vmem:[#allocation5 + $0x368] sm:$0xf] }
 0x1fd   : > { %v12946_v2 = vadd.f32 %v2722_v32, %v2674_v20  ;;  %v2627_v33 = vadd.f32 %v2626_v16, %v2578_v17  ;;  %v14627_v20 = vld [vmem:[#allocation36_spill] sm:$0xff]  ;;  %v11142_v32 = vld [vmem:[#allocation5 + $0x74] sm:$0xf0] }
 0x1fe   : > { %v8902_v16 = vld [vmem:[#allocation5 + $0x68] sm:$0xf]  ;;  %v11238_v17 = vld [vmem:[#allocation5 + $0x374] sm:$0xf0] }
 0x1ff   : > { %v8903_v31 = vor.u32 %v11142_v32, %v8902_v16 }
 0x201   : > { %v2724_v55 = vpop.f32.mrf.mxu3  ;;  %v2629_v0 = vpop.f32.mrf.mxu1  ;;  %2957 = vmatpush.bf16.msra.mxu0 %v8903_v31  ;;  %v14629_v31 = vld [vmem:[#allocation38_spill] sm:$0xff] }
 0x202   : > { %v2675_v23 = vpop.f32.mrf.mxu2  ;;  %v2580_v57 = vpop.f32.mrf.mxu0 }
 0x203   : > { %v2676_v6 = vadd.f32 %v2675_v23, %v2627_v33  ;;  %v2581_v35 = vadd.f32 %v2580_v57, %v12926_v47  ;;  %v9159_v23 = vor.u32 %v11206_v59, %v9158_v60 }
 0x204   : > { %2824 = vmatmul.bf16.gmra.mxu1 %v14625_v3 }
 0x205   : > { %v12949_v39 = vadd.f32 %v2724_v55, %v2676_v6  ;;  %v2630_v36 = vadd.f32 %v2629_v0, %v2581_v35  ;;  %2775 = vmatmul.bf16.gmra.mxu0 %v14624_v4  ;;  %v9287_v6 = vor.u32 %v11238_v17, %v9286_v19  ;;  %3055 = vmatpush.bf16.msra.mxu2 %v9159_v23  ;;  %v11174_v4 = vld [vmem:[#allocation5 + $0x174] sm:$0xf0] }
 0x206   : > { %2922 = vmatmul.bf16.gmra.mxu3 %v14627_v20 }
 0x207   : > { %2873 = vmatmul.bf16.gmra.mxu2 %v14626_v1  ;;  %3104 = vmatpush.bf16.msra.mxu3 %v9287_v6  ;;  %v9030_v1 = vld [vmem:[#allocation5 + $0x168] sm:$0xf]  ;;  %v14630_v6 = vld [vmem:[#allocation39_spill] sm:$0xff] }
 0x208   : > { %v9031_v59 = vor.u32 %v11174_v4, %v9030_v1  ;;  %v9142_v4 = vld [vmem:[#allocation5 + $0x248] sm:$0xf] }
 0x209   : > { %v2727_v57 = vpop.f32.mrf.mxu3  ;;  %v2631_v3 = vpop.f32.mrf.mxu1  ;;  %v8886_v1 = vld [vmem:[#allocation5 + $0x48] sm:$0xf] }
 0x20a   : > { %v2678_v33 = vpop.f32.mrf.mxu2  ;;  %v2582_v35 = vpop.f32.mrf.mxu0  ;;  %3006 = vmatpush.bf16.msra.mxu1 %v9031_v59 }
 0x20b   : > { %v2679_v55 = vadd.f32 %v2678_v33, %v2630_v36  ;;  %v2583_v0 = vadd.f32 %v2582_v35, %v12926_v47  ;;  %v14628_v33 = vld [vmem:[#allocation37_spill] sm:$0xff] }
 0x20c   : > { %v9270_v35 = vld [vmem:[#allocation5 + $0x348] sm:$0xf] }
 0x20d   : > { %v12956_v20 = vadd.f32 %v2727_v57, %v2679_v55  ;;  %v2632_v60 = vadd.f32 %v2631_v3, %v2583_v0  ;;  %v14631_v55 = vld [vmem:[#allocation40_spill] sm:$0xff]  ;;  %v11202_v3 = vld [vmem:[#allocation5 + $0x254] sm:$0xf0] }
 0x20e   : > { %v11138_v57 = vld [vmem:[#allocation5 + $0x54] sm:$0xf0] }
 0x20f   : > { %v11234_v0 = vld [vmem:[#allocation5 + $0x354] sm:$0xf0]  ;;  %v8887_v59 = vor.u32 %v11138_v57, %v8886_v1 }
 0x211   : > { %v2729_v16 = vpop.f32.mrf.mxu3  ;;  %v2634_v19 = vpop.f32.mrf.mxu1  ;;  %2958 = vmatpush.bf16.msra.mxu0 %v8887_v59  ;;  %v14633_v59 = vld [vmem:[#allocation42_spill] sm:$0xff] }
 0x212   : > { %v2680_v18 = vpop.f32.mrf.mxu2  ;;  %v2585_v32 = vpop.f32.mrf.mxu0 }
 0x213   : > { %v2681_v5 = vadd.f32 %v2680_v18, %v2632_v60  ;;  %v2586_v36 = vadd.f32 %v2585_v32, %v12926_v47  ;;  %v9143_v18 = vor.u32 %v11202_v3, %v9142_v4 }
 0x214   : > { %2829 = vmatmul.bf16.gmra.mxu1 %v14629_v31 }
 0x215   : > { %v12959_v23 = vadd.f32 %v2729_v16, %v2681_v5  ;;  %v2635_v17 = vadd.f32 %v2634_v19, %v2586_v36  ;;  %2780 = vmatmul.bf16.gmra.mxu0 %v14628_v33  ;;  %v9271_v5 = vor.u32 %v11234_v0, %v9270_v35  ;;  %3056 = vmatpush.bf16.msra.mxu2 %v9143_v18  ;;  %v11170_v33 = vld [vmem:[#allocation5 + $0x154] sm:$0xf0] }
 0x216   : > { %2927 = vmatmul.bf16.gmra.mxu3 %v14631_v55 }
 0x217   : > { %2878 = vmatmul.bf16.gmra.mxu2 %v14630_v6  ;;  %3105 = vmatpush.bf16.msra.mxu3 %v9271_v5  ;;  %v9014_v6 = vld [vmem:[#allocation5 + $0x148] sm:$0xf]  ;;  %v14634_v5 = vld [vmem:[#allocation43_spill] sm:$0xff] }
 0x218   : > { %v9015_v3 = vor.u32 %v11170_v33, %v9014_v6  ;;  %v9126_v33 = vld [vmem:[#allocation5 + $0x228] sm:$0xf] }
 0x219   : > { %v2732_v32 = vpop.f32.mrf.mxu3  ;;  %v2636_v31 = vpop.f32.mrf.mxu1  ;;  %v8870_v6 = vld [vmem:[#allocation5 + $0x28] sm:$0xf] }
 0x21a   : > { %v2683_v60 = vpop.f32.mrf.mxu2  ;;  %v2587_v36 = vpop.f32.mrf.mxu0  ;;  %3007 = vmatpush.bf16.msra.mxu1 %v9015_v3 }
 0x21b   : > { %v2684_v16 = vadd.f32 %v2683_v60, %v2635_v17  ;;  %v2588_v19 = vadd.f32 %v2587_v36, %v12926_v47  ;;  %v14632_v60 = vld [vmem:[#allocation41_spill] sm:$0xff] }
 0x21c   : > { %v9254_v36 = vld [vmem:[#allocation5 + $0x328] sm:$0xf] }
 0x21d   : > { %v12966_v55 = vadd.f32 %v2732_v32, %v2684_v16  ;;  %v2637_v4 = vadd.f32 %v2636_v31, %v2588_v19  ;;  %v14635_v16 = vld [vmem:[#allocation44_spill] sm:$0xff]  ;;  %v11198_v31 = vld [vmem:[#allocation5 + $0x234] sm:$0xf0] }
 0x21e   : > { %v11134_v32 = vld [vmem:[#allocation5 + $0x34] sm:$0xf0] }
 0x21f   : > { %v11230_v19 = vld [vmem:[#allocation5 + $0x334] sm:$0xf0]  ;;  %v8871_v3 = vor.u32 %v11134_v32, %v8870_v6 }
 0x221   : > { %v2734_v1 = vpop.f32.mrf.mxu3  ;;  %v2639_v35 = vpop.f32.mrf.mxu1  ;;  %2959 = vmatpush.bf16.msra.mxu0 %v8871_v3  ;;  %v14637_v3 = vld [vmem:[#allocation46_spill] sm:$0xff] }
 0x222   : > { %v2685_v21 = vpop.f32.mrf.mxu2  ;;  %v2590_v57 = vpop.f32.mrf.mxu0 }
 0x223   : > { %v2686_v62 = vadd.f32 %v2685_v21, %v2637_v4  ;;  %v2591_v17 = vadd.f32 %v2590_v57, %v12926_v47  ;;  %v9127_v21 = vor.u32 %v11198_v31, %v9126_v33 }
 0x224   : > { %2834 = vmatmul.bf16.gmra.mxu1 %v14633_v59 }
 0x225   : > { %v12969_v18 = vadd.f32 %v2734_v1, %v2686_v62  ;;  %v2640_v0 = vadd.f32 %v2639_v35, %v2591_v17  ;;  %2785 = vmatmul.bf16.gmra.mxu0 %v14632_v60  ;;  %v9255_v62 = vor.u32 %v11230_v19, %v9254_v36  ;;  %3057 = vmatpush.bf16.msra.mxu2 %v9127_v21  ;;  %v11166_v60 = vld [vmem:[#allocation5 + $0x134] sm:$0xf0] }
 0x226   : > { %2932 = vmatmul.bf16.gmra.mxu3 %v14635_v16 }
 0x227   : > { %2883 = vmatmul.bf16.gmra.mxu2 %v14634_v5  ;;  %3106 = vmatpush.bf16.msra.mxu3 %v9255_v62  ;;  %v8998_v5 = vld [vmem:[#allocation5 + $0x128] sm:$0xf]  ;;  %v14638_v62 = vld [vmem:[#allocation47_spill] sm:$0xff] }
 0x228   : > { %v8999_v31 = vor.u32 %v11166_v60, %v8998_v5  ;;  %v9110_v60 = vld [vmem:[#allocation5 + $0x208] sm:$0xf] }
 0x229   : > { %v2737_v57 = vpop.f32.mrf.mxu3  ;;  %v2641_v59 = vpop.f32.mrf.mxu1  ;;  %v8854_v5 = vld [vmem:[#allocation5 + $0x8] sm:$0xf] }
 0x22a   : > { %v2688_v4 = vpop.f32.mrf.mxu2  ;;  %v2592_v17 = vpop.f32.mrf.mxu0  ;;  %3008 = vmatpush.bf16.msra.mxu1 %v8999_v31 }
 0x22b   : > { %v2689_v1 = vadd.f32 %v2688_v4, %v2640_v0  ;;  %v2593_v35 = vadd.f32 %v2592_v17, %v12926_v47  ;;  %v14636_v4 = vld [vmem:[#allocation45_spill] sm:$0xff] }
 0x22c   : > { %v9238_v17 = vld [vmem:[#allocation5 + $0x308] sm:$0xf] }
 0x22d   : > { %v12976_v16 = vadd.f32 %v2737_v57, %v2689_v1  ;;  %v2642_v33 = vadd.f32 %v2641_v59, %v2593_v35  ;;  %v14639_v1 = vld [vmem:[#allocation48_spill] sm:$0xff]  ;;  %v11194_v59 = vld [vmem:[#allocation5 + $0x214] sm:$0xf0] }
 0x22e   : > { %v11130_v57 = vld [vmem:[#allocation5 + $0x14] sm:$0xf0] }
 0x22f   : > { %v11226_v35 = vld [vmem:[#allocation5 + $0x314] sm:$0xf0]  ;;  %v8855_v31 = vor.u32 %v11130_v57, %v8854_v5 }
 0x231   : > { %v2739_v6 = vpop.f32.mrf.mxu3  ;;  %v2644_v36 = vpop.f32.mrf.mxu1  ;;  %2960 = vmatpush.bf16.msra.mxu0 %v8855_v31  ;;  %v14641_v31 = vld [vmem:[#allocation50_spill] sm:$0xff] }
 0x232   : > { %v2690_v30 = vpop.f32.mrf.mxu2  ;;  %v2595_v32 = vpop.f32.mrf.mxu0 }
 0x233   : > { %v2691_v34 = vadd.f32 %v2690_v30, %v2642_v33  ;;  %v2596_v0 = vadd.f32 %v2595_v32, %v12926_v47  ;;  %v9111_v30 = vor.u32 %v11194_v59, %v9110_v60 }
 0x234   : > { %2839 = vmatmul.bf16.gmra.mxu1 %v14637_v3 }
 0x235   : > { %v12979_v21 = vadd.f32 %v2739_v6, %v2691_v34  ;;  %v2645_v19 = vadd.f32 %v2644_v36, %v2596_v0  ;;  %2790 = vmatmul.bf16.gmra.mxu0 %v14636_v4  ;;  %v9239_v34 = vor.u32 %v11226_v35, %v9238_v17  ;;  %3058 = vmatpush.bf16.msra.mxu2 %v9111_v30  ;;  %v11162_v4 = vld [vmem:[#allocation5 + $0x114] sm:$0xf0] }
 0x236   : > { %2937 = vmatmul.bf16.gmra.mxu3 %v14639_v1 }
 0x237   : > { %2888 = vmatmul.bf16.gmra.mxu2 %v14638_v62  ;;  %3107 = vmatpush.bf16.msra.mxu3 %v9239_v34  ;;  %v8982_v62 = vld [vmem:[#allocation5 + $0x108] sm:$0xf]  ;;  %v14642_v34 = vld [vmem:[#allocation51_spill] sm:$0xff] }
 0x238   : > { %v8983_v59 = vor.u32 %v11162_v4, %v8982_v62  ;;  %v9734_v4 = vld [vmem:[#allocation5 + $0x6e8] sm:$0xf] }
 0x239   : > { %v2742_v32 = vpop.f32.mrf.mxu3  ;;  %v2646_v3 = vpop.f32.mrf.mxu1  ;;  %v9478_v62 = vld [vmem:[#allocation5 + $0x4e8] sm:$0xf] }
 0x23a   : > { %v2693_v33 = vpop.f32.mrf.mxu2  ;;  %v2597_v0 = vpop.f32.mrf.mxu0  ;;  %3009 = vmatpush.bf16.msra.mxu1 %v8983_v59 }
 0x23b   : > { %v2694_v6 = vadd.f32 %v2693_v33, %v2645_v19  ;;  %v2598_v36 = vadd.f32 %v2597_v0, %v12926_v47  ;;  %v14640_v33 = vld [vmem:[#allocation49_spill] sm:$0xff] }
 0x23c   : > { %v9862_v0 = vld [vmem:[#allocation5 + $0x7e8] sm:$0xf] }
 0x23d   : > { %v12986_v1 = vadd.f32 %v2742_v32, %v2694_v6  ;;  %v2647_v60 = vadd.f32 %v2646_v3, %v2598_v36  ;;  %v14643_v6 = vld [vmem:[#allocation52_spill] sm:$0xff]  ;;  %v11350_v3 = vld [vmem:[#allocation5 + $0x6f4] sm:$0xf0] }
 0x23e   : > { %v11286_v32 = vld [vmem:[#allocation5 + $0x4f4] sm:$0xf0] }
 0x23f   : > { %v11382_v36 = vld [vmem:[#allocation5 + $0x7f4] sm:$0xf0]  ;;  %v9479_v59 = vor.u32 %v11286_v32, %v9478_v62 }
 0x241   : > { %v2744_v5 = vpop.f32.mrf.mxu3  ;;  %v2649_v17 = vpop.f32.mrf.mxu1  ;;  %3149 = vmatpush.bf16.msrb.mxu0 %v9479_v59  ;;  %v14645_v59 = vld [vmem:[#allocation55_spill] sm:$0xff] }
 0x242   : > { %v2695_v61 = vpop.f32.mrf.mxu2  ;;  %v2600_v57 = vpop.f32.mrf.mxu0 }
 0x243   : > { %v2696_v22 = vadd.f32 %v2695_v61, %v2647_v60  ;;  %v2601_v19 = vadd.f32 %v2600_v57, %v12926_v47  ;;  %v9735_v61 = vor.u32 %v11350_v3, %v9734_v4  ;;  %v11318_v4 = vld [vmem:[#allocation5 + $0x5f4] sm:$0xf0] }
 0x244   : > { %2844 = vmatmul.bf16.gmra.mxu1 %v14641_v31 }
 0x245   : > { %v12989_v30 = vadd.f32 %v2744_v5, %v2696_v22  ;;  %v2650_v35 = vadd.f32 %v2649_v17, %v2601_v19  ;;  %2795 = vmatmul.bf16.gmra.mxu0 %v14640_v33  ;;  %v9863_v22 = vor.u32 %v11382_v36, %v9862_v0  ;;  %3247 = vmatpush.bf16.msrb.mxu2 %v9735_v61  ;;  %v9606_v33 = vld [vmem:[#allocation5 + $0x5e8] sm:$0xf] }
 0x246   : > { %2942 = vmatmul.bf16.gmra.mxu3 %v14643_v6  ;;  %v9607_v3 = vor.u32 %v11318_v4, %v9606_v33  ;;  %v9718_v33 = vld [vmem:[#allocation5 + $0x6c8] sm:$0xf] }
 0x247   : > { %2893 = vmatmul.bf16.gmra.mxu2 %v14642_v34  ;;  %3296 = vmatpush.bf16.msrb.mxu3 %v9863_v22  ;;  %v11346_v22 = vld [vmem:[#allocation5 + $0x6d4] sm:$0xf0] }
 0x248   : > { %3198 = vmatpush.bf16.msrb.mxu1 %v9607_v3 }
 0x249   : > { %v2747_v57 = vpop.f32.mrf.mxu3  ;;  %v2651_v31 = vpop.f32.mrf.mxu1 }
 0x24a   : > { %v2698_v60 = vpop.f32.mrf.mxu2  ;;  %v2602_v19 = vpop.f32.mrf.mxu0 }
 0x24b   : > { %v2699_v5 = vadd.f32 %v2698_v60, %v2650_v35  ;;  %v2603_v17 = vadd.f32 %v2602_v19, %v12926_v47  ;;  %v14644_v60 = vld [vmem:[#allocation54_spill] sm:$0xff]  ;;  %v9846_v19 = vld [vmem:[#allocation5 + $0x7c8] sm:$0xf] }
 0x24d   : > { %v12996_v6 = vadd.f32 %v2747_v57, %v2699_v5  ;;  %v2652_v34 = vadd.f32 %v2651_v31, %v2603_v17  ;;  %v14646_v31 = vld [vmem:[#allocation56_spill] sm:$0xff]  ;;  %v11282_v57 = vld [vmem:[#allocation5 + $0x4d4] sm:$0xf0] }
 0x24e   : > { %v9462_v5 = vld [vmem:[#allocation5 + $0x4c8] sm:$0xf]  ;;  %v11378_v17 = vld [vmem:[#allocation5 + $0x7d4] sm:$0xf0] }
 0x251   : > { %v2749_v62 = vpop.f32.mrf.mxu3  ;;  %v2654_v0 = vpop.f32.mrf.mxu1 }
 0x252   : > { %v2700_v29 = vpop.f32.mrf.mxu2  ;;  %v2605_v32 = vpop.f32.mrf.mxu0 }
 0x253   : > { %v2701_v63 = vadd.f32 %v2700_v29, %v2652_v34  ;;  %v2606_v35 = vadd.f32 %v2605_v32, %v12926_v47  ;;  %v9719_v34 = vor.u32 %v11346_v22, %v9718_v33  ;;  %v9847_v32 = vor.u32 %v11378_v17, %v9846_v19  ;;  %v9446_v17 = vld [vmem:[#allocation5 + $0x4a8] sm:$0xf] }
 0x254   : > { %2849 = vmatmul.bf16.gmra.mxu1 %v14644_v60  ;;  %v9590_v60 = vld [vmem:[#allocation5 + $0x5c8] sm:$0xf] }
 0x255   : > { %v12999_v61 = vadd.f32 %v2749_v62, %v2701_v63  ;;  %v2655_v36 = vadd.f32 %v2654_v0, %v2606_v35  ;;  %2800 = vmatmul.bf16.gmra.mxu0 %v12844_v7  ;;  %v9463_v62 = vor.u32 %v11282_v57, %v9462_v5  ;;  %3248 = vmatpush.bf16.msrb.mxu2 %v9719_v34  ;;  %v11314_v7 = vld [vmem:[#allocation5 + $0x5d4] sm:$0xf0] }
 0x256   : > { %2947 = vmatmul.bf16.gmra.mxu3 %v14646_v31  ;;  %v9591_v33 = vor.u32 %v11314_v7, %v9590_v60  ;;  %v14647_v34 = vld [vmem:[#allocation19_spill] sm:$0xff]  ;;  %v9702_v7 = vld [vmem:[#allocation5 + $0x6a8] sm:$0xf] }
 0x257   : > { %2898 = vmatmul.bf16.gmra.mxu2 %v14645_v59  ;;  %3150 = vmatpush.bf16.msrb.mxu0 %v9463_v62  ;;  %v11342_v60 = vld [vmem:[#allocation5 + $0x6b4] sm:$0xf0] }
 0x258   : > { %3297 = vmatpush.bf16.msrb.mxu3 %v9847_v32  ;;  %3199 = vmatpush.bf16.msrb.mxu1 %v9591_v33 }
 0x259   : > { %v2752_v63 = vpop.f32.mrf.mxu3  ;;  %v2656_v0 = vpop.f32.mrf.mxu1 }
 0x25a   : > { %v2703_v29 = vpop.f32.mrf.mxu2  ;;  %v2607_v3 = vpop.f32.mrf.mxu0 }
 0x25b   : > { %v2704_v4 = vadd.f32 %v2703_v29, %v2655_v36  ;;  %v2608_v35 = vadd.f32 %v2607_v3, %v12926_v47  ;;  %v11374_v3 = vld [vmem:[#allocation5 + $0x7b4] sm:$0xf0] }
 0x25d   : > { %v13006_v59 = vadd.f32 %v2752_v63, %v2704_v4  ;;  %v2657_v31 = vadd.f32 %v2656_v0, %v2608_v35  ;;  %v11278_v4 = vld [vmem:[#allocation5 + $0x4b4] sm:$0xf0]  ;;  %v9830_v63 = vld [vmem:[#allocation5 + $0x7a8] sm:$0xf] }
 0x25e   : > { %v9447_v62 = vor.u32 %v11278_v4, %v9446_v17 }
 0x260   : > { %3151 = vmatpush.bf16.msrb.mxu0 %v9447_v62  ;;  %v11338_v62 = vld [vmem:[#allocation5 + $0x694] sm:$0xf0] }
 0x261   : > { %v2754_v36 = vpop.f32.mrf.mxu3  ;;  %v2815_v57 = vpop.f32.mrf.mxu1 }
 0x262   : > { %v2705_v22 = vpop.f32.mrf.mxu2  ;;  %v2766_v29 = vpop.f32.mrf.mxu0 }
 0x263   : > { %v2706_v28 = vadd.f32 %v2705_v22, %v2657_v31  ;;  %v2767_v5 = vadd.f32 %v2766_v29, %v12936_v58  ;;  %v9703_v31 = vor.u32 %v11342_v60, %v9702_v7 }
 0x264   : > { %3010 = vmatmul.bf16.vlgmr.msra.gmra.mxu1 %v12504_v53 }
 0x265   : > { %v13009_v19 = vadd.f32 %v2754_v36, %v2706_v28  ;;  %v2816_v47 = vadd.f32 %v2815_v57, %v2767_v5  ;;  %2961 = vmatmul.bf16.vlgmr.msra.gmra.mxu0 %v12502_v48  ;;  %v9831_v28 = vor.u32 %v11374_v3, %v9830_v63  ;;  %3249 = vmatpush.bf16.msrb.mxu2 %v9703_v31  ;;  %v9574_v5 = vld [vmem:[#allocation5 + $0x5a8] sm:$0xf]  ;;  %v11310_v57 = vld [vmem:[#allocation5 + $0x5b4] sm:$0xf0] }
 0x266   : > { %3108 = vmatmul.bf16.vlgmr.msra.gmra.mxu3 %v14647_v34  ;;  %v9575_v7 = vor.u32 %v11310_v57, %v9574_v5 }
 0x267   : > { %3059 = vmatmul.bf16.vlgmr.msra.gmra.mxu2 %v12506_v54  ;;  %3298 = vmatpush.bf16.msrb.mxu3 %v9831_v28  ;;  %v9430_v28 = vld [vmem:[#allocation5 + $0x488] sm:$0xf] }
 0x268   : > { %3200 = vmatpush.bf16.msrb.mxu1 %v9575_v7 }
 0x269   : > { %v2913_v35 = vpop.f32.mrf.mxu3  ;;  %v2817_v22 = vpop.f32.mrf.mxu1 }
 0x26a   : > { %v2864_v58 = vpop.f32.mrf.mxu2  ;;  %v2768_v0 = vpop.f32.mrf.mxu0 }
 0x26b   : > { %v2865_v32 = vadd.f32 %v2864_v58, %v2816_v47  ;;  %v2769_v33 = vadd.f32 %v2768_v0, %v12939_v38  ;;  %v9686_v58 = vld [vmem:[#allocation5 + $0x688] sm:$0xf] }
 0x26c   : > { %v9814_v0 = vld [vmem:[#allocation5 + $0x788] sm:$0xf] }
 0x26d   : > { %v2914_v36 = vadd.f32 %v2913_v35, %v2865_v32  ;;  %v2818_v29 = vadd.f32 %v2817_v22, %v2769_v33  ;;  %v9687_v35 = vor.u32 %v11338_v62, %v9686_v58 }
 0x26f   : > { %v3738_v38 = vmax.f32 %v2914_v36, 0.0  ;;  %3250 = vmatpush.bf16.msrb.mxu2 %v9687_v35 }
 0x271   : > { %v2915_v54 = vpop.f32.mrf.mxu3  ;;  %v2820_v4 = vpop.f32.mrf.mxu1 }
 0x272   : > { %v2866_v60 = vpop.f32.mrf.mxu2  ;;  %v2771_v17 = vpop.f32.mrf.mxu0 }
 0x273   : > { %v2867_v34 = vadd.f32 %v2866_v60, %v2818_v29  ;;  %v2772_v47 = vadd.f32 %v2771_v17, %v12946_v2  ;;  %v11274_v2 = vld [vmem:[#allocation5 + $0x494] sm:$0xf0] }
 0x274   : > { %3015 = vmatmul.bf16.gmra.mxu1 %v12524_v25  ;;  %v9431_v33 = vor.u32 %v11274_v2, %v9430_v28 }
 0x275   : > { %v2916_v63 = vadd.f32 %v2915_v54, %v2867_v34  ;;  %v2821_v31 = vadd.f32 %v2820_v4, %v2772_v47  ;;  %2966 = vmatmul.bf16.gmra.mxu0 %v12522_v24  ;;  %v11370_v54 = vld [vmem:[#allocation5 + $0x794] sm:$0xf0]  ;;  %v9558_v47 = vld [vmem:[#allocation5 + $0x588] sm:$0xf] }
 0x276   : > { %3113 = vmatmul.bf16.gmra.mxu3 %v12528_v27  ;;  %v9815_v22 = vor.u32 %v11370_v54, %v9814_v0  ;;  %3152 = vmatpush.bf16.msrb.mxu0 %v9431_v33  ;;  %v11306_v4 = vld [vmem:[#allocation5 + $0x594] sm:$0xf0]  ;;  %v9670_v54 = vld [vmem:[#allocation5 + $0x668] sm:$0xf] }
 0x277   : > { %v3742_v3 = vmax.f32 %v2916_v63, 0.0  ;;  %3064 = vmatmul.bf16.gmra.mxu2 %v12526_v26  ;;  %v9559_v63 = vor.u32 %v11306_v4, %v9558_v47  ;;  %v9414_v33 = vld [vmem:[#allocation5 + $0x468] sm:$0xf] }
 0x278   : > { %3299 = vmatpush.bf16.msrb.mxu3 %v9815_v22 }
 0x279   : > { %v13021_v32 = vpack.c.bf16 %v3742_v3, %v3738_v38  ;;  %v2918_v29 = vpop.f32.mrf.mxu3  ;;  %v2822_v7 = vpop.f32.mrf.mxu1  ;;  %3201 = vmatpush.bf16.msrb.mxu1 %v9559_v63 }
 0x27a   : > { %v2869_v34 = vpop.f32.mrf.mxu2  ;;  %v2773_v5 = vpop.f32.mrf.mxu0 }
 0x27b   : > { %14648 = vst [vmem:[#allocation63_spill] sm:$0xff] %v13021_v32  ;;  %v2870_v36 = vadd.f32 %v2869_v34, %v2821_v31  ;;  %v2774_v57 = vadd.f32 %v2773_v5, %v12949_v39  ;;  %v11334_v34 = vld [vmem:[#allocation5 + $0x674] sm:$0xf0] }
 0x27c   : > { %v9671_v22 = vor.u32 %v11334_v34, %v9670_v54 }
 0x27d   : > { %v2919_v60 = vadd.f32 %v2918_v29, %v2870_v36  ;;  %v2823_v17 = vadd.f32 %v2822_v7, %v2774_v57  ;;  %v11270_v36 = vld [vmem:[#allocation5 + $0x474] sm:$0xf0]  ;;  %v9798_v29 = vld [vmem:[#allocation5 + $0x768] sm:$0xf] }
 0x27e   : > { %v9415_v7 = vor.u32 %v11270_v36, %v9414_v33  ;;  %3251 = vmatpush.bf16.msrb.mxu2 %v9671_v22 }
 0x27f   : > { %v3746_v39 = vmax.f32 %v2919_v60, 0.0 }
 0x280   : > { %3153 = vmatpush.bf16.msrb.mxu0 %v9415_v7 }
 0x281   : > { %v2920_v58 = vpop.f32.mrf.mxu3  ;;  %v2825_v28 = vpop.f32.mrf.mxu1 }
 0x282   : > { %v2871_v38 = vpop.f32.mrf.mxu2  ;;  %v2776_v62 = vpop.f32.mrf.mxu0 }
 0x283   : > { %v2872_v3 = vadd.f32 %v2871_v38, %v2823_v17  ;;  %v2777_v31 = vadd.f32 %v2776_v62, %v12956_v20  ;;  %v11366_v20 = vld [vmem:[#allocation5 + $0x774] sm:$0xf0]  ;;  %v9542_v62 = vld [vmem:[#allocation5 + $0x568] sm:$0xf] }
 0x284   : > { %3020 = vmatmul.bf16.gmra.mxu1 %v12544_v50  ;;  %v9799_v17 = vor.u32 %v11366_v20, %v9798_v29  ;;  %v9654_v29 = vld [vmem:[#allocation5 + $0x648] sm:$0xf]  ;;  %v11330_v20 = vld [vmem:[#allocation5 + $0x654] sm:$0xf0] }
 0x285   : > { %v2921_v2 = vadd.f32 %v2920_v58, %v2872_v3  ;;  %v2826_v35 = vadd.f32 %v2825_v28, %v2777_v31  ;;  %2971 = vmatmul.bf16.gmra.mxu0 %v12542_v49  ;;  %v11302_v31 = vld [vmem:[#allocation5 + $0x574] sm:$0xf0]  ;;  %v9655_v7 = vor.u32 %v11330_v20, %v9654_v29 }
 0x286   : > { %3118 = vmatmul.bf16.gmra.mxu3 %v12548_v52  ;;  %v9543_v28 = vor.u32 %v11302_v31, %v9542_v62 }
 0x287   : > { %v3750_v0 = vmax.f32 %v2921_v2, 0.0  ;;  %3069 = vmatmul.bf16.gmra.mxu2 %v12546_v51  ;;  %3300 = vmatpush.bf16.msrb.mxu3 %v9799_v17  ;;  %v11266_v17 = vld [vmem:[#allocation5 + $0x454] sm:$0xf0] }
 0x288   : > { %3202 = vmatpush.bf16.msrb.mxu1 %v9543_v28  ;;  %3252 = vmatpush.bf16.msrb.mxu2 %v9655_v7 }
 0x289   : > { %v13029_v5 = vpack.c.bf16 %v3750_v0, %v3746_v39  ;;  %v2923_v47 = vpop.f32.mrf.mxu3  ;;  %v2827_v38 = vpop.f32.mrf.mxu1 }
 0x28a   : > { %v2874_v57 = vpop.f32.mrf.mxu2  ;;  %v2778_v4 = vpop.f32.mrf.mxu0 }
 0x28b   : > { %14649 = vst [vmem:[#allocation64_spill] sm:$0xff] %v13029_v5  ;;  %v2875_v60 = vadd.f32 %v2874_v57, %v2826_v35  ;;  %v2779_v63 = vadd.f32 %v2778_v4, %v12959_v23  ;;  %v9398_v57 = vld [vmem:[#allocation5 + $0x448] sm:$0xf] }
 0x28d   : > { %v2924_v3 = vadd.f32 %v2923_v47, %v2875_v60  ;;  %v2828_v58 = vadd.f32 %v2827_v38, %v2779_v63  ;;  %v9782_v60 = vld [vmem:[#allocation5 + $0x748] sm:$0xf]  ;;  %v9399_v63 = vor.u32 %v11266_v17, %v9398_v57 }
 0x28e   : > { %v9638_v17 = vld [vmem:[#allocation5 + $0x628] sm:$0xf] }
 0x28f   : > { %v3754_v23 = vmax.f32 %v2924_v3, 0.0  ;;  %3154 = vmatpush.bf16.msrb.mxu0 %v9399_v63  ;;  %v11262_v63 = vld [vmem:[#allocation5 + $0x434] sm:$0xf0] }
 0x291   : > { %v2925_v0 = vpop.f32.mrf.mxu3  ;;  %v2830_v34 = vpop.f32.mrf.mxu1 }
 0x292   : > { %v2876_v2 = vpop.f32.mrf.mxu2  ;;  %v2781_v54 = vpop.f32.mrf.mxu0 }
 0x293   : > { %v2877_v39 = vadd.f32 %v2876_v2, %v2828_v58  ;;  %v2782_v35 = vadd.f32 %v2781_v54, %v12966_v55  ;;  %v11362_v55 = vld [vmem:[#allocation5 + $0x754] sm:$0xf0] }
 0x294   : > { %3025 = vmatmul.bf16.gmra.mxu1 %v12564_v13  ;;  %v9783_v38 = vor.u32 %v11362_v55, %v9782_v60  ;;  %v11298_v54 = vld [vmem:[#allocation5 + $0x554] sm:$0xf0]  ;;  %v9382_v55 = vld [vmem:[#allocation5 + $0x428] sm:$0xf] }
 0x295   : > { %v2926_v33 = vadd.f32 %v2925_v0, %v2877_v39  ;;  %v2831_v22 = vadd.f32 %v2830_v34, %v2782_v35  ;;  %2976 = vmatmul.bf16.gmra.mxu0 %v12562_v12  ;;  %v9526_v0 = vld [vmem:[#allocation5 + $0x548] sm:$0xf]  ;;  %v11326_v60 = vld [vmem:[#allocation5 + $0x634] sm:$0xf0] }
 0x296   : > { %3123 = vmatmul.bf16.gmra.mxu3 %v12568_v15  ;;  %v9527_v35 = vor.u32 %v11298_v54, %v9526_v0 }
 0x297   : > { %v3758_v36 = vmax.f32 %v2926_v33, 0.0  ;;  %3074 = vmatmul.bf16.gmra.mxu2 %v12566_v14  ;;  %3301 = vmatpush.bf16.msrb.mxu3 %v9783_v38  ;;  %v9766_v38 = vld [vmem:[#allocation5 + $0x728] sm:$0xf] }
 0x298   : > { %3203 = vmatpush.bf16.msrb.mxu1 %v9527_v35 }
 0x299   : > { %v13037_v47 = vpack.c.bf16 %v3758_v36, %v3754_v23  ;;  %v2928_v58 = vpop.f32.mrf.mxu3  ;;  %v2832_v28 = vpop.f32.mrf.mxu1 }
 0x29a   : > { %v2879_v4 = vpop.f32.mrf.mxu2  ;;  %v2783_v62 = vpop.f32.mrf.mxu0 }
 0x29b   : > { %14650 = vst [vmem:[#allocation65_spill] sm:$0xff] %v13037_v47  ;;  %v2880_v3 = vadd.f32 %v2879_v4, %v2831_v22  ;;  %v2784_v31 = vadd.f32 %v2783_v62, %v12969_v18  ;;  %v9639_v4 = vor.u32 %v11326_v60, %v9638_v17  ;;  %v9383_v62 = vor.u32 %v11262_v63, %v9382_v55  ;;  %v11322_v63 = vld [vmem:[#allocation5 + $0x614] sm:$0xf0] }
 0x29d   : > { %v2929_v2 = vadd.f32 %v2928_v58, %v2880_v3  ;;  %v2833_v39 = vadd.f32 %v2832_v28, %v2784_v31  ;;  %3253 = vmatpush.bf16.msrb.mxu2 %v9639_v4  ;;  %3155 = vmatpush.bf16.msrb.mxu0 %v9383_v62  ;;  %v9622_v4 = vld [vmem:[#allocation5 + $0x608] sm:$0xf] }
 0x29e   : > { %v9750_v62 = vld [vmem:[#allocation5 + $0x708] sm:$0xf] }
 0x29f   : > { %v3762_v18 = vmax.f32 %v2929_v2, 0.0 }
 0x2a1   : > { %v2930_v23 = vpop.f32.mrf.mxu3  ;;  %v2835_v29 = vpop.f32.mrf.mxu1 }
 0x2a2   : > { %v2881_v34 = vpop.f32.mrf.mxu2  ;;  %v2786_v36 = vpop.f32.mrf.mxu0 }
 0x2a3   : > { %v2882_v33 = vadd.f32 %v2881_v34, %v2833_v39  ;;  %v2787_v22 = vadd.f32 %v2786_v36, %v12976_v16  ;;  %v11358_v16 = vld [vmem:[#allocation5 + $0x734] sm:$0xf0] }
 0x2a4   : > { %3030 = vmatmul.bf16.gmra.mxu1 %v12584_v41  ;;  %v9767_v31 = vor.u32 %v11358_v16, %v9766_v38  ;;  %v9366_v38 = vld [vmem:[#allocation5 + $0x408] sm:$0xf]  ;;  %v9623_v16 = vor.u32 %v11322_v63, %v9622_v4 }
 0x2a5   : > { %v2931_v20 = vadd.f32 %v2930_v23, %v2882_v33  ;;  %v2836_v57 = vadd.f32 %v2835_v29, %v2787_v22  ;;  %2981 = vmatmul.bf16.gmra.mxu0 %v12582_v40  ;;  %v9510_v33 = vld [vmem:[#allocation5 + $0x528] sm:$0xf]  ;;  %v11294_v23 = vld [vmem:[#allocation5 + $0x534] sm:$0xf0] }
 0x2a6   : > { %3128 = vmatmul.bf16.gmra.mxu3 %v12588_v43  ;;  %v9511_v36 = vor.u32 %v11294_v23, %v9510_v33  ;;  %3254 = vmatpush.bf16.msrb.mxu2 %v9623_v16  ;;  %v9224_v16 = vld [vmem:[#allocation5 + $0x2f8] sm:$0xf0] }
 0x2a7   : > { %v3766_v7 = vmax.f32 %v2931_v20, 0.0  ;;  %3079 = vmatmul.bf16.gmra.mxu2 %v12586_v42  ;;  %3302 = vmatpush.bf16.msrb.mxu3 %v9767_v31 }
 0x2a8   : > { %3204 = vmatpush.bf16.msrb.mxu1 %v9511_v36 }
 0x2a9   : > { %v13045_v3 = vpack.c.bf16 %v3766_v7, %v3762_v18  ;;  %v2933_v2 = vpop.f32.mrf.mxu3  ;;  %v2837_v54 = vpop.f32.mrf.mxu1 }
 0x2aa   : > { %v2884_v58 = vpop.f32.mrf.mxu2  ;;  %v2788_v39 = vpop.f32.mrf.mxu0 }
 0x2ab   : > { %14651 = vst [vmem:[#allocation66_spill] sm:$0xff] %v13045_v3  ;;  %v2885_v28 = vadd.f32 %v2884_v58, %v2836_v57  ;;  %v2789_v0 = vadd.f32 %v2788_v39, %v12979_v21  ;;  %v11258_v58 = vld [vmem:[#allocation5 + $0x414] sm:$0xf0] }
 0x2ad   : > { %v2934_v35 = vadd.f32 %v2933_v2, %v2885_v28  ;;  %v2838_v34 = vadd.f32 %v2837_v54, %v2789_v0  ;;  %v9367_v2 = vor.u32 %v11258_v58, %v9366_v38  ;;  %v11220_v38 = vld [vmem:[#allocation5 + $0x2ec] sm:$0xf] }
 0x2ae   : > { %v11156_v58 = vld [vmem:[#allocation5 + $0xec] sm:$0xf] }
 0x2af   : > { %v3770_v21 = vmax.f32 %v2934_v35, 0.0  ;;  %3156 = vmatpush.bf16.msrb.mxu0 %v9367_v2 }
 0x2b1   : > { %v2935_v20 = vpop.f32.mrf.mxu3  ;;  %v2840_v7 = vpop.f32.mrf.mxu1 }
 0x2b2   : > { %v2886_v22 = vpop.f32.mrf.mxu2  ;;  %v2791_v18 = vpop.f32.mrf.mxu0 }
 0x2b3   : > { %v2887_v29 = vadd.f32 %v2886_v22, %v2838_v34  ;;  %v2792_v57 = vadd.f32 %v2791_v18, %v12986_v1  ;;  %v11354_v1 = vld [vmem:[#allocation5 + $0x714] sm:$0xf0]  ;;  %v9494_v22 = vld [vmem:[#allocation5 + $0x508] sm:$0xf] }
 0x2b4   : > { %3035 = vmatmul.bf16.gmra.mxu1 %v12604_v9  ;;  %v9751_v39 = vor.u32 %v11354_v1, %v9750_v62  ;;  %v9227_v62 = vor.u32 %v11220_v38, %v9224_v16  ;;  %v8968_v1 = vld [vmem:[#allocation5 + $0xf8] sm:$0xf0]  ;;  %v14654_v16 = vld [vmem:[#allocation22_spill] sm:$0xff] }
 0x2b5   : > { %v2936_v17 = vadd.f32 %v2935_v20, %v2887_v29  ;;  %v2841_v60 = vadd.f32 %v2840_v7, %v2792_v57  ;;  %2986 = vmatmul.bf16.gmra.mxu0 %v12602_v8  ;;  %v11290_v29 = vld [vmem:[#allocation5 + $0x514] sm:$0xf0] }
 0x2b6   : > { %3133 = vmatmul.bf16.gmra.mxu3 %v12608_v11  ;;  %v9495_v20 = vor.u32 %v11290_v29, %v9494_v22  ;;  %3443 = vmatpush.bf16.msra.mxu2 %v9227_v62  ;;  %v11188_v29 = vld [vmem:[#allocation5 + $0x1ec] sm:$0xf]  ;;  %v14656_v62 = vld [vmem:[#allocation24_spill] sm:$0xff] }
 0x2b7   : > { %v3774_v55 = vmax.f32 %v2936_v17, 0.0  ;;  %3084 = vmatmul.bf16.gmra.mxu2 %v12606_v10  ;;  %3303 = vmatpush.bf16.msrb.mxu3 %v9751_v39 }
 0x2b8   : > { %3205 = vmatpush.bf16.msrb.mxu1 %v9495_v20  ;;  %v9096_v20 = vld [vmem:[#allocation5 + $0x1f8] sm:$0xf0] }
 0x2b9   : > { %v13053_v31 = vpack.c.bf16 %v3774_v55, %v3770_v21  ;;  %v2938_v54 = vpop.f32.mrf.mxu3  ;;  %v2842_v33 = vpop.f32.mrf.mxu1 }
 0x2ba   : > { %v2889_v28 = vpop.f32.mrf.mxu2  ;;  %v2793_v35 = vpop.f32.mrf.mxu0 }
 0x2bb   : > { %14652 = vst [vmem:[#allocation67_spill] sm:$0xff] %v13053_v31  ;;  %v2890_v0 = vadd.f32 %v2889_v28, %v2841_v60  ;;  %v2794_v34 = vadd.f32 %v2793_v35, %v12989_v30  ;;  %v11252_v28 = vld [vmem:[#allocation5 + $0x3ec] sm:$0xf]  ;;  %v9048_v31 = vld [vmem:[#allocation5 + $0x198] sm:$0xf0] }
 0x2bd   : > { %v2939_v23 = vadd.f32 %v2938_v54, %v2890_v0  ;;  %v2843_v36 = vadd.f32 %v2842_v33, %v2794_v34  ;;  %v8971_v0 = vor.u32 %v11156_v58, %v8968_v1  ;;  %v14655_v58 = vld [vmem:[#allocation23_spill] sm:$0xff]  ;;  %v11216_v1 = vld [vmem:[#allocation5 + $0x2cc] sm:$0xf] }
 0x2bf   : > { %v3778_v30 = vmax.f32 %v2939_v23, 0.0  ;;  %3345 = vmatpush.bf16.msra.mxu0 %v8971_v0  ;;  %v8952_v0 = vld [vmem:[#allocation5 + $0xd8] sm:$0xf0] }
 0x2c1   : > { %v2940_v7 = vpop.f32.mrf.mxu3  ;;  %v2845_v21 = vpop.f32.mrf.mxu1 }
 0x2c2   : > { %v2891_v18 = vpop.f32.mrf.mxu2  ;;  %v2796_v17 = vpop.f32.mrf.mxu0 }
 0x2c3   : > { %v2892_v57 = vadd.f32 %v2891_v18, %v2843_v36  ;;  %v2797_v60 = vadd.f32 %v2796_v17, %v12996_v6  ;;  %v9352_v6 = vld [vmem:[#allocation5 + $0x3f8] sm:$0xf0] }
 0x2c4   : > { %3040 = vmatmul.bf16.gmra.mxu1 %v12624_v45  ;;  %v9355_v54 = vor.u32 %v11252_v28, %v9352_v6  ;;  %v9208_v28 = vld [vmem:[#allocation5 + $0x2d8] sm:$0xf0]  ;;  %v11152_v6 = vld [vmem:[#allocation5 + $0xcc] sm:$0xf] }
 0x2c5   : > { %v2941_v55 = vadd.f32 %v2940_v7, %v2892_v57  ;;  %v2846_v4 = vadd.f32 %v2845_v21, %v2797_v60  ;;  %2991 = vmatmul.bf16.gmra.mxu0 %v12622_v44  ;;  %v9099_v57 = vor.u32 %v11188_v29, %v9096_v20 }
 0x2c6   : > { %3138 = vmatmul.bf16.gmra.mxu3 %v14608_v37 }
 0x2c7   : > { %v3782_v63 = vmax.f32 %v2941_v55, 0.0  ;;  %3089 = vmatmul.bf16.gmra.mxu2 %v12626_v46  ;;  %3492 = vmatpush.bf16.msra.mxu3 %v9355_v54  ;;  %v11248_v54 = vld [vmem:[#allocation5 + $0x3cc] sm:$0xf] }
 0x2c8   : > { %3394 = vmatpush.bf16.msra.mxu1 %v9099_v57 }
 0x2c9   : > { %v13061_v2 = vpack.c.bf16 %v3782_v63, %v3778_v30  ;;  %v2943_v34 = vpop.f32.mrf.mxu3  ;;  %v2847_v36 = vpop.f32.mrf.mxu1 }
 0x2ca   : > { %v2894_v39 = vpop.f32.mrf.mxu2  ;;  %v2798_v33 = vpop.f32.mrf.mxu0 }
 0x2cb   : > { %14653 = vst [vmem:[#allocation68_spill] sm:$0xff] %v13061_v2  ;;  %v2895_v35 = vadd.f32 %v2894_v39, %v2846_v4  ;;  %v2799_v23 = vadd.f32 %v2798_v33, %v12999_v61  ;;  %v9211_v39 = vor.u32 %v11216_v1, %v9208_v28  ;;  %v8955_v33 = vor.u32 %v11152_v6, %v8952_v0  ;;  %v11176_v2 = vld [vmem:[#allocation5 + $0x18c] sm:$0xf] }
 0x2cd   : > { %v2944_v22 = vadd.f32 %v2943_v34, %v2895_v35  ;;  %v2848_v18 = vadd.f32 %v2847_v36, %v2799_v23  ;;  %3444 = vmatpush.bf16.msra.mxu2 %v9211_v39  ;;  %3346 = vmatpush.bf16.msra.mxu0 %v8955_v33  ;;  %v14658_v39 = vld [vmem:[#allocation25_spill] sm:$0xff]  ;;  %v14661_v33 = vld [vmem:[#allocation28_spill] sm:$0xff] }
 0x2cf   : > { %v3786_v61 = vmax.f32 %v2944_v22, 0.0 }
 0x2d1   : > { %v2945_v60 = vpop.f32.mrf.mxu3  ;;  %v2850_v4 = vpop.f32.mrf.mxu1 }
 0x2d2   : > { %v2896_v7 = vpop.f32.mrf.mxu2  ;;  %v2801_v21 = vpop.f32.mrf.mxu0 }
 0x2d3   : > { %v2897_v17 = vadd.f32 %v2896_v7, %v2848_v18  ;;  %v2802_v55 = vadd.f32 %v2801_v21, %v13006_v59  ;;  %v9336_v59 = vld [vmem:[#allocation5 + $0x3d8] sm:$0xf0]  ;;  %v11184_v7 = vld [vmem:[#allocation5 + $0x1cc] sm:$0xf] }
 0x2d4   : > { %3045 = vmatmul.bf16.gmra.mxu1 %v14654_v16  ;;  %v9339_v23 = vor.u32 %v11248_v54, %v9336_v59  ;;  %v14659_v59 = vld [vmem:[#allocation26_spill] sm:$0xff] }
 0x2d5   : > { %v2946_v30 = vadd.f32 %v2945_v60, %v2897_v17  ;;  %v2851_v63 = vadd.f32 %v2850_v4, %v2802_v55  ;;  %2996 = vmatmul.bf16.gmra.mxu0 %v14610_v56  ;;  %v9080_v17 = vld [vmem:[#allocation5 + $0x1d8] sm:$0xf0]  ;;  %v12072_v55 = vld [vmem:[#allocation8] sm:$0xf] }
 0x2d6   : > { %3143 = vmatmul.bf16.gmra.mxu3 %v14656_v62  ;;  %v9083_v21 = vor.u32 %v11184_v7, %v9080_v17  ;;  %v13072_v4 = vperm.slane %v12072_v55, 2  ;;  %v9320_v7 = vld [vmem:[#allocation5 + $0x3b8] sm:$0xf0] }
 0x2d7   : > { %v3790_v38 = vmax.f32 %v2946_v30, 0.0  ;;  %3094 = vmatmul.bf16.gmra.mxu2 %v14655_v58  ;;  %3493 = vmatpush.bf16.msra.mxu3 %v9339_v23  ;;  %v11212_v23 = vld [vmem:[#allocation5 + $0x2ac] sm:$0xf]  ;;  %v9592_v62 = vld [vmem:[#allocation5 + $0x5d8] sm:$0xf0] }
 0x2d8   : > { %3395 = vmatpush.bf16.msra.mxu1 %v9083_v21 }
 0x2d9   : > { %v13069_v35 = vpack.c.bf16 %v3790_v38, %v3786_v61  ;;  %v2948_v22 = vpop.f32.mrf.mxu3  ;;  %v2852_v18 = vpop.f32.mrf.mxu1 }
 0x2da   : > { %v2899_v34 = vpop.f32.mrf.mxu2  ;;  %v2803_v29 = vpop.f32.mrf.mxu0 }
 0x2db   : > { %14657 = vst [vmem:[#allocation22_spill] sm:$0xff] %v13069_v35  ;;  %v2900_v36 = vadd.f32 %v2899_v34, %v2851_v63  ;;  %v2804_v20 = vadd.f32 %v2803_v29, %v13009_v19  ;;  %v14660_v34 = vld [vmem:[#allocation27_spill] sm:$0xff] }
 0x2dd   : > { %v2949_v57 = vadd.f32 %v2948_v22, %v2900_v36  ;;  %v2853_v60 = vadd.f32 %v2852_v18, %v2804_v20  ;;  %v9192_v36 = vld [vmem:[#allocation5 + $0x2b8] sm:$0xf0]  ;;  %v11148_v22 = vld [vmem:[#allocation5 + $0xac] sm:$0xf] }
 0x2de   : > { %v9195_v29 = vor.u32 %v11212_v23, %v9192_v36  ;;  %v8936_v20 = vld [vmem:[#allocation5 + $0xb8] sm:$0xf0]  ;;  %v11244_v18 = vld [vmem:[#allocation5 + $0x3ac] sm:$0xf] }
 0x2df   : > { %v3794_v0 = vmax.f32 %v2949_v57, 0.0  ;;  %v8939_v21 = vor.u32 %v11148_v22, %v8936_v20  ;;  %v9323_v55 = vor.u32 %v11244_v18, %v9320_v7 }
 0x2e0   : > { %3445 = vmatpush.bf16.msra.mxu2 %v9195_v29 }
 0x2e1   : > { %v2950_v63 = vpop.f32.mrf.mxu3  ;;  %v3011_v28 = vpop.f32.mrf.mxu1  ;;  %3347 = vmatpush.bf16.msra.mxu0 %v8939_v21  ;;  %3494 = vmatpush.bf16.msra.mxu3 %v9323_v55  ;;  %v14664_v21 = vld [vmem:[#allocation30_spill] sm:$0xff]  ;;  %v14665_v55 = vld [vmem:[#allocation31_spill] sm:$0xff] }
 0x2e2   : > { %v2901_v30 = vpop.f32.mrf.mxu2  ;;  %v2962_v38 = vpop.f32.mrf.mxu0 }
 0x2e3   : > { %v2902_v61 = vadd.f32 %v2901_v30, %v2853_v60  ;;  %v2963_v1 = vadd.f32 %v2962_v38, %v13072_v4 }
 0x2e4   : > { %3206 = vmatmul.bf16.vlgmr.msrb.gmra.mxu1 %v14659_v59 }
 0x2e5   : > { %v2951_v19 = vadd.f32 %v2950_v63, %v2902_v61  ;;  %v3012_v6 = vadd.f32 %v3011_v28, %v2963_v1  ;;  %3157 = vmatmul.bf16.vlgmr.msrb.gmra.mxu0 %v14658_v39  ;;  %v11180_v28 = vld [vmem:[#allocation5 + $0x1ac] sm:$0xf] }
 0x2e6   : > { %3304 = vmatmul.bf16.vlgmr.msrb.gmra.mxu3 %v14661_v33 }
 0x2e7   : > { %v3798_v54 = vmax.f32 %v2951_v19, 0.0  ;;  %3255 = vmatmul.bf16.vlgmr.msrb.gmra.mxu2 %v14660_v34  ;;  %v9064_v19 = vld [vmem:[#allocation5 + $0x1b8] sm:$0xf0] }
 0x2e8   : > { %v9067_v36 = vor.u32 %v11180_v28, %v9064_v19  ;;  %v8920_v28 = vld [vmem:[#allocation5 + $0x98] sm:$0xf0]  ;;  %v11240_v19 = vld [vmem:[#allocation5 + $0x38c] sm:$0xf] }
 0x2e9   : > { %v13079_v17 = vpack.c.bf16 %v3798_v54, %v3794_v0  ;;  %v3109_v30 = vpop.f32.mrf.mxu3  ;;  %v3013_v38 = vpop.f32.mrf.mxu1 }
 0x2ea   : > { %v3060_v60 = vpop.f32.mrf.mxu2  ;;  %v2964_v61 = vpop.f32.mrf.mxu0  ;;  %3396 = vmatpush.bf16.msra.mxu1 %v9067_v36 }
 0x2eb   : > { %14662 = vst [vmem:[#allocation69_spill] sm:$0xff] %v13079_v17  ;;  %v3061_v57 = vadd.f32 %v3060_v60, %v3012_v6  ;;  %v2965_v63 = vadd.f32 %v2964_v61, %v13072_v4  ;;  %v14663_v60 = vld [vmem:[#allocation29_spill] sm:$0xff]  ;;  %v9176_v61 = vld [vmem:[#allocation5 + $0x298] sm:$0xf0] }
 0x2ed   : > { %v13082_v1 = vadd.f32 %v3109_v30, %v3061_v57  ;;  %v3014_v23 = vadd.f32 %v3013_v38, %v2965_v63  ;;  %v14666_v57 = vld [vmem:[#allocation32_spill] sm:$0xff]  ;;  %v11208_v30 = vld [vmem:[#allocation5 + $0x28c] sm:$0xf] }
 0x2ee   : > { %v11144_v63 = vld [vmem:[#allocation5 + $0x8c] sm:$0xf]  ;;  %v9179_v38 = vor.u32 %v11208_v30, %v9176_v61  ;;  %v9051_v61 = vor.u32 %v11176_v2, %v9048_v31  ;;  %v9160_v2 = vld [vmem:[#allocation5 + $0x278] sm:$0xf0] }
 0x2ef   : > { %v11204_v31 = vld [vmem:[#allocation5 + $0x26c] sm:$0xf] }
 0x2f0   : > { %3446 = vmatpush.bf16.msra.mxu2 %v9179_v38  ;;  %3397 = vmatpush.bf16.msra.mxu1 %v9051_v61 }
 0x2f1   : > { %v3111_v22 = vpop.f32.mrf.mxu3  ;;  %v3016_v18 = vpop.f32.mrf.mxu1 }
 0x2f2   : > { %v3062_v0 = vpop.f32.mrf.mxu2  ;;  %v2967_v20 = vpop.f32.mrf.mxu0 }
 0x2f3   : > { %v3063_v54 = vadd.f32 %v3062_v0, %v3014_v23  ;;  %v2968_v6 = vadd.f32 %v2967_v20, %v13072_v4  ;;  %v9304_v23 = vld [vmem:[#allocation5 + $0x398] sm:$0xf0]  ;;  %v8923_v0 = vor.u32 %v11144_v63, %v8920_v28 }
 0x2f4   : > { %3211 = vmatmul.bf16.gmra.mxu1 %v14664_v21 }
 0x2f5   : > { %v13085_v29 = vadd.f32 %v3111_v22, %v3063_v54  ;;  %v3017_v7 = vadd.f32 %v3016_v18, %v2968_v6  ;;  %3162 = vmatmul.bf16.gmra.mxu0 %v14663_v60  ;;  %v9307_v54 = vor.u32 %v11240_v19, %v9304_v23 }
 0x2f6   : > { %3309 = vmatmul.bf16.gmra.mxu3 %v14666_v57  ;;  %3348 = vmatpush.bf16.msra.mxu0 %v8923_v0  ;;  %v14668_v0 = vld [vmem:[#allocation34_spill] sm:$0xff] }
 0x2f7   : > { %3260 = vmatmul.bf16.gmra.mxu2 %v14665_v55  ;;  %3495 = vmatpush.bf16.msra.mxu3 %v9307_v54  ;;  %v14669_v54 = vld [vmem:[#allocation35_spill] sm:$0xff] }
 0x2f9   : > { %v3114_v20 = vpop.f32.mrf.mxu3  ;;  %v3018_v17 = vpop.f32.mrf.mxu1 }
 0x2fa   : > { %v3065_v36 = vpop.f32.mrf.mxu2  ;;  %v2969_v6 = vpop.f32.mrf.mxu0 }
 0x2fb   : > { %v3066_v22 = vadd.f32 %v3065_v36, %v3017_v7  ;;  %v2970_v18 = vadd.f32 %v2969_v6, %v13072_v4  ;;  %v14667_v36 = vld [vmem:[#allocation33_spill] sm:$0xff] }
 0x2fc   : > { %v11236_v6 = vld [vmem:[#allocation5 + $0x36c] sm:$0xf] }
 0x2fd   : > { %v13092_v35 = vadd.f32 %v3114_v20, %v3066_v22  ;;  %v3019_v30 = vadd.f32 %v3018_v17, %v2970_v18  ;;  %v14670_v22 = vld [vmem:[#allocation36_spill] sm:$0xff]  ;;  %v11140_v17 = vld [vmem:[#allocation5 + $0x6c] sm:$0xf]  ;;  %v8904_v20 = vld [vmem:[#allocation5 + $0x78] sm:$0xf0] }
 0x2fe   : > { %v9288_v18 = vld [vmem:[#allocation5 + $0x378] sm:$0xf0]  ;;  %v8907_v61 = vor.u32 %v11140_v17, %v8904_v20 }
 0x300   : > { %3349 = vmatpush.bf16.msra.mxu0 %v8907_v61  ;;  %v14672_v61 = vld [vmem:[#allocation38_spill] sm:$0xff] }
 0x301   : > { %v3116_v63 = vpop.f32.mrf.mxu3  ;;  %v3021_v19 = vpop.f32.mrf.mxu1 }
 0x302   : > { %v3067_v3 = vpop.f32.mrf.mxu2  ;;  %v2972_v28 = vpop.f32.mrf.mxu0 }
 0x303   : > { %v3068_v47 = vadd.f32 %v3067_v3, %v3019_v30  ;;  %v2973_v7 = vadd.f32 %v2972_v28, %v13072_v4  ;;  %v9163_v3 = vor.u32 %v11204_v31, %v9160_v2 }
 0x304   : > { %3216 = vmatmul.bf16.gmra.mxu1 %v14668_v0 }
 0x305   : > { %v13095_v38 = vadd.f32 %v3116_v63, %v3068_v47  ;;  %v3022_v23 = vadd.f32 %v3021_v19, %v2973_v7  ;;  %3167 = vmatmul.bf16.gmra.mxu0 %v14667_v36  ;;  %v9291_v47 = vor.u32 %v11236_v6, %v9288_v18  ;;  %3447 = vmatpush.bf16.msra.mxu2 %v9163_v3 }
 0x306   : > { %3314 = vmatmul.bf16.gmra.mxu3 %v14670_v22  ;;  %v11172_v22 = vld [vmem:[#allocation5 + $0x16c] sm:$0xf] }
 0x307   : > { %3265 = vmatmul.bf16.gmra.mxu2 %v14669_v54  ;;  %3496 = vmatpush.bf16.msra.mxu3 %v9291_v47  ;;  %v9032_v54 = vld [vmem:[#allocation5 + $0x178] sm:$0xf0] }
 0x308   : > { %v9035_v2 = vor.u32 %v11172_v22, %v9032_v54  ;;  %v14673_v47 = vld [vmem:[#allocation39_spill] sm:$0xff]  ;;  %v11136_v22 = vld [vmem:[#allocation5 + $0x4c] sm:$0xf] }
 0x309   : > { %v3119_v28 = vpop.f32.mrf.mxu3  ;;  %v3023_v5 = vpop.f32.mrf.mxu1  ;;  %v9144_v54 = vld [vmem:[#allocation5 + $0x258] sm:$0xf0] }
 0x30a   : > { %v3070_v30 = vpop.f32.mrf.mxu2  ;;  %v2974_v7 = vpop.f32.mrf.mxu0  ;;  %3398 = vmatpush.bf16.msra.mxu1 %v9035_v2 }
 0x30b   : > { %v3071_v63 = vadd.f32 %v3070_v30, %v3022_v23  ;;  %v2975_v19 = vadd.f32 %v2974_v7, %v13072_v4  ;;  %v14671_v30 = vld [vmem:[#allocation37_spill] sm:$0xff] }
 0x30c   : > { %v11232_v7 = vld [vmem:[#allocation5 + $0x34c] sm:$0xf] }
 0x30d   : > { %v13102_v32 = vadd.f32 %v3119_v28, %v3071_v63  ;;  %v3024_v31 = vadd.f32 %v3023_v5, %v2975_v19  ;;  %v14674_v63 = vld [vmem:[#allocation40_spill] sm:$0xff]  ;;  %v11200_v5 = vld [vmem:[#allocation5 + $0x24c] sm:$0xf]  ;;  %v8888_v28 = vld [vmem:[#allocation5 + $0x58] sm:$0xf0] }
 0x30e   : > { %v9272_v19 = vld [vmem:[#allocation5 + $0x358] sm:$0xf0]  ;;  %v8891_v2 = vor.u32 %v11136_v22, %v8888_v28 }
 0x310   : > { %3350 = vmatpush.bf16.msra.mxu0 %v8891_v2  ;;  %v14676_v2 = vld [vmem:[#allocation42_spill] sm:$0xff] }
 0x311   : > { %v3121_v17 = vpop.f32.mrf.mxu3  ;;  %v3026_v6 = vpop.f32.mrf.mxu1 }
 0x312   : > { %v3072_v0 = vpop.f32.mrf.mxu2  ;;  %v2977_v20 = vpop.f32.mrf.mxu0 }
 0x313   : > { %v3073_v36 = vadd.f32 %v3072_v0, %v3024_v31  ;;  %v2978_v23 = vadd.f32 %v2977_v20, %v13072_v4  ;;  %v9147_v0 = vor.u32 %v11200_v5, %v9144_v54 }
 0x314   : > { %3221 = vmatmul.bf16.gmra.mxu1 %v14672_v61 }
 0x315   : > { %v13105_v3 = vadd.f32 %v3121_v17, %v3073_v36  ;;  %v3027_v18 = vadd.f32 %v3026_v6, %v2978_v23  ;;  %3172 = vmatmul.bf16.gmra.mxu0 %v14671_v30  ;;  %v9275_v36 = vor.u32 %v11232_v7, %v9272_v19  ;;  %3448 = vmatpush.bf16.msra.mxu2 %v9147_v0  ;;  %v9016_v30 = vld [vmem:[#allocation5 + $0x158] sm:$0xf0] }
 0x316   : > { %3319 = vmatmul.bf16.gmra.mxu3 %v14674_v63 }
 0x317   : > { %3270 = vmatmul.bf16.gmra.mxu2 %v14673_v47  ;;  %3497 = vmatpush.bf16.msra.mxu3 %v9275_v36  ;;  %v11168_v47 = vld [vmem:[#allocation5 + $0x14c] sm:$0xf]  ;;  %v14677_v36 = vld [vmem:[#allocation43_spill] sm:$0xff] }
 0x318   : > { %v9019_v54 = vor.u32 %v11168_v47, %v9016_v30  ;;  %v11196_v30 = vld [vmem:[#allocation5 + $0x22c] sm:$0xf] }
 0x319   : > { %v3124_v20 = vpop.f32.mrf.mxu3  ;;  %v3028_v61 = vpop.f32.mrf.mxu1  ;;  %v11132_v47 = vld [vmem:[#allocation5 + $0x2c] sm:$0xf] }
 0x31a   : > { %v3075_v31 = vpop.f32.mrf.mxu2  ;;  %v2979_v23 = vpop.f32.mrf.mxu0  ;;  %3399 = vmatpush.bf16.msra.mxu1 %v9019_v54 }
 0x31b   : > { %v3076_v17 = vadd.f32 %v3075_v31, %v3027_v18  ;;  %v2980_v6 = vadd.f32 %v2979_v23, %v13072_v4  ;;  %v14675_v31 = vld [vmem:[#allocation41_spill] sm:$0xff] }
 0x31c   : > { %v11228_v23 = vld [vmem:[#allocation5 + $0x32c] sm:$0xf] }
 0x31d   : > { %v13112_v63 = vadd.f32 %v3124_v20, %v3076_v17  ;;  %v3029_v5 = vadd.f32 %v3028_v61, %v2980_v6  ;;  %v14678_v17 = vld [vmem:[#allocation44_spill] sm:$0xff]  ;;  %v9128_v61 = vld [vmem:[#allocation5 + $0x238] sm:$0xf0] }
 0x31e   : > { %v8872_v20 = vld [vmem:[#allocation5 + $0x38] sm:$0xf0] }
 0x31f   : > { %v9256_v6 = vld [vmem:[#allocation5 + $0x338] sm:$0xf0]  ;;  %v8875_v54 = vor.u32 %v11132_v47, %v8872_v20 }
 0x321   : > { %v3126_v22 = vpop.f32.mrf.mxu3  ;;  %v3031_v7 = vpop.f32.mrf.mxu1  ;;  %3351 = vmatpush.bf16.msra.mxu0 %v8875_v54  ;;  %v14680_v54 = vld [vmem:[#allocation46_spill] sm:$0xff] }
 0x322   : > { %v3077_v57 = vpop.f32.mrf.mxu2  ;;  %v2982_v28 = vpop.f32.mrf.mxu0 }
 0x323   : > { %v3078_v55 = vadd.f32 %v3077_v57, %v3029_v5  ;;  %v2983_v18 = vadd.f32 %v2982_v28, %v13072_v4  ;;  %v9131_v57 = vor.u32 %v11196_v30, %v9128_v61 }
 0x324   : > { %3226 = vmatmul.bf16.gmra.mxu1 %v14676_v2 }
 0x325   : > { %v13115_v0 = vadd.f32 %v3126_v22, %v3078_v55  ;;  %v3032_v19 = vadd.f32 %v3031_v7, %v2983_v18  ;;  %3177 = vmatmul.bf16.gmra.mxu0 %v14675_v31  ;;  %v9259_v55 = vor.u32 %v11228_v23, %v9256_v6  ;;  %3449 = vmatpush.bf16.msra.mxu2 %v9131_v57  ;;  %v9000_v31 = vld [vmem:[#allocation5 + $0x138] sm:$0xf0] }
 0x326   : > { %3324 = vmatmul.bf16.gmra.mxu3 %v14678_v17 }
 0x327   : > { %3275 = vmatmul.bf16.gmra.mxu2 %v14677_v36  ;;  %3498 = vmatpush.bf16.msra.mxu3 %v9259_v55  ;;  %v11164_v36 = vld [vmem:[#allocation5 + $0x12c] sm:$0xf]  ;;  %v14681_v55 = vld [vmem:[#allocation47_spill] sm:$0xff] }
 0x328   : > { %v9003_v61 = vor.u32 %v11164_v36, %v9000_v31  ;;  %v11192_v31 = vld [vmem:[#allocation5 + $0x20c] sm:$0xf] }
 0x329   : > { %v3129_v28 = vpop.f32.mrf.mxu3  ;;  %v3033_v2 = vpop.f32.mrf.mxu1  ;;  %v11128_v36 = vld [vmem:[#allocation5 + $0xc] sm:$0xf] }
 0x32a   : > { %v3080_v5 = vpop.f32.mrf.mxu2  ;;  %v2984_v18 = vpop.f32.mrf.mxu0  ;;  %3400 = vmatpush.bf16.msra.mxu1 %v9003_v61 }
 0x32b   : > { %v3081_v22 = vadd.f32 %v3080_v5, %v3032_v19  ;;  %v2985_v7 = vadd.f32 %v2984_v18, %v13072_v4  ;;  %v14679_v5 = vld [vmem:[#allocation45_spill] sm:$0xff] }
 0x32c   : > { %v11224_v18 = vld [vmem:[#allocation5 + $0x30c] sm:$0xf] }
 0x32d   : > { %v13122_v17 = vadd.f32 %v3129_v28, %v3081_v22  ;;  %v3034_v30 = vadd.f32 %v3033_v2, %v2985_v7  ;;  %v14682_v22 = vld [vmem:[#allocation48_spill] sm:$0xff]  ;;  %v9112_v2 = vld [vmem:[#allocation5 + $0x218] sm:$0xf0] }
 0x32e   : > { %v8856_v28 = vld [vmem:[#allocation5 + $0x18] sm:$0xf0] }
 0x32f   : > { %v9240_v7 = vld [vmem:[#allocation5 + $0x318] sm:$0xf0]  ;;  %v8859_v61 = vor.u32 %v11128_v36, %v8856_v28 }
 0x331   : > { %v3131_v47 = vpop.f32.mrf.mxu3  ;;  %v3036_v23 = vpop.f32.mrf.mxu1  ;;  %3352 = vmatpush.bf16.msra.mxu0 %v8859_v61  ;;  %v14684_v61 = vld [vmem:[#allocation50_spill] sm:$0xff] }
 0x332   : > { %v3082_v21 = vpop.f32.mrf.mxu2  ;;  %v2987_v20 = vpop.f32.mrf.mxu0 }
 0x333   : > { %v3083_v60 = vadd.f32 %v3082_v21, %v3034_v30  ;;  %v2988_v19 = vadd.f32 %v2987_v20, %v13072_v4  ;;  %v9115_v21 = vor.u32 %v11192_v31, %v9112_v2 }
 0x334   : > { %3231 = vmatmul.bf16.gmra.mxu1 %v14680_v54 }
 0x335   : > { %v13125_v57 = vadd.f32 %v3131_v47, %v3083_v60  ;;  %v3037_v6 = vadd.f32 %v3036_v23, %v2988_v19  ;;  %3182 = vmatmul.bf16.gmra.mxu0 %v14679_v5  ;;  %v9243_v60 = vor.u32 %v11224_v18, %v9240_v7  ;;  %3450 = vmatpush.bf16.msra.mxu2 %v9115_v21  ;;  %v8984_v5 = vld [vmem:[#allocation5 + $0x118] sm:$0xf0] }
 0x336   : > { %3329 = vmatmul.bf16.gmra.mxu3 %v14682_v22 }
 0x337   : > { %3280 = vmatmul.bf16.gmra.mxu2 %v14681_v55  ;;  %3499 = vmatpush.bf16.msra.mxu3 %v9243_v60  ;;  %v11160_v55 = vld [vmem:[#allocation5 + $0x10c] sm:$0xf]  ;;  %v14685_v60 = vld [vmem:[#allocation51_spill] sm:$0xff] }
 0x338   : > { %v8987_v2 = vor.u32 %v11160_v55, %v8984_v5  ;;  %v11348_v5 = vld [vmem:[#allocation5 + $0x6ec] sm:$0xf] }
 0x339   : > { %v3134_v20 = vpop.f32.mrf.mxu3  ;;  %v3038_v54 = vpop.f32.mrf.mxu1  ;;  %v11284_v55 = vld [vmem:[#allocation5 + $0x4ec] sm:$0xf] }
 0x33a   : > { %v3085_v30 = vpop.f32.mrf.mxu2  ;;  %v2989_v19 = vpop.f32.mrf.mxu0  ;;  %3401 = vmatpush.bf16.msra.mxu1 %v8987_v2 }
 0x33b   : > { %v3086_v47 = vadd.f32 %v3085_v30, %v3037_v6  ;;  %v2990_v23 = vadd.f32 %v2989_v19, %v13072_v4  ;;  %v14683_v30 = vld [vmem:[#allocation49_spill] sm:$0xff] }
 0x33c   : > { %v11380_v19 = vld [vmem:[#allocation5 + $0x7ec] sm:$0xf] }
 0x33d   : > { %v13132_v22 = vadd.f32 %v3134_v20, %v3086_v47  ;;  %v3039_v31 = vadd.f32 %v3038_v54, %v2990_v23  ;;  %v14686_v47 = vld [vmem:[#allocation52_spill] sm:$0xff]  ;;  %v9736_v54 = vld [vmem:[#allocation5 + $0x6f8] sm:$0xf0] }
 0x33e   : > { %v9480_v20 = vld [vmem:[#allocation5 + $0x4f8] sm:$0xf0] }
 0x33f   : > { %v9864_v23 = vld [vmem:[#allocation5 + $0x7f8] sm:$0xf0]  ;;  %v9483_v2 = vor.u32 %v11284_v55, %v9480_v20 }
 0x341   : > { %v3136_v36 = vpop.f32.mrf.mxu3  ;;  %v3041_v18 = vpop.f32.mrf.mxu1  ;;  %3541 = vmatpush.bf16.msrb.mxu0 %v9483_v2  ;;  %v14688_v2 = vld [vmem:[#allocation54_spill] sm:$0xff] }
 0x342   : > { %v3087_v33 = vpop.f32.mrf.mxu2  ;;  %v2992_v28 = vpop.f32.mrf.mxu0 }
 0x343   : > { %v3088_v34 = vadd.f32 %v3087_v33, %v3039_v31  ;;  %v2993_v6 = vadd.f32 %v2992_v28, %v13072_v4  ;;  %v9739_v33 = vor.u32 %v11348_v5, %v9736_v54  ;;  %v9608_v5 = vld [vmem:[#allocation5 + $0x5f8] sm:$0xf0] }
 0x344   : > { %3236 = vmatmul.bf16.gmra.mxu1 %v14684_v61 }
 0x345   : > { %v13135_v21 = vadd.f32 %v3136_v36, %v3088_v34  ;;  %v3042_v7 = vadd.f32 %v3041_v18, %v2993_v6  ;;  %3187 = vmatmul.bf16.gmra.mxu0 %v14683_v30  ;;  %v9867_v34 = vor.u32 %v11380_v19, %v9864_v23  ;;  %3639 = vmatpush.bf16.msrb.mxu2 %v9739_v33  ;;  %v11316_v30 = vld [vmem:[#allocation5 + $0x5ec] sm:$0xf] }
 0x346   : > { %3334 = vmatmul.bf16.gmra.mxu3 %v14686_v47  ;;  %v9611_v54 = vor.u32 %v11316_v30, %v9608_v5  ;;  %v11344_v30 = vld [vmem:[#allocation5 + $0x6cc] sm:$0xf]  ;;  %v9848_v5 = vld [vmem:[#allocation5 + $0x7d8] sm:$0xf0] }
 0x347   : > { %3285 = vmatmul.bf16.gmra.mxu2 %v14685_v60  ;;  %3688 = vmatpush.bf16.msrb.mxu3 %v9867_v34  ;;  %v14689_v34 = vld [vmem:[#allocation55_spill] sm:$0xff] }
 0x348   : > { %3590 = vmatpush.bf16.msrb.mxu1 %v9611_v54 }
 0x349   : > { %v3139_v28 = vpop.f32.mrf.mxu3  ;;  %v3043_v61 = vpop.f32.mrf.mxu1 }
 0x34a   : > { %v3090_v31 = vpop.f32.mrf.mxu2  ;;  %v2994_v6 = vpop.f32.mrf.mxu0 }
 0x34b   : > { %v3091_v36 = vadd.f32 %v3090_v31, %v3042_v7  ;;  %v2995_v18 = vadd.f32 %v2994_v6, %v13072_v4  ;;  %v14687_v31 = vld [vmem:[#allocation53_spill] sm:$0xff]  ;;  %v9464_v6 = vld [vmem:[#allocation5 + $0x4d8] sm:$0xf0] }
 0x34d   : > { %v13142_v47 = vadd.f32 %v3139_v28, %v3091_v36  ;;  %v3044_v60 = vadd.f32 %v3043_v61, %v2995_v18  ;;  %v14690_v61 = vld [vmem:[#allocation56_spill] sm:$0xff]  ;;  %v9720_v36 = vld [vmem:[#allocation5 + $0x6d8] sm:$0xf0]  ;;  %v11280_v28 = vld [vmem:[#allocation5 + $0x4cc] sm:$0xf] }
 0x34e   : > { %v11376_v18 = vld [vmem:[#allocation5 + $0x7cc] sm:$0xf] }
 0x351   : > { %v3141_v55 = vpop.f32.mrf.mxu3  ;;  %v3046_v19 = vpop.f32.mrf.mxu1 }
 0x352   : > { %v3092_v59 = vpop.f32.mrf.mxu2  ;;  %v2997_v20 = vpop.f32.mrf.mxu0 }
 0x353   : > { %v3093_v39 = vadd.f32 %v3092_v59, %v3044_v60  ;;  %v2998_v7 = vadd.f32 %v2997_v20, %v13072_v4  ;;  %v9723_v60 = vor.u32 %v11344_v30, %v9720_v36  ;;  %v9467_v20 = vor.u32 %v11280_v28, %v9464_v6 }
 0x354   : > { %3241 = vmatmul.bf16.gmra.mxu1 %v14688_v2 }
 0x355   : > { %v13145_v33 = vadd.f32 %v3141_v55, %v3093_v39  ;;  %v3047_v23 = vadd.f32 %v3046_v19, %v2998_v7  ;;  %3192 = vmatmul.bf16.gmra.mxu0 %v14687_v31  ;;  %v9851_v7 = vor.u32 %v11376_v18, %v9848_v5  ;;  %3640 = vmatpush.bf16.msrb.mxu2 %v9723_v60  ;;  %v11312_v31 = vld [vmem:[#allocation5 + $0x5cc] sm:$0xf]  ;;  %v14691_v60 = vld [vmem:[#allocation18_spill] sm:$0xff] }
 0x356   : > { %3339 = vmatmul.bf16.gmra.mxu3 %v14690_v61  ;;  %3542 = vmatpush.bf16.msrb.mxu0 %v9467_v20  ;;  %v9595_v30 = vor.u32 %v11312_v31, %v9592_v62  ;;  %v11340_v62 = vld [vmem:[#allocation5 + $0x6ac] sm:$0xf]  ;;  %v9704_v31 = vld [vmem:[#allocation5 + $0x6b8] sm:$0xf0] }
 0x357   : > { %3290 = vmatmul.bf16.gmra.mxu2 %v14689_v34  ;;  %3689 = vmatpush.bf16.msrb.mxu3 %v9851_v7  ;;  %v11276_v5 = vld [vmem:[#allocation5 + $0x4ac] sm:$0xf] }
 0x358   : > { %3591 = vmatpush.bf16.msrb.mxu1 %v9595_v30 }
 0x359   : > { %v3144_v39 = vpop.f32.mrf.mxu3  ;;  %v3048_v2 = vpop.f32.mrf.mxu1 }
 0x35a   : > { %v3095_v59 = vpop.f32.mrf.mxu2  ;;  %v2999_v55 = vpop.f32.mrf.mxu0 }
 0x35b   : > { %v3096_v54 = vadd.f32 %v3095_v59, %v3047_v23  ;;  %v3000_v19 = vadd.f32 %v2999_v55, %v13072_v4  ;;  %v9832_v55 = vld [vmem:[#allocation5 + $0x7b8] sm:$0xf0] }
 0x35d   : > { %v13152_v34 = vadd.f32 %v3144_v39, %v3096_v54  ;;  %v3049_v61 = vadd.f32 %v3048_v2, %v3000_v19  ;;  %v14692_v2 = vld [vmem:[#allocation19_spill] sm:$0xff]  ;;  %v11372_v39 = vld [vmem:[#allocation5 + $0x7ac] sm:$0xf] }
 0x35e   : > { %v9448_v54 = vld [vmem:[#allocation5 + $0x4b8] sm:$0xf0] }
 0x35f   : > { %v9451_v20 = vor.u32 %v11276_v5, %v9448_v54 }
 0x361   : > { %v3146_v23 = vpop.f32.mrf.mxu3  ;;  %v3207_v6 = vpop.f32.mrf.mxu1  ;;  %3543 = vmatpush.bf16.msrb.mxu0 %v9451_v20  ;;  %v11272_v20 = vld [vmem:[#allocation5 + $0x48c] sm:$0xf] }
 0x362   : > { %v3097_v36 = vpop.f32.mrf.mxu2  ;;  %v3158_v59 = vpop.f32.mrf.mxu0 }
 0x363   : > { %v3098_v58 = vadd.f32 %v3097_v36, %v3049_v61  ;;  %v3159_v28 = vadd.f32 %v3158_v59, %v13082_v1  ;;  %v9707_v61 = vor.u32 %v11340_v62, %v9704_v31  ;;  %v11308_v59 = vld [vmem:[#allocation5 + $0x5ac] sm:$0xf] }
 0x364   : > { %3402 = vmatmul.bf16.vlgmr.msra.gmra.mxu1 %v12504_v53 }
 0x365   : > { %v13155_v18 = vadd.f32 %v3146_v23, %v3098_v58  ;;  %v3208_v4 = vadd.f32 %v3207_v6, %v3159_v28  ;;  %3353 = vmatmul.bf16.vlgmr.msra.gmra.mxu0 %v12502_v48  ;;  %v9835_v58 = vor.u32 %v11372_v39, %v9832_v55  ;;  %3641 = vmatpush.bf16.msrb.mxu2 %v9707_v61  ;;  %v9576_v28 = vld [vmem:[#allocation5 + $0x5b8] sm:$0xf0]  ;;  %v11336_v55 = vld [vmem:[#allocation5 + $0x68c] sm:$0xf] }
 0x366   : > { %3500 = vmatmul.bf16.vlgmr.msra.gmra.mxu3 %v14692_v2  ;;  %v9579_v6 = vor.u32 %v11308_v59, %v9576_v28 }
 0x367   : > { %3451 = vmatmul.bf16.vlgmr.msra.gmra.mxu2 %v14691_v60  ;;  %3690 = vmatpush.bf16.msrb.mxu3 %v9835_v58 }
 0x368   : > { %3592 = vmatpush.bf16.msrb.mxu1 %v9579_v6  ;;  %v11304_v6 = vld [vmem:[#allocation5 + $0x58c] sm:$0xf] }
 0x369   : > { %v3305_v19 = vpop.f32.mrf.mxu3  ;;  %v3209_v53 = vpop.f32.mrf.mxu1 }
 0x36a   : > { %v3256_v1 = vpop.f32.mrf.mxu2  ;;  %v3160_v30 = vpop.f32.mrf.mxu0 }
 0x36b   : > { %v3257_v7 = vadd.f32 %v3256_v1, %v3208_v4  ;;  %v3161_v48 = vadd.f32 %v3160_v30, %v13085_v29  ;;  %v9688_v1 = vld [vmem:[#allocation5 + $0x698] sm:$0xf0] }
 0x36c   : > { %v9816_v30 = vld [vmem:[#allocation5 + $0x798] sm:$0xf0] }
 0x36d   : > { %v3306_v36 = vadd.f32 %v3305_v19, %v3257_v7  ;;  %v3210_v23 = vadd.f32 %v3209_v53, %v3161_v48  ;;  %v9691_v7 = vor.u32 %v11336_v55, %v9688_v1  ;;  %v11368_v19 = vld [vmem:[#allocation5 + $0x78c] sm:$0xf] }
 0x36e   : > { %v11332_v1 = vld [vmem:[#allocation5 + $0x66c] sm:$0xf] }
 0x36f   : > { %v3739_v29 = vmax.f32 %v3306_v36, 0.0  ;;  %3642 = vmatpush.bf16.msrb.mxu2 %v9691_v7  ;;  %v11268_v7 = vld [vmem:[#allocation5 + $0x46c] sm:$0xf] }
 0x371   : > { %v3307_v62 = vpop.f32.mrf.mxu3  ;;  %v3212_v5 = vpop.f32.mrf.mxu1 }
 0x372   : > { %v3258_v60 = vpop.f32.mrf.mxu2  ;;  %v3163_v31 = vpop.f32.mrf.mxu0 }
 0x373   : > { %v3259_v2 = vadd.f32 %v3258_v60, %v3210_v23  ;;  %v3164_v4 = vadd.f32 %v3163_v31, %v13092_v35  ;;  %v9432_v35 = vld [vmem:[#allocation5 + $0x498] sm:$0xf0] }
 0x374   : > { %3407 = vmatmul.bf16.gmra.mxu1 %v12524_v25  ;;  %v9435_v53 = vor.u32 %v11272_v20, %v9432_v35  ;;  %v9560_v60 = vld [vmem:[#allocation5 + $0x598] sm:$0xf0] }
 0x375   : > { %v3308_v54 = vadd.f32 %v3307_v62, %v3259_v2  ;;  %v3213_v61 = vadd.f32 %v3212_v5, %v3164_v4  ;;  %3358 = vmatmul.bf16.gmra.mxu0 %v12522_v24  ;;  %v9819_v24 = vor.u32 %v11368_v19, %v9816_v30  ;;  %v9563_v2 = vor.u32 %v11304_v6, %v9560_v60  ;;  %v9672_v20 = vld [vmem:[#allocation5 + $0x678] sm:$0xf0]  ;;  %v11364_v30 = vld [vmem:[#allocation5 + $0x76c] sm:$0xf] }
 0x376   : > { %3505 = vmatmul.bf16.gmra.mxu3 %v12528_v27  ;;  %3544 = vmatpush.bf16.msrb.mxu0 %v9435_v53  ;;  %v9675_v35 = vor.u32 %v11332_v1, %v9672_v20  ;;  %v9416_v19 = vld [vmem:[#allocation5 + $0x478] sm:$0xf0]  ;;  %v11360_v20 = vld [vmem:[#allocation5 + $0x74c] sm:$0xf] }
 0x377   : > { %v3743_v39 = vmax.f32 %v3308_v54, 0.0  ;;  %3456 = vmatmul.bf16.gmra.mxu2 %v12526_v26  ;;  %3691 = vmatpush.bf16.msrb.mxu3 %v9819_v24  ;;  %v9419_v24 = vor.u32 %v11268_v7, %v9416_v19  ;;  %v9400_v1 = vld [vmem:[#allocation5 + $0x458] sm:$0xf0] }
 0x378   : > { %3593 = vmatpush.bf16.msrb.mxu1 %v9563_v2  ;;  %3643 = vmatpush.bf16.msrb.mxu2 %v9675_v35 }
 0x379   : > { %v13167_v58 = vpack.c.bf16 %v3743_v39, %v3739_v29  ;;  %v3310_v23 = vpop.f32.mrf.mxu3  ;;  %v3214_v26 = vpop.f32.mrf.mxu1 }
 0x37a   : > { %v3261_v48 = vpop.f32.mrf.mxu2  ;;  %v3165_v59 = vpop.f32.mrf.mxu0  ;;  %3545 = vmatpush.bf16.msrb.mxu0 %v9419_v24 }
 0x37b   : > { %v3262_v36 = vadd.f32 %v3261_v48, %v3213_v61  ;;  %v3166_v25 = vadd.f32 %v3165_v59, %v13095_v38 }
 0x37d   : > { %v3311_v27 = vadd.f32 %v3310_v23, %v3262_v36  ;;  %v3215_v28 = vadd.f32 %v3214_v26, %v3166_v25  ;;  %v11300_v26 = vld [vmem:[#allocation5 + $0x56c] sm:$0xf] }
 0x37f   : > { %v3747_v38 = vmax.f32 %v3311_v27, 0.0  ;;  %v9544_v27 = vld [vmem:[#allocation5 + $0x578] sm:$0xf0] }
 0x381   : > { %v3312_v4 = vpop.f32.mrf.mxu3  ;;  %v3217_v61 = vpop.f32.mrf.mxu1 }
 0x382   : > { %v3263_v62 = vpop.f32.mrf.mxu2  ;;  %v3168_v5 = vpop.f32.mrf.mxu0 }
 0x383   : > { %v3264_v31 = vadd.f32 %v3263_v62, %v3215_v28  ;;  %v3169_v54 = vadd.f32 %v3168_v5, %v13102_v32  ;;  %v9800_v32 = vld [vmem:[#allocation5 + $0x778] sm:$0xf0]  ;;  %v9547_v28 = vor.u32 %v11300_v26, %v9544_v27 }
 0x384   : > { %3412 = vmatmul.bf16.gmra.mxu1 %v12544_v50 }
 0x385   : > { %v3313_v29 = vadd.f32 %v3312_v4, %v3264_v31  ;;  %v3218_v39 = vadd.f32 %v3217_v61, %v3169_v54  ;;  %3363 = vmatmul.bf16.gmra.mxu0 %v12542_v49  ;;  %v9803_v49 = vor.u32 %v11364_v30, %v9800_v32  ;;  %3594 = vmatpush.bf16.msrb.mxu1 %v9547_v28 }
 0x386   : > { %3510 = vmatmul.bf16.gmra.mxu3 %v12548_v52 }
 0x387   : > { %v3751_v55 = vmax.f32 %v3313_v29, 0.0  ;;  %3461 = vmatmul.bf16.gmra.mxu2 %v12546_v51  ;;  %3692 = vmatpush.bf16.msrb.mxu3 %v9803_v49  ;;  %v11328_v29 = vld [vmem:[#allocation5 + $0x64c] sm:$0xf] }
 0x388   : > { %v11296_v49 = vld [vmem:[#allocation5 + $0x54c] sm:$0xf] }
 0x389   : > { %v13175_v48 = vpack.c.bf16 %v3751_v55, %v3747_v38  ;;  %v3315_v23 = vpop.f32.mrf.mxu3  ;;  %v3219_v51 = vpop.f32.mrf.mxu1  ;;  %v11264_v38 = vld [vmem:[#allocation5 + $0x44c] sm:$0xf] }
 0x38a   : > { %v3266_v53 = vpop.f32.mrf.mxu2  ;;  %v3170_v59 = vpop.f32.mrf.mxu0  ;;  %v9403_v19 = vor.u32 %v11264_v38, %v9400_v1  ;;  %v11292_v1 = vld [vmem:[#allocation5 + $0x52c] sm:$0xf] }
 0x38b   : > { %v3267_v36 = vadd.f32 %v3266_v53, %v3218_v39  ;;  %v3171_v50 = vadd.f32 %v3170_v59, %v13105_v3  ;;  %v9656_v39 = vld [vmem:[#allocation5 + $0x658] sm:$0xf0] }
 0x38c   : > { %v9659_v55 = vor.u32 %v11328_v29, %v9656_v39  ;;  %3546 = vmatpush.bf16.msrb.mxu0 %v9403_v19 }
 0x38d   : > { %v3316_v52 = vadd.f32 %v3315_v23, %v3267_v36  ;;  %v3220_v25 = vadd.f32 %v3219_v51, %v3171_v50  ;;  %v9528_v36 = vld [vmem:[#allocation5 + $0x558] sm:$0xf0] }
 0x38e   : > { %3644 = vmatpush.bf16.msrb.mxu2 %v9659_v55  ;;  %v9531_v23 = vor.u32 %v11296_v49, %v9528_v36  ;;  %v9624_v49 = vld [vmem:[#allocation5 + $0x618] sm:$0xf0]  ;;  %v11256_v36 = vld [vmem:[#allocation5 + $0x40c] sm:$0xf] }
 0x38f   : > { %v3755_v3 = vmax.f32 %v3316_v52, 0.0 }
 0x390   : > { %3595 = vmatpush.bf16.msrb.mxu1 %v9531_v23 }
 0x391   : > { %v3317_v2 = vpop.f32.mrf.mxu3  ;;  %v3222_v4 = vpop.f32.mrf.mxu1 }
 0x392   : > { %v3268_v6 = vpop.f32.mrf.mxu2  ;;  %v3173_v62 = vpop.f32.mrf.mxu0 }
 0x393   : > { %v3269_v60 = vadd.f32 %v3268_v6, %v3220_v25  ;;  %v3174_v31 = vadd.f32 %v3173_v62, %v13112_v63  ;;  %v9784_v63 = vld [vmem:[#allocation5 + $0x758] sm:$0xf0]  ;;  %v11260_v62 = vld [vmem:[#allocation5 + $0x42c] sm:$0xf] }
 0x394   : > { %3417 = vmatmul.bf16.gmra.mxu1 %v12564_v13 }
 0x395   : > { %v3318_v5 = vadd.f32 %v3317_v2, %v3269_v60  ;;  %v3223_v54 = vadd.f32 %v3222_v4, %v3174_v31  ;;  %3368 = vmatmul.bf16.gmra.mxu0 %v12562_v12  ;;  %v9787_v12 = vor.u32 %v11360_v20, %v9784_v63  ;;  %v11324_v60 = vld [vmem:[#allocation5 + $0x62c] sm:$0xf]  ;;  %v9640_v2 = vld [vmem:[#allocation5 + $0x638] sm:$0xf0] }
 0x396   : > { %3515 = vmatmul.bf16.gmra.mxu3 %v12568_v15  ;;  %v9643_v31 = vor.u32 %v11324_v60, %v9640_v2  ;;  %v9384_v4 = vld [vmem:[#allocation5 + $0x438] sm:$0xf0] }
 0x397   : > { %v3759_v61 = vmax.f32 %v3318_v5, 0.0  ;;  %3466 = vmatmul.bf16.gmra.mxu2 %v12566_v14  ;;  %3693 = vmatpush.bf16.msrb.mxu3 %v9787_v12  ;;  %v11356_v5 = vld [vmem:[#allocation5 + $0x72c] sm:$0xf]  ;;  %v9512_v20 = vld [vmem:[#allocation5 + $0x538] sm:$0xf0] }
 0x398   : > { %3645 = vmatpush.bf16.msrb.mxu2 %v9643_v31  ;;  %v9515_v63 = vor.u32 %v11292_v1, %v9512_v20  ;;  %v9496_v60 = vld [vmem:[#allocation5 + $0x518] sm:$0xf0] }
 0x399   : > { %v13183_v7 = vpack.c.bf16 %v3759_v61, %v3755_v3  ;;  %v3320_v32 = vpop.f32.mrf.mxu3  ;;  %v3224_v14 = vpop.f32.mrf.mxu1  ;;  %v9387_v61 = vor.u32 %v11260_v62, %v9384_v4 }
 0x39a   : > { %v3271_v35 = vpop.f32.mrf.mxu2  ;;  %v3175_v53 = vpop.f32.mrf.mxu0  ;;  %3596 = vmatpush.bf16.msrb.mxu1 %v9515_v63 }
 0x39b   : > { %v3272_v30 = vadd.f32 %v3271_v35, %v3223_v54  ;;  %v3176_v13 = vadd.f32 %v3175_v53, %v13115_v0  ;;  %3547 = vmatpush.bf16.msrb.mxu0 %v9387_v61 }
 0x39d   : > { %v3321_v15 = vadd.f32 %v3320_v32, %v3272_v30  ;;  %v3225_v24 = vadd.f32 %v3224_v14, %v3176_v13 }
 0x39f   : > { %v3763_v0 = vmax.f32 %v3321_v15, 0.0 }
 0x3a1   : > { %v3322_v51 = vpop.f32.mrf.mxu3  ;;  %v3227_v26 = vpop.f32.mrf.mxu1 }
 0x3a2   : > { %v3273_v59 = vpop.f32.mrf.mxu2  ;;  %v3178_v52 = vpop.f32.mrf.mxu0 }
 0x3a3   : > { %v3274_v50 = vadd.f32 %v3273_v59, %v3225_v24  ;;  %v3179_v25 = vadd.f32 %v3178_v52, %v13122_v17  ;;  %v9768_v17 = vld [vmem:[#allocation5 + $0x738] sm:$0xf0]  ;;  %v11320_v24 = vld [vmem:[#allocation5 + $0x60c] sm:$0xf] }
 0x3a4   : > { %3422 = vmatmul.bf16.gmra.mxu1 %v12584_v41  ;;  %v9627_v23 = vor.u32 %v11320_v24, %v9624_v49  ;;  %v9368_v59 = vld [vmem:[#allocation5 + $0x418] sm:$0xf0] }
 0x3a5   : > { %v3323_v27 = vadd.f32 %v3322_v51, %v3274_v50  ;;  %v3228_v28 = vadd.f32 %v3227_v26, %v3179_v25  ;;  %3373 = vmatmul.bf16.gmra.mxu0 %v12582_v40  ;;  %v9771_v40 = vor.u32 %v11356_v5, %v9768_v17  ;;  %v11352_v50 = vld [vmem:[#allocation5 + $0x70c] sm:$0xf]  ;;  %v9371_v25 = vor.u32 %v11256_v36, %v9368_v59 }
 0x3a6   : > { %3520 = vmatmul.bf16.gmra.mxu3 %v12588_v43  ;;  %3646 = vmatpush.bf16.msrb.mxu2 %v9627_v23  ;;  %v11414_v23 = vld [vmem:[%s14471_s3 + $0xf8] sm:$0xff] }
 0x3a7   : > { %v3767_v6 = vmax.f32 %v3323_v27, 0.0  ;;  %3471 = vmatmul.bf16.gmra.mxu2 %v12586_v42  ;;  %3694 = vmatpush.bf16.msrb.mxu3 %v9771_v40 }
 0x3a8   : > { %3548 = vmatpush.bf16.msrb.mxu0 %v9371_v25 }
 0x3a9   : > { %v13191_v54 = vpack.c.bf16 %v3767_v6, %v3763_v0  ;;  %v3325_v39 = vpop.f32.mrf.mxu3  ;;  %v3229_v42 = vpop.f32.mrf.mxu1  ;;  %v11288_v6 = vld [vmem:[#allocation5 + $0x50c] sm:$0xf] }
 0x3aa   : > { %v3276_v3 = vpop.f32.mrf.mxu2  ;;  %v3180_v38 = vpop.f32.mrf.mxu0  ;;  %v9499_v2 = vor.u32 %v11288_v6, %v9496_v60  ;;  %v14696_v60 = vld [vmem:[#allocation26_spill] sm:$0xff] }
 0x3ab   : > { %v3277_v29 = vadd.f32 %v3276_v3, %v3228_v28  ;;  %v3181_v41 = vadd.f32 %v3180_v38, %v13125_v57 }
 0x3ac   : > { %3597 = vmatpush.bf16.msrb.mxu1 %v9499_v2  ;;  %v14697_v2 = vld [vmem:[#allocation27_spill] sm:$0xff] }
 0x3ad   : > { %v3326_v43 = vadd.f32 %v3325_v39, %v3277_v29  ;;  %v3230_v55 = vadd.f32 %v3229_v42, %v3181_v41 }
 0x3af   : > { %v3771_v57 = vmax.f32 %v3326_v43, 0.0 }
 0x3b1   : > { %v3327_v12 = vpop.f32.mrf.mxu3  ;;  %v3232_v53 = vpop.f32.mrf.mxu1 }
 0x3b2   : > { %v3278_v35 = vpop.f32.mrf.mxu2  ;;  %v3183_v30 = vpop.f32.mrf.mxu0 }
 0x3b3   : > { %v3279_v19 = vadd.f32 %v3278_v35, %v3230_v55  ;;  %v3184_v32 = vadd.f32 %v3183_v30, %v13132_v22  ;;  %v9752_v22 = vld [vmem:[#allocation5 + $0x718] sm:$0xf0] }
 0x3b4   : > { %3427 = vmatmul.bf16.gmra.mxu1 %v12604_v9 }
 0x3b5   : > { %v3328_v13 = vadd.f32 %v3327_v12, %v3279_v19  ;;  %v3233_v14 = vadd.f32 %v3232_v53, %v3184_v32  ;;  %3378 = vmatmul.bf16.gmra.mxu0 %v12602_v8  ;;  %v9755_v8 = vor.u32 %v11352_v50, %v9752_v22  ;;  %v14693_v53 = vld [vmem:[#allocation23_spill] sm:$0xff] }
 0x3b6   : > { %3525 = vmatmul.bf16.gmra.mxu3 %v12608_v11  ;;  %v11398_v50 = vld [vmem:[%s14471_s3 + $0x78] sm:$0xff]  ;;  %v12073_v22 = vld [vmem:[#allocation8] sm:$0xf] }
 0x3b7   : > { %v3775_v15 = vmax.f32 %v3328_v13, 0.0  ;;  %3476 = vmatmul.bf16.gmra.mxu2 %v12606_v10  ;;  %3695 = vmatpush.bf16.msrb.mxu3 %v9755_v8  ;;  %v11406_v13 = vld [vmem:[%s14471_s3 + $0xb8] sm:$0xff] }
 0x3b8   : > { %4190 = vmatpush.bf16.msra.mxu2 %v11406_v13  ;;  %4141 = vmatpush.bf16.msra.mxu1 %v11398_v50 }
 0x3b9   : > { %v13199_v51 = vpack.c.bf16 %v3775_v15, %v3771_v57  ;;  %v3330_v27 = vpop.f32.mrf.mxu3  ;;  %v3234_v10 = vpop.f32.mrf.mxu1 }
 0x3ba   : > { %v3281_v52 = vpop.f32.mrf.mxu2  ;;  %v3185_v28 = vpop.f32.mrf.mxu0 }
 0x3bb   : > { %v3282_v26 = vadd.f32 %v3281_v52, %v3233_v14  ;;  %v3186_v9 = vadd.f32 %v3185_v28, %v13135_v21  ;;  %4239 = vmatpush.bf16.msra.mxu3 %v11414_v23  ;;  %v13230_v52 = vperm.slane %v12073_v22, 3 }
 0x3bd   : > { %v3331_v11 = vadd.f32 %v3330_v27, %v3282_v26  ;;  %v3235_v0 = vadd.f32 %v3234_v10, %v3186_v9 }
 0x3bf   : > { %v3779_v21 = vmax.f32 %v3331_v11, 0.0  ;;  %v14695_v11 = vld [vmem:[#allocation25_spill] sm:$0xff] }
 0x3c1   : > { %v3332_v4 = vpop.f32.mrf.mxu3  ;;  %v3237_v3 = vpop.f32.mrf.mxu1 }
 0x3c2   : > { %v3283_v62 = vpop.f32.mrf.mxu2  ;;  %v3188_v5 = vpop.f32.mrf.mxu0 }
 0x3c3   : > { %v3284_v31 = vadd.f32 %v3283_v62, %v3235_v0  ;;  %v3189_v17 = vadd.f32 %v3188_v5, %v13142_v47  ;;  %v14698_v62 = vld [vmem:[#allocation28_spill] sm:$0xff] }
 0x3c4   : > { %3432 = vmatmul.bf16.gmra.mxu1 %v12624_v45 }
 0x3c5   : > { %v3333_v61 = vadd.f32 %v3332_v4, %v3284_v31  ;;  %v3238_v40 = vadd.f32 %v3237_v3, %v3189_v17  ;;  %3383 = vmatmul.bf16.gmra.mxu0 %v12622_v44  ;;  %v11405_v31 = vld [vmem:[%s14471_s3 + $0xb0] sm:$0xff] }
 0x3c6   : > { %3530 = vmatmul.bf16.gmra.mxu3 %v14608_v37  ;;  %4191 = vmatpush.bf16.msra.mxu2 %v11405_v31 }
 0x3c7   : > { %v3783_v29 = vmax.f32 %v3333_v61, 0.0  ;;  %3481 = vmatmul.bf16.gmra.mxu2 %v12626_v46 }
 0x3c9   : > { %v13207_v39 = vpack.c.bf16 %v3783_v29, %v3779_v21  ;;  %v3335_v42 = vpop.f32.mrf.mxu3  ;;  %v3239_v55 = vpop.f32.mrf.mxu1 }
 0x3ca   : > { %v3286_v38 = vpop.f32.mrf.mxu2  ;;  %v3190_v43 = vpop.f32.mrf.mxu0 }
 0x3cb   : > { %v3287_v41 = vadd.f32 %v3286_v38, %v3238_v40  ;;  %v3191_v47 = vadd.f32 %v3190_v43, %v13145_v33  ;;  %v14694_v33 = vld [vmem:[#allocation24_spill] sm:$0xff]  ;;  %v11389_v38 = vld [vmem:[%s14471_s3 + $0x30] sm:$0xff] }
 0x3cc   : > { %v11397_v43 = vld [vmem:[%s14471_s3 + $0x70] sm:$0xff] }
 0x3cd   : > { %v3336_v1 = vadd.f32 %v3335_v42, %v3287_v41  ;;  %v3240_v20 = vadd.f32 %v3239_v55, %v3191_v47  ;;  %v11413_v41 = vld [vmem:[%s14471_s3 + $0xf0] sm:$0xff]  ;;  %4142 = vmatpush.bf16.msra.mxu1 %v11397_v43 }
 0x3ce   : > { %4240 = vmatpush.bf16.msra.mxu3 %v11413_v41 }
 0x3cf   : > { %v3787_v30 = vmax.f32 %v3336_v1, 0.0 }
 0x3d1   : > { %v3337_v35 = vpop.f32.mrf.mxu3  ;;  %v3242_v46 = vpop.f32.mrf.mxu1 }
 0x3d2   : > { %v3288_v44 = vpop.f32.mrf.mxu2  ;;  %v3193_v19 = vpop.f32.mrf.mxu0 }
 0x3d3   : > { %v3289_v63 = vadd.f32 %v3288_v44, %v3240_v20  ;;  %v3194_v45 = vadd.f32 %v3193_v19, %v13152_v34 }
 0x3d4   : > { %3437 = vmatmul.bf16.gmra.mxu1 %v14654_v16  ;;  %v11390_v16 = vld [vmem:[%s14471_s3 + $0x38] sm:$0xff] }
 0x3d5   : > { %v3338_v12 = vadd.f32 %v3337_v35, %v3289_v63  ;;  %v3243_v37 = vadd.f32 %v3242_v46, %v3194_v45  ;;  %3388 = vmatmul.bf16.gmra.mxu0 %v14610_v56  ;;  %v14699_v45 = vld [vmem:[#allocation29_spill] sm:$0xff]  ;;  %v14700_v46 = vld [vmem:[#allocation30_spill] sm:$0xff] }
 0x3d6   : > { %3535 = vmatmul.bf16.gmra.mxu3 %v14694_v33  ;;  %4092 = vmatpush.bf16.msra.mxu0 %v11390_v16 }
 0x3d7   : > { %v3791_v32 = vmax.f32 %v3338_v12, 0.0  ;;  %3486 = vmatmul.bf16.gmra.mxu2 %v14693_v53  ;;  %v14701_v12 = vld [vmem:[#allocation31_spill] sm:$0xff] }
 0x3d9   : > { %v13218_v14 = vpack.c.bf16 %v3791_v32, %v3787_v30  ;;  %v3340_v15 = vpop.f32.mrf.mxu3  ;;  %v3244_v49 = vpop.f32.mrf.mxu1  ;;  %v11404_v30 = vld [vmem:[%s14471_s3 + $0xa8] sm:$0xff] }
 0x3da   : > { %v3291_v34 = vpop.f32.mrf.mxu2  ;;  %v3195_v24 = vpop.f32.mrf.mxu0  ;;  %4093 = vmatpush.bf16.msra.mxu0 %v11389_v38  ;;  %4192 = vmatpush.bf16.msra.mxu2 %v11404_v30 }
 0x3db   : > { %v3292_v57 = vadd.f32 %v3291_v34, %v3243_v37  ;;  %v3196_v56 = vadd.f32 %v3195_v24, %v13155_v18  ;;  %v14702_v37 = vld [vmem:[#allocation32_spill] sm:$0xff] }
 0x3dc   : > { %v11388_v24 = vld [vmem:[%s14471_s3 + $0x28] sm:$0xff] }
 0x3dd   : > { %v3341_v36 = vadd.f32 %v3340_v15, %v3292_v57  ;;  %v3245_v59 = vadd.f32 %v3244_v49, %v3196_v56  ;;  %v11412_v56 = vld [vmem:[%s14471_s3 + $0xe8] sm:$0xff] }
 0x3de   : > { %4094 = vmatpush.bf16.msra.mxu0 %v11388_v24  ;;  %4241 = vmatpush.bf16.msra.mxu3 %v11412_v56 }
 0x3df   : > { %v3795_v0 = vmax.f32 %v3341_v36, 0.0  ;;  %v11396_v36 = vld [vmem:[%s14471_s3 + $0x68] sm:$0xff] }
 0x3e0   : > { %4143 = vmatpush.bf16.msra.mxu1 %v11396_v36 }
 0x3e1   : > { %v3342_v8 = vpop.f32.mrf.mxu3  ;;  %v3403_v28 = vpop.f32.mrf.mxu1 }
 0x3e2   : > { %v3293_v18 = vpop.f32.mrf.mxu2  ;;  %v3354_v26 = vpop.f32.mrf.mxu0 }
 0x3e3   : > { %v3294_v25 = vadd.f32 %v3293_v18, %v3245_v59  ;;  %v3355_v27 = vadd.f32 %v3354_v26, %v13230_v52  ;;  %v14703_v26 = vld [vmem:[#allocation33_spill] sm:$0xff] }
 0x3e4   : > { %3598 = vmatmul.bf16.vlgmr.msrb.gmra.mxu1 %v14696_v60 }
 0x3e5   : > { %v3343_v9 = vadd.f32 %v3342_v8, %v3294_v25  ;;  %v3404_v10 = vadd.f32 %v3403_v28, %v3355_v27  ;;  %3549 = vmatmul.bf16.vlgmr.msrb.gmra.mxu0 %v14695_v11  ;;  %v14704_v27 = vld [vmem:[#allocation34_spill] sm:$0xff]  ;;  %v14705_v28 = vld [vmem:[#allocation35_spill] sm:$0xff] }
 0x3e6   : > { %3696 = vmatmul.bf16.vlgmr.msrb.gmra.mxu3 %v14698_v62 }
 0x3e7   : > { %v3799_v6 = vmax.f32 %v3343_v9, 0.0  ;;  %3647 = vmatmul.bf16.vlgmr.msrb.gmra.mxu2 %v14697_v2  ;;  %v14706_v9 = vld [vmem:[#allocation36_spill] sm:$0xff] }
 0x3e9   : > { %v13240_v4 = vpack.c.bf16 %v3799_v6, %v3795_v0  ;;  %v3501_v3 = vpop.f32.mrf.mxu3  ;;  %v3405_v21 = vpop.f32.mrf.mxu1 }
 0x3ea   : > { %v3452_v5 = vpop.f32.mrf.mxu2  ;;  %v3356_v61 = vpop.f32.mrf.mxu0 }
 0x3eb   : > { %v3453_v17 = vadd.f32 %v3452_v5, %v3404_v10  ;;  %v3357_v40 = vadd.f32 %v3356_v61, %v13230_v52  ;;  %v11403_v10 = vld [vmem:[%s14471_s3 + $0xa0] sm:$0xff] }
 0x3ec   : > { %4193 = vmatpush.bf16.msra.mxu2 %v11403_v10  ;;  %v11387_v5 = vld [vmem:[%s14471_s3 + $0x20] sm:$0xff] }
 0x3ed   : > { %v13243_v29 = vadd.f32 %v3501_v3, %v3453_v17  ;;  %v3406_v42 = vadd.f32 %v3405_v21, %v3357_v40  ;;  %v11411_v17 = vld [vmem:[%s14471_s3 + $0xe0] sm:$0xff]  ;;  %4095 = vmatpush.bf16.msra.mxu0 %v11387_v5 }
 0x3ee   : > { %v11395_v61 = vld [vmem:[%s14471_s3 + $0x60] sm:$0xff]  ;;  %4242 = vmatpush.bf16.msra.mxu3 %v11411_v17  ;;  %v11393_v17 = vld [vmem:[%s14471_s3 + $0x50] sm:$0xff] }
 0x3ef   : > { %4144 = vmatpush.bf16.msra.mxu1 %v11395_v61 }
 0x3f1   : > { %v3503_v1 = vpop.f32.mrf.mxu3  ;;  %v3408_v63 = vpop.f32.mrf.mxu1 }
 0x3f2   : > { %v3454_v47 = vpop.f32.mrf.mxu2  ;;  %v3359_v20 = vpop.f32.mrf.mxu0 }
 0x3f3   : > { %v3455_v55 = vadd.f32 %v3454_v47, %v3406_v42  ;;  %v3360_v44 = vadd.f32 %v3359_v20, %v13230_v52  ;;  %v14708_v20 = vld [vmem:[#allocation38_spill] sm:$0xff] }
 0x3f4   : > { %3603 = vmatmul.bf16.gmra.mxu1 %v14700_v46 }
 0x3f5   : > { %v13255_v35 = vadd.f32 %v3503_v1, %v3455_v55  ;;  %v3409_v19 = vadd.f32 %v3408_v63, %v3360_v44  ;;  %3554 = vmatmul.bf16.gmra.mxu0 %v14699_v45  ;;  %v14707_v1 = vld [vmem:[#allocation37_spill] sm:$0xff]  ;;  %v14709_v44 = vld [vmem:[#allocation39_spill] sm:$0xff]  ;;  %v14710_v63 = vld [vmem:[#allocation40_spill] sm:$0xff] }
 0x3f6   : > { %3701 = vmatmul.bf16.gmra.mxu3 %v14702_v37 }
 0x3f7   : > { %3652 = vmatmul.bf16.gmra.mxu2 %v14701_v12 }
 0x3f9   : > { %v3506_v33 = vpop.f32.mrf.mxu3  ;;  %v3410_v57 = vpop.f32.mrf.mxu1 }
 0x3fa   : > { %v3457_v32 = vpop.f32.mrf.mxu2  ;;  %v3361_v13 = vpop.f32.mrf.mxu0 }
 0x3fb   : > { %v3458_v53 = vadd.f32 %v3457_v32, %v3409_v19  ;;  %v3362_v34 = vadd.f32 %v3361_v13, %v13230_v52  ;;  %v11402_v19 = vld [vmem:[%s14471_s3 + $0x98] sm:$0xff] }
 0x3fc   : > { %4194 = vmatpush.bf16.msra.mxu2 %v11402_v19  ;;  %v11410_v13 = vld [vmem:[%s14471_s3 + $0xd8] sm:$0xff] }
 0x3fd   : > { %v13265_v15 = vadd.f32 %v3506_v33, %v3458_v53  ;;  %v3411_v49 = vadd.f32 %v3410_v57, %v3362_v34  ;;  %v11386_v33 = vld [vmem:[%s14471_s3 + $0x18] sm:$0xff]  ;;  %4243 = vmatpush.bf16.msra.mxu3 %v11410_v13 }
 0x3fe   : > { %v11394_v57 = vld [vmem:[%s14471_s3 + $0x58] sm:$0xff]  ;;  %4096 = vmatpush.bf16.msra.mxu0 %v11386_v33  ;;  %v11408_v33 = vld [vmem:[%s14471_s3 + $0xc8] sm:$0xff] }
 0x3ff   : > { %4145 = vmatpush.bf16.msra.mxu1 %v11394_v57 }
 0x401   : > { %v3508_v59 = vpop.f32.mrf.mxu3  ;;  %v3413_v18 = vpop.f32.mrf.mxu1 }
 0x402   : > { %v3459_v16 = vpop.f32.mrf.mxu2  ;;  %v3364_v50 = vpop.f32.mrf.mxu0 }
 0x403   : > { %v3460_v23 = vadd.f32 %v3459_v16, %v3411_v49  ;;  %v3365_v22 = vadd.f32 %v3364_v50, %v13230_v52  ;;  %4146 = vmatpush.bf16.msra.mxu1 %v11393_v17  ;;  %v11407_v17 = vld [vmem:[%s14471_s3 + $0xc0] sm:$0xff] }
 0x404   : > { %3608 = vmatmul.bf16.gmra.mxu1 %v14704_v27  ;;  %v11401_v27 = vld [vmem:[%s14471_s3 + $0x90] sm:$0xff] }
 0x405   : > { %v13277_v25 = vadd.f32 %v3508_v59, %v3460_v23  ;;  %v3414_v8 = vadd.f32 %v3413_v18, %v3365_v22  ;;  %3559 = vmatmul.bf16.gmra.mxu0 %v14703_v26  ;;  %v14711_v22 = vld [vmem:[#allocation41_spill] sm:$0xff]  ;;  %v14712_v18 = vld [vmem:[#allocation42_spill] sm:$0xff]  ;;  %v14714_v26 = vld [vmem:[#allocation44_spill] sm:$0xff]  ;;  %4195 = vmatpush.bf16.msra.mxu2 %v11401_v27 }
 0x406   : > { %3706 = vmatmul.bf16.gmra.mxu3 %v14706_v9  ;;  %v14721_v27 = vld [vmem:[#allocation51_spill] sm:$0xff] }
 0x407   : > { %3657 = vmatmul.bf16.gmra.mxu2 %v14705_v28 }
 0x409   : > { %v3511_v6 = vpop.f32.mrf.mxu3  ;;  %v3415_v62 = vpop.f32.mrf.mxu1 }
 0x40a   : > { %v3462_v11 = vpop.f32.mrf.mxu2  ;;  %v3366_v60 = vpop.f32.mrf.mxu0 }
 0x40b   : > { %v3463_v0 = vadd.f32 %v3462_v11, %v3414_v8  ;;  %v3367_v2 = vadd.f32 %v3366_v60, %v13230_v52  ;;  %v14713_v8 = vld [vmem:[#allocation43_spill] sm:$0xff] }
 0x40d   : > { %v13287_v31 = vadd.f32 %v3511_v6, %v3463_v0  ;;  %v3416_v3 = vadd.f32 %v3415_v62, %v3367_v2  ;;  %v11385_v2 = vld [vmem:[%s14471_s3 + $0x10] sm:$0xff] }
 0x40e   : > { %v11409_v62 = vld [vmem:[%s14471_s3 + $0xd0] sm:$0xff]  ;;  %4097 = vmatpush.bf16.msra.mxu0 %v11385_v2 }
 0x40f   : > { %4244 = vmatpush.bf16.msra.mxu3 %v11409_v62 }
 0x411   : > { %v3513_v38 = vpop.f32.mrf.mxu3  ;;  %v3418_v43 = vpop.f32.mrf.mxu1 }
 0x412   : > { %v3464_v40 = vpop.f32.mrf.mxu2  ;;  %v3369_v41 = vpop.f32.mrf.mxu0 }
 0x413   : > { %v3465_v21 = vadd.f32 %v3464_v40, %v3416_v3  ;;  %v3370_v42 = vadd.f32 %v3369_v41, %v13230_v52  ;;  %4245 = vmatpush.bf16.msra.mxu3 %v11408_v33 }
 0x414   : > { %3613 = vmatmul.bf16.gmra.mxu1 %v14708_v20  ;;  %v14718_v20 = vld [vmem:[#allocation48_spill] sm:$0xff] }
 0x415   : > { %v13299_v47 = vadd.f32 %v3513_v38, %v3465_v21  ;;  %v3419_v55 = vadd.f32 %v3418_v43, %v3370_v42  ;;  %3564 = vmatmul.bf16.gmra.mxu0 %v14707_v1  ;;  %v14715_v43 = vld [vmem:[#allocation45_spill] sm:$0xff]  ;;  %v14717_v1 = vld [vmem:[#allocation47_spill] sm:$0xff] }
 0x416   : > { %3711 = vmatmul.bf16.gmra.mxu3 %v14710_v63 }
 0x417   : > { %3662 = vmatmul.bf16.gmra.mxu2 %v14709_v44  ;;  %v11400_v44 = vld [vmem:[%s14471_s3 + $0x88] sm:$0xff]  ;;  %4246 = vmatpush.bf16.msra.mxu3 %v11407_v17 }
 0x418   : > { %4196 = vmatpush.bf16.msra.mxu2 %v11400_v44  ;;  %v14725_v44 = vld [vmem:[#allocation55_spill] sm:$0xff] }
 0x419   : > { %v3516_v12 = vpop.f32.mrf.mxu3  ;;  %v3420_v32 = vpop.f32.mrf.mxu1 }
 0x41a   : > { %v3467_v45 = vpop.f32.mrf.mxu2  ;;  %v3371_v37 = vpop.f32.mrf.mxu0 }
 0x41b   : > { %v3468_v46 = vadd.f32 %v3467_v45, %v3419_v55  ;;  %v3372_v30 = vadd.f32 %v3371_v37, %v13230_v52  ;;  %v14716_v55 = vld [vmem:[#allocation46_spill] sm:$0xff] }
 0x41d   : > { %v13309_v53 = vadd.f32 %v3516_v12, %v3468_v46  ;;  %v3421_v34 = vadd.f32 %v3420_v32, %v3372_v30  ;;  %v11384_v32 = vld [vmem:[%s14471_s3 + $0x8] sm:$0xff] }
 0x41e   : > { %4098 = vmatpush.bf16.msra.mxu0 %v11384_v32 }
 0x421   : > { %v3518_v49 = vpop.f32.mrf.mxu3  ;;  %v3423_v23 = vpop.f32.mrf.mxu1 }
 0x422   : > { %v3469_v24 = vpop.f32.mrf.mxu2  ;;  %v3374_v36 = vpop.f32.mrf.mxu0 }
 0x423   : > { %v3470_v56 = vadd.f32 %v3469_v24, %v3421_v34  ;;  %v3375_v16 = vadd.f32 %v3374_v36, %v13230_v52  ;;  %v11392_v34 = vld [vmem:[%s14471_s3 + $0x48] sm:$0xff]  ;;  %v11383_v36 = vld [vmem:[%s14471_s3] sm:$0xff] }
 0x424   : > { %3618 = vmatmul.bf16.gmra.mxu1 %v14712_v18  ;;  %4099 = vmatpush.bf16.msra.mxu0 %v11383_v36 }
 0x425   : > { %v13321_v59 = vadd.f32 %v3518_v49, %v3470_v56  ;;  %v3424_v50 = vadd.f32 %v3423_v23, %v3375_v16  ;;  %3569 = vmatmul.bf16.gmra.mxu0 %v14711_v22  ;;  %4147 = vmatpush.bf16.msra.mxu1 %v11392_v34  ;;  %v11391_v16 = vld [vmem:[%s14471_s3 + $0x40] sm:$0xff] }
 0x426   : > { %3716 = vmatmul.bf16.gmra.mxu3 %v14714_v26  ;;  %v11399_v23 = vld [vmem:[%s14471_s3 + $0x80] sm:$0xff]  ;;  %v14720_v26 = vld [vmem:[#allocation50_spill] sm:$0xff] }
 0x427   : > { %3667 = vmatmul.bf16.gmra.mxu2 %v14713_v8  ;;  %v14719_v8 = vld [vmem:[#allocation49_spill] sm:$0xff] }
 0x428   : > { %4197 = vmatpush.bf16.msra.mxu2 %v11399_v23  ;;  %v14727_v23 = vld [vmem:[#allocation57_spill] sm:$0xff] }
 0x429   : > { %v3521_v10 = vpop.f32.mrf.mxu3  ;;  %v3425_v6 = vpop.f32.mrf.mxu1  ;;  %4148 = vmatpush.bf16.msra.mxu1 %v11391_v16 }
 0x42a   : > { %v3472_v28 = vpop.f32.mrf.mxu2  ;;  %v3376_v11 = vpop.f32.mrf.mxu0 }
 0x42b   : > { %v3473_v9 = vadd.f32 %v3472_v28, %v3424_v50  ;;  %v3377_v0 = vadd.f32 %v3376_v11, %v13230_v52  ;;  %v14722_v28 = vld [vmem:[#allocation52_spill] sm:$0xff] }
 0x42d   : > { %v13331_v60 = vadd.f32 %v3521_v10, %v3473_v9  ;;  %v3426_v5 = vadd.f32 %v3425_v6, %v3377_v0 }
 0x431   : > { %v13344_v40 = vpop.f32.mrf.mxu3  ;;  %v3428_v41 = vpop.f32.mrf.mxu1 }
 0x432   : > { %v3474_v3 = vpop.f32.mrf.mxu2  ;;  %v3379_v21 = vpop.f32.mrf.mxu0 }
 0x433   : > { %v13342_v61 = vadd.f32 %v3474_v3, %v3426_v5  ;;  %v3380_v38 = vadd.f32 %v3379_v21, %v13230_v52 }
 0x434   : > { %3623 = vmatmul.bf16.gmra.mxu1 %v14716_v55 }
 0x435   : > { %v3429_v42 = vadd.f32 %v3428_v41, %v3380_v38  ;;  %3574 = vmatmul.bf16.gmra.mxu0 %v14715_v43 }
 0x436   : > { %3721 = vmatmul.bf16.gmra.mxu3 %v14718_v20  ;;  %v14724_v20 = vld [vmem:[#allocation54_spill] sm:$0xff] }
 0x437   : > { %3672 = vmatmul.bf16.gmra.mxu2 %v14717_v1  ;;  %v14723_v1 = vld [vmem:[#allocation53_spill] sm:$0xff] }
 0x439   : > { %v3526_v45 = vpop.f32.mrf.mxu3  ;;  %v3430_v37 = vpop.f32.mrf.mxu1 }
 0x43a   : > { %v3477_v63 = vpop.f32.mrf.mxu2  ;;  %v3381_v46 = vpop.f32.mrf.mxu0 }
 0x43b   : > { %v3478_v19 = vadd.f32 %v3477_v63, %v3429_v42  ;;  %v3382_v12 = vadd.f32 %v3381_v46, %v13230_v52  ;;  %v14726_v63 = vld [vmem:[#allocation56_spill] sm:$0xff] }
 0x43d   : > { %v13355_v30 = vadd.f32 %v3526_v45, %v3478_v19  ;;  %v3431_v13 = vadd.f32 %v3430_v37, %v3382_v12 }
 0x441   : > { %v13368_v56 = vpop.f32.mrf.mxu3  ;;  %v3433_v22 = vpop.f32.mrf.mxu1 }
 0x442   : > { %v3479_v57 = vpop.f32.mrf.mxu2  ;;  %v3384_v49 = vpop.f32.mrf.mxu0 }
 0x443   : > { %v13366_v24 = vadd.f32 %v3479_v57, %v3431_v13  ;;  %v3385_v50 = vadd.f32 %v3384_v49, %v13230_v52 }
 0x444   : > { %3628 = vmatmul.bf16.gmra.mxu1 %v14720_v26 }
 0x445   : > { %v3434_v18 = vadd.f32 %v3433_v22, %v3385_v50  ;;  %3579 = vmatmul.bf16.gmra.mxu0 %v14719_v8  ;;  %v14728_v50 = vld [vmem:[#allocation63_spill] sm:$0xff] }
 0x446   : > { %3726 = vmatmul.bf16.gmra.mxu3 %v14722_v28 }
 0x447   : > { %3677 = vmatmul.bf16.gmra.mxu2 %v14721_v27 }
 0x449   : > { %v3531_v11 = vpop.f32.mrf.mxu3  ;;  %v3435_v2 = vpop.f32.mrf.mxu1 }
 0x44a   : > { %v3482_v9 = vpop.f32.mrf.mxu2  ;;  %v3386_v0 = vpop.f32.mrf.mxu0 }
 0x44b   : > { %v3483_v10 = vadd.f32 %v3482_v9, %v3434_v18  ;;  %v3387_v6 = vadd.f32 %v3386_v0, %v13230_v52 }
 0x44d   : > { %v13385_v62 = vadd.f32 %v3531_v11, %v3483_v10  ;;  %v3436_v5 = vadd.f32 %v3435_v2, %v3387_v6 }
 0x451   : > { %v13392_v38 = vpop.f32.mrf.mxu3  ;;  %v3438_v43 = vpop.f32.mrf.mxu1 }
 0x452   : > { %v3484_v3 = vpop.f32.mrf.mxu2  ;;  %v3389_v41 = vpop.f32.mrf.mxu0 }
 0x453   : > { %v13390_v21 = vadd.f32 %v3484_v3, %v3436_v5  ;;  %v3390_v42 = vadd.f32 %v3389_v41, %v13230_v52  ;;  %v14729_v41 = vld [vmem:[#allocation58_spill] sm:$0xff] }
 0x454   : > { %3633 = vmatmul.bf16.gmra.mxu1 %v14724_v20 }
 0x455   : > { %v3439_v55 = vadd.f32 %v3438_v43, %v3390_v42  ;;  %3584 = vmatmul.bf16.gmra.mxu0 %v14723_v1  ;;  %v14730_v42 = vld [vmem:[#allocation64_spill] sm:$0xff] }
 0x456   : > { %3731 = vmatmul.bf16.gmra.mxu3 %v14726_v63 }
 0x457   : > { %3682 = vmatmul.bf16.gmra.mxu2 %v14725_v44 }
 0x459   : > { %v3536_v46 = vpop.f32.mrf.mxu3  ;;  %v3440_v32 = vpop.f32.mrf.mxu1 }
 0x45a   : > { %v3487_v19 = vpop.f32.mrf.mxu2  ;;  %v3391_v12 = vpop.f32.mrf.mxu0 }
 0x45b   : > { %v3488_v45 = vadd.f32 %v3487_v19, %v3439_v55  ;;  %v3392_v37 = vadd.f32 %v3391_v12, %v13230_v52 }
 0x45d   : > { %v13400_v33 = vadd.f32 %v3536_v46, %v3488_v45  ;;  %v3441_v13 = vadd.f32 %v3440_v32, %v3392_v37 }
 0x461   : > { %v13404_v49 = vpop.f32.mrf.mxu3  ;;  %v3599_v16 = vpop.f32.mrf.mxu1 }
 0x462   : > { %v3489_v34 = vpop.f32.mrf.mxu2  ;;  %v3550_v36 = vpop.f32.mrf.mxu0 }
 0x463   : > { %v13402_v57 = vadd.f32 %v3489_v34, %v3441_v13  ;;  %v3551_v22 = vadd.f32 %v3550_v36, %v13243_v29 }
 0x464   : > { %4149 = vmatmul.bf16.vlgmr.msra.gmra.mxu1 %v14728_v50  ;;  %v14732_v50 = vld [vmem:[#allocation65_spill] sm:$0xff] }
 0x465   : > { %4100 = vmatmul.bf16.vlgmr.msra.gmra.mxu0 %v14727_v23  ;;  %v3600_v27 = vadd.f32 %v3599_v16, %v3551_v22  ;;  %v14731_v16 = vld [vmem:[#allocation59_spill] sm:$0xff] }
 0x467   : > { %4198 = vmatmul.bf16.vlgmr.msra.gmra.mxu2 %v13167_v58 }
 0x469   : > { %v3697_v18 = vpop.f32.mrf.mxu3  ;;  %v3601_v26 = vpop.f32.mrf.mxu1 }
 0x46a   : > { %v3648_v52 = vpop.f32.mrf.mxu2  ;;  %v3552_v8 = vpop.f32.mrf.mxu0 }
 0x46b   : > { %v3553_v28 = vadd.f32 %v3552_v8, %v13255_v35  ;;  %v3649_v9 = vadd.f32 %v3648_v52, %v3600_v27 }
 0x46d   : > { %v3602_v10 = vadd.f32 %v3601_v26, %v3553_v28  ;;  %v3698_v0 = vadd.f32 %v3697_v18, %v3649_v9 }
 0x46f   : > { %v3740_v58 = vmax.f32 %v3698_v0, 0.0 }
 0x471   : > { %v3699_v2 = vpop.f32.mrf.mxu3  ;;  %v3604_v17 = vpop.f32.mrf.mxu1 }
 0x472   : > { %v3650_v11 = vpop.f32.mrf.mxu2  ;;  %v3555_v5 = vpop.f32.mrf.mxu0 }
 0x473   : > { %v3651_v6 = vadd.f32 %v3650_v11, %v3602_v10  ;;  %v3556_v35 = vadd.f32 %v3555_v5, %v13265_v15 }
 0x474   : > { %4154 = vmatmul.bf16.gmra.mxu1 %v14730_v42 }
 0x475   : > { %v3700_v3 = vadd.f32 %v3699_v2, %v3651_v6  ;;  %4105 = vmatmul.bf16.gmra.mxu0 %v14729_v41  ;;  %v3605_v63 = vadd.f32 %v3604_v17, %v3556_v35 }
 0x477   : > { %v3744_v29 = vmax.f32 %v3700_v3, 0.0  ;;  %4203 = vmatmul.bf16.gmra.mxu2 %v13175_v48  ;;  %v14733_v3 = vld [vmem:[#allocation60_spill] sm:$0xff] }
 0x479   : > { %v3804_v43 = vpack.c.bf16 %v3744_v29, %v3740_v58  ;;  %v3702_v1 = vpop.f32.mrf.mxu3  ;;  %v3606_v44 = vpop.f32.mrf.mxu1  ;;  %v14734_v58 = vld [vmem:[#allocation66_spill] sm:$0xff] }
 0x47a   : > { %v3653_v55 = vpop.f32.mrf.mxu2  ;;  %v3557_v20 = vpop.f32.mrf.mxu0 }
 0x47b   : > { %4247 = vmatmul.bf16.vlgmr.msra.gmra.mxu3 %v3804_v43  ;;  %v3558_v19 = vadd.f32 %v3557_v20, %v13277_v25  ;;  %v3654_v45 = vadd.f32 %v3653_v55, %v3605_v63 }
 0x47d   : > { %v3607_v46 = vadd.f32 %v3606_v44, %v3558_v19  ;;  %v3703_v37 = vadd.f32 %v3702_v1, %v3654_v45 }
 0x47f   : > { %v3748_v15 = vmax.f32 %v3703_v37, 0.0 }
 0x481   : > { %v3704_v13 = vpop.f32.mrf.mxu3  ;;  %v3609_v36 = vpop.f32.mrf.mxu1 }
 0x482   : > { %v3655_v12 = vpop.f32.mrf.mxu2  ;;  %v3560_v34 = vpop.f32.mrf.mxu0 }
 0x483   : > { %v3656_v32 = vadd.f32 %v3655_v12, %v3607_v46  ;;  %v3561_v22 = vadd.f32 %v3560_v34, %v13287_v31 }
 0x484   : > { %4159 = vmatmul.bf16.gmra.mxu1 %v14732_v50 }
 0x485   : > { %v3705_v48 = vadd.f32 %v3704_v13, %v3656_v32  ;;  %4110 = vmatmul.bf16.gmra.mxu0 %v14731_v16  ;;  %v3610_v27 = vadd.f32 %v3609_v36, %v3561_v22  ;;  %v14735_v13 = vld [vmem:[#allocation61_spill] sm:$0xff]  ;;  %v14736_v36 = vld [vmem:[#allocation67_spill] sm:$0xff] }
 0x487   : > { %v3752_v23 = vmax.f32 %v3705_v48, 0.0  ;;  %4208 = vmatmul.bf16.gmra.mxu2 %v13183_v7 }
 0x489   : > { %v3808_v25 = vpack.c.bf16 %v3752_v23, %v3748_v15  ;;  %v3707_v18 = vpop.f32.mrf.mxu3  ;;  %v3611_v26 = vpop.f32.mrf.mxu1  ;;  %v3524_v15 = vadd.f32 %v13344_v40, %v13342_v61  ;;  %v14738_v61 = vld [vmem:[#allocation68_spill] sm:$0xff] }
 0x48a   : > { %v3658_v52 = vpop.f32.mrf.mxu2  ;;  %v3562_v8 = vpop.f32.mrf.mxu0 }
 0x48b   : > { %4252 = vmatmul.bf16.gmra.mxu3 %v3808_v25  ;;  %v3563_v28 = vadd.f32 %v3562_v8, %v13299_v47  ;;  %v3659_v9 = vadd.f32 %v3658_v52, %v3610_v27 }
 0x48d   : > { %v3612_v10 = vadd.f32 %v3611_v26, %v3563_v28  ;;  %v3708_v0 = vadd.f32 %v3707_v18, %v3659_v9 }
 0x48f   : > { %v3756_v31 = vmax.f32 %v3708_v0, 0.0 }
 0x491   : > { %v3709_v2 = vpop.f32.mrf.mxu3  ;;  %v3614_v17 = vpop.f32.mrf.mxu1 }
 0x492   : > { %v3660_v11 = vpop.f32.mrf.mxu2  ;;  %v3565_v5 = vpop.f32.mrf.mxu0 }
 0x493   : > { %v3661_v6 = vadd.f32 %v3660_v11, %v3612_v10  ;;  %v3566_v29 = vadd.f32 %v3565_v5, %v13309_v53  ;;  %v14737_v11 = vld [vmem:[#allocation20_spill] sm:$0xff] }
 0x494   : > { %4164 = vmatmul.bf16.gmra.mxu1 %v14734_v58 }
 0x495   : > { %v3710_v7 = vadd.f32 %v3709_v2, %v3661_v6  ;;  %4115 = vmatmul.bf16.gmra.mxu0 %v14733_v3  ;;  %v3615_v1 = vadd.f32 %v3614_v17, %v3566_v29  ;;  %v3529_v17 = vadd.f32 %v13368_v56, %v13366_v24  ;;  %v14740_v24 = vld [vmem:[#allocation22_spill] sm:$0xff] }
 0x497   : > { %v3760_v41 = vmax.f32 %v3710_v7, 0.0  ;;  %4213 = vmatmul.bf16.gmra.mxu2 %v13191_v54 }
 0x499   : > { %v3812_v47 = vpack.c.bf16 %v3760_v41, %v3756_v31  ;;  %v3712_v43 = vpop.f32.mrf.mxu3  ;;  %v3616_v55 = vpop.f32.mrf.mxu1 }
 0x49a   : > { %v3663_v42 = vpop.f32.mrf.mxu2  ;;  %v3567_v35 = vpop.f32.mrf.mxu0 }
 0x49b   : > { %4257 = vmatmul.bf16.gmra.mxu3 %v3812_v47  ;;  %v3568_v20 = vadd.f32 %v3567_v35, %v13321_v59  ;;  %v3664_v44 = vadd.f32 %v3663_v42, %v3615_v1 }
 0x49d   : > { %v3617_v63 = vadd.f32 %v3616_v55, %v3568_v20  ;;  %v3713_v45 = vadd.f32 %v3712_v43, %v3664_v44  ;;  %v14739_v20 = vld [vmem:[#allocation21_spill] sm:$0xff] }
 0x49f   : > { %v3764_v53 = vmax.f32 %v3713_v45, 0.0 }
 0x4a1   : > { %v3714_v12 = vpop.f32.mrf.mxu3  ;;  %v3619_v32 = vpop.f32.mrf.mxu1 }
 0x4a2   : > { %v3665_v19 = vpop.f32.mrf.mxu2  ;;  %v3570_v37 = vpop.f32.mrf.mxu0 }
 0x4a3   : > { %v3666_v46 = vadd.f32 %v3665_v19, %v3617_v63  ;;  %v3571_v48 = vadd.f32 %v3570_v37, %v13331_v60 }
 0x4a4   : > { %4169 = vmatmul.bf16.gmra.mxu1 %v14736_v36 }
 0x4a5   : > { %v3715_v54 = vadd.f32 %v3714_v12, %v3666_v46  ;;  %4120 = vmatmul.bf16.gmra.mxu0 %v14735_v13  ;;  %v3620_v25 = vadd.f32 %v3619_v32, %v3571_v48  ;;  %v3534_v46 = vadd.f32 %v13392_v38, %v13390_v21  ;;  %v14742_v21 = vld [vmem:[#allocation69_spill] sm:$0xff] }
 0x4a7   : > { %v3768_v34 = vmax.f32 %v3715_v54, 0.0  ;;  %4218 = vmatmul.bf16.gmra.mxu2 %v13199_v51 }
 0x4a9   : > { %v3816_v59 = vpack.c.bf16 %v3768_v34, %v3764_v53  ;;  %v3717_v23 = vpop.f32.mrf.mxu3  ;;  %v3621_v22 = vpop.f32.mrf.mxu1 }
 0x4aa   : > { %v3668_v16 = vpop.f32.mrf.mxu2  ;;  %v3572_v50 = vpop.f32.mrf.mxu0 }
 0x4ab   : > { %4262 = vmatmul.bf16.gmra.mxu3 %v3816_v59  ;;  %v3573_v52 = vadd.f32 %v3572_v50, %v3524_v15  ;;  %v3669_v18 = vadd.f32 %v3668_v16, %v3620_v25 }
 0x4ad   : > { %v3622_v8 = vadd.f32 %v3621_v22, %v3573_v52  ;;  %v3718_v27 = vadd.f32 %v3717_v23, %v3669_v18  ;;  %v14741_v23 = vld [vmem:[#allocation62_spill] sm:$0xff]  ;;  %v3539_v18 = vadd.f32 %v13404_v49, %v13402_v57 }
 0x4af   : > { %v3772_v0 = vmax.f32 %v3718_v27, 0.0 }
 0x4b1   : > { %v3719_v9 = vpop.f32.mrf.mxu3  ;;  %v3624_v10 = vpop.f32.mrf.mxu1 }
 0x4b2   : > { %v3670_v26 = vpop.f32.mrf.mxu2  ;;  %v3575_v51 = vpop.f32.mrf.mxu0 }
 0x4b3   : > { %v3671_v28 = vadd.f32 %v3670_v26, %v3622_v8  ;;  %v3576_v40 = vadd.f32 %v3575_v51, %v13355_v30 }
 0x4b4   : > { %4174 = vmatmul.bf16.gmra.mxu1 %v14738_v61 }
 0x4b5   : > { %v3720_v60 = vadd.f32 %v3719_v9, %v3671_v28  ;;  %4125 = vmatmul.bf16.gmra.mxu0 %v14737_v11  ;;  %v3625_v41 = vadd.f32 %v3624_v10, %v3576_v40 }
 0x4b7   : > { %v3776_v6 = vmax.f32 %v3720_v60, 0.0  ;;  %4223 = vmatmul.bf16.gmra.mxu2 %v13207_v39 }
 0x4b9   : > { %v3820_v2 = vpack.c.bf16 %v3776_v6, %v3772_v0  ;;  %v3722_v7 = vpop.f32.mrf.mxu3  ;;  %v3626_v31 = vpop.f32.mrf.mxu1 }
 0x4ba   : > { %v3673_v5 = vpop.f32.mrf.mxu2  ;;  %v3577_v3 = vpop.f32.mrf.mxu0 }
 0x4bb   : > { %4267 = vmatmul.bf16.gmra.mxu3 %v3820_v2  ;;  %v3578_v58 = vadd.f32 %v3577_v3, %v3529_v17  ;;  %v3674_v29 = vadd.f32 %v3673_v5, %v3625_v41  ;;  %v11430_v3 = vld [vmem:[%s14472_s4 + $0x74] sm:$0xf0] }
 0x4bd   : > { %v3627_v47 = vadd.f32 %v3626_v31, %v3578_v58  ;;  %v3723_v43 = vadd.f32 %v3722_v7, %v3674_v29  ;;  %v10054_v7 = vld [vmem:[%s14472_s4 + $0x68] sm:$0xf]  ;;  %v13456_v58 = vld [vmem:[#allocation8 + $0x4] ss:$0 sm:$0xff] }
 0x4be   : > { %v10055_v31 = vor.u32 %v11430_v3, %v10054_v7 }
 0x4bf   : > { %v3780_v44 = vmax.f32 %v3723_v43, 0.0  ;;  %v10056_v43 = vld [vmem:[%s14472_s4 + $0x78] sm:$0xf0] }
 0x4c0   : > { %4672 = vmatpush.bf16.msrb.mxu2 %v10055_v31 }
 0x4c1   : > { %v3724_v55 = vpop.f32.mrf.mxu3  ;;  %v3629_v1 = vpop.f32.mrf.mxu1 }
 0x4c2   : > { %v3675_v42 = vpop.f32.mrf.mxu2  ;;  %v3580_v39 = vpop.f32.mrf.mxu0 }
 0x4c3   : > { %v3676_v35 = vadd.f32 %v3675_v42, %v3627_v47  ;;  %v3581_v56 = vadd.f32 %v3580_v39, %v13385_v62  ;;  %v11428_v42 = vld [vmem:[%s14472_s4 + $0x6c] sm:$0xf]  ;;  %v11429_v39 = vld [vmem:[%s14472_s4 + $0x6c] sm:$0xf0] }
 0x4c4   : > { %4179 = vmatmul.bf16.gmra.mxu1 %v14740_v24 }
 0x4c5   : > { %v3725_v30 = vadd.f32 %v3724_v55, %v3676_v35  ;;  %4130 = vmatmul.bf16.gmra.mxu0 %v14739_v20  ;;  %v3630_v54 = vadd.f32 %v3629_v1, %v3581_v56  ;;  %v10059_v35 = vor.u32 %v11428_v42, %v10056_v43  ;;  %v10046_v55 = vld [vmem:[%s14472_s4 + $0x60] sm:$0xf] }
 0x4c7   : > { %v3784_v63 = vmax.f32 %v3725_v30, 0.0  ;;  %4228 = vmatmul.bf16.gmra.mxu2 %v13218_v14  ;;  %v10047_v30 = vor.u32 %v11429_v39, %v10046_v55  ;;  %4721 = vmatpush.bf16.msrb.mxu3 %v10059_v35  ;;  %v11423_v55 = vld [vmem:[%s14472_s4 + $0x44] sm:$0xf]  ;;  %v10032_v39 = vld [vmem:[%s14472_s4 + $0x50] sm:$0xf0] }
 0x4c9   : > { %v3824_v19 = vpack.c.bf16 %v3784_v63, %v3780_v44  ;;  %v3727_v12 = vpop.f32.mrf.mxu3  ;;  %v3631_v32 = vpop.f32.mrf.mxu1  ;;  %4574 = vmatpush.bf16.msrb.mxu0 %v10047_v30  ;;  %v10035_v30 = vor.u32 %v11423_v55, %v10032_v39 }
 0x4ca   : > { %v3678_v45 = vpop.f32.mrf.mxu2  ;;  %v3582_v37 = vpop.f32.mrf.mxu0 }
 0x4cb   : > { %4272 = vmatmul.bf16.gmra.mxu3 %v3824_v19  ;;  %v3583_v13 = vadd.f32 %v3582_v37, %v3534_v46  ;;  %v3679_v53 = vadd.f32 %v3678_v45, %v3630_v54  ;;  %v11427_v19 = vld [vmem:[%s14472_s4 + $0x64] sm:$0xf]  ;;  %v10048_v45 = vld [vmem:[%s14472_s4 + $0x70] sm:$0xf0] }
 0x4cd   : > { %v3632_v34 = vadd.f32 %v3631_v32, %v3583_v13  ;;  %v3728_v48 = vadd.f32 %v3727_v12, %v3679_v53  ;;  %v10051_v12 = vor.u32 %v11427_v19, %v10048_v45 }
 0x4cf   : > { %v3788_v50 = vmax.f32 %v3728_v48, 0.0  ;;  %4623 = vmatpush.bf16.msrb.mxu1 %v10051_v12 }
 0x4d1   : > { %v3729_v16 = vpop.f32.mrf.mxu3  ;;  %v3634_v15 = vpop.f32.mrf.mxu1 }
 0x4d2   : > { %v3680_v36 = vpop.f32.mrf.mxu2  ;;  %v3585_v14 = vpop.f32.mrf.mxu0 }
 0x4d3   : > { %v3681_v59 = vadd.f32 %v3680_v36, %v3632_v34  ;;  %v3586_v38 = vadd.f32 %v3585_v14, %v13400_v33  ;;  %4624 = vmatpush.bf16.msrb.mxu1 %v10035_v30 }
 0x4d4   : > { %4184 = vmatmul.bf16.gmra.mxu1 %v14742_v21 }
 0x4d5   : > { %v3730_v62 = vadd.f32 %v3729_v16, %v3681_v59  ;;  %4135 = vmatmul.bf16.gmra.mxu0 %v14741_v23  ;;  %v3635_v28 = vadd.f32 %v3634_v15, %v3586_v38 }
 0x4d7   : > { %v3792_v22 = vmax.f32 %v3730_v62, 0.0  ;;  %4233 = vmatmul.bf16.gmra.mxu2 %v13240_v4 }
 0x4d9   : > { %v3828_v25 = vpack.c.bf16 %v3792_v22, %v3788_v50  ;;  %v3732_v8 = vpop.f32.mrf.mxu3  ;;  %v3636_v27 = vpop.f32.mrf.mxu1 }
 0x4da   : > { %v3683_v52 = vpop.f32.mrf.mxu2  ;;  %v3587_v26 = vpop.f32.mrf.mxu0 }
 0x4db   : > { %4277 = vmatmul.bf16.gmra.mxu3 %v3828_v25  ;;  %v3588_v9 = vadd.f32 %v3587_v26, %v3539_v18  ;;  %v3684_v51 = vadd.f32 %v3683_v52, %v3635_v28  ;;  %v11426_v26 = vld [vmem:[%s14472_s4 + $0x54] sm:$0xf0] }
 0x4dd   : > { %v3637_v10 = vadd.f32 %v3636_v27, %v3588_v9  ;;  %v3733_v11 = vadd.f32 %v3732_v8, %v3684_v51  ;;  %v10038_v8 = vld [vmem:[%s14472_s4 + $0x48] sm:$0xf] }
 0x4de   : > { %v10039_v9 = vor.u32 %v11426_v26, %v10038_v8 }
 0x4df   : > { %v3796_v40 = vmax.f32 %v3733_v11, 0.0 }
 0x4e0   : > { %4673 = vmatpush.bf16.msrb.mxu2 %v10039_v9 }
 0x4e1   : > { %v3734_v4 = vpop.f32.mrf.mxu3  ;;  %v4150_v61 = vpop.f32.mrf.mxu1 }
 0x4e2   : > { %v3685_v60 = vpop.f32.mrf.mxu2  ;;  %v4101_v6 = vpop.f32.mrf.mxu0 }
 0x4e3   : > { %v3686_v0 = vadd.f32 %v3685_v60, %v3637_v10  ;;  %v4102_v1 = vadd.f32 %v13456_v58, %v4101_v6 }
 0x4e5   : > { %v3735_v33 = vadd.f32 %v3734_v4, %v3686_v0  ;;  %v4151_v44 = vadd.f32 %v4150_v61, %v4102_v1  ;;  %v11424_v61 = vld [vmem:[%s14472_s4 + $0x4c] sm:$0xf] }
 0x4e7   : > { %v3800_v2 = vmax.f32 %v3735_v33, 0.0  ;;  %v10040_v33 = vld [vmem:[%s14472_s4 + $0x58] sm:$0xf0] }
 0x4e9   : > { %v3832_v5 = vpack.c.bf16 %v3800_v2, %v3796_v40  ;;  %v4152_v49 = vpop.f32.mrf.mxu1  ;;  %v10043_v2 = vor.u32 %v11424_v61, %v10040_v33  ;;  %v11421_v61 = vld [vmem:[%s14472_s4 + $0x2c] sm:$0xf0] }
 0x4ea   : > { %v4199_v17 = vpop.f32.mrf.mxu2  ;;  %v4103_v57 = vpop.f32.mrf.mxu0 }
 0x4eb   : > { %4282 = vmatmul.bf16.gmra.mxu3 %v3832_v5  ;;  %v4200_v56 = vadd.f32 %v4199_v17, %v4151_v44  ;;  %v4104_v37 = vadd.f32 %v13456_v58, %v4103_v57  ;;  %v10030_v5 = vld [vmem:[%s14472_s4 + $0x40] sm:$0xf]  ;;  %v11425_v17 = vld [vmem:[%s14472_s4 + $0x4c] sm:$0xf0] }
 0x4ec   : > { %v10031_v3 = vor.u32 %v11425_v17, %v10030_v5  ;;  %4722 = vmatpush.bf16.msrb.mxu3 %v10043_v2 }
 0x4ed   : > { %v4153_v53 = vadd.f32 %v4152_v49, %v4104_v37 }
 0x4ee   : > { %4575 = vmatpush.bf16.msrb.mxu0 %v10031_v3 }
 0x4f1   : > { %v4155_v47 = vpop.f32.mrf.mxu1 }
 0x4f2   : > { %v4201_v41 = vpop.f32.mrf.mxu2  ;;  %v4106_v29 = vpop.f32.mrf.mxu0 }
 0x4f3   : > { %v4202_v59 = vadd.f32 %v4201_v41, %v4153_v53  ;;  %v4107_v14 = vadd.f32 %v13456_v58, %v4106_v29 }
 0x4f5   : > { %v4156_v22 = vadd.f32 %v4155_v47, %v4107_v14 }
 0x4f9   : > { %v4157_v24 = vpop.f32.mrf.mxu1 }
 0x4fa   : > { %v4204_v20 = vpop.f32.mrf.mxu2  ;;  %v4108_v63 = vpop.f32.mrf.mxu0 }
 0x4fb   : > { %v4205_v25 = vadd.f32 %v4204_v20, %v4156_v22  ;;  %v4109_v27 = vadd.f32 %v13456_v58, %v4108_v63  ;;  %v11422_v22 = vld [vmem:[%s14472_s4 + $0x34] sm:$0xf0] }
 0x4fd   : > { %v4158_v11 = vadd.f32 %v4157_v24, %v4109_v27 }
 0x4fe   : > { %v4248_v46 = vpop.f32.mrf.mxu3 }
 0x4ff   : > { %v13479_v32 = vadd.f32 %v4248_v46, %v4200_v56 }
 0x501   : > { %v4288_v54 = vmul.f32 0.5, %v13479_v32  ;;  %8623 = vst [vmem:[%s13482_s18] sm:$0xff] %v13479_v32  ;;  %v4160_v48 = vpop.f32.mrf.mxu1 }
 0x502   : > { %v4206_v13 = vpop.f32.mrf.mxu2  ;;  %v4111_v36 = vpop.f32.mrf.mxu0 }
 0x503   : > { %v4304_v34 = vmul.f32 1.442695, %v4288_v54  ;;  %v4207_v4 = vadd.f32 %v4206_v13, %v4158_v11  ;;  %v4112_v57 = vadd.f32 %v13456_v58, %v4111_v36 }
 0x505   : > { %11783 = vpow2.f32 %v4304_v34  ;;  %v4161_v47 = vadd.f32 %v4160_v48, %v4112_v57 }
 0x506   : > { %v4250_v16 = vpop.f32.mrf.mxu3 }
 0x507   : > { %v13487_v15 = vadd.f32 %v4250_v16, %v4202_v59 }
 0x509   : > { %v4289_v62 = vmul.f32 0.5, %v13487_v15  ;;  %8624 = vst [vmem:[%s13482_s18 + $0x8] sm:$0xff] %v13487_v15  ;;  %v4162_v52 = vpop.f32.mrf.mxu1 }
 0x50a   : > { %v4209_v23 = vpop.f32.mrf.mxu2  ;;  %v4113_v38 = vpop.f32.mrf.mxu0 }
 0x50b   : > { %v11784_v50 = vpop.eup %11783  ;;  %v4306_v21 = vmul.f32 1.442695, %v4289_v62  ;;  %v4210_v35 = vadd.f32 %v4209_v23, %v4161_v47  ;;  %v4114_v20 = vadd.f32 %v13456_v58, %v4113_v38 }
 0x50c   : > { %4352 = vrot.lane.b32.xlu0 %v11784_v50, %s12314_s23  ;;  %v10022_v50 = vld [vmem:[%s14472_s4 + $0x28] sm:$0xf] }
 0x50d   : > { %11785 = vpow2.f32 %v4306_v21  ;;  %v4163_v45 = vadd.f32 %v4162_v52, %v4114_v20 }
 0x50e   : > { %v4253_v18 = vpop.f32.mrf.mxu3 }
 0x50f   : > { %v13500_v28 = vadd.f32 %v4253_v18, %v4205_v25  ;;  %v10023_v25 = vor.u32 %v11422_v22, %v10022_v50 }
 0x511   : > { %v4290_v51 = vmul.f32 0.5, %v13500_v28  ;;  %8625 = vst [vmem:[%s13482_s18 + $0x10] sm:$0xff] %v13500_v28  ;;  %v4165_v49 = vpop.f32.mrf.mxu1  ;;  %4674 = vmatpush.bf16.msrb.mxu2 %v10023_v25 }
 0x512   : > { %v4211_v10 = vpop.f32.mrf.mxu2  ;;  %v4116_v6 = vpop.f32.mrf.mxu0 }
 0x513   : > { %v11786_v60 = vpop.eup %11785  ;;  %v4308_v0 = vmul.f32 1.442695, %v4290_v51  ;;  %v4212_v12 = vadd.f32 %v4211_v10, %v4163_v45  ;;  %v4117_v13 = vadd.f32 %v13456_v58, %v4116_v6  ;;  %v11420_v10 = vld [vmem:[%s14472_s4 + $0x2c] sm:$0xf] }
 0x514   : > { %4354 = vrot.lane.b32.xlu0 %v11786_v60, %s12314_s23  ;;  %v10024_v60 = vld [vmem:[%s14472_s4 + $0x38] sm:$0xf0] }
 0x515   : > { %11787 = vpow2.f32 %v4308_v0  ;;  %v4166_v48 = vadd.f32 %v4165_v49, %v4117_v13  ;;  %v10027_v6 = vor.u32 %v11420_v10, %v10024_v60  ;;  %v9998_v10 = vld [vmem:[%s14472_s4] sm:$0xf] }
 0x516   : > { %v4255_v40 = vpop.f32.mrf.mxu3 }
 0x517   : > { %v13519_v7 = vadd.f32 %v4255_v40, %v4207_v4  ;;  %v10014_v4 = vld [vmem:[%s14472_s4 + $0x20] sm:$0xf]  ;;  %4723 = vmatpush.bf16.msrb.mxu3 %v10027_v6 }
 0x518   : > { %v10015_v2 = vor.u32 %v11421_v61, %v10014_v4 }
 0x519   : > { %v4291_v31 = vmul.f32 0.5, %v13519_v7  ;;  %8626 = vst [vmem:[%s13482_s18 + $0x18] sm:$0xff] %v13519_v7  ;;  %v4167_v63 = vpop.f32.mrf.mxu1 }
 0x51a   : > { %v4214_v41 = vpop.f32.mrf.mxu2  ;;  %v4118_v43 = vpop.f32.mrf.mxu0  ;;  %4576 = vmatpush.bf16.msrb.mxu0 %v10015_v2 }
 0x51b   : > { %v11788_v29 = vpop.eup %11787  ;;  %v4310_v42 = vmul.f32 1.442695, %v4291_v31  ;;  %v4215_v62 = vadd.f32 %v4214_v41, %v4166_v48  ;;  %v4119_v21 = vadd.f32 %v13456_v58, %v4118_v43  ;;  %v11419_v41 = vld [vmem:[%s14472_s4 + $0x24] sm:$0xf] }
 0x51c   : > { %4356 = vrot.lane.b32.xlu1 %v11788_v29, %s12314_s23  ;;  %v10016_v29 = vld [vmem:[%s14472_s4 + $0x30] sm:$0xf0] }
 0x51d   : > { %11789 = vpow2.f32 %v4310_v42  ;;  %v4168_v26 = vadd.f32 %v4167_v63, %v4119_v21  ;;  %v10019_v42 = vor.u32 %v11419_v41, %v10016_v29  ;;  %v10000_v41 = vld [vmem:[%s14472_s4 + $0x10] sm:$0xf0] }
 0x51e   : > { %v4258_v1 = vpop.f32.mrf.mxu3 }
 0x51f   : > { %v13532_v44 = vadd.f32 %v4258_v1, %v4210_v35  ;;  %4625 = vmatpush.bf16.msrb.mxu1 %v10019_v42 }
 0x521   : > { %v4292_v24 = vmul.f32 0.5, %v13532_v44  ;;  %8627 = vst [vmem:[%s13482_s18 + $0x20] sm:$0xff] %v13532_v44  ;;  %v4170_v59 = vpop.f32.mrf.mxu1 }
 0x522   : > { %v4216_v56 = vpop.f32.mrf.mxu2  ;;  %v4121_v37 = vpop.f32.mrf.mxu0 }
 0x523   : > { %v11790_v19 = vpop.eup %11789  ;;  %v4312_v46 = vmul.f32 1.442695, %v4292_v24  ;;  %v4217_v9 = vadd.f32 %v4216_v56, %v4168_v26  ;;  %v4122_v33 = vadd.f32 %v13456_v58, %v4121_v37 }
 0x524   : > { %4358 = vrot.lane.b32.xlu1 %v11790_v19, %s12314_s23 }
 0x525   : > { %11791 = vpow2.f32 %v4312_v46  ;;  %v4171_v49 = vadd.f32 %v4170_v59, %v4122_v33  ;;  %v10006_v59 = vld [vmem:[%s14472_s4 + $0x8] sm:$0xf] }
 0x526   : > { %v4260_v54 = vpop.f32.mrf.mxu3 }
 0x527   : > { %v13539_v53 = vadd.f32 %v4260_v54, %v4212_v12 }
 0x529   : > { %v4293_v34 = vmul.f32 0.5, %v13539_v53  ;;  %8628 = vst [vmem:[%s13482_s18 + $0x28] sm:$0xff] %v13539_v53  ;;  %v4172_v51 = vpop.f32.mrf.mxu1 }
 0x52a   : > { %v4219_v14 = vpop.f32.mrf.mxu2  ;;  %v4123_v52 = vpop.f32.mrf.mxu0 }
 0x52b   : > { %v11792_v36 = vpop.eup %11791  ;;  %v4314_v16 = vmul.f32 1.442695, %v4293_v34  ;;  %v4220_v31 = vadd.f32 %v4219_v14, %v4171_v49  ;;  %v4124_v43 = vadd.f32 %v13456_v58, %v4123_v52 }
 0x52c   : > { %4360 = vrot.lane.b32.xlu2 %v11792_v36, %s12314_s23 }
 0x52d   : > { %11793 = vpow2.f32 %v4314_v16  ;;  %v4173_v20 = vadd.f32 %v4172_v51, %v4124_v43  ;;  %v11418_v16 = vld [vmem:[%s14472_s4 + $0x14] sm:$0xf0]  ;;  %v10008_v51 = vld [vmem:[%s14472_s4 + $0x18] sm:$0xf0] }
 0x52e   : > { %v4263_v23 = vpop.f32.mrf.mxu3 }
 0x52f   : > { %v13552_v38 = vadd.f32 %v4263_v23, %v4215_v62  ;;  %v10007_v23 = vor.u32 %v11418_v16, %v10006_v59 }
 0x531   : > { %v4294_v18 = vmul.f32 0.5, %v13552_v38  ;;  %8629 = vst [vmem:[%s13482_s18 + $0x30] sm:$0xff] %v13552_v38  ;;  %v4175_v35 = vpop.f32.mrf.mxu1  ;;  %4675 = vmatpush.bf16.msrb.mxu2 %v10007_v23 }
 0x532   : > { %v4221_v11 = vpop.f32.mrf.mxu2  ;;  %v4126_v17 = vpop.f32.mrf.mxu0 }
 0x533   : > { %v11794_v8 = vpop.eup %11793  ;;  %v4316_v27 = vmul.f32 1.442695, %v4294_v18  ;;  %v4222_v56 = vadd.f32 %v4221_v11, %v4173_v20  ;;  %v4127_v45 = vadd.f32 %v13456_v58, %v4126_v17 }
 0x534   : > { %4362 = vrot.lane.b32.xlu2 %v11794_v8, %s12314_s23 }
 0x535   : > { %11795 = vpow2.f32 %v4316_v27  ;;  %v4176_v34 = vadd.f32 %v4175_v35, %v4127_v45 }
 0x536   : > { %v4265_v0 = vpop.f32.mrf.mxu3 }
 0x537   : > { %v13571_v40 = vadd.f32 %v4265_v0, %v4217_v9  ;;  %v11416_v9 = vld [vmem:[%s14472_s4 + $0xc] sm:$0xf]  ;;  %v11417_v0 = vld [vmem:[%s14472_s4 + $0xc] sm:$0xf0] }
 0x538   : > { %v10011_v11 = vor.u32 %v11416_v9, %v10008_v51  ;;  %v9999_v61 = vor.u32 %v11417_v0, %v9998_v10  ;;  %v10318_v0 = vld [vmem:[#allocation7 + $0x1c0] sm:$0xf] }
 0x539   : > { %v4295_v5 = vmul.f32 0.5, %v13571_v40  ;;  %8630 = vst [vmem:[%s13482_s18 + $0x38] sm:$0xff] %v13571_v40  ;;  %v4177_v12 = vpop.f32.mrf.mxu1 }
 0x53a   : > { %v4224_v39 = vpop.f32.mrf.mxu2  ;;  %v4128_v24 = vpop.f32.mrf.mxu0  ;;  %4724 = vmatpush.bf16.msrb.mxu3 %v10011_v11  ;;  %4577 = vmatpush.bf16.msrb.mxu0 %v9999_v61  ;;  %v11619_v11 = vld [vmem:[#allocation7 + $0x5dc] sm:$0xf0] }
 0x53b   : > { %v11796_v57 = vpop.eup %11795  ;;  %v4318_v3 = vmul.f32 1.442695, %v4295_v5  ;;  %v4225_v48 = vadd.f32 %v4224_v39, %v4176_v34  ;;  %v4129_v50 = vadd.f32 %v13456_v58, %v4128_v24  ;;  %v11491_v61 = vld [vmem:[#allocation7 + $0x1dc] sm:$0xf0] }
 0x53c   : > { %4364 = vrot.lane.b32.xlu0 %v11796_v57, %s12314_s23 }
 0x53d   : > { %11797 = vpow2.f32 %v4318_v3  ;;  %v4178_v52 = vadd.f32 %v4177_v12, %v4129_v50 }
 0x53e   : > { %v4268_v47 = vpop.f32.mrf.mxu3 }
 0x53f   : > { %v13584_v55 = vadd.f32 %v4268_v47, %v4220_v31  ;;  %v11415_v31 = vld [vmem:[%s14472_s4 + $0x4] sm:$0xf] }
 0x540   : > { %v10003_v42 = vor.u32 %v11415_v31, %v10000_v41  ;;  %v608_v31 = vld [vmem:[%s13666_s11] sm:$0xff] }
 0x541   : > { %v4296_v1 = vmul.f32 0.5, %v13584_v55  ;;  %8631 = vst [vmem:[%s13482_s18 + $0x40] sm:$0xff] %v13584_v55  ;;  %v4180_v18 = vpop.f32.mrf.mxu1 }
 0x542   : > { %v4226_v54 = vpop.f32.mrf.mxu2  ;;  %v4131_v14 = vpop.f32.mrf.mxu0  ;;  %4626 = vmatpush.bf16.msrb.mxu1 %v10003_v42 }
 0x543   : > { %v11798_v30 = vpop.eup %11797  ;;  %v4320_v63 = vmul.f32 1.442695, %v4296_v1  ;;  %v4227_v27 = vadd.f32 %v4226_v54, %v4178_v52  ;;  %v4132_v6 = vadd.f32 %v13456_v58, %v4131_v14 }
 0x544   : > { %4366 = vrot.lane.b32.xlu1 %v11798_v30, %s12314_s23 }
 0x545   : > { %11799 = vpow2.f32 %v4320_v63  ;;  %v4181_v17 = vadd.f32 %v4180_v18, %v4132_v6 }
 0x546   : > { %v4270_v19 = vpop.f32.mrf.mxu3 }
 0x547   : > { %v13591_v46 = vadd.f32 %v4270_v19, %v4222_v56 }
 0x549   : > { %v4297_v37 = vmul.f32 0.5, %v13591_v46  ;;  %8632 = vst [vmem:[%s13482_s18 + $0x48] sm:$0xff] %v13591_v46  ;;  %v4182_v3 = vpop.f32.mrf.mxu1 }
 0x54a   : > { %v4229_v26 = vpop.f32.mrf.mxu2  ;;  %v4133_v33 = vpop.f32.mrf.mxu0 }
 0x54b   : > { %v11800_v13 = vpop.eup %11799  ;;  %v4322_v36 = vmul.f32 1.442695, %v4297_v37  ;;  %v4230_v49 = vadd.f32 %v4229_v26, %v4181_v17  ;;  %v4134_v43 = vadd.f32 %v13456_v58, %v4133_v33  ;;  %v11086_v33 = vld [vmem:[#allocation7 + $0x7c0] sm:$0xf] }
 0x54c   : > { %4368 = vrot.lane.b32.xlu2 %v11800_v13, %s12314_s23 }
 0x54d   : > { %11801 = vpow2.f32 %v4322_v36  ;;  %v4183_v20 = vadd.f32 %v4182_v3, %v4134_v43 }
 0x54e   : > { %v4273_v62 = vpop.f32.mrf.mxu3 }
 0x54f   : > { %v13604_v22 = vadd.f32 %v4273_v62, %v4225_v48 }
 0x551   : > { %v4298_v21 = vmul.f32 0.5, %v13604_v22  ;;  %8633 = vst [vmem:[%s13482_s18 + $0x50] sm:$0xff] %v13604_v22  ;;  %v4185_v12 = vpop.f32.mrf.mxu1 }
 0x552   : > { %v4231_v29 = vpop.f32.mrf.mxu2  ;;  %v4136_v1 = vpop.f32.mrf.mxu0 }
 0x553   : > { %v11802_v25 = vpop.eup %11801  ;;  %v4324_v8 = vmul.f32 1.442695, %v4298_v21  ;;  %v4232_v24 = vadd.f32 %v4231_v29, %v4183_v20  ;;  %v4137_v19 = vadd.f32 %v13456_v58, %v4136_v1  ;;  %v609_v29 = vld [vmem:[%s13666_s11 + $0x8] sm:$0xff] }
 0x554   : > { %4370 = vrot.lane.b32.xlu0 %v11802_v25, %s12314_s23 }
 0x555   : > { %11803 = vpow2.f32 %v4324_v8  ;;  %v4186_v34 = vadd.f32 %v4185_v12, %v4137_v19  ;;  %v10286_v19 = vld [vmem:[#allocation7 + $0x180] sm:$0xf] }
 0x556   : > { %v4275_v60 = vpop.f32.mrf.mxu3 }
 0x557   : > { %v13623_v4 = vadd.f32 %v4275_v60, %v4227_v27  ;;  %v10830_v60 = vld [vmem:[#allocation7 + $0x5c0] sm:$0xf] }
 0x558   : > { %v10831_v6 = vor.u32 %v11619_v11, %v10830_v60  ;;  %v11475_v60 = vld [vmem:[#allocation7 + $0x15c] sm:$0xf0] }
 0x559   : > { %v4299_v2 = vmul.f32 0.5, %v13623_v4  ;;  %8634 = vst [vmem:[%s13482_s18 + $0x58] sm:$0xff] %v13623_v4  ;;  %v4187_v50 = vpop.f32.mrf.mxu1  ;;  %v11667_v11 = vld [vmem:[#allocation7 + $0x75c] sm:$0xf0] }
 0x55a   : > { %v4234_v37 = vpop.f32.mrf.mxu2  ;;  %v4138_v48 = vpop.f32.mrf.mxu0  ;;  %6513 = vmatpush.bf16.msra.mxu2 %v10831_v6 }
 0x55b   : > { %v11804_v5 = vpop.eup %11803  ;;  %v4326_v57 = vmul.f32 1.442695, %v4299_v2  ;;  %v4235_v59 = vadd.f32 %v4234_v37, %v4186_v34  ;;  %v4139_v14 = vadd.f32 %v13456_v58, %v4138_v48  ;;  %v11683_v2 = vld [vmem:[#allocation7 + $0x7dc] sm:$0xf0]  ;;  %v611_v48 = vld [vmem:[%s13666_s11 + $0x18] sm:$0xff] }
 0x55c   : > { %4372 = vrot.lane.b32.xlu1 %v11804_v5, %s12314_s23  ;;  %v10319_v5 = vor.u32 %v11491_v61, %v10318_v0  ;;  %v11087_v17 = vor.u32 %v11683_v2, %v11086_v33  ;;  %v11054_v37 = vld [vmem:[#allocation7 + $0x780] sm:$0xf] }
 0x55d   : > { %11805 = vpow2.f32 %v4326_v57  ;;  %v4188_v52 = vadd.f32 %v4187_v50, %v4139_v14  ;;  %v10574_v57 = vld [vmem:[#allocation7 + $0x3c0] sm:$0xf] }
 0x55e   : > { %v4278_v47 = vpop.f32.mrf.mxu3  ;;  %6415 = vmatpush.bf16.msra.mxu0 %v10319_v5  ;;  %6562 = vmatpush.bf16.msra.mxu3 %v11087_v17  ;;  %v10542_v34 = vld [vmem:[#allocation7 + $0x380] sm:$0xf] }
 0x55f   : > { %v13636_v35 = vadd.f32 %v4278_v47, %v4230_v49  ;;  %v11555_v49 = vld [vmem:[#allocation7 + $0x3dc] sm:$0xf0] }
 0x560   : > { %v10575_v3 = vor.u32 %v11555_v49, %v10574_v57  ;;  %v10510_v61 = vld [vmem:[#allocation7 + $0x340] sm:$0xf] }
 0x561   : > { %v4300_v39 = vmul.f32 0.5, %v13636_v35  ;;  %8635 = vst [vmem:[%s13482_s18 + $0x60] sm:$0xff] %v13636_v35  ;;  %v11539_v33 = vld [vmem:[#allocation7 + $0x35c] sm:$0xf0] }
 0x562   : > { %v4236_v21 = vpop.f32.mrf.mxu2  ;;  %6464 = vmatpush.bf16.msra.mxu1 %v10575_v3  ;;  %v10511_v2 = vor.u32 %v11539_v33, %v10510_v61  ;;  %v614_v3 = vld [vmem:[%s13666_s11 + $0x30] sm:$0xff] }
 0x563   : > { %v11806_v30 = vpop.eup %11805  ;;  %v4328_v63 = vmul.f32 1.442695, %v4300_v39  ;;  %v4237_v8 = vadd.f32 %v4236_v21, %v4188_v52 }
 0x564   : > { %4374 = vrot.lane.b32.xlu2 %v11806_v30, %s12314_s23 }
 0x565   : > { %11807 = vpow2.f32 %v4328_v63  ;;  %v610_v63 = vld [vmem:[%s13666_s11 + $0x10] sm:$0xff] }
 0x566   : > { %v4280_v56 = vpop.f32.mrf.mxu3 }
 0x567   : > { %v13643_v45 = vadd.f32 %v4280_v56, %v4232_v24  ;;  %v10798_v24 = vld [vmem:[#allocation7 + $0x580] sm:$0xf] }
 0x568   : > { %v11611_v56 = vld [vmem:[#allocation7 + $0x59c] sm:$0xf0] }
 0x569   : > { %v4301_v54 = vmul.f32 0.5, %v13643_v45  ;;  %8636 = vst [vmem:[%s13482_s18 + $0x68] sm:$0xff] %v13643_v45  ;;  %v10799_v12 = vor.u32 %v11611_v56, %v10798_v24  ;;  %v11531_v24 = vld [vmem:[#allocation7 + $0x31c] sm:$0xf0] }
 0x56b   : > { %v11808_v13 = vpop.eup %11807  ;;  %v4330_v36 = vmul.f32 1.442695, %v4301_v54  ;;  %6514 = vmatpush.bf16.msra.mxu2 %v10799_v12 }
 0x56c   : > { %4376 = vrot.lane.b32.xlu0 %v11808_v13, %s12314_s23 }
 0x56d   : > { %11809 = vpow2.f32 %v4330_v36  ;;  %v11547_v36 = vld [vmem:[#allocation7 + $0x39c] sm:$0xf0] }
 0x56e   : > { %v4283_v16 = vpop.f32.mrf.mxu3 }
 0x56f   : > { %v13650_v62 = vadd.f32 %v4283_v16, %v4235_v59  ;;  %v10543_v59 = vor.u32 %v11547_v36, %v10542_v34  ;;  %v11587_v34 = vld [vmem:[#allocation7 + $0x4dc] sm:$0xf0] }
 0x570   : > { %v10190_v36 = vld [vmem:[#allocation7 + $0xc0] sm:$0xf] }
 0x571   : > { %v4302_v23 = vmul.f32 0.5, %v13650_v62  ;;  %8637 = vst [vmem:[%s13482_s18 + $0x70] sm:$0xff] %v13650_v62  ;;  %6465 = vmatpush.bf16.msra.mxu1 %v10543_v59 }
 0x573   : > { %v11810_v25 = vpop.eup %11809  ;;  %v4332_v18 = vmul.f32 1.442695, %v4302_v23 }
 0x574   : > { %4378 = vrot.lane.b32.xlu1 %v11810_v25, %s12314_s23 }
 0x575   : > { %11811 = vpow2.f32 %v4332_v18  ;;  %v612_v18 = vld [vmem:[%s13666_s11 + $0x20] sm:$0xff]  ;;  %6466 = vmatpush.bf16.msra.mxu1 %v10511_v2 }
 0x576   : > { %v4285_v26 = vpop.f32.mrf.mxu3  ;;  %v10414_v2 = vld [vmem:[#allocation7 + $0x280] sm:$0xf] }
 0x577   : > { %v13657_v58 = vadd.f32 %v4285_v26, %v4237_v8  ;;  %v613_v8 = vld [vmem:[%s13666_s11 + $0x28] sm:$0xff] }
 0x579   : > { %v4303_v27 = vmul.f32 0.5, %v13657_v58  ;;  %8638 = vst [vmem:[%s13482_s18 + $0x78] sm:$0xff] %v13657_v58 }
 0x57b   : > { %v11812_v9 = vpop.eup %11811  ;;  %v4334_v51 = vmul.f32 1.442695, %v4303_v27  ;;  %v10766_v27 = vld [vmem:[#allocation7 + $0x540] sm:$0xf] }
 0x57c   : > { %4380 = vrot.lane.b32.xlu2 %v11812_v9, %s12314_s23  ;;  %v11603_v9 = vld [vmem:[#allocation7 + $0x55c] sm:$0xf0] }
 0x57d   : > { %11813 = vpow2.f32 %v4334_v51  ;;  %v10254_v51 = vld [vmem:[#allocation7 + $0x140] sm:$0xf] }
 0x57e   : > { %v4353_v10 = vpop.permute.xlu0 %4352  ;;  %v10255_v0 = vor.u32 %v11475_v60, %v10254_v51  ;;  %v11579_v60 = vld [vmem:[#allocation7 + $0x49c] sm:$0xf0] }
 0x57f   : > { %v4400_v47 = vmul.f32 %v4353_v10, %v608_v31  ;;  %v10767_v10 = vor.u32 %v11603_v9, %v10766_v27 }
 0x581   : > { %v4416_v39 = vadd.f32 %v4400_v47, %v13479_v32  ;;  %v11483_v32 = vld [vmem:[#allocation7 + $0x19c] sm:$0xf0]  ;;  %6515 = vmatpush.bf16.msra.mxu2 %v10767_v10 }
 0x582   : > { %v10287_v54 = vor.u32 %v11483_v32, %v10286_v19  ;;  %v11595_v47 = vld [vmem:[#allocation7 + $0x51c] sm:$0xf0] }
 0x583   : > { %v11814_v41 = vpop.eup %11813  ;;  %v10670_v10 = vld [vmem:[#allocation7 + $0x480] sm:$0xf] }
 0x584   : > { %4382 = vrot.lane.b32.xlu0 %v11814_v41, %s12314_s23  ;;  %6416 = vmatpush.bf16.msra.mxu0 %v10287_v54  ;;  %v615_v41 = vld [vmem:[%s13666_s11 + $0x38] sm:$0xff]  ;;  %v616_v54 = vld [vmem:[%s13666_s11 + $0x40] sm:$0xff] }
 0x586   : > { %v4355_v42 = vpop.permute.xlu0 %4354  ;;  %v4361_v14 = vpop.permute.xlu2 %4360 }
 0x587   : > { %v4401_v43 = vmul.f32 %v4355_v42, %v609_v29  ;;  %v4404_v5 = vmul.f32 %v4361_v14, %v612_v18  ;;  %v10734_v29 = vld [vmem:[#allocation7 + $0x500] sm:$0xf] }
 0x588   : > { %6417 = vmatpush.bf16.msra.mxu0 %v10255_v0  ;;  %v10222_v42 = vld [vmem:[#allocation7 + $0x100] sm:$0xf] }
 0x589   : > { %v4417_v1 = vadd.f32 %v4401_v43, %v13487_v15  ;;  %v11675_v15 = vld [vmem:[#allocation7 + $0x79c] sm:$0xf0]  ;;  %v4420_v57 = vadd.f32 %v4404_v5, %v13532_v44  ;;  %v10735_v43 = vor.u32 %v11595_v47, %v10734_v29 }
 0x58a   : > { %v11055_v13 = vor.u32 %v11675_v15, %v11054_v37  ;;  %v11651_v14 = vld [vmem:[#allocation7 + $0x6dc] sm:$0xf0] }
 0x58b   : > { %v4432_v30 = vpack.c.bf16 %v4417_v1, %v4416_v39  ;;  %v11467_v39 = vld [vmem:[#allocation7 + $0x11c] sm:$0xf0]  ;;  %6516 = vmatpush.bf16.msra.mxu2 %v10735_v43 }
 0x58c   : > { %6563 = vmatpush.bf16.msra.mxu3 %v11055_v13  ;;  %v11659_v1 = vld [vmem:[#allocation7 + $0x71c] sm:$0xf0] }
 0x58d   : > { %10060 = vmatmul.msk.bf16.vlgmr.msrb.gmra.mxu0 %vm4545_vm0, %v4432_v30  ;;  %10068 = vmatmul.msk.bf16.vlgmr.msrb.gmra.mxu1 %vm4545_vm0, %v4432_v30  ;;  %v10702_v13 = vld [vmem:[#allocation7 + $0x4c0] sm:$0xf] }
 0x58e   : > { %10076 = vmatmul.msk.bf16.vlgmr.msrb.gmra.mxu2 %vm4545_vm0, %v4432_v30  ;;  %10084 = vmatmul.msk.bf16.vlgmr.msrb.gmra.mxu3 %vm4545_vm0, %v4432_v30  ;;  %v4357_v20 = vpop.permute.xlu1 %4356  ;;  %v4363_v26 = vpop.permute.xlu2 %4362  ;;  %v10223_v30 = vor.u32 %v11467_v39, %v10222_v42  ;;  %v10703_v59 = vor.u32 %v11587_v34, %v10702_v13  ;;  %v10926_v0 = vld [vmem:[#allocation7 + $0x680] sm:$0xf] }
 0x58f   : > { %v4402_v16 = vmul.f32 %v4357_v20, %v610_v63  ;;  %v10478_v63 = vld [vmem:[#allocation7 + $0x300] sm:$0xf] }
 0x590   : > { %v10479_v19 = vor.u32 %v11531_v24, %v10478_v63  ;;  %6418 = vmatpush.bf16.msra.mxu0 %v10223_v30  ;;  %6517 = vmatpush.bf16.msra.mxu2 %v10703_v59  ;;  %v11515_v5 = vld [vmem:[#allocation7 + $0x29c] sm:$0xf0] }
 0x591   : > { %v4418_v21 = vadd.f32 %v4402_v16, %v13500_v28  ;;  %v11022_v28 = vld [vmem:[#allocation7 + $0x740] sm:$0xf] }
 0x592   : > { %v11023_v6 = vor.u32 %v11667_v11, %v11022_v28  ;;  %6467 = vmatpush.bf16.msra.mxu1 %v10479_v19  ;;  %v11459_v16 = vld [vmem:[#allocation7 + $0xdc] sm:$0xf0]  ;;  %v10671_v11 = vor.u32 %v11579_v60, %v10670_v10  ;;  %v11615_v60 = vld [vmem:[#allocation7 + $0x5c4] sm:$0xf] }
 0x593   : > { %v10158_v28 = vld [vmem:[#allocation7 + $0x80] sm:$0xf] }
 0x594   : > { %6564 = vmatpush.bf16.msra.mxu3 %v11023_v6  ;;  %v11643_v6 = vld [vmem:[#allocation7 + $0x69c] sm:$0xf0]  ;;  %6518 = vmatpush.bf16.msra.mxu2 %v10671_v11 }
 0x595   : > { %v10927_v33 = vor.u32 %v11643_v6, %v10926_v0  ;;  %v10638_v42 = vld [vmem:[#allocation7 + $0x440] sm:$0xf]  ;;  %v10320_v0 = vld [vmem:[#allocation7 + $0x1e0] sm:$0xf0] }
 0x596   : > { %v4359_v23 = vpop.permute.xlu1 %4358  ;;  %v11571_v43 = vld [vmem:[#allocation7 + $0x45c] sm:$0xf0]  ;;  %v11679_v6 = vld [vmem:[#allocation7 + $0x7c4] sm:$0xf] }
 0x597   : > { %v4403_v50 = vmul.f32 %v4359_v23, %v611_v48  ;;  %v10126_v39 = vld [vmem:[#allocation7 + $0x40] sm:$0xf] }
 0x598   : > { %v11507_v63 = vld [vmem:[#allocation7 + $0x25c] sm:$0xf0] }
 0x599   : > { %v4419_v25 = vadd.f32 %v4403_v50, %v13519_v7  ;;  %v4405_v7 = vmul.f32 %v4363_v26, %v613_v8  ;;  %v10446_v50 = vld [vmem:[#allocation7 + $0x2c0] sm:$0xf] }
 0x59b   : > { %v4433_v52 = vpack.c.bf16 %v4419_v25, %v4418_v21  ;;  %v4421_v17 = vadd.f32 %v4405_v7, %v13539_v53  ;;  %v10990_v53 = vld [vmem:[#allocation7 + $0x700] sm:$0xf]  ;;  %v617_v25 = vld [vmem:[%s13666_s11 + $0x48] sm:$0xff] }
 0x59c   : > { %v10991_v20 = vor.u32 %v11659_v1, %v10990_v53  ;;  %v11523_v21 = vld [vmem:[#allocation7 + $0x2dc] sm:$0xf0]  ;;  %v10639_v53 = vor.u32 %v11571_v43, %v10638_v42 }
 0x59d   : > { %10061 = vmatmul.msk.bf16.gmra.mxu0 %vm4545_vm0, %v4433_v52  ;;  %10069 = vmatmul.msk.bf16.gmra.mxu1 %vm4545_vm0, %v4433_v52  ;;  %v4434_v49 = vpack.c.bf16 %v4421_v17, %v4420_v57  ;;  %v11451_v7 = vld [vmem:[#allocation7 + $0x9c] sm:$0xf0]  ;;  %v10415_v17 = vor.u32 %v11515_v5, %v10414_v2  ;;  %v619_v57 = vld [vmem:[%s13666_s11 + $0x58] sm:$0xff]  ;;  %v414_v2 = vld [vmem:[#allocation8 + $0x5] sm:$0xf] }
 0x59e   : > { %10077 = vmatmul.msk.bf16.gmra.mxu2 %vm4545_vm0, %v4433_v52  ;;  %10085 = vmatmul.msk.bf16.gmra.mxu3 %vm4545_vm0, %v4433_v52  ;;  %v10447_v52 = vor.u32 %v11523_v21, %v10446_v50  ;;  %v11443_v1 = vld [vmem:[#allocation7 + $0x5c] sm:$0xf0] }
 0x59f   : > { %6565 = vmatpush.bf16.msra.mxu3 %v10991_v20  ;;  %v10127_v30 = vor.u32 %v11443_v1, %v10126_v39  ;;  %v10382_v20 = vld [vmem:[#allocation7 + $0x240] sm:$0xf]  ;;  %6519 = vmatpush.bf16.msra.mxu2 %v10639_v53  ;;  %v13739_v1 = vperm.slane %v414_v2, 2 }
 0x5a0   : > { %6468 = vmatpush.bf16.msra.mxu1 %v10447_v52  ;;  %v10383_v24 = vor.u32 %v11507_v63, %v10382_v20  ;;  %v11627_v21 = vld [vmem:[#allocation7 + $0x61c] sm:$0xf0]  ;;  %v11479_v63 = vld [vmem:[#allocation7 + $0x184] sm:$0xf] }
 0x5a1   : > { %v11499_v52 = vld [vmem:[#allocation7 + $0x21c] sm:$0xf0] }
 0x5a4   : > { %6469 = vmatpush.bf16.msra.mxu1 %v10415_v17 }
 0x5a6   : > { %v4369_v48 = vpop.permute.xlu2 %4368 }
 0x5a7   : > { %v4408_v18 = vmul.f32 %v4369_v48, %v616_v54  ;;  %v11563_v48 = vld [vmem:[#allocation7 + $0x41c] sm:$0xf0] }
 0x5a8   : > { %6470 = vmatpush.bf16.msra.mxu1 %v10383_v24  ;;  %v10288_v24 = vld [vmem:[#allocation7 + $0x1a0] sm:$0xf0] }
 0x5a9   : > { %v4424_v27 = vadd.f32 %v4408_v18, %v13584_v55  ;;  %v618_v55 = vld [vmem:[%s13666_s11 + $0x50] sm:$0xff] }
 0x5ad   : > { %10062 = vmatmul.msk.bf16.gmra.mxu0 %vm4545_vm0, %v4434_v49  ;;  %10070 = vmatmul.msk.bf16.gmra.mxu1 %vm4545_vm0, %v4434_v49 }
 0x5ae   : > { %10078 = vmatmul.msk.bf16.gmra.mxu2 %vm4545_vm0, %v4434_v49  ;;  %10086 = vmatmul.msk.bf16.gmra.mxu3 %vm4545_vm0, %v4434_v49  ;;  %v4365_v31 = vpop.permute.xlu0 %4364 }
 0x5af   : > { %v4406_v44 = vmul.f32 %v4365_v31, %v614_v3 }
 0x5b1   : > { %v4422_v32 = vadd.f32 %v4406_v44, %v13552_v38  ;;  %v10958_v38 = vld [vmem:[#allocation7 + $0x6c0] sm:$0xf] }
 0x5b2   : > { %v10959_v23 = vor.u32 %v11651_v14, %v10958_v38  ;;  %v10894_v44 = vld [vmem:[#allocation7 + $0x640] sm:$0xf]  ;;  %v623_v14 = vld [vmem:[%s13666_s11 + $0x78] sm:$0xff] }
 0x5b4   : > { %6566 = vmatpush.bf16.msra.mxu3 %v10959_v23  ;;  %v10862_v23 = vld [vmem:[#allocation7 + $0x600] sm:$0xf] }
 0x5b6   : > { %v4367_v56 = vpop.permute.xlu1 %4366 }
 0x5b7   : > { %v4407_v12 = vmul.f32 %v4367_v56, %v615_v41  ;;  %v620_v56 = vld [vmem:[%s13666_s11 + $0x60] sm:$0xff] }
 0x5b8   : > { %6567 = vmatpush.bf16.msra.mxu3 %v10927_v33 }
 0x5b9   : > { %v4423_v37 = vadd.f32 %v4407_v12, %v13571_v40  ;;  %v10191_v40 = vor.u32 %v11459_v16, %v10190_v36  ;;  %v621_v12 = vld [vmem:[%s13666_s11 + $0x68] sm:$0xff]  ;;  %v10606_v36 = vld [vmem:[#allocation7 + $0x400] sm:$0xf]  ;;  %v622_v16 = vld [vmem:[%s13666_s11 + $0x70] sm:$0xff]  ;;  %s12217_s11 = scalar_lea.hbm %s14476_s8, 256 }
 0x5ba   : > { %v10607_v59 = vor.u32 %v11563_v48, %v10606_v36  ;;  %v10544_v36 = vld [vmem:[#allocation7 + $0x3a0] sm:$0xf0]  ;;  %p12219_p2 = scmp.lt.s32.totalorder %s12217_s11, %s12213_s5 }
 0x5bb   : > { %v4435_v15 = vpack.c.bf16 %v4423_v37, %v4422_v32  ;;  %6419 = vmatpush.bf16.msra.mxu0 %v10191_v40  ;;  %v10094_v40 = vld [vmem:[#allocation7] sm:$0xf] }
 0x5bc   : > { %6520 = vmatpush.bf16.msra.mxu2 %v10607_v59  ;;  %p12220_p10 = por %p12219_p2, %p12218_p9 }
 0x5bd   : > { %10063 = vmatmul.msk.bf16.gmra.mxu0 %vm4545_vm0, %v4435_v15  ;;  %10071 = vmatmul.msk.bf16.gmra.mxu1 %vm4545_vm0, %v4435_v15 }
 0x5be   : > { %10079 = vmatmul.msk.bf16.gmra.mxu2 %vm4545_vm0, %v4435_v15  ;;  %10087 = vmatmul.msk.bf16.gmra.mxu3 %vm4545_vm0, %v4435_v15  ;;  %v4375_v49 = vpop.permute.xlu2 %4374  ;;  %p12221_p12 = pnand %p12220_p10, %p12216_p11 }
 0x5bf   : > { %v4411_v31 = vmul.f32 %v4375_v49, %v619_v57  ;;  %v13733_v57 = vperm.slane %v414_v2, 0  ;;  %v13735_v49 = vperm.slane %v414_v2, 1 }
 0x5c1   : > { %v4427_v29 = vadd.f32 %v4411_v31, %v13623_v4 }
 0x5c6   : > { %v4371_v8 = vpop.permute.xlu0 %4370 }
 0x5c7   : > { %v4409_v26 = vmul.f32 %v4371_v8, %v617_v25  ;;  %v10350_v25 = vld [vmem:[#allocation7 + $0x200] sm:$0xf]  ;;  %v10863_v8 = vor.u32 %v11627_v21, %v10862_v23 }
 0x5c9   : > { %v4425_v9 = vadd.f32 %v4409_v26, %v13591_v46  ;;  %v10159_v46 = vor.u32 %v11451_v7, %v10158_v28  ;;  %v10351_v26 = vor.u32 %v11499_v52, %v10350_v25  ;;  %v10832_v28 = vld [vmem:[#allocation7 + $0x5e0] sm:$0xf0] }
 0x5ca   : > { %v10835_v11 = vor.u32 %v11615_v60, %v10832_v28  ;;  %v11487_v7 = vld [vmem:[#allocation7 + $0x1c4] sm:$0xf] }
 0x5cb   : > { %v4436_v51 = vpack.c.bf16 %v4425_v9, %v4424_v27  ;;  %6420 = vmatpush.bf16.msra.mxu0 %v10159_v46  ;;  %6471 = vmatpush.bf16.msra.mxu1 %v10351_v26  ;;  %v10576_v46 = vld [vmem:[#allocation7 + $0x3e0] sm:$0xf0] }
 0x5cc   : > { %6709 = vmatpush.bf16.msrb.mxu2 %v10835_v11 }
 0x5cd   : > { %10064 = vmatmul.msk.bf16.gmra.mxu0 %vm4545_vm0, %v4436_v51  ;;  %10072 = vmatmul.msk.bf16.gmra.mxu1 %vm4545_vm0, %v4436_v51 }
 0x5ce   : > { %10080 = vmatmul.msk.bf16.gmra.mxu2 %vm4545_vm0, %v4436_v51  ;;  %10088 = vmatmul.msk.bf16.gmra.mxu3 %vm4545_vm0, %v4436_v51  ;;  %v4373_v61 = vpop.permute.xlu1 %4372 }
 0x5cf   : > { %v4410_v3 = vmul.f32 %v4373_v61, %v618_v55  ;;  %6421 = vmatpush.bf16.msra.mxu0 %v10127_v30  ;;  %v10323_v55 = vor.u32 %v11487_v7, %v10320_v0 }
 0x5d1   : > { %v4426_v41 = vadd.f32 %v4410_v3, %v13604_v22  ;;  %v11635_v22 = vld [vmem:[#allocation7 + $0x65c] sm:$0xf0] }
 0x5d2   : > { %v10895_v4 = vor.u32 %v11635_v22, %v10894_v44  ;;  %v13741_v44 = vperm.slane %v414_v2, 3 }
 0x5d3   : > { %v4437_v47 = vpack.c.bf16 %v4427_v29, %v4426_v41  ;;  %v11607_v41 = vld [vmem:[#allocation7 + $0x584] sm:$0xf] }
 0x5d4   : > { %6568 = vmatpush.bf16.msra.mxu3 %v10895_v4  ;;  %v10800_v29 = vld [vmem:[#allocation7 + $0x5a0] sm:$0xf0] }
 0x5d5   : > { %v10803_v43 = vor.u32 %v11607_v41, %v10800_v29  ;;  %v11535_v29 = vld [vmem:[#allocation7 + $0x344] sm:$0xf] }
 0x5d6   : > { %v4381_v38 = vpop.permute.xlu2 %4380 }
 0x5d7   : > { %6710 = vmatpush.bf16.msrb.mxu2 %v10803_v43 }
 0x5d8   : > { %6569 = vmatpush.bf16.msra.mxu3 %v10863_v8 }
 0x5dd   : > { %10065 = vmatmul.msk.bf16.gmra.mxu0 %vm4545_vm0, %v4437_v47  ;;  %10073 = vmatmul.msk.bf16.gmra.mxu1 %vm4545_vm0, %v4437_v47 }
 0x5de   : > { %10081 = vmatmul.msk.bf16.gmra.mxu2 %vm4545_vm0, %v4437_v47  ;;  %10089 = vmatmul.msk.bf16.gmra.mxu3 %vm4545_vm0, %v4437_v47  ;;  %v4377_v19 = vpop.permute.xlu0 %4376 }
 0x5df   : > { %v4412_v32 = vmul.f32 %v4377_v19, %v620_v56 }
 0x5e1   : > { %v4428_v54 = vadd.f32 %v4412_v32, %v13636_v35  ;;  %v11435_v35 = vld [vmem:[#allocation7 + $0x1c] sm:$0xf0]  ;;  %v11671_v32 = vld [vmem:[#allocation7 + $0x784] sm:$0xf] }
 0x5e2   : > { %v10095_v50 = vor.u32 %v11435_v35, %v10094_v40 }
 0x5e4   : > { %6422 = vmatpush.bf16.msra.mxu0 %v10095_v50 }
 0x5e6   : > { %v4379_v37 = vpop.permute.xlu1 %4378 }
 0x5e7   : > { %v4413_v15 = vmul.f32 %v4379_v37, %v621_v12  ;;  %v10291_v12 = vor.u32 %v11479_v63, %v10288_v24  ;;  %v11056_v37 = vld [vmem:[#allocation7 + $0x7a0] sm:$0xf0] }
 0x5e8   : > { %6611 = vmatpush.bf16.msrb.mxu0 %v10323_v55 }
 0x5e9   : > { %v4429_v13 = vadd.f32 %v4413_v15, %v13643_v45  ;;  %v4414_v45 = vmul.f32 %v4381_v38, %v622_v16  ;;  %v11059_v15 = vor.u32 %v11671_v32, %v11056_v37 }
 0x5eb   : > { %v4438_v34 = vpack.c.bf16 %v4429_v13, %v4428_v54  ;;  %v4430_v9 = vadd.f32 %v4414_v45, %v13650_v62  ;;  %v11088_v62 = vld [vmem:[#allocation7 + $0x7e0] sm:$0xf0] }
 0x5ec   : > { %v11091_v61 = vor.u32 %v11679_v6, %v11088_v62  ;;  %6612 = vmatpush.bf16.msrb.mxu0 %v10291_v12 }
 0x5ed   : > { %10066 = vmatmul.msk.bf16.gmra.mxu0 %vm4545_vm0, %v4438_v34  ;;  %10074 = vmatmul.msk.bf16.gmra.mxu1 %vm4545_vm0, %v4438_v34 }
 0x5ee   : > { %10082 = vmatmul.msk.bf16.gmra.mxu2 %vm4545_vm0, %v4438_v34  ;;  %10090 = vmatmul.msk.bf16.gmra.mxu3 %vm4545_vm0, %v4438_v34  ;;  %v11543_v34 = vld [vmem:[#allocation7 + $0x384] sm:$0xf] }
 0x5ef   : > { %6758 = vmatpush.bf16.msrb.mxu3 %v11091_v61  ;;  %v10547_v16 = vor.u32 %v11543_v34, %v10544_v36  ;;  %v11471_v61 = vld [vmem:[#allocation7 + $0x144] sm:$0xf] }
 0x5f0   : > { %v11591_v36 = vld [vmem:[#allocation7 + $0x504] sm:$0xf] }
 0x5f3   : > { %6759 = vmatpush.bf16.msrb.mxu3 %v11059_v15 }
 0x5f6   : > { %v4383_v18 = vpop.permute.xlu0 %4382 }
 0x5f7   : > { %v4415_v27 = vmul.f32 %v4383_v18, %v623_v14 }
 0x5f9   : > { %v4431_v51 = vadd.f32 %v4415_v27, %v13657_v58  ;;  %v11551_v58 = vld [vmem:[#allocation7 + $0x3c4] sm:$0xf] }
 0x5fa   : > { %v10579_v33 = vor.u32 %v11551_v58, %v10576_v46  ;;  %v10256_v58 = vld [vmem:[#allocation7 + $0x160] sm:$0xf0] }
 0x5fb   : > { %v4439_v10 = vpack.c.bf16 %v4431_v51, %v4430_v9  ;;  %v11599_v9 = vld [vmem:[#allocation7 + $0x544] sm:$0xf]  ;;  %v10259_v2 = vor.u32 %v11471_v61, %v10256_v58 }
 0x5fc   : > { %6660 = vmatpush.bf16.msrb.mxu1 %v10579_v33  ;;  %v10768_v51 = vld [vmem:[#allocation7 + $0x560] sm:$0xf0] }
 0x5fd   : > { %10067 = vmatmul.msk.bf16.gmra.mxu0 %vm4545_vm0, %v4439_v10  ;;  %10075 = vmatmul.msk.bf16.gmra.mxu1 %vm4545_vm0, %v4439_v10  ;;  %v10771_v28 = vor.u32 %v11599_v9, %v10768_v51  ;;  %v11655_v9 = vld [vmem:[#allocation7 + $0x704] sm:$0xf] }
 0x5fe   : > { %10083 = vmatmul.msk.bf16.gmra.mxu2 %vm4545_vm0, %v4439_v10  ;;  %10091 = vmatmul.msk.bf16.gmra.mxu3 %vm4545_vm0, %v4439_v10  ;;  %v10992_v51 = vld [vmem:[#allocation7 + $0x720] sm:$0xf0] }
 0x5ff   : > { %6711 = vmatpush.bf16.msrb.mxu2 %v10771_v28  ;;  %6613 = vmatpush.bf16.msrb.mxu0 %v10259_v2 }
 0x600   : > { %6661 = vmatpush.bf16.msrb.mxu1 %v10547_v16 }
 0x60a   : > { %v4579_v5 = vpop.f32.mrf.mxu0  ;;  %v4628_v17 = vpop.f32.mrf.mxu1 }
 0x60b   : > { %v4580_v3 = vadd.f32 %v4579_v5, %v13733_v57  ;;  %v4629_v31 = vadd.f32 %v4628_v17, %v13735_v49  ;;  %v11663_v5 = vld [vmem:[#allocation7 + $0x744] sm:$0xf] }
 0x60c   : > { %v11024_v17 = vld [vmem:[#allocation7 + $0x760] sm:$0xf0] }
 0x60d   : > { %v4766_v4 = vmax.f32 %v4580_v3, 0.0  ;;  %v4767_v20 = vmax.f32 %v4629_v31, 0.0  ;;  %v11027_v3 = vor.u32 %v11663_v5, %v11024_v17 }
 0x60f   : > { %6760 = vmatpush.bf16.msrb.mxu3 %v11027_v3 }
 0x611   : > { %v4677_v47 = vpop.f32.mrf.mxu2  ;;  %v4726_v42 = vpop.f32.mrf.mxu3 }
 0x612   : > { %v4581_v39 = vpop.f32.mrf.mxu0  ;;  %v4630_v53 = vpop.f32.mrf.mxu1  ;;  %v4678_v48 = vadd.f32 %v4677_v47, %v13739_v1  ;;  %v4727_v59 = vadd.f32 %v4726_v42, %v13741_v44  ;;  %v10512_v47 = vld [vmem:[#allocation7 + $0x360] sm:$0xf0] }
 0x613   : > { %v4582_v22 = vadd.f32 %v4581_v39, %v13733_v57  ;;  %v4631_v30 = vadd.f32 %v4630_v53, %v13735_v49  ;;  %v10515_v39 = vor.u32 %v11535_v29, %v10512_v47 }
 0x614   : > { %v4768_v50 = vmax.f32 %v4678_v48, 0.0  ;;  %v4769_v21 = vmax.f32 %v4727_v59, 0.0  ;;  %v10736_v48 = vld [vmem:[#allocation7 + $0x520] sm:$0xf0] }
 0x615   : > { %v4770_v56 = vmax.f32 %v4582_v22, 0.0  ;;  %v4771_v19 = vmax.f32 %v4631_v30, 0.0  ;;  %6662 = vmatpush.bf16.msrb.mxu1 %v10515_v39 }
 0x617   : > { %v13745_v54 = vpack.c.bf16 %v4770_v56, %v4766_v4  ;;  %v13747_v13 = vpack.c.bf16 %v4771_v19, %v4767_v20 }
 0x619   : > { %v4679_v38 = vpop.f32.mrf.mxu2  ;;  %v4728_v14 = vpop.f32.mrf.mxu3  ;;  %6423 = vmatmul.bf16.vlgmr.msra.gmra.mxu0 %v13745_v54  ;;  %6472 = vmatmul.bf16.vlgmr.msra.gmra.mxu1 %v13747_v13 }
 0x61a   : > { %v4680_v40 = vadd.f32 %v4679_v38, %v13739_v1  ;;  %v4729_v35 = vadd.f32 %v4728_v14, %v13741_v44  ;;  %v4584_v23 = vpop.f32.mrf.mxu0  ;;  %v4633_v45 = vpop.f32.mrf.mxu1  ;;  %v10739_v38 = vor.u32 %v11591_v36, %v10736_v48  ;;  %v10192_v36 = vld [vmem:[#allocation7 + $0xe0] sm:$0xf0] }
 0x61b   : > { %v4585_v26 = vadd.f32 %v4584_v23, %v13733_v57  ;;  %v4634_v27 = vadd.f32 %v4633_v45, %v13735_v49 }
 0x61c   : > { %v4772_v25 = vmax.f32 %v4680_v40, 0.0  ;;  %v4773_v52 = vmax.f32 %v4729_v35, 0.0  ;;  %6712 = vmatpush.bf16.msrb.mxu2 %v10739_v38  ;;  %v11647_v38 = vld [vmem:[#allocation7 + $0x6c4] sm:$0xf] }
 0x61d   : > { %v4774_v55 = vmax.f32 %v4585_v26, 0.0  ;;  %v4775_v62 = vmax.f32 %v4634_v27, 0.0 }
 0x61e   : > { %v13755_v18 = vpack.c.bf16 %v4772_v25, %v4768_v50  ;;  %v13757_v8 = vpack.c.bf16 %v4773_v52, %v4769_v21  ;;  %v11463_v21 = vld [vmem:[#allocation7 + $0x104] sm:$0xf] }
 0x61f   : > { %v10224_v25 = vld [vmem:[#allocation7 + $0x120] sm:$0xf0] }
 0x620   : > { %6521 = vmatmul.bf16.vlgmr.msra.gmra.mxu2 %v13755_v18  ;;  %6570 = vmatmul.bf16.vlgmr.msra.gmra.mxu3 %v13757_v8  ;;  %v10227_v27 = vor.u32 %v11463_v21, %v10224_v25 }
 0x621   : > { %v4682_v10 = vpop.f32.mrf.mxu2  ;;  %v4731_v60 = vpop.f32.mrf.mxu3 }
 0x622   : > { %v4586_v11 = vpop.f32.mrf.mxu0  ;;  %v4635_v7 = vpop.f32.mrf.mxu1  ;;  %v4683_v42 = vadd.f32 %v4682_v10, %v13739_v1  ;;  %v4732_v43 = vadd.f32 %v4731_v60, %v13741_v44  ;;  %v10995_v10 = vor.u32 %v11655_v9, %v10992_v51  ;;  %6614 = vmatpush.bf16.msrb.mxu0 %v10227_v27 }
 0x623   : > { %v4587_v0 = vadd.f32 %v4586_v11, %v13733_v57  ;;  %v4636_v6 = vadd.f32 %v4635_v7, %v13735_v49  ;;  %v11527_v11 = vld [vmem:[#allocation7 + $0x304] sm:$0xf] }
 0x624   : > { %v4776_v24 = vmax.f32 %v4683_v42, 0.0  ;;  %v4777_v56 = vmax.f32 %v4732_v43, 0.0  ;;  %v10480_v7 = vld [vmem:[#allocation7 + $0x320] sm:$0xf0]  ;;  %6761 = vmatpush.bf16.msrb.mxu3 %v10995_v10 }
 0x625   : > { %v4778_v46 = vmax.f32 %v4587_v0, 0.0  ;;  %v4779_v33 = vmax.f32 %v4636_v6, 0.0 }
 0x627   : > { %v13765_v31 = vpack.c.bf16 %v4778_v46, %v4774_v55  ;;  %v13767_v41 = vpack.c.bf16 %v4779_v33, %v4775_v62  ;;  %v10483_v55 = vor.u32 %v11527_v11, %v10480_v7 }
 0x629   : > { %v4684_v53 = vpop.f32.mrf.mxu2  ;;  %v4733_v22 = vpop.f32.mrf.mxu3  ;;  %6428 = vmatmul.bf16.gmra.mxu0 %v13765_v31  ;;  %6477 = vmatmul.bf16.gmra.mxu1 %v13767_v41 }
 0x62a   : > { %v4685_v30 = vadd.f32 %v4684_v53, %v13739_v1  ;;  %v4734_v4 = vadd.f32 %v4733_v22, %v13741_v44  ;;  %v4589_v20 = vpop.f32.mrf.mxu0  ;;  %v4638_v63 = vpop.f32.mrf.mxu1  ;;  %6663 = vmatpush.bf16.msrb.mxu1 %v10483_v55  ;;  %v11583_v53 = vld [vmem:[#allocation7 + $0x4c4] sm:$0xf] }
 0x62b   : > { %v4590_v15 = vadd.f32 %v4589_v20, %v13733_v57  ;;  %v4639_v34 = vadd.f32 %v4638_v63, %v13735_v49  ;;  %v10704_v22 = vld [vmem:[#allocation7 + $0x4e0] sm:$0xf0] }
 0x62c   : > { %v4780_v19 = vmax.f32 %v4685_v30, 0.0  ;;  %v4781_v12 = vmax.f32 %v4734_v4, 0.0  ;;  %v10707_v20 = vor.u32 %v11583_v53, %v10704_v22 }
 0x62d   : > { %v4782_v45 = vmax.f32 %v4590_v15, 0.0  ;;  %v4783_v50 = vmax.f32 %v4639_v34, 0.0  ;;  %v11455_v34 = vld [vmem:[#allocation7 + $0xc4] sm:$0xf] }
 0x62e   : > { %v13775_v32 = vpack.c.bf16 %v4780_v19, %v4776_v24  ;;  %v13777_v37 = vpack.c.bf16 %v4781_v12, %v4777_v56  ;;  %6713 = vmatpush.bf16.msrb.mxu2 %v10707_v20  ;;  %v10160_v20 = vld [vmem:[#allocation7 + $0xa0] sm:$0xf0] }
 0x630   : > { %6526 = vmatmul.bf16.gmra.mxu2 %v13775_v32  ;;  %6575 = vmatmul.bf16.gmra.mxu3 %v13777_v37 }
 0x631   : > { %v4687_v59 = vpop.f32.mrf.mxu2  ;;  %v4736_v16 = vpop.f32.mrf.mxu3 }
 0x632   : > { %v4591_v14 = vpop.f32.mrf.mxu0  ;;  %v4640_v40 = vpop.f32.mrf.mxu1  ;;  %v4688_v0 = vadd.f32 %v4687_v59, %v13739_v1  ;;  %v4737_v6 = vadd.f32 %v4736_v16, %v13741_v44  ;;  %v10195_v16 = vor.u32 %v11455_v34, %v10192_v36 }
 0x633   : > { %v4592_v35 = vadd.f32 %v4591_v14, %v13733_v57  ;;  %v4641_v23 = vadd.f32 %v4640_v40, %v13735_v49  ;;  %v10960_v14 = vld [vmem:[#allocation7 + $0x6e0] sm:$0xf0] }
 0x634   : > { %v4784_v5 = vmax.f32 %v4688_v0, 0.0  ;;  %v4785_v17 = vmax.f32 %v4737_v6, 0.0  ;;  %v10963_v40 = vor.u32 %v11647_v38, %v10960_v14  ;;  %6615 = vmatpush.bf16.msrb.mxu0 %v10195_v16 }
 0x635   : > { %v4786_v52 = vmax.f32 %v4592_v35, 0.0  ;;  %v4787_v26 = vmax.f32 %v4641_v23, 0.0 }
 0x636   : > { %6762 = vmatpush.bf16.msrb.mxu3 %v10963_v40 }
 0x637   : > { %v13785_v60 = vpack.c.bf16 %v4786_v52, %v4782_v45  ;;  %v13787_v28 = vpack.c.bf16 %v4787_v26, %v4783_v50  ;;  %v11519_v45 = vld [vmem:[#allocation7 + $0x2c4] sm:$0xf] }
 0x638   : > { %v10448_v50 = vld [vmem:[#allocation7 + $0x2e0] sm:$0xf0] }
 0x639   : > { %v4689_v62 = vpop.f32.mrf.mxu2  ;;  %v4738_v61 = vpop.f32.mrf.mxu3  ;;  %6433 = vmatmul.bf16.gmra.mxu0 %v13785_v60  ;;  %6482 = vmatmul.bf16.gmra.mxu1 %v13787_v28  ;;  %v10451_v52 = vor.u32 %v11519_v45, %v10448_v50 }
 0x63a   : > { %v4690_v58 = vadd.f32 %v4689_v62, %v13739_v1  ;;  %v4739_v46 = vadd.f32 %v4738_v61, %v13741_v44  ;;  %v4594_v33 = vpop.f32.mrf.mxu0  ;;  %v4643_v2 = vpop.f32.mrf.mxu1 }
 0x63b   : > { %v4595_v43 = vadd.f32 %v4594_v33, %v13733_v57  ;;  %v4644_v39 = vadd.f32 %v4643_v2, %v13735_v49  ;;  %6664 = vmatpush.bf16.msrb.mxu1 %v10451_v52  ;;  %v11575_v33 = vld [vmem:[#allocation7 + $0x484] sm:$0xf] }
 0x63c   : > { %v4788_v3 = vmax.f32 %v4690_v58, 0.0  ;;  %v4789_v29 = vmax.f32 %v4739_v46, 0.0  ;;  %v10672_v2 = vld [vmem:[#allocation7 + $0x4a0] sm:$0xf0] }
 0x63d   : > { %v4790_v12 = vmax.f32 %v4595_v43, 0.0  ;;  %v4791_v15 = vmax.f32 %v4644_v39, 0.0 }
 0x63e   : > { %v13795_v47 = vpack.c.bf16 %v4788_v3, %v4784_v5  ;;  %v13797_v42 = vpack.c.bf16 %v4789_v29, %v4785_v17  ;;  %v10675_v3 = vor.u32 %v11575_v33, %v10672_v2 }
 0x640   : > { %6531 = vmatmul.bf16.gmra.mxu2 %v13795_v47  ;;  %6580 = vmatmul.bf16.gmra.mxu3 %v13797_v42 }
 0x641   : > { %v4692_v30 = vpop.f32.mrf.mxu2  ;;  %v4741_v4 = vpop.f32.mrf.mxu3  ;;  %6714 = vmatpush.bf16.msrb.mxu2 %v10675_v3 }
 0x642   : > { %v4596_v63 = vpop.f32.mrf.mxu0  ;;  %v4645_v24 = vpop.f32.mrf.mxu1  ;;  %v4693_v21 = vadd.f32 %v4692_v30, %v13739_v1  ;;  %v4742_v25 = vadd.f32 %v4741_v4, %v13741_v44  ;;  %v11447_v4 = vld [vmem:[#allocation7 + $0x84] sm:$0xf] }
 0x643   : > { %v4597_v56 = vadd.f32 %v4596_v63, %v13733_v57  ;;  %v4646_v19 = vadd.f32 %v4645_v24, %v13735_v49 }
 0x644   : > { %v4792_v7 = vmax.f32 %v4693_v21, 0.0  ;;  %v4793_v0 = vmax.f32 %v4742_v25, 0.0 }
 0x645   : > { %v4794_v48 = vmax.f32 %v4597_v56, 0.0  ;;  %v4795_v59 = vmax.f32 %v4646_v19, 0.0  ;;  %v10163_v56 = vor.u32 %v11447_v4, %v10160_v20  ;;  %v11639_v19 = vld [vmem:[#allocation7 + $0x684] sm:$0xf] }
 0x646   : > { %v11631_v20 = vld [vmem:[#allocation7 + $0x644] sm:$0xf] }
 0x647   : > { %v13805_v35 = vpack.c.bf16 %v4794_v48, %v4790_v12  ;;  %v13807_v23 = vpack.c.bf16 %v4795_v59, %v4791_v15  ;;  %v10928_v12 = vld [vmem:[#allocation7 + $0x6a0] sm:$0xf0]  ;;  %6616 = vmatpush.bf16.msrb.mxu0 %v10163_v56 }
 0x648   : > { %v10931_v15 = vor.u32 %v11639_v19, %v10928_v12  ;;  %v11511_v48 = vld [vmem:[#allocation7 + $0x284] sm:$0xf] }
 0x649   : > { %v4694_v26 = vpop.f32.mrf.mxu2  ;;  %v4743_v27 = vpop.f32.mrf.mxu3  ;;  %6438 = vmatmul.bf16.gmra.mxu0 %v13805_v35  ;;  %6487 = vmatmul.bf16.gmra.mxu1 %v13807_v23  ;;  %v10416_v59 = vld [vmem:[#allocation7 + $0x2a0] sm:$0xf0] }
 0x64a   : > { %v4695_v9 = vadd.f32 %v4694_v26, %v13739_v1  ;;  %v4744_v51 = vadd.f32 %v4743_v27, %v13741_v44  ;;  %v4599_v10 = vpop.f32.mrf.mxu0  ;;  %v4648_v11 = vpop.f32.mrf.mxu1  ;;  %6763 = vmatpush.bf16.msrb.mxu3 %v10931_v15  ;;  %v10419_v14 = vor.u32 %v11511_v48, %v10416_v59  ;;  %v11503_v12 = vld [vmem:[#allocation7 + $0x244] sm:$0xf] }
 0x64b   : > { %v4600_v58 = vadd.f32 %v4599_v10, %v13733_v57  ;;  %v4649_v46 = vadd.f32 %v4648_v11, %v13735_v49  ;;  %v10384_v15 = vld [vmem:[#allocation7 + $0x260] sm:$0xf0] }
 0x64c   : > { %v4796_v6 = vmax.f32 %v4695_v9, 0.0  ;;  %v4797_v55 = vmax.f32 %v4744_v51, 0.0  ;;  %6665 = vmatpush.bf16.msrb.mxu1 %v10419_v14 }
 0x64d   : > { %v4798_v22 = vmax.f32 %v4600_v58, 0.0  ;;  %v4799_v30 = vmax.f32 %v4649_v46, 0.0 }
 0x64e   : > { %v13815_v62 = vpack.c.bf16 %v4796_v6, %v4792_v7  ;;  %v13817_v61 = vpack.c.bf16 %v4797_v55, %v4793_v0  ;;  %v11567_v6 = vld [vmem:[#allocation7 + $0x444] sm:$0xf] }
 0x64f   : > { %v10640_v55 = vld [vmem:[#allocation7 + $0x460] sm:$0xf0] }
 0x650   : > { %6536 = vmatmul.bf16.gmra.mxu2 %v13815_v62  ;;  %6585 = vmatmul.bf16.gmra.mxu3 %v13817_v61  ;;  %v10643_v33 = vor.u32 %v11567_v6, %v10640_v55  ;;  %v11431_v6 = vld [vmem:[#allocation7 + $0x4] sm:$0xf] }
 0x651   : > { %v4697_v5 = vpop.f32.mrf.mxu2  ;;  %v4746_v17 = vpop.f32.mrf.mxu3 }
 0x652   : > { %v4601_v29 = vpop.f32.mrf.mxu0  ;;  %v4650_v43 = vpop.f32.mrf.mxu1  ;;  %v4698_v16 = vadd.f32 %v4697_v5, %v13739_v1  ;;  %v4747_v38 = vadd.f32 %v4746_v17, %v13741_v44  ;;  %6715 = vmatpush.bf16.msrb.mxu2 %v10643_v33 }
 0x653   : > { %v4602_v39 = vadd.f32 %v4601_v29, %v13733_v57  ;;  %v4651_v53 = vadd.f32 %v4650_v43, %v13735_v49 }
 0x654   : > { %v4800_v26 = vmax.f32 %v4698_v16, 0.0  ;;  %v4801_v27 = vmax.f32 %v4747_v38, 0.0  ;;  %v10387_v16 = vor.u32 %v11503_v12, %v10384_v15 }
 0x655   : > { %v4802_v63 = vmax.f32 %v4602_v39, 0.0  ;;  %v4803_v24 = vmax.f32 %v4651_v53, 0.0  ;;  %v11439_v39 = vld [vmem:[#allocation7 + $0x44] sm:$0xf] }
 0x656   : > { %v10128_v53 = vld [vmem:[#allocation7 + $0x60] sm:$0xf0]  ;;  %6666 = vmatpush.bf16.msrb.mxu1 %v10387_v16 }
 0x657   : > { %v13825_v34 = vpack.c.bf16 %v4802_v63, %v4798_v22  ;;  %v13827_v36 = vpack.c.bf16 %v4803_v24, %v4799_v30  ;;  %v10131_v4 = vor.u32 %v11439_v39, %v10128_v53  ;;  %v10896_v63 = vld [vmem:[#allocation7 + $0x660] sm:$0xf0] }
 0x658   : > { %v10899_v24 = vor.u32 %v11631_v20, %v10896_v63 }
 0x659   : > { %v4699_v40 = vpop.f32.mrf.mxu2  ;;  %v4748_v45 = vpop.f32.mrf.mxu3  ;;  %6443 = vmatmul.bf16.gmra.mxu0 %v13825_v34  ;;  %6492 = vmatmul.bf16.gmra.mxu1 %v13827_v36 }
 0x65a   : > { %v4700_v50 = vadd.f32 %v4699_v40, %v13739_v1  ;;  %v4749_v21 = vadd.f32 %v4748_v45, %v13741_v44  ;;  %v4604_v25 = vpop.f32.mrf.mxu0  ;;  %v4653_v52 = vpop.f32.mrf.mxu1  ;;  %6617 = vmatpush.bf16.msrb.mxu0 %v10131_v4  ;;  %6764 = vmatpush.bf16.msrb.mxu3 %v10899_v24 }
 0x65b   : > { %v4605_v7 = vadd.f32 %v4604_v25, %v13733_v57  ;;  %v4654_v0 = vadd.f32 %v4653_v52, %v13735_v49 }
 0x65c   : > { %v4804_v9 = vmax.f32 %v4700_v50, 0.0  ;;  %v4805_v51 = vmax.f32 %v4749_v21, 0.0 }
 0x65d   : > { %v4806_v29 = vmax.f32 %v4605_v7, 0.0  ;;  %v4807_v43 = vmax.f32 %v4654_v0, 0.0  ;;  %v11559_v7 = vld [vmem:[#allocation7 + $0x404] sm:$0xf] }
 0x65e   : > { %v13835_v10 = vpack.c.bf16 %v4804_v9, %v4800_v26  ;;  %v13837_v11 = vpack.c.bf16 %v4805_v51, %v4801_v27  ;;  %v10608_v0 = vld [vmem:[#allocation7 + $0x420] sm:$0xf0] }
 0x660   : > { %6541 = vmatmul.bf16.gmra.mxu2 %v13835_v10  ;;  %6590 = vmatmul.bf16.gmra.mxu3 %v13837_v11 }
 0x661   : > { %v4702_v58 = vpop.f32.mrf.mxu2  ;;  %v4751_v46 = vpop.f32.mrf.mxu3 }
 0x662   : > { %v4606_v2 = vpop.f32.mrf.mxu0  ;;  %v4655_v5 = vpop.f32.mrf.mxu1  ;;  %v4703_v48 = vadd.f32 %v4702_v58, %v13739_v1  ;;  %v4752_v59 = vadd.f32 %v4751_v46, %v13741_v44 }
 0x663   : > { %v4607_v17 = vadd.f32 %v4606_v2, %v13733_v57  ;;  %v4656_v3 = vadd.f32 %v4655_v5, %v13735_v49  ;;  %v10611_v2 = vor.u32 %v11559_v7, %v10608_v0  ;;  %v10096_v5 = vld [vmem:[#allocation7 + $0x20] sm:$0xf0] }
 0x664   : > { %v4808_v25 = vmax.f32 %v4703_v48, 0.0  ;;  %v4809_v52 = vmax.f32 %v4752_v59, 0.0  ;;  %v10099_v39 = vor.u32 %v11431_v6, %v10096_v5  ;;  %v10838_v5 = vld [vmem:[#allocation7 + $0x5c8] sm:$0xf] }
 0x665   : > { %v4810_v22 = vmax.f32 %v4607_v17, 0.0  ;;  %v4811_v30 = vmax.f32 %v4656_v3, 0.0  ;;  %v11623_v17 = vld [vmem:[#allocation7 + $0x604] sm:$0xf]  ;;  %6716 = vmatpush.bf16.msrb.mxu2 %v10611_v2 }
 0x666   : > { %v10864_v3 = vld [vmem:[#allocation7 + $0x620] sm:$0xf0]  ;;  %6618 = vmatpush.bf16.msrb.mxu0 %v10099_v39 }
 0x667   : > { %v13845_v56 = vpack.c.bf16 %v4810_v22, %v4806_v29  ;;  %v13847_v19 = vpack.c.bf16 %v4811_v30, %v4807_v43  ;;  %v10867_v53 = vor.u32 %v11623_v17, %v10864_v3  ;;  %v11495_v22 = vld [vmem:[#allocation7 + $0x204] sm:$0xf]  ;;  %v11620_v17 = vld [vmem:[#allocation7 + $0x5e4] sm:$0xf0] }
 0x668   : > { %v10352_v30 = vld [vmem:[#allocation7 + $0x220] sm:$0xf0]  ;;  %v10326_v3 = vld [vmem:[#allocation7 + $0x1c8] sm:$0xf]  ;;  %v10839_v39 = vor.u32 %v11620_v17, %v10838_v5 }
 0x669   : > { %v4704_v38 = vpop.f32.mrf.mxu2  ;;  %v4753_v14 = vpop.f32.mrf.mxu3  ;;  %6448 = vmatmul.bf16.gmra.mxu0 %v13845_v56  ;;  %6497 = vmatmul.bf16.gmra.mxu1 %v13847_v19  ;;  %v10355_v63 = vor.u32 %v11495_v22, %v10352_v30  ;;  %v11094_v22 = vld [vmem:[#allocation7 + $0x7c8] sm:$0xf] }
 0x66a   : > { %v4705_v40 = vadd.f32 %v4704_v38, %v13739_v1  ;;  %v4754_v45 = vadd.f32 %v4753_v14, %v13741_v44  ;;  %v4609_v50 = vpop.f32.mrf.mxu0  ;;  %v4658_v21 = vpop.f32.mrf.mxu1  ;;  %6765 = vmatpush.bf16.msrb.mxu3 %v10867_v53  ;;  %v11492_v53 = vld [vmem:[#allocation7 + $0x1e4] sm:$0xf0]  ;;  %6905 = vmatpush.bf16.msra.mxu2 %v10839_v39 }
 0x66b   : > { %v4610_v55 = vadd.f32 %v4609_v50, %v13733_v57  ;;  %v4659_v58 = vadd.f32 %v4658_v21, %v13735_v49  ;;  %6667 = vmatpush.bf16.msrb.mxu1 %v10355_v63  ;;  %v11684_v30 = vld [vmem:[#allocation7 + $0x7e4] sm:$0xf0]  ;;  %v10327_v63 = vor.u32 %v11492_v53, %v10326_v3 }
 0x66c   : > { %v4812_v26 = vmax.f32 %v4705_v40, 0.0  ;;  %v4813_v27 = vmax.f32 %v4754_v45, 0.0  ;;  %v10806_v3 = vld [vmem:[#allocation7 + $0x588] sm:$0xf] }
 0x66d   : > { %v4814_v24 = vmax.f32 %v4610_v55, 0.0  ;;  %v4815_v12 = vmax.f32 %v4659_v58, 0.0  ;;  %6807 = vmatpush.bf16.msra.mxu0 %v10327_v63  ;;  %v11676_v63 = vld [vmem:[#allocation7 + $0x7a4] sm:$0xf0] }
 0x66e   : > { %v13855_v9 = vpack.c.bf16 %v4812_v26, %v4808_v25  ;;  %v13857_v51 = vpack.c.bf16 %v4813_v27, %v4809_v52 }
 0x670   : > { %6546 = vmatmul.bf16.gmra.mxu2 %v13855_v9  ;;  %6595 = vmatmul.bf16.gmra.mxu3 %v13857_v51 }
 0x671   : > { %v4707_v46 = vpop.f32.mrf.mxu2  ;;  %v4756_v33 = vpop.f32.mrf.mxu3 }
 0x672   : > { %v4611_v29 = vpop.f32.mrf.mxu0  ;;  %v4660_v43 = vpop.f32.mrf.mxu1  ;;  %v4708_v38 = vadd.f32 %v4707_v46, %v13739_v1  ;;  %v4757_v14 = vadd.f32 %v4756_v33, %v13741_v44 }
 0x673   : > { %v4612_v4 = vadd.f32 %v4611_v29, %v13733_v57  ;;  %v4661_v20 = vadd.f32 %v4660_v43, %v13735_v49 }
 0x674   : > { %v4816_v26 = vmax.f32 %v4708_v38, 0.0  ;;  %v4817_v27 = vmax.f32 %v4757_v14, 0.0 }
 0x675   : > { %v4818_v15 = vmax.f32 %v4612_v4, 0.0  ;;  %v4819_v48 = vmax.f32 %v4661_v20, 0.0 }
 0x677   : > { %v13865_v59 = vpack.c.bf16 %v4818_v15, %v4814_v24  ;;  %v13867_v16 = vpack.c.bf16 %v4819_v48, %v4815_v12  ;;  %v11095_v24 = vor.u32 %v11684_v30, %v11094_v22 }
 0x679   : > { %v4709_v40 = vpop.f32.mrf.mxu2  ;;  %v4758_v45 = vpop.f32.mrf.mxu3  ;;  %6453 = vmatmul.bf16.gmra.mxu0 %v13865_v59  ;;  %6502 = vmatmul.bf16.gmra.mxu1 %v13867_v16 }
 0x67a   : > { %v4710_v50 = vadd.f32 %v4709_v40, %v13739_v1  ;;  %v4759_v21 = vadd.f32 %v4758_v45, %v13741_v44  ;;  %v4614_v25 = vpop.f32.mrf.mxu0  ;;  %v4663_v52 = vpop.f32.mrf.mxu1  ;;  %6954 = vmatpush.bf16.msra.mxu3 %v11095_v24 }
 0x67b   : > { %v4615_v58 = vadd.f32 %v4614_v25, %v13733_v57  ;;  %v4664_v46 = vadd.f32 %v4663_v52, %v13735_v49 }
 0x67c   : > { %v4820_v7 = vmax.f32 %v4710_v50, 0.0  ;;  %v4821_v0 = vmax.f32 %v4759_v21, 0.0 }
 0x67d   : > { %v4822_v12 = vmax.f32 %v4615_v58, 0.0  ;;  %v4823_v15 = vmax.f32 %v4664_v46, 0.0  ;;  %v10582_v46 = vld [vmem:[#allocation7 + $0x3c8] sm:$0xf] }
 0x67e   : > { %v13875_v6 = vpack.c.bf16 %v4820_v7, %v4816_v26  ;;  %v13877_v55 = vpack.c.bf16 %v4821_v0, %v4817_v27 }
 0x680   : > { %6551 = vmatmul.bf16.gmra.mxu2 %v13875_v6  ;;  %6600 = vmatmul.bf16.gmra.mxu3 %v13877_v55 }
 0x681   : > { %v4712_v33 = vpop.f32.mrf.mxu2  ;;  %v4761_v2 = vpop.f32.mrf.mxu3 }
 0x682   : > { %v4616_v29 = vpop.f32.mrf.mxu0  ;;  %v4665_v43 = vpop.f32.mrf.mxu1  ;;  %v4713_v45 = vadd.f32 %v4712_v33, %v13739_v1  ;;  %v4762_v50 = vadd.f32 %v4761_v2, %v13741_v44  ;;  %v11556_v33 = vld [vmem:[#allocation7 + $0x3e4] sm:$0xf0] }
 0x683   : > { %v4617_v4 = vadd.f32 %v4616_v29, %v13733_v57  ;;  %v4666_v20 = vadd.f32 %v4665_v43, %v13735_v49  ;;  %v10583_v17 = vor.u32 %v11556_v33, %v10582_v46  ;;  %v11612_v29 = vld [vmem:[#allocation7 + $0x5a4] sm:$0xf0] }
 0x684   : > { %v4824_v52 = vmax.f32 %v4713_v45, 0.0  ;;  %v4825_v26 = vmax.f32 %v4762_v50, 0.0  ;;  %v10294_v43 = vld [vmem:[#allocation7 + $0x188] sm:$0xf]  ;;  %v10807_v30 = vor.u32 %v11612_v29, %v10806_v3 }
 0x685   : > { %v4826_v48 = vmax.f32 %v4617_v4, 0.0  ;;  %v4827_v38 = vmax.f32 %v4666_v20, 0.0  ;;  %6856 = vmatpush.bf16.msra.mxu1 %v10583_v17  ;;  %v11484_v4 = vld [vmem:[#allocation7 + $0x1a4] sm:$0xf0] }
 0x686   : > { %v11062_v20 = vld [vmem:[#allocation7 + $0x788] sm:$0xf]  ;;  %v10295_v24 = vor.u32 %v11484_v4, %v10294_v43  ;;  %6906 = vmatpush.bf16.msra.mxu2 %v10807_v30 }
 0x687   : > { %v13885_v14 = vpack.c.bf16 %v4826_v48, %v4822_v12  ;;  %v13887_v40 = vpack.c.bf16 %v4827_v38, %v4823_v15  ;;  %v11063_v12 = vor.u32 %v11676_v63, %v11062_v20  ;;  %v10550_v50 = vld [vmem:[#allocation7 + $0x388] sm:$0xf] }
 0x688   : > { %6808 = vmatpush.bf16.msra.mxu0 %v10295_v24  ;;  %v11604_v17 = vld [vmem:[#allocation7 + $0x564] sm:$0xf0] }
 0x689   : > { %v4714_v57 = vpop.f32.mrf.mxu2  ;;  %v4763_v21 = vpop.f32.mrf.mxu3  ;;  %6458 = vmatmul.bf16.gmra.mxu0 %v13885_v14  ;;  %6507 = vmatmul.bf16.gmra.mxu1 %v13887_v40  ;;  %v10262_v3 = vld [vmem:[#allocation7 + $0x148] sm:$0xf] }
 0x68a   : > { %v4715_v49 = vadd.f32 %v4714_v57, %v13739_v1  ;;  %v4764_v25 = vadd.f32 %v4763_v21, %v13741_v44  ;;  %v13901_v1 = vld [vmem:[#allocation8 + $0x9] sm:$0xff]  ;;  %6955 = vmatpush.bf16.msra.mxu3 %v11063_v12 }
 0x68b   : > { %v13906_v44 = vperm.slane %v13901_v1, 0  ;;  %v11548_v57 = vld [vmem:[#allocation7 + $0x3a4] sm:$0xf0] }
 0x68c   : > { %v4828_v27 = vmax.f32 %v4715_v49, 0.0  ;;  %v4829_v7 = vmax.f32 %v4764_v25, 0.0  ;;  %v11476_v4 = vld [vmem:[#allocation7 + $0x164] sm:$0xf0] }
 0x68d   : > { %v11030_v20 = vld [vmem:[#allocation7 + $0x748] sm:$0xf]  ;;  %v10263_v24 = vor.u32 %v11476_v4, %v10262_v3 }
 0x68e   : > { %v13895_v0 = vpack.c.bf16 %v4828_v27, %v4824_v52  ;;  %v13897_v58 = vpack.c.bf16 %v4829_v7, %v4825_v26  ;;  %v10551_v26 = vor.u32 %v11548_v57, %v10550_v50  ;;  %v11668_v63 = vld [vmem:[#allocation7 + $0x764] sm:$0xf0] }
 0x68f   : > { %v11031_v12 = vor.u32 %v11668_v63, %v11030_v20  ;;  %6809 = vmatpush.bf16.msra.mxu0 %v10263_v24  ;;  %v11596_v4 = vld [vmem:[#allocation7 + $0x524] sm:$0xf0] }
 0x690   : > { %6556 = vmatmul.bf16.gmra.mxu2 %v13895_v0  ;;  %6605 = vmatmul.bf16.gmra.mxu3 %v13897_v58 }
 0x691   : > { %6857 = vmatpush.bf16.msra.mxu1 %v10551_v26  ;;  %6956 = vmatpush.bf16.msra.mxu3 %v11031_v12 }
 0x696   : > { %v6424_v2 = vpop.f32.mrf.mxu0  ;;  %v6473_v5 = vpop.f32.mrf.mxu1 }
 0x697   : > { %v6425_v39 = vadd.f32 %v6424_v2, %v13906_v44 }
 0x699   : > { %6619 = vmatmul.bf16.vlgmr.msrb.gmra.mxu0 %v13745_v54  ;;  %6668 = vmatmul.bf16.vlgmr.msrb.gmra.mxu1 %v13747_v13  ;;  %v6474_v15 = vadd.f32 %v6473_v5, %v6425_v39  ;;  %v10774_v5 = vld [vmem:[#allocation7 + $0x548] sm:$0xf] }
 0x69a   : > { %v10775_v30 = vor.u32 %v11604_v17, %v10774_v5 }
 0x69c   : > { %6907 = vmatpush.bf16.msra.mxu2 %v10775_v30 }
 0x69e   : > { %v6426_v53 = vpop.f32.mrf.mxu0  ;;  %v6475_v22 = vpop.f32.mrf.mxu1 }
 0x69f   : > { %v6427_v21 = vadd.f32 %v6426_v53, %v13906_v44 }
 0x6a0   : > { %6717 = vmatmul.bf16.vlgmr.msrb.gmra.mxu2 %v13755_v18  ;;  %6766 = vmatmul.bf16.vlgmr.msrb.gmra.mxu3 %v13757_v8 }
 0x6a1   : > { %v6476_v7 = vadd.f32 %v6475_v22, %v6427_v21 }
 0x6a3   : > { %v6522_v48 = vpop.f32.mrf.mxu2  ;;  %v6571_v38 = vpop.f32.mrf.mxu3 }
 0x6a4   : > { %v6523_v45 = vadd.f32 %v6522_v48, %v6474_v15 }
 0x6a6   : > { %v6572_v49 = vadd.f32 %v6571_v38, %v6523_v45  ;;  %v6429_v25 = vpop.f32.mrf.mxu0  ;;  %v6478_v52 = vpop.f32.mrf.mxu1 }
 0x6a7   : > { %v6430_v29 = vadd.f32 %v6429_v25, %v13906_v44  ;;  %v11540_v25 = vld [vmem:[#allocation7 + $0x364] sm:$0xf0] }
 0x6a8   : > { %v7983_v27 = vmul.f32 0.5, %v6572_v49  ;;  %v10518_v49 = vld [vmem:[#allocation7 + $0x348] sm:$0xf] }
 0x6a9   : > { %6624 = vmatmul.bf16.gmra.mxu0 %v13765_v31  ;;  %6673 = vmatmul.bf16.gmra.mxu1 %v13767_v41  ;;  %v6479_v38 = vadd.f32 %v6478_v52, %v6430_v29  ;;  %v10519_v52 = vor.u32 %v11540_v25, %v10518_v49 }
 0x6aa   : > { %11815 = vtanh.f32 %v7983_v27 }
 0x6ab   : > { %v6524_v46 = vpop.f32.mrf.mxu2  ;;  %v6573_v33 = vpop.f32.mrf.mxu3  ;;  %6858 = vmatpush.bf16.msra.mxu1 %v10519_v52 }
 0x6ac   : > { %v6525_v2 = vadd.f32 %v6524_v46, %v6476_v7 }
 0x6ae   : > { %v6574_v43 = vadd.f32 %v6573_v33, %v6525_v2  ;;  %v6431_v39 = vpop.f32.mrf.mxu0  ;;  %v6480_v53 = vpop.f32.mrf.mxu1 }
 0x6af   : > { %v6432_v26 = vadd.f32 %v6431_v39, %v13906_v44  ;;  %v10742_v39 = vld [vmem:[#allocation7 + $0x508] sm:$0xf] }
 0x6b0   : > { %v11816_v22 = vpop.eup %11815  ;;  %v7991_v15 = vmul.f32 0.5, %v6574_v43  ;;  %6722 = vmatmul.bf16.gmra.mxu2 %v13775_v32  ;;  %6771 = vmatmul.bf16.gmra.mxu3 %v13777_v37 }
 0x6b1   : > { %v8239_v48 = vmul.f32 0.5, %v11816_v22  ;;  %v6481_v17 = vadd.f32 %v6480_v53, %v6432_v26  ;;  %v10743_v22 = vor.u32 %v11596_v4, %v10742_v39 }
 0x6b2   : > { %11817 = vtanh.f32 %v7991_v15  ;;  %v10230_v15 = vld [vmem:[#allocation7 + $0x108] sm:$0xf] }
 0x6b3   : > { %v8367_v45 = vadd.f32 0.5, %v8239_v48  ;;  %v6527_v50 = vpop.f32.mrf.mxu2  ;;  %v6576_v57 = vpop.f32.mrf.mxu3  ;;  %v11468_v48 = vld [vmem:[#allocation7 + $0x124] sm:$0xf0]  ;;  %6908 = vmatpush.bf16.msra.mxu2 %v10743_v22 }
 0x6b4   : > { %v6528_v21 = vadd.f32 %v6527_v50, %v6479_v38  ;;  %v10998_v38 = vld [vmem:[#allocation7 + $0x708] sm:$0xf] }
 0x6b5   : > { %8495 = vst [vmem:[%s13919_s16] sm:$0xff] %v8367_v45  ;;  %v10231_v45 = vor.u32 %v11468_v48, %v10230_v15  ;;  %v11660_v50 = vld [vmem:[#allocation7 + $0x724] sm:$0xf0] }
 0x6b6   : > { %v6577_v27 = vadd.f32 %v6576_v57, %v6528_v21  ;;  %v6434_v7 = vpop.f32.mrf.mxu0  ;;  %v6483_v46 = vpop.f32.mrf.mxu1  ;;  %v10999_v21 = vor.u32 %v11660_v50, %v10998_v38  ;;  %v11588_v48 = vld [vmem:[#allocation7 + $0x4e4] sm:$0xf0] }
 0x6b7   : > { %v6435_v20 = vadd.f32 %v6434_v7, %v13906_v44  ;;  %6810 = vmatpush.bf16.msra.mxu0 %v10231_v45 }
 0x6b8   : > { %v11818_v33 = vpop.eup %11817  ;;  %v7999_v2 = vmul.f32 0.5, %v6577_v27  ;;  %6957 = vmatpush.bf16.msra.mxu3 %v10999_v21  ;;  %v10198_v21 = vld [vmem:[#allocation7 + $0xc8] sm:$0xf] }
 0x6b9   : > { %v8247_v5 = vmul.f32 0.5, %v11818_v33  ;;  %6629 = vmatmul.bf16.gmra.mxu0 %v13785_v60  ;;  %6678 = vmatmul.bf16.gmra.mxu1 %v13787_v28  ;;  %v6484_v25 = vadd.f32 %v6483_v46, %v6435_v20  ;;  %v10486_v33 = vld [vmem:[#allocation7 + $0x308] sm:$0xf] }
 0x6ba   : > { %11819 = vtanh.f32 %v7999_v2  ;;  %v11532_v2 = vld [vmem:[#allocation7 + $0x324] sm:$0xf0] }
 0x6bb   : > { %v8375_v3 = vadd.f32 0.5, %v8247_v5  ;;  %v6529_v29 = vpop.f32.mrf.mxu2  ;;  %v6578_v43 = vpop.f32.mrf.mxu3 }
 0x6bc   : > { %v6530_v30 = vadd.f32 %v6529_v29, %v6481_v17 }
 0x6bd   : > { %8503 = vst [vmem:[%s13919_s16 + $0x40] sm:$0xff] %v8375_v3 }
 0x6be   : > { %v6579_v63 = vadd.f32 %v6578_v43, %v6530_v30  ;;  %v6436_v24 = vpop.f32.mrf.mxu0  ;;  %v6485_v12 = vpop.f32.mrf.mxu1  ;;  %v10487_v43 = vor.u32 %v11532_v2, %v10486_v33 }
 0x6bf   : > { %v6437_v5 = vadd.f32 %v6436_v24, %v13906_v44  ;;  %v10710_v24 = vld [vmem:[#allocation7 + $0x4c8] sm:$0xf] }
 0x6c0   : > { %v11820_v53 = vpop.eup %11819  ;;  %v8007_v57 = vmul.f32 0.5, %v6579_v63  ;;  %6727 = vmatmul.bf16.gmra.mxu2 %v13795_v47  ;;  %6776 = vmatmul.bf16.gmra.mxu3 %v13797_v42 }
 0x6c1   : > { %v8255_v49 = vmul.f32 0.5, %v11820_v53  ;;  %6859 = vmatpush.bf16.msra.mxu1 %v10487_v43  ;;  %v6486_v4 = vadd.f32 %v6485_v12, %v6437_v5 }
 0x6c2   : > { %11821 = vtanh.f32 %v8007_v57  ;;  %v10711_v57 = vor.u32 %v11588_v48, %v10710_v24 }
 0x6c3   : > { %v8383_v26 = vadd.f32 0.5, %v8255_v49  ;;  %v6532_v27 = vpop.f32.mrf.mxu2  ;;  %v6581_v7 = vpop.f32.mrf.mxu3  ;;  %v11460_v49 = vld [vmem:[#allocation7 + $0xe4] sm:$0xf0] }
 0x6c4   : > { %v6533_v52 = vadd.f32 %v6532_v27, %v6484_v25  ;;  %v10966_v25 = vld [vmem:[#allocation7 + $0x6c8] sm:$0xf]  ;;  %6909 = vmatpush.bf16.msra.mxu2 %v10711_v57 }
 0x6c5   : > { %8511 = vst [vmem:[%s13919_s16 + $0x80] sm:$0xff] %v8383_v26  ;;  %v10199_v26 = vor.u32 %v11460_v49, %v10198_v21  ;;  %v11652_v27 = vld [vmem:[#allocation7 + $0x6e4] sm:$0xf0] }
 0x6c6   : > { %v6582_v17 = vadd.f32 %v6581_v7, %v6533_v52  ;;  %v6439_v3 = vpop.f32.mrf.mxu0  ;;  %v6488_v29 = vpop.f32.mrf.mxu1  ;;  %v10967_v52 = vor.u32 %v11652_v27, %v10966_v25  ;;  %v11580_v49 = vld [vmem:[#allocation7 + $0x4a4] sm:$0xf0] }
 0x6c7   : > { %v6440_v38 = vadd.f32 %v6439_v3, %v13906_v44  ;;  %6811 = vmatpush.bf16.msra.mxu0 %v10199_v26 }
 0x6c8   : > { %v11822_v30 = vpop.eup %11821  ;;  %v8015_v39 = vmul.f32 0.5, %v6582_v17  ;;  %6958 = vmatpush.bf16.msra.mxu3 %v10967_v52  ;;  %v10166_v52 = vld [vmem:[#allocation7 + $0x88] sm:$0xf] }
 0x6c9   : > { %v8263_v46 = vmul.f32 0.5, %v11822_v30  ;;  %6634 = vmatmul.bf16.gmra.mxu0 %v13805_v35  ;;  %6683 = vmatmul.bf16.gmra.mxu1 %v13807_v23  ;;  %v6489_v2 = vadd.f32 %v6488_v29, %v6440_v38  ;;  %v10454_v30 = vld [vmem:[#allocation7 + $0x2c8] sm:$0xf] }
 0x6ca   : > { %11823 = vtanh.f32 %v8015_v39  ;;  %v11524_v39 = vld [vmem:[#allocation7 + $0x2e4] sm:$0xf0] }
 0x6cb   : > { %v8391_v20 = vadd.f32 0.5, %v8263_v46  ;;  %v6534_v63 = vpop.f32.mrf.mxu2  ;;  %v6583_v22 = vpop.f32.mrf.mxu3 }
 0x6cc   : > { %v6535_v15 = vadd.f32 %v6534_v63, %v6486_v4 }
 0x6cd   : > { %8519 = vst [vmem:[%s13919_s16 + $0xc0] sm:$0xff] %v8391_v20 }
 0x6ce   : > { %v6584_v45 = vadd.f32 %v6583_v22, %v6535_v15  ;;  %v6441_v50 = vpop.f32.mrf.mxu0  ;;  %v6490_v53 = vpop.f32.mrf.mxu1  ;;  %v10455_v22 = vor.u32 %v11524_v39, %v10454_v30 }
 0x6cf   : > { %v6442_v46 = vadd.f32 %v6441_v50, %v13906_v44  ;;  %v10678_v50 = vld [vmem:[#allocation7 + $0x488] sm:$0xf] }
 0x6d0   : > { %v11824_v12 = vpop.eup %11823  ;;  %v8023_v7 = vmul.f32 0.5, %v6584_v45  ;;  %6732 = vmatmul.bf16.gmra.mxu2 %v13815_v62  ;;  %6781 = vmatmul.bf16.gmra.mxu3 %v13817_v61 }
 0x6d1   : > { %v8271_v33 = vmul.f32 0.5, %v11824_v12  ;;  %6860 = vmatpush.bf16.msra.mxu1 %v10455_v22  ;;  %v6491_v48 = vadd.f32 %v6490_v53, %v6442_v46 }
 0x6d2   : > { %11825 = vtanh.f32 %v8023_v7  ;;  %v10679_v7 = vor.u32 %v11580_v49, %v10678_v50 }
 0x6d3   : > { %v8399_v5 = vadd.f32 0.5, %v8271_v33  ;;  %v6537_v17 = vpop.f32.mrf.mxu2  ;;  %v6586_v3 = vpop.f32.mrf.mxu3  ;;  %v11452_v33 = vld [vmem:[#allocation7 + $0xa4] sm:$0xf0] }
 0x6d4   : > { %v6538_v43 = vadd.f32 %v6537_v17, %v6489_v2  ;;  %v10934_v2 = vld [vmem:[#allocation7 + $0x688] sm:$0xf]  ;;  %6910 = vmatpush.bf16.msra.mxu2 %v10679_v7 }
 0x6d5   : > { %8527 = vst [vmem:[%s13919_s16 + $0x100] sm:$0xff] %v8399_v5  ;;  %v10167_v5 = vor.u32 %v11452_v33, %v10166_v52  ;;  %v11644_v17 = vld [vmem:[#allocation7 + $0x6a4] sm:$0xf0] }
 0x6d6   : > { %v6587_v4 = vadd.f32 %v6586_v3, %v6538_v43  ;;  %v6444_v20 = vpop.f32.mrf.mxu0  ;;  %v6493_v63 = vpop.f32.mrf.mxu1  ;;  %v10935_v43 = vor.u32 %v11644_v17, %v10934_v2  ;;  %v11572_v33 = vld [vmem:[#allocation7 + $0x464] sm:$0xf0] }
 0x6d7   : > { %v6445_v25 = vadd.f32 %v6444_v20, %v13906_v44  ;;  %6812 = vmatpush.bf16.msra.mxu0 %v10167_v5 }
 0x6d8   : > { %v11826_v15 = vpop.eup %11825  ;;  %v8031_v24 = vmul.f32 0.5, %v6587_v4  ;;  %6959 = vmatpush.bf16.msra.mxu3 %v10935_v43  ;;  %v10134_v43 = vld [vmem:[#allocation7 + $0x48] sm:$0xf] }
 0x6d9   : > { %v8279_v29 = vmul.f32 0.5, %v11826_v15  ;;  %6639 = vmatmul.bf16.gmra.mxu0 %v13825_v34  ;;  %6688 = vmatmul.bf16.gmra.mxu1 %v13827_v36  ;;  %v6494_v39 = vadd.f32 %v6493_v63, %v6445_v25  ;;  %v10422_v15 = vld [vmem:[#allocation7 + $0x288] sm:$0xf] }
 0x6da   : > { %11827 = vtanh.f32 %v8031_v24  ;;  %v11516_v24 = vld [vmem:[#allocation7 + $0x2a4] sm:$0xf0] }
 0x6db   : > { %v8407_v38 = vadd.f32 0.5, %v8279_v29  ;;  %v6539_v45 = vpop.f32.mrf.mxu2  ;;  %v6588_v57 = vpop.f32.mrf.mxu3 }
 0x6dc   : > { %v6540_v21 = vadd.f32 %v6539_v45, %v6491_v48 }
 0x6dd   : > { %8535 = vst [vmem:[%s13919_s16 + $0x140] sm:$0xff] %v8407_v38 }
 0x6de   : > { %v6589_v26 = vadd.f32 %v6588_v57, %v6540_v21  ;;  %v6446_v27 = vpop.f32.mrf.mxu0  ;;  %v6495_v12 = vpop.f32.mrf.mxu1  ;;  %v10423_v57 = vor.u32 %v11516_v24, %v10422_v15  ;;  %v10390_v15 = vld [vmem:[#allocation7 + $0x248] sm:$0xf] }
 0x6df   : > { %v6447_v29 = vadd.f32 %v6446_v27, %v13906_v44  ;;  %v10646_v27 = vld [vmem:[#allocation7 + $0x448] sm:$0xf] }
 0x6e0   : > { %v11828_v53 = vpop.eup %11827  ;;  %v8039_v3 = vmul.f32 0.5, %v6589_v26  ;;  %6737 = vmatmul.bf16.gmra.mxu2 %v13835_v10  ;;  %6786 = vmatmul.bf16.gmra.mxu3 %v13837_v11  ;;  %v11508_v24 = vld [vmem:[#allocation7 + $0x264] sm:$0xf0] }
 0x6e1   : > { %v8287_v30 = vmul.f32 0.5, %v11828_v53  ;;  %6861 = vmatpush.bf16.msra.mxu1 %v10423_v57  ;;  %v6496_v49 = vadd.f32 %v6495_v12, %v6447_v29 }
 0x6e2   : > { %11829 = vtanh.f32 %v8039_v3  ;;  %v10647_v3 = vor.u32 %v11572_v33, %v10646_v27 }
 0x6e3   : > { %v8415_v46 = vadd.f32 0.5, %v8287_v30  ;;  %v6542_v4 = vpop.f32.mrf.mxu2  ;;  %v6591_v20 = vpop.f32.mrf.mxu3  ;;  %v11444_v30 = vld [vmem:[#allocation7 + $0x64] sm:$0xf0] }
 0x6e4   : > { %v6543_v22 = vadd.f32 %v6542_v4, %v6494_v39  ;;  %v10902_v39 = vld [vmem:[#allocation7 + $0x648] sm:$0xf]  ;;  %6911 = vmatpush.bf16.msra.mxu2 %v10647_v3 }
 0x6e5   : > { %8543 = vst [vmem:[%s13919_s16 + $0x180] sm:$0xff] %v8415_v46  ;;  %v10135_v46 = vor.u32 %v11444_v30, %v10134_v43  ;;  %v11636_v4 = vld [vmem:[#allocation7 + $0x664] sm:$0xf0] }
 0x6e6   : > { %v6592_v48 = vadd.f32 %v6591_v20, %v6543_v22  ;;  %v6449_v38 = vpop.f32.mrf.mxu0  ;;  %v6498_v45 = vpop.f32.mrf.mxu1  ;;  %v10903_v22 = vor.u32 %v11636_v4, %v10902_v39  ;;  %v11564_v4 = vld [vmem:[#allocation7 + $0x424] sm:$0xf0] }
 0x6e7   : > { %v6450_v2 = vadd.f32 %v6449_v38, %v13906_v44  ;;  %6813 = vmatpush.bf16.msra.mxu0 %v10135_v46  ;;  %v10614_v46 = vld [vmem:[#allocation7 + $0x408] sm:$0xf] }
 0x6e8   : > { %v11830_v21 = vpop.eup %11829  ;;  %v8047_v50 = vmul.f32 0.5, %v6592_v48  ;;  %v10391_v48 = vor.u32 %v11508_v24, %v10390_v15  ;;  %6960 = vmatpush.bf16.msra.mxu3 %v10903_v22  ;;  %v10615_v15 = vor.u32 %v11564_v4, %v10614_v46  ;;  %v11628_v24 = vld [vmem:[#allocation7 + $0x624] sm:$0xf0] }
 0x6e9   : > { %v8295_v63 = vmul.f32 0.5, %v11830_v21  ;;  %6644 = vmatmul.bf16.gmra.mxu0 %v13845_v56  ;;  %6693 = vmatmul.bf16.gmra.mxu1 %v13847_v19  ;;  %v6499_v38 = vadd.f32 %v6498_v45, %v6450_v2 }
 0x6ea   : > { %11831 = vtanh.f32 %v8047_v50  ;;  %6862 = vmatpush.bf16.msra.mxu1 %v10391_v48  ;;  %6912 = vmatpush.bf16.msra.mxu2 %v10615_v15 }
 0x6eb   : > { %v8423_v25 = vadd.f32 0.5, %v8295_v63  ;;  %v6544_v26 = vpop.f32.mrf.mxu2  ;;  %v6593_v7 = vpop.f32.mrf.mxu3 }
 0x6ec   : > { %v6545_v52 = vadd.f32 %v6544_v26, %v6496_v49  ;;  %v10102_v49 = vld [vmem:[#allocation7 + $0x8] sm:$0xf] }
 0x6ed   : > { %8551 = vst [vmem:[%s13919_s16 + $0x1c0] sm:$0xff] %v8423_v25  ;;  %v11436_v25 = vld [vmem:[#allocation7 + $0x24] sm:$0xf0] }
 0x6ee   : > { %v6594_v5 = vadd.f32 %v6593_v7, %v6545_v52  ;;  %v6451_v17 = vpop.f32.mrf.mxu0  ;;  %v6500_v53 = vpop.f32.mrf.mxu1  ;;  %v10358_v26 = vld [vmem:[#allocation7 + $0x208] sm:$0xf]  ;;  %v10103_v7 = vor.u32 %v11436_v25, %v10102_v49 }
 0x6ef   : > { %v11500_v52 = vld [vmem:[#allocation7 + $0x224] sm:$0xf0]  ;;  %v6452_v27 = vadd.f32 %v6451_v17, %v13906_v44 }
 0x6f0   : > { %v11832_v12 = vpop.eup %11831  ;;  %v8055_v20 = vmul.f32 0.5, %v6594_v5  ;;  %6742 = vmatmul.bf16.gmra.mxu2 %v13855_v9  ;;  %6791 = vmatmul.bf16.gmra.mxu3 %v13857_v51  ;;  %v10359_v43 = vor.u32 %v11500_v52, %v10358_v26 }
 0x6f1   : > { %v8303_v29 = vmul.f32 0.5, %v11832_v12  ;;  %6814 = vmatpush.bf16.msra.mxu0 %v10103_v7  ;;  %v6501_v39 = vadd.f32 %v6500_v53, %v6452_v27  ;;  %v10870_v12 = vld [vmem:[#allocation7 + $0x608] sm:$0xf] }
 0x6f2   : > { %11833 = vtanh.f32 %v8055_v20  ;;  %6863 = vmatpush.bf16.msra.mxu1 %v10359_v43  ;;  %v10871_v48 = vor.u32 %v11628_v24, %v10870_v12 }
 0x6f3   : > { %v8431_v57 = vadd.f32 0.5, %v8303_v29  ;;  %v6547_v21 = vpop.f32.mrf.mxu2  ;;  %v6596_v50 = vpop.f32.mrf.mxu3 }
 0x6f4   : > { %v6548_v63 = vadd.f32 %v6547_v21, %v6499_v38  ;;  %6961 = vmatpush.bf16.msra.mxu3 %v10871_v48 }
 0x6f5   : > { %8559 = vst [vmem:[%s13919_s16 + $0x200] sm:$0xff] %v8431_v57 }
 0x6f6   : > { %v6597_v33 = vadd.f32 %v6596_v50, %v6548_v63  ;;  %v6454_v5 = vpop.f32.mrf.mxu0  ;;  %v6503_v3 = vpop.f32.mrf.mxu1 }
 0x6f7   : > { %v6455_v38 = vadd.f32 %v6454_v5, %v13906_v44 }
 0x6f8   : > { %v11834_v45 = vpop.eup %11833  ;;  %v8063_v2 = vmul.f32 0.5, %v6597_v33 }
 0x6f9   : > { %v8311_v30 = vmul.f32 0.5, %v11834_v45  ;;  %6649 = vmatmul.bf16.gmra.mxu0 %v13865_v59  ;;  %6698 = vmatmul.bf16.gmra.mxu1 %v13867_v16  ;;  %v6504_v25 = vadd.f32 %v6503_v3, %v6455_v38 }
 0x6fa   : > { %11835 = vtanh.f32 %v8063_v2 }
 0x6fb   : > { %v8439_v17 = vadd.f32 0.5, %v8311_v30  ;;  %v6549_v20 = vpop.f32.mrf.mxu2  ;;  %v6598_v22 = vpop.f32.mrf.mxu3 }
 0x6fc   : > { %v6550_v29 = vadd.f32 %v6549_v20, %v6501_v39  ;;  %v11616_v20 = vld [vmem:[#allocation7 + $0x5cc] sm:$0xf] }
 0x6fd   : > { %8567 = vst [vmem:[%s13919_s16 + $0x240] sm:$0xff] %v8439_v17 }
 0x6fe   : > { %v6599_v57 = vadd.f32 %v6598_v22, %v6550_v29  ;;  %v6456_v21 = vpop.f32.mrf.mxu0  ;;  %v6505_v50 = vpop.f32.mrf.mxu1  ;;  %v10840_v22 = vld [vmem:[#allocation7 + $0x5e8] sm:$0xf0] }
 0x6ff   : > { %v6457_v33 = vadd.f32 %v6456_v21, %v13906_v44  ;;  %v10843_v38 = vor.u32 %v11616_v20, %v10840_v22  ;;  %v10328_v21 = vld [vmem:[#allocation7 + $0x1e8] sm:$0xf0] }
 0x700   : > { %v11836_v53 = vpop.eup %11835  ;;  %v8071_v63 = vmul.f32 0.5, %v6599_v57  ;;  %6747 = vmatmul.bf16.gmra.mxu2 %v13875_v6  ;;  %6796 = vmatmul.bf16.gmra.mxu3 %v13877_v55  ;;  %v11488_v57 = vld [vmem:[#allocation7 + $0x1cc] sm:$0xf] }
 0x701   : > { %v8319_v49 = vmul.f32 0.5, %v11836_v53  ;;  %v6506_v3 = vadd.f32 %v6505_v50, %v6457_v33  ;;  %v11680_v53 = vld [vmem:[#allocation7 + $0x7cc] sm:$0xf]  ;;  %7101 = vmatpush.bf16.msrb.mxu2 %v10843_v38 }
 0x702   : > { %11837 = vtanh.f32 %v8071_v63  ;;  %v10331_v63 = vor.u32 %v11488_v57, %v10328_v21  ;;  %v11608_v57 = vld [vmem:[#allocation7 + $0x58c] sm:$0xf] }
 0x703   : > { %v8447_v26 = vadd.f32 0.5, %v8319_v49  ;;  %v6552_v7 = vpop.f32.mrf.mxu2  ;;  %v6601_v52 = vpop.f32.mrf.mxu3  ;;  %v11096_v49 = vld [vmem:[#allocation7 + $0x7e8] sm:$0xf0] }
 0x704   : > { %v6553_v27 = vadd.f32 %v6552_v7, %v6504_v25  ;;  %7003 = vmatpush.bf16.msrb.mxu0 %v10331_v63  ;;  %v10808_v21 = vld [vmem:[#allocation7 + $0x5a8] sm:$0xf0] }
 0x705   : > { %8575 = vst [vmem:[%s13919_s16 + $0x280] sm:$0xff] %v8447_v26  ;;  %v11099_v26 = vor.u32 %v11680_v53, %v11096_v49 }
 0x706   : > { %v6602_v5 = vadd.f32 %v6601_v52, %v6553_v27  ;;  %v6459_v43 = vpop.f32.mrf.mxu0  ;;  %v6508_v45 = vpop.f32.mrf.mxu1 }
 0x707   : > { %v6460_v15 = vadd.f32 %v6459_v43, %v13906_v44  ;;  %7150 = vmatpush.bf16.msrb.mxu3 %v11099_v26  ;;  %v11480_v26 = vld [vmem:[#allocation7 + $0x18c] sm:$0xf] }
 0x708   : > { %v11838_v2 = vpop.eup %11837  ;;  %v8079_v30 = vmul.f32 0.5, %v6602_v5 }
 0x709   : > { %v8327_v39 = vmul.f32 0.5, %v11838_v2  ;;  %6654 = vmatmul.bf16.gmra.mxu0 %v13885_v14  ;;  %6703 = vmatmul.bf16.gmra.mxu1 %v13887_v40  ;;  %v6509_v52 = vadd.f32 %v6508_v45, %v6460_v15  ;;  %v11552_v2 = vld [vmem:[#allocation7 + $0x3cc] sm:$0xf]  ;;  %v13974_v15 = vperm.slane %v13901_v1, 1 }
 0x70a   : > { %11839 = vtanh.f32 %v8079_v30  ;;  %v10584_v30 = vld [vmem:[#allocation7 + $0x3e8] sm:$0xf0] }
 0x70b   : > { %v8455_v46 = vadd.f32 0.5, %v8327_v39  ;;  %v6554_v4 = vpop.f32.mrf.mxu2  ;;  %v6603_v12 = vpop.f32.mrf.mxu3 }
 0x70c   : > { %v6555_v17 = vadd.f32 %v6554_v4, %v6506_v3 }
 0x70d   : > { %8583 = vst [vmem:[%s13919_s16 + $0x2c0] sm:$0xff] %v8455_v46 }
 0x70e   : > { %v6604_v24 = vadd.f32 %v6603_v12, %v6555_v17  ;;  %v6461_v29 = vpop.f32.mrf.mxu0  ;;  %v6510_v48 = vpop.f32.mrf.mxu1  ;;  %v10587_v12 = vor.u32 %v11552_v2, %v10584_v30 }
 0x70f   : > { %v6462_v39 = vadd.f32 %v6461_v29, %v13906_v44 }
 0x710   : > { %v11840_v50 = vpop.eup %11839  ;;  %v8087_v25 = vmul.f32 0.5, %v6604_v24  ;;  %6752 = vmatmul.bf16.gmra.mxu2 %v13895_v0  ;;  %6801 = vmatmul.bf16.gmra.mxu3 %v13897_v58 }
 0x711   : > { %v8335_v7 = vmul.f32 0.5, %v11840_v50  ;;  %7052 = vmatpush.bf16.msrb.mxu1 %v10587_v12  ;;  %v6511_v22 = vadd.f32 %v6510_v48, %v6462_v39  ;;  %v11672_v48 = vld [vmem:[#allocation7 + $0x78c] sm:$0xf] }
 0x712   : > { %11841 = vtanh.f32 %v8087_v25  ;;  %v10811_v25 = vor.u32 %v11608_v57, %v10808_v21  ;;  %v11544_v12 = vld [vmem:[#allocation7 + $0x38c] sm:$0xf] }
 0x713   : > { %v8463_v27 = vadd.f32 0.5, %v8335_v7  ;;  %v6557_v33 = vpop.f32.mrf.mxu2  ;;  %v6606_v5 = vpop.f32.mrf.mxu3  ;;  %v10296_v7 = vld [vmem:[#allocation7 + $0x1a8] sm:$0xf0] }
 0x714   : > { %v6558_v43 = vadd.f32 %v6557_v33, %v6509_v52  ;;  %v10299_v52 = vor.u32 %v11480_v26, %v10296_v7  ;;  %7102 = vmatpush.bf16.msrb.mxu2 %v10811_v25  ;;  %v10776_v26 = vld [vmem:[#allocation7 + $0x568] sm:$0xf0] }
 0x715   : > { %8591 = vst [vmem:[%s13919_s16 + $0x300] sm:$0xff] %v8463_v27  ;;  %v11064_v27 = vld [vmem:[#allocation7 + $0x7a8] sm:$0xf0] }
 0x716   : > { %v6607_v3 = vadd.f32 %v6606_v5, %v6558_v43  ;;  %v6620_v46 = vpop.f32.mrf.mxu0  ;;  %v6669_v4 = vpop.f32.mrf.mxu1  ;;  %v11067_v5 = vor.u32 %v11672_v48, %v11064_v27  ;;  %7004 = vmatpush.bf16.msrb.mxu0 %v10299_v52 }
 0x717   : > { %v6621_v53 = vadd.f32 %v6620_v46, %v13974_v15 }
 0x718   : > { %v11842_v17 = vpop.eup %11841  ;;  %v8095_v20 = vmul.f32 0.5, %v6607_v3  ;;  %7151 = vmatpush.bf16.msrb.mxu3 %v11067_v5  ;;  %v10264_v5 = vld [vmem:[#allocation7 + $0x168] sm:$0xf0] }
 0x719   : > { %v8343_v45 = vmul.f32 0.5, %v11842_v17  ;;  %6815 = vmatmul.bf16.vlgmr.msra.gmra.mxu0 %v13745_v54  ;;  %6864 = vmatmul.bf16.vlgmr.msra.gmra.mxu1 %v13747_v13  ;;  %v6670_v2 = vadd.f32 %v6669_v4, %v6621_v53  ;;  %v10552_v17 = vld [vmem:[#allocation7 + $0x3a8] sm:$0xf0] }
 0x71a   : > { %11843 = vtanh.f32 %v8095_v20 }
 0x71b   : > { %v8471_v24 = vadd.f32 0.5, %v8343_v45  ;;  %v6559_v44 = vpop.f32.mrf.mxu2  ;;  %v6608_v29 = vpop.f32.mrf.mxu3 }
 0x71c   : > { %v6560_v38 = vadd.f32 %v6559_v44, %v6511_v22  ;;  %v10555_v44 = vor.u32 %v11544_v12, %v10552_v17 }
 0x71d   : > { %8599 = vst [vmem:[%s13919_s16 + $0x340] sm:$0xff] %v8471_v24 }
 0x71e   : > { %v6609_v63 = vadd.f32 %v6608_v29, %v6560_v38  ;;  %v6622_v49 = vpop.f32.mrf.mxu0  ;;  %v6671_v50 = vpop.f32.mrf.mxu1  ;;  %7053 = vmatpush.bf16.msrb.mxu1 %v10555_v44  ;;  %v11536_v44 = vld [vmem:[#allocation7 + $0x34c] sm:$0xf] }
 0x71f   : > { %v6623_v20 = vadd.f32 %v6622_v49, %v13974_v15  ;;  %v11600_v49 = vld [vmem:[#allocation7 + $0x54c] sm:$0xf] }
 0x720   : > { %v11844_v1 = vpop.eup %11843  ;;  %v8103_v33 = vmul.f32 0.5, %v6609_v63  ;;  %6913 = vmatmul.bf16.vlgmr.msra.gmra.mxu2 %v13755_v18  ;;  %6962 = vmatmul.bf16.vlgmr.msra.gmra.mxu3 %v13757_v8 }
 0x721   : > { %v8351_v43 = vmul.f32 0.5, %v11844_v1  ;;  %v6672_v57 = vadd.f32 %v6671_v50, %v6623_v20  ;;  %v10779_v1 = vor.u32 %v11600_v49, %v10776_v26 }
 0x722   : > { %11845 = vtanh.f32 %v8103_v33  ;;  %v11472_v33 = vld [vmem:[#allocation7 + $0x14c] sm:$0xf] }
 0x723   : > { %v8479_v30 = vadd.f32 0.5, %v8351_v43  ;;  %v6718_v39 = vpop.f32.mrf.mxu2  ;;  %v6767_v3 = vpop.f32.mrf.mxu3  ;;  %v11664_v43 = vld [vmem:[#allocation7 + $0x74c] sm:$0xf]  ;;  %7103 = vmatpush.bf16.msrb.mxu2 %v10779_v1 }
 0x724   : > { %v6719_v46 = vadd.f32 %v6718_v39, %v6670_v2  ;;  %v10267_v2 = vor.u32 %v11472_v33, %v10264_v5  ;;  %v10744_v33 = vld [vmem:[#allocation7 + $0x528] sm:$0xf0] }
 0x725   : > { %8607 = vst [vmem:[%s13919_s16 + $0x380] sm:$0xff] %v8479_v30  ;;  %v11032_v30 = vld [vmem:[#allocation7 + $0x768] sm:$0xf0] }
 0x726   : > { %v6768_v45 = vadd.f32 %v6767_v3, %v6719_v46  ;;  %v6625_v22 = vpop.f32.mrf.mxu0  ;;  %v6674_v24 = vpop.f32.mrf.mxu1  ;;  %v11035_v3 = vor.u32 %v11664_v43, %v11032_v30  ;;  %7005 = vmatpush.bf16.msrb.mxu0 %v10267_v2 }
 0x727   : > { %v6626_v7 = vadd.f32 %v6625_v22, %v13974_v15 }
 0x728   : > { %v11846_v29 = vpop.eup %11845  ;;  %v7984_v38 = vmul.f32 0.5, %v6768_v45  ;;  %7152 = vmatpush.bf16.msrb.mxu3 %v11035_v3  ;;  %v10232_v3 = vld [vmem:[#allocation7 + $0x128] sm:$0xf0] }
 0x729   : > { %v8359_v4 = vmul.f32 0.5, %v11846_v29  ;;  %6820 = vmatmul.bf16.gmra.mxu0 %v13765_v31  ;;  %6869 = vmatmul.bf16.gmra.mxu1 %v13767_v41  ;;  %v6675_v12 = vadd.f32 %v6674_v24, %v6626_v7  ;;  %v10520_v29 = vld [vmem:[#allocation7 + $0x368] sm:$0xf0] }
 0x72a   : > { %11847 = vtanh.f32 %v7984_v38 }
 0x72b   : > { %v8487_v21 = vadd.f32 0.5, %v8359_v4  ;;  %v6720_v53 = vpop.f32.mrf.mxu2  ;;  %v6769_v63 = vpop.f32.mrf.mxu3 }
 0x72c   : > { %v6721_v25 = vadd.f32 %v6720_v53, %v6672_v57  ;;  %v10523_v53 = vor.u32 %v11536_v44, %v10520_v29 }
 0x72d   : > { %8615 = vst [vmem:[%s13919_s16 + $0x3c0] sm:$0xff] %v8487_v21 }
 0x72e   : > { %v6770_v48 = vadd.f32 %v6769_v63, %v6721_v25  ;;  %v6627_v52 = vpop.f32.mrf.mxu0  ;;  %v6676_v27 = vpop.f32.mrf.mxu1  ;;  %7054 = vmatpush.bf16.msrb.mxu1 %v10523_v53  ;;  %v11528_v53 = vld [vmem:[#allocation7 + $0x30c] sm:$0xf] }
 0x72f   : > { %v6628_v38 = vadd.f32 %v6627_v52, %v13974_v15  ;;  %v11592_v52 = vld [vmem:[#allocation7 + $0x50c] sm:$0xf] }
 0x730   : > { %v11848_v50 = vpop.eup %11847  ;;  %v7992_v39 = vmul.f32 0.5, %v6770_v48  ;;  %6918 = vmatmul.bf16.gmra.mxu2 %v13775_v32  ;;  %6967 = vmatmul.bf16.gmra.mxu3 %v13777_v37 }
 0x731   : > { %v8240_v46 = vmul.f32 0.5, %v11848_v50  ;;  %v6677_v49 = vadd.f32 %v6676_v27, %v6628_v38  ;;  %v10747_v50 = vor.u32 %v11592_v52, %v10744_v33 }
 0x732   : > { %11849 = vtanh.f32 %v7992_v39  ;;  %v11464_v39 = vld [vmem:[#allocation7 + $0x10c] sm:$0xf] }
 0x733   : > { %v8368_v17 = vadd.f32 0.5, %v8240_v46  ;;  %v6723_v20 = vpop.f32.mrf.mxu2  ;;  %v6772_v45 = vpop.f32.mrf.mxu3  ;;  %v11656_v46 = vld [vmem:[#allocation7 + $0x70c] sm:$0xf]  ;;  %7104 = vmatpush.bf16.msrb.mxu2 %v10747_v50 }
 0x734   : > { %v6724_v22 = vadd.f32 %v6723_v20, %v6675_v12  ;;  %v10235_v12 = vor.u32 %v11464_v39, %v10232_v3  ;;  %v10712_v39 = vld [vmem:[#allocation7 + $0x4e8] sm:$0xf0] }
 0x735   : > { %8496 = vst [vmem:[%s13919_s16 + $0x8] sm:$0xff] %v8368_v17  ;;  %v11000_v17 = vld [vmem:[#allocation7 + $0x728] sm:$0xf0] }
 0x736   : > { %v6773_v4 = vadd.f32 %v6772_v45, %v6724_v22  ;;  %v6630_v57 = vpop.f32.mrf.mxu0  ;;  %v6679_v21 = vpop.f32.mrf.mxu1  ;;  %v11003_v45 = vor.u32 %v11656_v46, %v11000_v17  ;;  %7006 = vmatpush.bf16.msrb.mxu0 %v10235_v12 }
 0x737   : > { %v6631_v5 = vadd.f32 %v6630_v57, %v13974_v15 }
 0x738   : > { %v11850_v63 = vpop.eup %11849  ;;  %v8000_v25 = vmul.f32 0.5, %v6773_v4  ;;  %7153 = vmatpush.bf16.msrb.mxu3 %v11003_v45  ;;  %v10200_v45 = vld [vmem:[#allocation7 + $0xe8] sm:$0xf0] }
 0x739   : > { %v8248_v24 = vmul.f32 0.5, %v11850_v63  ;;  %6825 = vmatmul.bf16.gmra.mxu0 %v13785_v60  ;;  %6874 = vmatmul.bf16.gmra.mxu1 %v13787_v28  ;;  %v6680_v44 = vadd.f32 %v6679_v21, %v6631_v5  ;;  %v10488_v63 = vld [vmem:[#allocation7 + $0x328] sm:$0xf0] }
 0x73a   : > { %11851 = vtanh.f32 %v8000_v25 }
 0x73b   : > { %v8376_v26 = vadd.f32 0.5, %v8248_v24  ;;  %v6725_v7 = vpop.f32.mrf.mxu2  ;;  %v6774_v48 = vpop.f32.mrf.mxu3 }
 0x73c   : > { %v6726_v1 = vadd.f32 %v6725_v7, %v6677_v49  ;;  %v10491_v7 = vor.u32 %v11528_v53, %v10488_v63 }
 0x73d   : > { %8504 = vst [vmem:[%s13919_s16 + $0x48] sm:$0xff] %v8376_v26 }
 0x73e   : > { %v6775_v43 = vadd.f32 %v6774_v48, %v6726_v1  ;;  %v6632_v2 = vpop.f32.mrf.mxu0  ;;  %v6681_v30 = vpop.f32.mrf.mxu1  ;;  %7055 = vmatpush.bf16.msrb.mxu1 %v10491_v7  ;;  %v11520_v7 = vld [vmem:[#allocation7 + $0x2cc] sm:$0xf] }
 0x73f   : > { %v6633_v25 = vadd.f32 %v6632_v2, %v13974_v15  ;;  %v11584_v2 = vld [vmem:[#allocation7 + $0x4cc] sm:$0xf] }
 0x740   : > { %v11852_v27 = vpop.eup %11851  ;;  %v8008_v20 = vmul.f32 0.5, %v6775_v43  ;;  %6923 = vmatmul.bf16.gmra.mxu2 %v13795_v47  ;;  %6972 = vmatmul.bf16.gmra.mxu3 %v13797_v42 }
 0x741   : > { %v8256_v22 = vmul.f32 0.5, %v11852_v27  ;;  %v6682_v52 = vadd.f32 %v6681_v30, %v6633_v25  ;;  %v10715_v27 = vor.u32 %v11584_v2, %v10712_v39 }
 0x742   : > { %11853 = vtanh.f32 %v8008_v20  ;;  %v11456_v20 = vld [vmem:[#allocation7 + $0xcc] sm:$0xf] }
 0x743   : > { %v8384_v29 = vadd.f32 0.5, %v8256_v22  ;;  %v6728_v38 = vpop.f32.mrf.mxu2  ;;  %v6777_v4 = vpop.f32.mrf.mxu3  ;;  %v11648_v22 = vld [vmem:[#allocation7 + $0x6cc] sm:$0xf]  ;;  %7105 = vmatpush.bf16.msrb.mxu2 %v10715_v27 }
 0x744   : > { %v6729_v57 = vadd.f32 %v6728_v38, %v6680_v44  ;;  %v10203_v44 = vor.u32 %v11456_v20, %v10200_v45  ;;  %v10680_v20 = vld [vmem:[#allocation7 + $0x4a8] sm:$0xf0] }
 0x745   : > { %8512 = vst [vmem:[%s13919_s16 + $0x88] sm:$0xff] %v8384_v29  ;;  %v10968_v29 = vld [vmem:[#allocation7 + $0x6e8] sm:$0xf0] }
 0x746   : > { %v6778_v24 = vadd.f32 %v6777_v4, %v6729_v57  ;;  %v6635_v49 = vpop.f32.mrf.mxu0  ;;  %v6684_v26 = vpop.f32.mrf.mxu1  ;;  %v10971_v4 = vor.u32 %v11648_v22, %v10968_v29  ;;  %7007 = vmatpush.bf16.msrb.mxu0 %v10203_v44 }
 0x747   : > { %v6636_v3 = vadd.f32 %v6635_v49, %v13974_v15 }
 0x748   : > { %v11854_v48 = vpop.eup %11853  ;;  %v8016_v1 = vmul.f32 0.5, %v6778_v24  ;;  %7154 = vmatpush.bf16.msrb.mxu3 %v10971_v4  ;;  %v10168_v4 = vld [vmem:[#allocation7 + $0xa8] sm:$0xf0] }
 0x749   : > { %v8264_v21 = vmul.f32 0.5, %v11854_v48  ;;  %6830 = vmatmul.bf16.gmra.mxu0 %v13805_v35  ;;  %6879 = vmatmul.bf16.gmra.mxu1 %v13807_v23  ;;  %v6685_v53 = vadd.f32 %v6684_v26, %v6636_v3  ;;  %v10456_v48 = vld [vmem:[#allocation7 + $0x2e8] sm:$0xf0] }
 0x74a   : > { %11855 = vtanh.f32 %v8016_v1 }
 0x74b   : > { %v8392_v33 = vadd.f32 0.5, %v8264_v21  ;;  %v6730_v5 = vpop.f32.mrf.mxu2  ;;  %v6779_v43 = vpop.f32.mrf.mxu3 }
 0x74c   : > { %v6731_v50 = vadd.f32 %v6730_v5, %v6682_v52  ;;  %v10459_v5 = vor.u32 %v11520_v7, %v10456_v48 }
 0x74d   : > { %8520 = vst [vmem:[%s13919_s16 + $0xc8] sm:$0xff] %v8392_v33 }
 0x74e   : > { %v6780_v46 = vadd.f32 %v6779_v43, %v6731_v50  ;;  %v6637_v12 = vpop.f32.mrf.mxu0  ;;  %v6686_v17 = vpop.f32.mrf.mxu1  ;;  %7056 = vmatpush.bf16.msrb.mxu1 %v10459_v5  ;;  %v11512_v5 = vld [vmem:[#allocation7 + $0x28c] sm:$0xf] }
 0x74f   : > { %v6638_v1 = vadd.f32 %v6637_v12, %v13974_v15  ;;  %v11576_v12 = vld [vmem:[#allocation7 + $0x48c] sm:$0xf] }
 0x750   : > { %v11856_v30 = vpop.eup %11855  ;;  %v8024_v38 = vmul.f32 0.5, %v6780_v46  ;;  %6928 = vmatmul.bf16.gmra.mxu2 %v13815_v62  ;;  %6977 = vmatmul.bf16.gmra.mxu3 %v13817_v61 }
 0x751   : > { %v8272_v57 = vmul.f32 0.5, %v11856_v30  ;;  %v6687_v2 = vadd.f32 %v6686_v17, %v6638_v1  ;;  %v10683_v30 = vor.u32 %v11576_v12, %v10680_v20 }
 0x752   : > { %11857 = vtanh.f32 %v8024_v38  ;;  %v11448_v38 = vld [vmem:[#allocation7 + $0x8c] sm:$0xf] }
 0x753   : > { %v8400_v63 = vadd.f32 0.5, %v8272_v57  ;;  %v6733_v25 = vpop.f32.mrf.mxu2  ;;  %v6782_v24 = vpop.f32.mrf.mxu3  ;;  %v11640_v57 = vld [vmem:[#allocation7 + $0x68c] sm:$0xf]  ;;  %7106 = vmatpush.bf16.msrb.mxu2 %v10683_v30 }
 0x754   : > { %v6734_v49 = vadd.f32 %v6733_v25, %v6685_v53  ;;  %v10171_v53 = vor.u32 %v11448_v38, %v10168_v4  ;;  %v10648_v38 = vld [vmem:[#allocation7 + $0x468] sm:$0xf0] }
 0x755   : > { %8528 = vst [vmem:[%s13919_s16 + $0x108] sm:$0xff] %v8400_v63  ;;  %v10936_v63 = vld [vmem:[#allocation7 + $0x6a8] sm:$0xf0] }
 0x756   : > { %v6783_v21 = vadd.f32 %v6782_v24, %v6734_v49  ;;  %v6640_v52 = vpop.f32.mrf.mxu0  ;;  %v6689_v33 = vpop.f32.mrf.mxu1  ;;  %v10939_v24 = vor.u32 %v11640_v57, %v10936_v63  ;;  %7008 = vmatpush.bf16.msrb.mxu0 %v10171_v53 }
 0x757   : > { %v6641_v45 = vadd.f32 %v6640_v52, %v13974_v15 }
 0x758   : > { %v11858_v43 = vpop.eup %11857  ;;  %v8032_v50 = vmul.f32 0.5, %v6783_v21  ;;  %7155 = vmatpush.bf16.msrb.mxu3 %v10939_v24  ;;  %v10136_v24 = vld [vmem:[#allocation7 + $0x68] sm:$0xf0] }
 0x759   : > { %v8280_v26 = vmul.f32 0.5, %v11858_v43  ;;  %6835 = vmatmul.bf16.gmra.mxu0 %v13825_v34  ;;  %6884 = vmatmul.bf16.gmra.mxu1 %v13827_v36  ;;  %v6690_v7 = vadd.f32 %v6689_v33, %v6641_v45  ;;  %v10424_v43 = vld [vmem:[#allocation7 + $0x2a8] sm:$0xf0] }
 0x75a   : > { %11859 = vtanh.f32 %v8032_v50 }
 0x75b   : > { %v8408_v39 = vadd.f32 0.5, %v8280_v26  ;;  %v6735_v3 = vpop.f32.mrf.mxu2  ;;  %v6784_v46 = vpop.f32.mrf.mxu3 }
 0x75c   : > { %v6736_v27 = vadd.f32 %v6735_v3, %v6687_v2  ;;  %v10427_v3 = vor.u32 %v11512_v5, %v10424_v43  ;;  %v10392_v5 = vld [vmem:[#allocation7 + $0x268] sm:$0xf0] }
 0x75d   : > { %8536 = vst [vmem:[%s13919_s16 + $0x148] sm:$0xff] %v8408_v39 }
 0x75e   : > { %v6785_v22 = vadd.f32 %v6784_v46, %v6736_v27  ;;  %v6642_v44 = vpop.f32.mrf.mxu0  ;;  %v6691_v29 = vpop.f32.mrf.mxu1  ;;  %7057 = vmatpush.bf16.msrb.mxu1 %v10427_v3 }
 0x75f   : > { %v6643_v50 = vadd.f32 %v6642_v44, %v13974_v15  ;;  %v11568_v44 = vld [vmem:[#allocation7 + $0x44c] sm:$0xf] }
 0x760   : > { %v11860_v17 = vpop.eup %11859  ;;  %v8040_v25 = vmul.f32 0.5, %v6785_v22  ;;  %6933 = vmatmul.bf16.gmra.mxu2 %v13835_v10  ;;  %6982 = vmatmul.bf16.gmra.mxu3 %v13837_v11 }
 0x761   : > { %v8288_v49 = vmul.f32 0.5, %v11860_v17  ;;  %v6692_v12 = vadd.f32 %v6691_v29, %v6643_v50  ;;  %v10651_v17 = vor.u32 %v11568_v44, %v10648_v38 }
 0x762   : > { %11861 = vtanh.f32 %v8040_v25  ;;  %v11440_v25 = vld [vmem:[#allocation7 + $0x4c] sm:$0xf] }
 0x763   : > { %v8416_v48 = vadd.f32 0.5, %v8288_v49  ;;  %v6738_v1 = vpop.f32.mrf.mxu2  ;;  %v6787_v21 = vpop.f32.mrf.mxu3  ;;  %v11632_v49 = vld [vmem:[#allocation7 + $0x64c] sm:$0xf]  ;;  %7107 = vmatpush.bf16.msrb.mxu2 %v10651_v17 }
 0x764   : > { %v6739_v52 = vadd.f32 %v6738_v1, %v6690_v7  ;;  %v10139_v7 = vor.u32 %v11440_v25, %v10136_v24 }
 0x765   : > { %8544 = vst [vmem:[%s13919_s16 + $0x188] sm:$0xff] %v8416_v48  ;;  %v10904_v48 = vld [vmem:[#allocation7 + $0x668] sm:$0xf0] }
 0x766   : > { %v6788_v26 = vadd.f32 %v6787_v21, %v6739_v52  ;;  %v6645_v2 = vpop.f32.mrf.mxu0  ;;  %v6694_v39 = vpop.f32.mrf.mxu1  ;;  %v10907_v21 = vor.u32 %v11632_v49, %v10904_v48  ;;  %v11504_v52 = vld [vmem:[#allocation7 + $0x24c] sm:$0xf]  ;;  %7009 = vmatpush.bf16.msrb.mxu0 %v10139_v7 }
 0x767   : > { %v6646_v4 = vadd.f32 %v6645_v2, %v13974_v15  ;;  %v10395_v50 = vor.u32 %v11504_v52, %v10392_v5  ;;  %v11560_v49 = vld [vmem:[#allocation7 + $0x40c] sm:$0xf] }
 0x768   : > { %v11862_v46 = vpop.eup %11861  ;;  %v8048_v27 = vmul.f32 0.5, %v6788_v26  ;;  %7156 = vmatpush.bf16.msrb.mxu3 %v10907_v21  ;;  %v10616_v7 = vld [vmem:[#allocation7 + $0x428] sm:$0xf0] }
 0x769   : > { %v8296_v33 = vmul.f32 0.5, %v11862_v46  ;;  %6840 = vmatmul.bf16.gmra.mxu0 %v13845_v56  ;;  %6889 = vmatmul.bf16.gmra.mxu1 %v13847_v19  ;;  %v6695_v26 = vadd.f32 %v6694_v39, %v6646_v4  ;;  %v11624_v48 = vld [vmem:[#allocation7 + $0x60c] sm:$0xf]  ;;  %v10619_v21 = vor.u32 %v11560_v49, %v10616_v7 }
 0x76a   : > { %11863 = vtanh.f32 %v8048_v27  ;;  %7058 = vmatpush.bf16.msrb.mxu1 %v10395_v50  ;;  %v10872_v52 = vld [vmem:[#allocation7 + $0x628] sm:$0xf0] }
 0x76b   : > { %v8424_v20 = vadd.f32 0.5, %v8296_v33  ;;  %v6740_v45 = vpop.f32.mrf.mxu2  ;;  %v6789_v22 = vpop.f32.mrf.mxu3  ;;  %v11432_v33 = vld [vmem:[#allocation7 + $0xc] sm:$0xf]  ;;  %7108 = vmatpush.bf16.msrb.mxu2 %v10619_v21 }
 0x76c   : > { %v6741_v30 = vadd.f32 %v6740_v45, %v6692_v12  ;;  %v10104_v12 = vld [vmem:[#allocation7 + $0x28] sm:$0xf0] }
 0x76d   : > { %8552 = vst [vmem:[%s13919_s16 + $0x1c8] sm:$0xff] %v8424_v20  ;;  %v11496_v20 = vld [vmem:[#allocation7 + $0x20c] sm:$0xf]  ;;  %v10107_v45 = vor.u32 %v11432_v33, %v10104_v12 }
 0x76e   : > { %v6790_v57 = vadd.f32 %v6789_v22, %v6741_v30  ;;  %v6647_v53 = vpop.f32.mrf.mxu0  ;;  %v6696_v63 = vpop.f32.mrf.mxu1  ;;  %v10360_v22 = vld [vmem:[#allocation7 + $0x228] sm:$0xf0] }
 0x76f   : > { %v6648_v30 = vadd.f32 %v6647_v53, %v13974_v15  ;;  %v10363_v17 = vor.u32 %v11496_v20, %v10360_v22  ;;  %7010 = vmatpush.bf16.msrb.mxu0 %v10107_v45 }
 0x770   : > { %v11864_v29 = vpop.eup %11863  ;;  %v8056_v1 = vmul.f32 0.5, %v6790_v57  ;;  %6938 = vmatmul.bf16.gmra.mxu2 %v13855_v9  ;;  %6987 = vmatmul.bf16.gmra.mxu3 %v13857_v51 }
 0x771   : > { %v8304_v43 = vmul.f32 0.5, %v11864_v29  ;;  %7059 = vmatpush.bf16.msrb.mxu1 %v10363_v17  ;;  %v6697_v24 = vadd.f32 %v6696_v63, %v6648_v30 }
 0x772   : > { %11865 = vtanh.f32 %v8056_v1 }
 0x773   : > { %v8432_v2 = vadd.f32 0.5, %v8304_v43  ;;  %v6743_v3 = vpop.f32.mrf.mxu2  ;;  %v6792_v46 = vpop.f32.mrf.mxu3  ;;  %v10875_v43 = vor.u32 %v11624_v48, %v10872_v52 }
 0x774   : > { %v6744_v27 = vadd.f32 %v6743_v3, %v6695_v26 }
 0x775   : > { %8560 = vst [vmem:[%s13919_s16 + $0x208] sm:$0xff] %v8432_v2  ;;  %7157 = vmatpush.bf16.msrb.mxu3 %v10875_v43 }
 0x776   : > { %v6793_v44 = vadd.f32 %v6792_v46, %v6744_v27  ;;  %v6650_v38 = vpop.f32.mrf.mxu0  ;;  %v6699_v57 = vpop.f32.mrf.mxu1 }
 0x777   : > { %v6651_v50 = vadd.f32 %v6650_v38, %v13974_v15 }
 0x778   : > { %v11866_v39 = vpop.eup %11865  ;;  %v8064_v4 = vmul.f32 0.5, %v6793_v44 }
 0x779   : > { %v8312_v25 = vmul.f32 0.5, %v11866_v39  ;;  %6845 = vmatmul.bf16.gmra.mxu0 %v13865_v59  ;;  %6894 = vmatmul.bf16.gmra.mxu1 %v13867_v16  ;;  %v6700_v33 = vadd.f32 %v6699_v57, %v6651_v50  ;;  %v10334_v50 = vld [vmem:[#allocation7 + $0x1d0] sm:$0xf] }
 0x77a   : > { %11867 = vtanh.f32 %v8064_v4 }
 0x77b   : > { %v8440_v53 = vadd.f32 0.5, %v8312_v25  ;;  %v6745_v29 = vpop.f32.mrf.mxu2  ;;  %v6794_v1 = vpop.f32.mrf.mxu3 }
 0x77c   : > { %v6746_v5 = vadd.f32 %v6745_v29, %v6697_v24  ;;  %v11621_v29 = vld [vmem:[#allocation7 + $0x5ec] sm:$0xf0] }
 0x77d   : > { %8568 = vst [vmem:[%s13919_s16 + $0x248] sm:$0xff] %v8440_v53  ;;  %v10846_v53 = vld [vmem:[#allocation7 + $0x5d0] sm:$0xf] }
 0x77e   : > { %v6795_v26 = vadd.f32 %v6794_v1, %v6746_v5  ;;  %v6652_v2 = vpop.f32.mrf.mxu0  ;;  %v6701_v3 = vpop.f32.mrf.mxu1  ;;  %v10847_v43 = vor.u32 %v11621_v29, %v10846_v53  ;;  %v14040_v29 = vld [vmem:[#allocation8 + $0x9] sm:$0xff] }
 0x77f   : > { %v6653_v30 = vadd.f32 %v6652_v2, %v13974_v15  ;;  %v11102_v2 = vld [vmem:[#allocation7 + $0x7d0] sm:$0xf] }
 0x780   : > { %v11868_v63 = vpop.eup %11867  ;;  %v8072_v46 = vmul.f32 0.5, %v6795_v26  ;;  %6943 = vmatmul.bf16.gmra.mxu2 %v13875_v6  ;;  %6992 = vmatmul.bf16.gmra.mxu3 %v13877_v55  ;;  %v11493_v26 = vld [vmem:[#allocation7 + $0x1ec] sm:$0xf0] }
 0x781   : > { %v8320_v27 = vmul.f32 0.5, %v11868_v63  ;;  %v6702_v57 = vadd.f32 %v6701_v3, %v6653_v30  ;;  %v10335_v63 = vor.u32 %v11493_v26, %v10334_v50  ;;  %7297 = vmatpush.bf16.msra.mxu2 %v10847_v43  ;;  %v10814_v50 = vld [vmem:[#allocation7 + $0x590] sm:$0xf] }
 0x782   : > { %11869 = vtanh.f32 %v8072_v46  ;;  %v11685_v46 = vld [vmem:[#allocation7 + $0x7ec] sm:$0xf0] }
 0x783   : > { %v8448_v12 = vadd.f32 0.5, %v8320_v27  ;;  %v6748_v20 = vpop.f32.mrf.mxu2  ;;  %v6797_v45 = vpop.f32.mrf.mxu3  ;;  %7199 = vmatpush.bf16.msra.mxu0 %v10335_v63  ;;  %v11613_v26 = vld [vmem:[#allocation7 + $0x5ac] sm:$0xf0] }
 0x784   : > { %v6749_v22 = vadd.f32 %v6748_v20, %v6700_v33  ;;  %v11103_v33 = vor.u32 %v11685_v46, %v11102_v2 }
 0x785   : > { %8576 = vst [vmem:[%s13919_s16 + $0x288] sm:$0xff] %v8448_v12 }
 0x786   : > { %v6798_v44 = vadd.f32 %v6797_v45, %v6749_v22  ;;  %v6655_v38 = vpop.f32.mrf.mxu0  ;;  %v6704_v17 = vpop.f32.mrf.mxu1  ;;  %7346 = vmatpush.bf16.msra.mxu3 %v11103_v33  ;;  %v11485_v33 = vld [vmem:[#allocation7 + $0x1ac] sm:$0xf0] }
 0x787   : > { %v6656_v1 = vadd.f32 %v6655_v38, %v13974_v15  ;;  %v10590_v38 = vld [vmem:[#allocation7 + $0x3d0] sm:$0xf] }
 0x788   : > { %v11870_v39 = vpop.eup %11869  ;;  %v8080_v4 = vmul.f32 0.5, %v6798_v44 }
 0x789   : > { %v8328_v25 = vmul.f32 0.5, %v11870_v39  ;;  %6850 = vmatmul.bf16.gmra.mxu0 %v13885_v14  ;;  %6899 = vmatmul.bf16.gmra.mxu1 %v13887_v40  ;;  %v6705_v20 = vadd.f32 %v6704_v17, %v6656_v1  ;;  %v11557_v39 = vld [vmem:[#allocation7 + $0x3ec] sm:$0xf0]  ;;  %v14043_v1 = vperm.slane %v14040_v29, 2 }
 0x78a   : > { %11871 = vtanh.f32 %v8080_v4 }
 0x78b   : > { %v8456_v24 = vadd.f32 0.5, %v8328_v25  ;;  %v6750_v49 = vpop.f32.mrf.mxu2  ;;  %v6799_v7 = vpop.f32.mrf.mxu3 }
 0x78c   : > { %v6751_v48 = vadd.f32 %v6750_v49, %v6702_v57  ;;  %v10591_v49 = vor.u32 %v11557_v39, %v10590_v38 }
 0x78d   : > { %8584 = vst [vmem:[%s13919_s16 + $0x2c8] sm:$0xff] %v8456_v24 }
 0x78e   : > { %v6800_v21 = vadd.f32 %v6799_v7, %v6751_v48  ;;  %v6657_v52 = vpop.f32.mrf.mxu0  ;;  %v6706_v5 = vpop.f32.mrf.mxu1  ;;  %7248 = vmatpush.bf16.msra.mxu1 %v10591_v49 }
 0x78f   : > { %v6658_v4 = vadd.f32 %v6657_v52, %v13974_v15 }
 0x790   : > { %v11872_v3 = vpop.eup %11871  ;;  %v8088_v27 = vmul.f32 0.5, %v6800_v21  ;;  %6948 = vmatmul.bf16.gmra.mxu2 %v13895_v0  ;;  %6997 = vmatmul.bf16.gmra.mxu3 %v13897_v58 }
 0x791   : > { %v8336_v12 = vmul.f32 0.5, %v11872_v3  ;;  %v6707_v53 = vadd.f32 %v6706_v5, %v6658_v4  ;;  %v10302_v5 = vld [vmem:[#allocation7 + $0x190] sm:$0xf] }
 0x792   : > { %11873 = vtanh.f32 %v8088_v27  ;;  %v10815_v27 = vor.u32 %v11613_v26, %v10814_v50 }
 0x793   : > { %v8464_v45 = vadd.f32 0.5, %v8336_v12  ;;  %v6753_v22 = vpop.f32.mrf.mxu2  ;;  %v6802_v30 = vpop.f32.mrf.mxu3  ;;  %v11070_v12 = vld [vmem:[#allocation7 + $0x790] sm:$0xf] }
 0x794   : > { %v6754_v44 = vadd.f32 %v6753_v22, %v6705_v20  ;;  %v10303_v20 = vor.u32 %v11485_v33, %v10302_v5  ;;  %7298 = vmatpush.bf16.msra.mxu2 %v10815_v27  ;;  %v11605_v33 = vld [vmem:[#allocation7 + $0x56c] sm:$0xf0] }
 0x795   : > { %8592 = vst [vmem:[%s13919_s16 + $0x308] sm:$0xff] %v8464_v45  ;;  %v11677_v45 = vld [vmem:[#allocation7 + $0x7ac] sm:$0xf0] }
 0x796   : > { %v6803_v25 = vadd.f32 %v6802_v30, %v6754_v44  ;;  %v6816_v57 = vpop.f32.mrf.mxu0  ;;  %v6865_v24 = vpop.f32.mrf.mxu1  ;;  %v11071_v44 = vor.u32 %v11677_v45, %v11070_v12  ;;  %7200 = vmatpush.bf16.msra.mxu0 %v10303_v20 }
 0x797   : > { %v6817_v2 = vadd.f32 %v6816_v57, %v14043_v1 }
 0x798   : > { %v11874_v7 = vpop.eup %11873  ;;  %v8096_v48 = vmul.f32 0.5, %v6803_v25  ;;  %7347 = vmatpush.bf16.msra.mxu3 %v11071_v44  ;;  %v10270_v44 = vld [vmem:[#allocation7 + $0x150] sm:$0xf] }
 0x799   : > { %v8344_v17 = vmul.f32 0.5, %v11874_v7  ;;  %7011 = vmatmul.bf16.vlgmr.msrb.gmra.mxu0 %v13745_v54  ;;  %7060 = vmatmul.bf16.vlgmr.msrb.gmra.mxu1 %v13747_v13  ;;  %v6866_v39 = vadd.f32 %v6865_v24, %v6817_v2  ;;  %v10558_v7 = vld [vmem:[#allocation7 + $0x390] sm:$0xf] }
 0x79a   : > { %11875 = vtanh.f32 %v8096_v48  ;;  %v11549_v48 = vld [vmem:[#allocation7 + $0x3ac] sm:$0xf0] }
 0x79b   : > { %v8472_v15 = vadd.f32 0.5, %v8344_v17  ;;  %v6755_v21 = vpop.f32.mrf.mxu2  ;;  %v6804_v52 = vpop.f32.mrf.mxu3 }
 0x79c   : > { %v6756_v43 = vadd.f32 %v6755_v21, %v6707_v53 }
 0x79d   : > { %8600 = vst [vmem:[%s13919_s16 + $0x348] sm:$0xff] %v8472_v15 }
 0x79e   : > { %v6805_v63 = vadd.f32 %v6804_v52, %v6756_v43  ;;  %v6818_v46 = vpop.f32.mrf.mxu0  ;;  %v6867_v3 = vpop.f32.mrf.mxu1  ;;  %v10559_v52 = vor.u32 %v11549_v48, %v10558_v7 }
 0x79f   : > { %v6819_v17 = vadd.f32 %v6818_v46, %v14043_v1  ;;  %v10782_v46 = vld [vmem:[#allocation7 + $0x550] sm:$0xf] }
 0x7a0   : > { %v11876_v22 = vpop.eup %11875  ;;  %v8104_v30 = vmul.f32 0.5, %v6805_v63  ;;  %7109 = vmatmul.bf16.vlgmr.msrb.gmra.mxu2 %v13755_v18  ;;  %7158 = vmatmul.bf16.vlgmr.msrb.gmra.mxu3 %v13757_v8 }
 0x7a1   : > { %v8352_v38 = vmul.f32 0.5, %v11876_v22  ;;  %7249 = vmatpush.bf16.msra.mxu1 %v10559_v52  ;;  %v6868_v26 = vadd.f32 %v6867_v3, %v6819_v17 }
 0x7a2   : > { %11877 = vtanh.f32 %v8104_v30  ;;  %v10783_v30 = vor.u32 %v11605_v33, %v10782_v46 }
 0x7a3   : > { %v8480_v4 = vadd.f32 0.5, %v8352_v38  ;;  %v6914_v25 = vpop.f32.mrf.mxu2  ;;  %v6963_v57 = vpop.f32.mrf.mxu3  ;;  %v11477_v38 = vld [vmem:[#allocation7 + $0x16c] sm:$0xf0] }
 0x7a4   : > { %v6915_v49 = vadd.f32 %v6914_v25, %v6866_v39  ;;  %v11038_v39 = vld [vmem:[#allocation7 + $0x750] sm:$0xf]  ;;  %7299 = vmatpush.bf16.msra.mxu2 %v10783_v30 }
 0x7a5   : > { %8608 = vst [vmem:[%s13919_s16 + $0x388] sm:$0xff] %v8480_v4  ;;  %v10271_v4 = vor.u32 %v11477_v38, %v10270_v44  ;;  %v11669_v25 = vld [vmem:[#allocation7 + $0x76c] sm:$0xf0] }
 0x7a6   : > { %v6964_v53 = vadd.f32 %v6963_v57, %v6915_v49  ;;  %v6821_v15 = vpop.f32.mrf.mxu0  ;;  %v6870_v21 = vpop.f32.mrf.mxu1  ;;  %v11039_v49 = vor.u32 %v11669_v25, %v11038_v39  ;;  %v11597_v38 = vld [vmem:[#allocation7 + $0x52c] sm:$0xf0] }
 0x7a7   : > { %v6822_v12 = vadd.f32 %v6821_v15, %v14043_v1  ;;  %7201 = vmatpush.bf16.msra.mxu0 %v10271_v4 }
 0x7a8   : > { %v11878_v43 = vpop.eup %11877  ;;  %v7985_v50 = vmul.f32 0.5, %v6964_v53  ;;  %7348 = vmatpush.bf16.msra.mxu3 %v11039_v49  ;;  %v10238_v49 = vld [vmem:[#allocation7 + $0x110] sm:$0xf] }
 0x7a9   : > { %v8360_v24 = vmul.f32 0.5, %v11878_v43  ;;  %7016 = vmatmul.bf16.gmra.mxu0 %v13765_v31  ;;  %7065 = vmatmul.bf16.gmra.mxu1 %v13767_v41  ;;  %v6871_v48 = vadd.f32 %v6870_v21, %v6822_v12  ;;  %v10526_v43 = vld [vmem:[#allocation7 + $0x350] sm:$0xf] }
 0x7aa   : > { %11879 = vtanh.f32 %v7985_v50  ;;  %v11541_v50 = vld [vmem:[#allocation7 + $0x36c] sm:$0xf0] }
 0x7ab   : > { %v8488_v2 = vadd.f32 0.5, %v8360_v24  ;;  %v6916_v63 = vpop.f32.mrf.mxu2  ;;  %v6965_v27 = vpop.f32.mrf.mxu3 }
 0x7ac   : > { %v6917_v5 = vadd.f32 %v6916_v63, %v6868_v26 }
 0x7ad   : > { %8616 = vst [vmem:[%s13919_s16 + $0x3c8] sm:$0xff] %v8488_v2 }
 0x7ae   : > { %v6966_v20 = vadd.f32 %v6965_v27, %v6917_v5  ;;  %v6823_v45 = vpop.f32.mrf.mxu0  ;;  %v6872_v22 = vpop.f32.mrf.mxu1  ;;  %v10527_v27 = vor.u32 %v11541_v50, %v10526_v43 }
 0x7af   : > { %v6824_v24 = vadd.f32 %v6823_v45, %v14043_v1  ;;  %v10750_v45 = vld [vmem:[#allocation7 + $0x510] sm:$0xf] }
 0x7b0   : > { %v11880_v3 = vpop.eup %11879  ;;  %v7993_v57 = vmul.f32 0.5, %v6966_v20  ;;  %7114 = vmatmul.bf16.gmra.mxu2 %v13775_v32  ;;  %7163 = vmatmul.bf16.gmra.mxu3 %v13777_v37 }
 0x7b1   : > { %v8241_v7 = vmul.f32 0.5, %v11880_v3  ;;  %7250 = vmatpush.bf16.msra.mxu1 %v10527_v27  ;;  %v6873_v33 = vadd.f32 %v6872_v22, %v6824_v24 }
 0x7b2   : > { %11881 = vtanh.f32 %v7993_v57  ;;  %v10751_v57 = vor.u32 %v11597_v38, %v10750_v45 }
 0x7b3   : > { %v8369_v17 = vadd.f32 0.5, %v8241_v7  ;;  %v6919_v53 = vpop.f32.mrf.mxu2  ;;  %v6968_v15 = vpop.f32.mrf.mxu3  ;;  %v11469_v7 = vld [vmem:[#allocation7 + $0x12c] sm:$0xf0] }
 0x7b4   : > { %v6920_v52 = vadd.f32 %v6919_v53, %v6871_v48  ;;  %v11006_v48 = vld [vmem:[#allocation7 + $0x710] sm:$0xf]  ;;  %7300 = vmatpush.bf16.msra.mxu2 %v10751_v57 }
 0x7b5   : > { %8497 = vst [vmem:[%s13919_s16 + $0x10] sm:$0xff] %v8369_v17  ;;  %v10239_v17 = vor.u32 %v11469_v7, %v10238_v49  ;;  %v11661_v53 = vld [vmem:[#allocation7 + $0x72c] sm:$0xf0] }
 0x7b6   : > { %v6969_v26 = vadd.f32 %v6968_v15, %v6920_v52  ;;  %v6826_v2 = vpop.f32.mrf.mxu0  ;;  %v6875_v63 = vpop.f32.mrf.mxu1  ;;  %v11007_v52 = vor.u32 %v11661_v53, %v11006_v48  ;;  %v11589_v7 = vld [vmem:[#allocation7 + $0x4ec] sm:$0xf0] }
 0x7b7   : > { %v6827_v39 = vadd.f32 %v6826_v2, %v14043_v1  ;;  %7202 = vmatpush.bf16.msra.mxu0 %v10239_v17 }
 0x7b8   : > { %v11882_v5 = vpop.eup %11881  ;;  %v8001_v46 = vmul.f32 0.5, %v6969_v26  ;;  %7349 = vmatpush.bf16.msra.mxu3 %v11007_v52  ;;  %v10206_v52 = vld [vmem:[#allocation7 + $0xd0] sm:$0xf] }
 0x7b9   : > { %v8249_v21 = vmul.f32 0.5, %v11882_v5  ;;  %7021 = vmatmul.bf16.gmra.mxu0 %v13785_v60  ;;  %7070 = vmatmul.bf16.gmra.mxu1 %v13787_v28  ;;  %v6876_v50 = vadd.f32 %v6875_v63, %v6827_v39  ;;  %v10494_v5 = vld [vmem:[#allocation7 + $0x310] sm:$0xf] }
 0x7ba   : > { %11883 = vtanh.f32 %v8001_v46  ;;  %v11533_v46 = vld [vmem:[#allocation7 + $0x32c] sm:$0xf0] }
 0x7bb   : > { %v8377_v12 = vadd.f32 0.5, %v8249_v21  ;;  %v6921_v20 = vpop.f32.mrf.mxu2  ;;  %v6970_v30 = vpop.f32.mrf.mxu3 }
 0x7bc   : > { %v6922_v44 = vadd.f32 %v6921_v20, %v6873_v33 }
 0x7bd   : > { %8505 = vst [vmem:[%s13919_s16 + $0x50] sm:$0xff] %v8377_v12 }
 0x7be   : > { %v6971_v4 = vadd.f32 %v6970_v30, %v6922_v44  ;;  %v6828_v25 = vpop.f32.mrf.mxu0  ;;  %v6877_v3 = vpop.f32.mrf.mxu1  ;;  %v10495_v30 = vor.u32 %v11533_v46, %v10494_v5 }
 0x7bf   : > { %v6829_v21 = vadd.f32 %v6828_v25, %v14043_v1  ;;  %v10718_v25 = vld [vmem:[#allocation7 + $0x4d0] sm:$0xf] }
 0x7c0   : > { %v11884_v22 = vpop.eup %11883  ;;  %v8009_v15 = vmul.f32 0.5, %v6971_v4  ;;  %7119 = vmatmul.bf16.gmra.mxu2 %v13795_v47  ;;  %7168 = vmatmul.bf16.gmra.mxu3 %v13797_v42 }
 0x7c1   : > { %v8257_v43 = vmul.f32 0.5, %v11884_v22  ;;  %7251 = vmatpush.bf16.msra.mxu1 %v10495_v30  ;;  %v6878_v38 = vadd.f32 %v6877_v3, %v6829_v21 }
 0x7c2   : > { %11885 = vtanh.f32 %v8009_v15  ;;  %v10719_v15 = vor.u32 %v11589_v7, %v10718_v25 }
 0x7c3   : > { %v8385_v24 = vadd.f32 0.5, %v8257_v43  ;;  %v6924_v26 = vpop.f32.mrf.mxu2  ;;  %v6973_v2 = vpop.f32.mrf.mxu3  ;;  %v11461_v43 = vld [vmem:[#allocation7 + $0xec] sm:$0xf0] }
 0x7c4   : > { %v6925_v27 = vadd.f32 %v6924_v26, %v6876_v50  ;;  %v10974_v50 = vld [vmem:[#allocation7 + $0x6d0] sm:$0xf]  ;;  %7301 = vmatpush.bf16.msra.mxu2 %v10719_v15 }
 0x7c5   : > { %8513 = vst [vmem:[%s13919_s16 + $0x90] sm:$0xff] %v8385_v24  ;;  %v10207_v24 = vor.u32 %v11461_v43, %v10206_v52  ;;  %v11653_v26 = vld [vmem:[#allocation7 + $0x6ec] sm:$0xf0] }
 0x7c6   : > { %v6974_v33 = vadd.f32 %v6973_v2, %v6925_v27  ;;  %v6831_v12 = vpop.f32.mrf.mxu0  ;;  %v6880_v20 = vpop.f32.mrf.mxu1  ;;  %v10975_v27 = vor.u32 %v11653_v26, %v10974_v50  ;;  %v11581_v43 = vld [vmem:[#allocation7 + $0x4ac] sm:$0xf0] }
 0x7c7   : > { %v6832_v48 = vadd.f32 %v6831_v12, %v14043_v1  ;;  %7203 = vmatpush.bf16.msra.mxu0 %v10207_v24 }
 0x7c8   : > { %v11886_v44 = vpop.eup %11885  ;;  %v8017_v45 = vmul.f32 0.5, %v6974_v33  ;;  %7350 = vmatpush.bf16.msra.mxu3 %v10975_v27  ;;  %v10174_v27 = vld [vmem:[#allocation7 + $0x90] sm:$0xf] }
 0x7c9   : > { %v8265_v63 = vmul.f32 0.5, %v11886_v44  ;;  %7026 = vmatmul.bf16.gmra.mxu0 %v13805_v35  ;;  %7075 = vmatmul.bf16.gmra.mxu1 %v13807_v23  ;;  %v6881_v46 = vadd.f32 %v6880_v20, %v6832_v48  ;;  %v10462_v44 = vld [vmem:[#allocation7 + $0x2d0] sm:$0xf] }
 0x7ca   : > { %11887 = vtanh.f32 %v8017_v45  ;;  %v11525_v45 = vld [vmem:[#allocation7 + $0x2ec] sm:$0xf0] }
 0x7cb   : > { %v8393_v39 = vadd.f32 0.5, %v8265_v63  ;;  %v6926_v4 = vpop.f32.mrf.mxu2  ;;  %v6975_v57 = vpop.f32.mrf.mxu3 }
 0x7cc   : > { %v6927_v49 = vadd.f32 %v6926_v4, %v6878_v38 }
 0x7cd   : > { %8521 = vst [vmem:[%s13919_s16 + $0xd0] sm:$0xff] %v8393_v39 }
 0x7ce   : > { %v6976_v17 = vadd.f32 %v6975_v57, %v6927_v49  ;;  %v6833_v53 = vpop.f32.mrf.mxu0  ;;  %v6882_v22 = vpop.f32.mrf.mxu1  ;;  %v10463_v57 = vor.u32 %v11525_v45, %v10462_v44 }
 0x7cf   : > { %v6834_v63 = vadd.f32 %v6833_v53, %v14043_v1  ;;  %v10686_v53 = vld [vmem:[#allocation7 + $0x490] sm:$0xf] }
 0x7d0   : > { %v11888_v3 = vpop.eup %11887  ;;  %v8025_v2 = vmul.f32 0.5, %v6976_v17  ;;  %7124 = vmatmul.bf16.gmra.mxu2 %v13815_v62  ;;  %7173 = vmatmul.bf16.gmra.mxu3 %v13817_v61 }
 0x7d1   : > { %v8273_v5 = vmul.f32 0.5, %v11888_v3  ;;  %7252 = vmatpush.bf16.msra.mxu1 %v10463_v57  ;;  %v6883_v7 = vadd.f32 %v6882_v22, %v6834_v63 }
 0x7d2   : > { %11889 = vtanh.f32 %v8025_v2  ;;  %v10687_v2 = vor.u32 %v11581_v43, %v10686_v53 }
 0x7d3   : > { %v8401_v21 = vadd.f32 0.5, %v8273_v5  ;;  %v6929_v33 = vpop.f32.mrf.mxu2  ;;  %v6978_v12 = vpop.f32.mrf.mxu3  ;;  %v11453_v5 = vld [vmem:[#allocation7 + $0xac] sm:$0xf0] }
 0x7d4   : > { %v6930_v30 = vadd.f32 %v6929_v33, %v6881_v46  ;;  %v10942_v46 = vld [vmem:[#allocation7 + $0x690] sm:$0xf]  ;;  %7302 = vmatpush.bf16.msra.mxu2 %v10687_v2 }
 0x7d5   : > { %8529 = vst [vmem:[%s13919_s16 + $0x110] sm:$0xff] %v8401_v21  ;;  %v10175_v21 = vor.u32 %v11453_v5, %v10174_v27  ;;  %v11645_v33 = vld [vmem:[#allocation7 + $0x6ac] sm:$0xf0] }
 0x7d6   : > { %v6979_v38 = vadd.f32 %v6978_v12, %v6930_v30  ;;  %v6836_v39 = vpop.f32.mrf.mxu0  ;;  %v6885_v4 = vpop.f32.mrf.mxu1  ;;  %v10943_v30 = vor.u32 %v11645_v33, %v10942_v46  ;;  %v11573_v5 = vld [vmem:[#allocation7 + $0x46c] sm:$0xf0] }
 0x7d7   : > { %v6837_v50 = vadd.f32 %v6836_v39, %v14043_v1  ;;  %7204 = vmatpush.bf16.msra.mxu0 %v10175_v21 }
 0x7d8   : > { %v11890_v49 = vpop.eup %11889  ;;  %v8033_v25 = vmul.f32 0.5, %v6979_v38  ;;  %7351 = vmatpush.bf16.msra.mxu3 %v10943_v30  ;;  %v10142_v30 = vld [vmem:[#allocation7 + $0x50] sm:$0xf] }
 0x7d9   : > { %v8281_v20 = vmul.f32 0.5, %v11890_v49  ;;  %7031 = vmatmul.bf16.gmra.mxu0 %v13825_v34  ;;  %7080 = vmatmul.bf16.gmra.mxu1 %v13827_v36  ;;  %v6886_v45 = vadd.f32 %v6885_v4, %v6837_v50  ;;  %v10430_v49 = vld [vmem:[#allocation7 + $0x290] sm:$0xf] }
 0x7da   : > { %11891 = vtanh.f32 %v8033_v25  ;;  %v11517_v25 = vld [vmem:[#allocation7 + $0x2ac] sm:$0xf0] }
 0x7db   : > { %v8409_v48 = vadd.f32 0.5, %v8281_v20  ;;  %v6931_v17 = vpop.f32.mrf.mxu2  ;;  %v6980_v15 = vpop.f32.mrf.mxu3 }
 0x7dc   : > { %v6932_v52 = vadd.f32 %v6931_v17, %v6883_v7 }
 0x7dd   : > { %8537 = vst [vmem:[%s13919_s16 + $0x150] sm:$0xff] %v8409_v48 }
 0x7de   : > { %v6981_v24 = vadd.f32 %v6980_v15, %v6932_v52  ;;  %v6838_v26 = vpop.f32.mrf.mxu0  ;;  %v6887_v3 = vpop.f32.mrf.mxu1  ;;  %v10431_v15 = vor.u32 %v11517_v25, %v10430_v49  ;;  %v10398_v49 = vld [vmem:[#allocation7 + $0x250] sm:$0xf] }
 0x7df   : > { %v6839_v20 = vadd.f32 %v6838_v26, %v14043_v1  ;;  %v10654_v26 = vld [vmem:[#allocation7 + $0x450] sm:$0xf] }
 0x7e0   : > { %v11892_v22 = vpop.eup %11891  ;;  %v8041_v12 = vmul.f32 0.5, %v6981_v24  ;;  %7129 = vmatmul.bf16.gmra.mxu2 %v13835_v10  ;;  %7178 = vmatmul.bf16.gmra.mxu3 %v13837_v11  ;;  %v11509_v25 = vld [vmem:[#allocation7 + $0x26c] sm:$0xf0] }
 0x7e1   : > { %v8289_v44 = vmul.f32 0.5, %v11892_v22  ;;  %7253 = vmatpush.bf16.msra.mxu1 %v10431_v15  ;;  %v6888_v43 = vadd.f32 %v6887_v3, %v6839_v20 }
 0x7e2   : > { %11893 = vtanh.f32 %v8041_v12  ;;  %v10655_v12 = vor.u32 %v11573_v5, %v10654_v26 }
 0x7e3   : > { %v8417_v63 = vadd.f32 0.5, %v8289_v44  ;;  %v6934_v38 = vpop.f32.mrf.mxu2  ;;  %v6983_v39 = vpop.f32.mrf.mxu3  ;;  %v11445_v44 = vld [vmem:[#allocation7 + $0x6c] sm:$0xf0] }
 0x7e4   : > { %v6935_v57 = vadd.f32 %v6934_v38, %v6886_v45  ;;  %v10910_v45 = vld [vmem:[#allocation7 + $0x650] sm:$0xf]  ;;  %7303 = vmatpush.bf16.msra.mxu2 %v10655_v12 }
 0x7e5   : > { %8545 = vst [vmem:[%s13919_s16 + $0x190] sm:$0xff] %v8417_v63  ;;  %v10143_v63 = vor.u32 %v11445_v44, %v10142_v30  ;;  %v11637_v38 = vld [vmem:[#allocation7 + $0x66c] sm:$0xf0] }
 0x7e6   : > { %v6984_v7 = vadd.f32 %v6983_v39, %v6935_v57  ;;  %v6841_v48 = vpop.f32.mrf.mxu0  ;;  %v6890_v17 = vpop.f32.mrf.mxu1  ;;  %v10911_v57 = vor.u32 %v11637_v38, %v10910_v45  ;;  %v11565_v38 = vld [vmem:[#allocation7 + $0x42c] sm:$0xf0] }
 0x7e7   : > { %v6842_v46 = vadd.f32 %v6841_v48, %v14043_v1  ;;  %7205 = vmatpush.bf16.msra.mxu0 %v10143_v63  ;;  %v10622_v63 = vld [vmem:[#allocation7 + $0x410] sm:$0xf] }
 0x7e8   : > { %v11894_v52 = vpop.eup %11893  ;;  %v8049_v53 = vmul.f32 0.5, %v6984_v7  ;;  %v10399_v7 = vor.u32 %v11509_v25, %v10398_v49  ;;  %7352 = vmatpush.bf16.msra.mxu3 %v10911_v57  ;;  %v10623_v49 = vor.u32 %v11565_v38, %v10622_v63  ;;  %v11629_v25 = vld [vmem:[#allocation7 + $0x62c] sm:$0xf0] }
 0x7e9   : > { %v8297_v4 = vmul.f32 0.5, %v11894_v52  ;;  %7036 = vmatmul.bf16.gmra.mxu0 %v13845_v56  ;;  %7085 = vmatmul.bf16.gmra.mxu1 %v13847_v19  ;;  %v6891_v48 = vadd.f32 %v6890_v17, %v6842_v46 }
 0x7ea   : > { %11895 = vtanh.f32 %v8049_v53  ;;  %7254 = vmatpush.bf16.msra.mxu1 %v10399_v7  ;;  %7304 = vmatpush.bf16.msra.mxu2 %v10623_v49 }
 0x7eb   : > { %v8425_v50 = vadd.f32 0.5, %v8297_v4  ;;  %v6936_v24 = vpop.f32.mrf.mxu2  ;;  %v6985_v2 = vpop.f32.mrf.mxu3 }
 0x7ec   : > { %v6937_v27 = vadd.f32 %v6936_v24, %v6888_v43  ;;  %v10110_v43 = vld [vmem:[#allocation7 + $0x10] sm:$0xf] }
 0x7ed   : > { %8553 = vst [vmem:[%s13919_s16 + $0x1d0] sm:$0xff] %v8425_v50  ;;  %v11437_v50 = vld [vmem:[#allocation7 + $0x2c] sm:$0xf0] }
 0x7ee   : > { %v6986_v21 = vadd.f32 %v6985_v2, %v6937_v27  ;;  %v6843_v33 = vpop.f32.mrf.mxu0  ;;  %v6892_v22 = vpop.f32.mrf.mxu1  ;;  %v10366_v24 = vld [vmem:[#allocation7 + $0x210] sm:$0xf]  ;;  %v10111_v2 = vor.u32 %v11437_v50, %v10110_v43 }
 0x7ef   : > { %v11501_v27 = vld [vmem:[#allocation7 + $0x22c] sm:$0xf0]  ;;  %v6844_v26 = vadd.f32 %v6843_v33, %v14043_v1 }
 0x7f0   : > { %v11896_v3 = vpop.eup %11895  ;;  %v8057_v39 = vmul.f32 0.5, %v6986_v21  ;;  %7134 = vmatmul.bf16.gmra.mxu2 %v13855_v9  ;;  %7183 = vmatmul.bf16.gmra.mxu3 %v13857_v51  ;;  %v10367_v30 = vor.u32 %v11501_v27, %v10366_v24 }
 0x7f1   : > { %v8305_v20 = vmul.f32 0.5, %v11896_v3  ;;  %7206 = vmatpush.bf16.msra.mxu0 %v10111_v2  ;;  %v6893_v45 = vadd.f32 %v6892_v22, %v6844_v26  ;;  %v10878_v3 = vld [vmem:[#allocation7 + $0x610] sm:$0xf] }
 0x7f2   : > { %11897 = vtanh.f32 %v8057_v39  ;;  %7255 = vmatpush.bf16.msra.mxu1 %v10367_v30  ;;  %v10879_v7 = vor.u32 %v11629_v25, %v10878_v3 }
 0x7f3   : > { %v8433_v15 = vadd.f32 0.5, %v8305_v20  ;;  %v6939_v52 = vpop.f32.mrf.mxu2  ;;  %v6988_v53 = vpop.f32.mrf.mxu3 }
 0x7f4   : > { %v6940_v4 = vadd.f32 %v6939_v52, %v6891_v48  ;;  %7353 = vmatpush.bf16.msra.mxu3 %v10879_v7 }
 0x7f5   : > { %8561 = vst [vmem:[%s13919_s16 + $0x210] sm:$0xff] %v8433_v15 }
 0x7f6   : > { %v6989_v5 = vadd.f32 %v6988_v53, %v6940_v4  ;;  %v6846_v21 = vpop.f32.mrf.mxu0  ;;  %v6895_v12 = vpop.f32.mrf.mxu1 }
 0x7f7   : > { %v6847_v48 = vadd.f32 %v6846_v21, %v14043_v1 }
 0x7f8   : > { %v11898_v17 = vpop.eup %11897  ;;  %v8065_v46 = vmul.f32 0.5, %v6989_v5 }
 0x7f9   : > { %v8313_v44 = vmul.f32 0.5, %v11898_v17  ;;  %7041 = vmatmul.bf16.gmra.mxu0 %v13865_v59  ;;  %7090 = vmatmul.bf16.gmra.mxu1 %v13867_v16  ;;  %v6896_v50 = vadd.f32 %v6895_v12, %v6847_v48 }
 0x7fa   : > { %11899 = vtanh.f32 %v8065_v46 }
 0x7fb   : > { %v8441_v33 = vadd.f32 0.5, %v8313_v44  ;;  %v6941_v39 = vpop.f32.mrf.mxu2  ;;  %v6990_v57 = vpop.f32.mrf.mxu3 }
 0x7fc   : > { %v6942_v20 = vadd.f32 %v6941_v39, %v6893_v45  ;;  %v11617_v39 = vld [vmem:[#allocation7 + $0x5d4] sm:$0xf] }
 0x7fd   : > { %8569 = vst [vmem:[%s13919_s16 + $0x250] sm:$0xff] %v8441_v33 }
 0x7fe   : > { %v6991_v15 = vadd.f32 %v6990_v57, %v6942_v20  ;;  %v6848_v52 = vpop.f32.mrf.mxu0  ;;  %v6897_v53 = vpop.f32.mrf.mxu1  ;;  %v10848_v57 = vld [vmem:[#allocation7 + $0x5f0] sm:$0xf0] }
 0x7ff   : > { %v6849_v5 = vadd.f32 %v6848_v52, %v14043_v1  ;;  %v10851_v48 = vor.u32 %v11617_v39, %v10848_v57  ;;  %v10336_v52 = vld [vmem:[#allocation7 + $0x1f0] sm:$0xf0] }
 0x800   : > { %v11900_v22 = vpop.eup %11899  ;;  %v8073_v4 = vmul.f32 0.5, %v6991_v15  ;;  %7139 = vmatmul.bf16.gmra.mxu2 %v13875_v6  ;;  %7188 = vmatmul.bf16.gmra.mxu3 %v13877_v55  ;;  %v11489_v15 = vld [vmem:[#allocation7 + $0x1d4] sm:$0xf] }
 0x801   : > { %v8321_v43 = vmul.f32 0.5, %v11900_v22  ;;  %v6898_v12 = vadd.f32 %v6897_v53, %v6849_v5  ;;  %v11681_v22 = vld [vmem:[#allocation7 + $0x7d4] sm:$0xf]  ;;  %7493 = vmatpush.bf16.msrb.mxu2 %v10851_v48 }
 0x802   : > { %11901 = vtanh.f32 %v8073_v4  ;;  %v10339_v4 = vor.u32 %v11489_v15, %v10336_v52  ;;  %v11609_v15 = vld [vmem:[#allocation7 + $0x594] sm:$0xf] }
 0x803   : > { %v8449_v24 = vadd.f32 0.5, %v8321_v43  ;;  %v6944_v2 = vpop.f32.mrf.mxu2  ;;  %v6993_v27 = vpop.f32.mrf.mxu3  ;;  %v11104_v43 = vld [vmem:[#allocation7 + $0x7f0] sm:$0xf0] }
 0x804   : > { %v6945_v26 = vadd.f32 %v6944_v2, %v6896_v50  ;;  %7395 = vmatpush.bf16.msrb.mxu0 %v10339_v4  ;;  %v10816_v52 = vld [vmem:[#allocation7 + $0x5b0] sm:$0xf0] }
 0x805   : > { %8577 = vst [vmem:[%s13919_s16 + $0x290] sm:$0xff] %v8449_v24  ;;  %v11107_v24 = vor.u32 %v11681_v22, %v11104_v43 }
 0x806   : > { %v6994_v21 = vadd.f32 %v6993_v27, %v6945_v26  ;;  %v6851_v30 = vpop.f32.mrf.mxu0  ;;  %v6900_v17 = vpop.f32.mrf.mxu1 }
 0x807   : > { %v6852_v49 = vadd.f32 %v6851_v30, %v14043_v1  ;;  %7542 = vmatpush.bf16.msrb.mxu3 %v11107_v24  ;;  %v11481_v24 = vld [vmem:[#allocation7 + $0x194] sm:$0xf] }
 0x808   : > { %v11902_v46 = vpop.eup %11901  ;;  %v8081_v44 = vmul.f32 0.5, %v6994_v21 }
 0x809   : > { %v8329_v45 = vmul.f32 0.5, %v11902_v46  ;;  %7046 = vmatmul.bf16.gmra.mxu0 %v13885_v14  ;;  %7095 = vmatmul.bf16.gmra.mxu1 %v13887_v40  ;;  %v6901_v27 = vadd.f32 %v6900_v17, %v6852_v49  ;;  %v11553_v46 = vld [vmem:[#allocation7 + $0x3d4] sm:$0xf]  ;;  %v14110_v49 = vperm.slane %v14040_v29, 3 }
 0x80a   : > { %11903 = vtanh.f32 %v8081_v44  ;;  %v10592_v44 = vld [vmem:[#allocation7 + $0x3f0] sm:$0xf0] }
 0x80b   : > { %v8457_v63 = vadd.f32 0.5, %v8329_v45  ;;  %v6946_v38 = vpop.f32.mrf.mxu2  ;;  %v6995_v3 = vpop.f32.mrf.mxu3 }
 0x80c   : > { %v6947_v33 = vadd.f32 %v6946_v38, %v6898_v12 }
 0x80d   : > { %8585 = vst [vmem:[%s13919_s16 + $0x2d0] sm:$0xff] %v8457_v63 }
 0x80e   : > { %v6996_v25 = vadd.f32 %v6995_v3, %v6947_v33  ;;  %v6853_v20 = vpop.f32.mrf.mxu0  ;;  %v6902_v7 = vpop.f32.mrf.mxu1  ;;  %v10595_v3 = vor.u32 %v11553_v46, %v10592_v44 }
 0x80f   : > { %v6854_v45 = vadd.f32 %v6853_v20, %v14043_v1 }
 0x810   : > { %v11904_v53 = vpop.eup %11903  ;;  %v8089_v50 = vmul.f32 0.5, %v6996_v25  ;;  %7144 = vmatmul.bf16.gmra.mxu2 %v13895_v0  ;;  %7193 = vmatmul.bf16.gmra.mxu3 %v13897_v58 }
 0x811   : > { %v8337_v2 = vmul.f32 0.5, %v11904_v53  ;;  %7444 = vmatpush.bf16.msrb.mxu1 %v10595_v3  ;;  %v6903_v57 = vadd.f32 %v6902_v7, %v6854_v45  ;;  %v11673_v7 = vld [vmem:[#allocation7 + $0x794] sm:$0xf] }
 0x812   : > { %11905 = vtanh.f32 %v8089_v50  ;;  %v10819_v50 = vor.u32 %v11609_v15, %v10816_v52  ;;  %v11545_v3 = vld [vmem:[#allocation7 + $0x394] sm:$0xf] }
 0x813   : > { %v8465_v26 = vadd.f32 0.5, %v8337_v2  ;;  %v6949_v5 = vpop.f32.mrf.mxu2  ;;  %v6998_v21 = vpop.f32.mrf.mxu3  ;;  %v10304_v2 = vld [vmem:[#allocation7 + $0x1b0] sm:$0xf0] }
 0x814   : > { %v6950_v30 = vadd.f32 %v6949_v5, %v6901_v27  ;;  %v10307_v27 = vor.u32 %v11481_v24, %v10304_v2  ;;  %7494 = vmatpush.bf16.msrb.mxu2 %v10819_v50  ;;  %v10784_v24 = vld [vmem:[#allocation7 + $0x570] sm:$0xf0] }
 0x815   : > { %8593 = vst [vmem:[%s13919_s16 + $0x310] sm:$0xff] %v8465_v26  ;;  %v11072_v26 = vld [vmem:[#allocation7 + $0x7b0] sm:$0xf0] }
 0x816   : > { %v6999_v12 = vadd.f32 %v6998_v21, %v6950_v30  ;;  %v7012_v63 = vpop.f32.mrf.mxu0  ;;  %v7061_v38 = vpop.f32.mrf.mxu1  ;;  %v11075_v21 = vor.u32 %v11673_v7, %v11072_v26  ;;  %7396 = vmatpush.bf16.msrb.mxu0 %v10307_v27 }
 0x817   : > { %v7013_v22 = vadd.f32 %v7012_v63, %v14110_v49 }
 0x818   : > { %v11906_v33 = vpop.eup %11905  ;;  %v8097_v39 = vmul.f32 0.5, %v6999_v12  ;;  %7543 = vmatpush.bf16.msrb.mxu3 %v11075_v21  ;;  %v10272_v21 = vld [vmem:[#allocation7 + $0x170] sm:$0xf0] }
 0x819   : > { %v8345_v17 = vmul.f32 0.5, %v11906_v33  ;;  %7207 = vmatmul.bf16.vlgmr.msra.gmra.mxu0 %v13745_v54  ;;  %7256 = vmatmul.bf16.vlgmr.msra.gmra.mxu1 %v13747_v13  ;;  %v7062_v46 = vadd.f32 %v7061_v38, %v7013_v22  ;;  %v10560_v33 = vld [vmem:[#allocation7 + $0x3b0] sm:$0xf0] }
 0x81a   : > { %11907 = vtanh.f32 %v8097_v39 }
 0x81b   : > { %v8473_v25 = vadd.f32 0.5, %v8345_v17  ;;  %v6951_v1 = vpop.f32.mrf.mxu2  ;;  %v7000_v20 = vpop.f32.mrf.mxu3 }
 0x81c   : > { %v6952_v48 = vadd.f32 %v6951_v1, %v6903_v57  ;;  %v10563_v1 = vor.u32 %v11545_v3, %v10560_v33 }
 0x81d   : > { %8601 = vst [vmem:[%s13919_s16 + $0x350] sm:$0xff] %v8473_v25 }
 0x81e   : > { %v7001_v4 = vadd.f32 %v7000_v20, %v6952_v48  ;;  %v7014_v43 = vpop.f32.mrf.mxu0  ;;  %v7063_v53 = vpop.f32.mrf.mxu1  ;;  %7445 = vmatpush.bf16.msrb.mxu1 %v10563_v1  ;;  %v11537_v1 = vld [vmem:[#allocation7 + $0x354] sm:$0xf] }
 0x81f   : > { %v7015_v39 = vadd.f32 %v7014_v43, %v14110_v49  ;;  %v11601_v43 = vld [vmem:[#allocation7 + $0x554] sm:$0xf] }
 0x820   : > { %v11908_v29 = vpop.eup %11907  ;;  %v8105_v5 = vmul.f32 0.5, %v7001_v4  ;;  %7305 = vmatmul.bf16.vlgmr.msra.gmra.mxu2 %v13755_v18  ;;  %7354 = vmatmul.bf16.vlgmr.msra.gmra.mxu3 %v13757_v8 }
 0x821   : > { %v8353_v30 = vmul.f32 0.5, %v11908_v29  ;;  %v7064_v15 = vadd.f32 %v7063_v53, %v7015_v39  ;;  %v10787_v29 = vor.u32 %v11601_v43, %v10784_v24 }
 0x822   : > { %11909 = vtanh.f32 %v8105_v5  ;;  %v11473_v5 = vld [vmem:[#allocation7 + $0x154] sm:$0xf] }
 0x823   : > { %v8481_v44 = vadd.f32 0.5, %v8353_v30  ;;  %v7110_v45 = vpop.f32.mrf.mxu2  ;;  %v7159_v12 = vpop.f32.mrf.mxu3  ;;  %v11665_v30 = vld [vmem:[#allocation7 + $0x754] sm:$0xf]  ;;  %7495 = vmatpush.bf16.msrb.mxu2 %v10787_v29 }
 0x824   : > { %v7111_v63 = vadd.f32 %v7110_v45, %v7062_v46  ;;  %v10275_v46 = vor.u32 %v11473_v5, %v10272_v21  ;;  %v10752_v5 = vld [vmem:[#allocation7 + $0x530] sm:$0xf0] }
 0x825   : > { %8609 = vst [vmem:[%s13919_s16 + $0x390] sm:$0xff] %v8481_v44  ;;  %v11040_v44 = vld [vmem:[#allocation7 + $0x770] sm:$0xf0] }
 0x826   : > { %v7160_v17 = vadd.f32 %v7159_v12, %v7111_v63  ;;  %v7017_v57 = vpop.f32.mrf.mxu0  ;;  %v7066_v25 = vpop.f32.mrf.mxu1  ;;  %v11043_v12 = vor.u32 %v11665_v30, %v11040_v44  ;;  %7397 = vmatpush.bf16.msrb.mxu0 %v10275_v46 }
 0x827   : > { %v7018_v2 = vadd.f32 %v7017_v57, %v14110_v49 }
 0x828   : > { %v11910_v20 = vpop.eup %11909  ;;  %v7986_v48 = vmul.f32 0.5, %v7160_v17  ;;  %7544 = vmatpush.bf16.msrb.mxu3 %v11043_v12  ;;  %v10240_v12 = vld [vmem:[#allocation7 + $0x130] sm:$0xf0] }
 0x829   : > { %v8361_v38 = vmul.f32 0.5, %v11910_v20  ;;  %7212 = vmatmul.bf16.gmra.mxu0 %v13765_v31  ;;  %7261 = vmatmul.bf16.gmra.mxu1 %v13767_v41  ;;  %v7067_v3 = vadd.f32 %v7066_v25, %v7018_v2  ;;  %v10528_v20 = vld [vmem:[#allocation7 + $0x370] sm:$0xf0] }
 0x82a   : > { %11911 = vtanh.f32 %v7986_v48 }
 0x82b   : > { %v8489_v52 = vadd.f32 0.5, %v8361_v38  ;;  %v7112_v22 = vpop.f32.mrf.mxu2  ;;  %v7161_v4 = vpop.f32.mrf.mxu3 }
 0x82c   : > { %v7113_v50 = vadd.f32 %v7112_v22, %v7064_v15  ;;  %v10531_v22 = vor.u32 %v11537_v1, %v10528_v20 }
 0x82d   : > { %8617 = vst [vmem:[%s13919_s16 + $0x3d0] sm:$0xff] %v8489_v52 }
 0x82e   : > { %v7162_v7 = vadd.f32 %v7161_v4, %v7113_v50  ;;  %v7019_v27 = vpop.f32.mrf.mxu0  ;;  %v7068_v26 = vpop.f32.mrf.mxu1  ;;  %7446 = vmatpush.bf16.msrb.mxu1 %v10531_v22  ;;  %v11529_v22 = vld [vmem:[#allocation7 + $0x314] sm:$0xf] }
 0x82f   : > { %v7020_v48 = vadd.f32 %v7019_v27, %v14110_v49  ;;  %v11593_v27 = vld [vmem:[#allocation7 + $0x514] sm:$0xf] }
 0x830   : > { %v11912_v53 = vpop.eup %11911  ;;  %v7994_v45 = vmul.f32 0.5, %v7162_v7  ;;  %7310 = vmatmul.bf16.gmra.mxu2 %v13775_v32  ;;  %7359 = vmatmul.bf16.gmra.mxu3 %v13777_v37 }
 0x831   : > { %v8242_v63 = vmul.f32 0.5, %v11912_v53  ;;  %v7069_v43 = vadd.f32 %v7068_v26, %v7020_v48  ;;  %v10755_v53 = vor.u32 %v11593_v27, %v10752_v5 }
 0x832   : > { %11913 = vtanh.f32 %v7994_v45  ;;  %v11465_v45 = vld [vmem:[#allocation7 + $0x114] sm:$0xf] }
 0x833   : > { %v8370_v33 = vadd.f32 0.5, %v8242_v63  ;;  %v7115_v39 = vpop.f32.mrf.mxu2  ;;  %v7164_v17 = vpop.f32.mrf.mxu3  ;;  %v11657_v63 = vld [vmem:[#allocation7 + $0x714] sm:$0xf]  ;;  %7496 = vmatpush.bf16.msrb.mxu2 %v10755_v53 }
 0x834   : > { %v7116_v57 = vadd.f32 %v7115_v39, %v7067_v3  ;;  %v10243_v3 = vor.u32 %v11465_v45, %v10240_v12  ;;  %v10720_v45 = vld [vmem:[#allocation7 + $0x4f0] sm:$0xf0] }
 0x835   : > { %8498 = vst [vmem:[%s13919_s16 + $0x18] sm:$0xff] %v8370_v33  ;;  %v11008_v33 = vld [vmem:[#allocation7 + $0x730] sm:$0xf0] }
 0x836   : > { %v7165_v38 = vadd.f32 %v7164_v17, %v7116_v57  ;;  %v7022_v15 = vpop.f32.mrf.mxu0  ;;  %v7071_v52 = vpop.f32.mrf.mxu1  ;;  %v11011_v17 = vor.u32 %v11657_v63, %v11008_v33  ;;  %7398 = vmatpush.bf16.msrb.mxu0 %v10243_v3 }
 0x837   : > { %v7023_v21 = vadd.f32 %v7022_v15, %v14110_v49 }
 0x838   : > { %v11914_v4 = vpop.eup %11913  ;;  %v8002_v50 = vmul.f32 0.5, %v7165_v38  ;;  %7545 = vmatpush.bf16.msrb.mxu3 %v11011_v17  ;;  %v10208_v17 = vld [vmem:[#allocation7 + $0xf0] sm:$0xf0] }
 0x839   : > { %v8250_v25 = vmul.f32 0.5, %v11914_v4  ;;  %7217 = vmatmul.bf16.gmra.mxu0 %v13785_v60  ;;  %7266 = vmatmul.bf16.gmra.mxu1 %v13787_v28  ;;  %v7072_v1 = vadd.f32 %v7071_v52, %v7023_v21  ;;  %v10496_v4 = vld [vmem:[#allocation7 + $0x330] sm:$0xf0] }
 0x83a   : > { %11915 = vtanh.f32 %v8002_v50 }
 0x83b   : > { %v8378_v24 = vadd.f32 0.5, %v8250_v25  ;;  %v7117_v2 = vpop.f32.mrf.mxu2  ;;  %v7166_v7 = vpop.f32.mrf.mxu3 }
 0x83c   : > { %v7118_v29 = vadd.f32 %v7117_v2, %v7069_v43  ;;  %v10499_v2 = vor.u32 %v11529_v22, %v10496_v4 }
 0x83d   : > { %8506 = vst [vmem:[%s13919_s16 + $0x58] sm:$0xff] %v8378_v24 }
 0x83e   : > { %v7167_v30 = vadd.f32 %v7166_v7, %v7118_v29  ;;  %v7024_v46 = vpop.f32.mrf.mxu0  ;;  %v7073_v44 = vpop.f32.mrf.mxu1  ;;  %7447 = vmatpush.bf16.msrb.mxu1 %v10499_v2  ;;  %v11521_v2 = vld [vmem:[#allocation7 + $0x2d4] sm:$0xf] }
 0x83f   : > { %v7025_v50 = vadd.f32 %v7024_v46, %v14110_v49  ;;  %v11585_v46 = vld [vmem:[#allocation7 + $0x4d4] sm:$0xf] }
 0x840   : > { %v11916_v26 = vpop.eup %11915  ;;  %v8010_v39 = vmul.f32 0.5, %v7167_v30  ;;  %7315 = vmatmul.bf16.gmra.mxu2 %v13795_v47  ;;  %7364 = vmatmul.bf16.gmra.mxu3 %v13797_v42 }
 0x841   : > { %v8258_v57 = vmul.f32 0.5, %v11916_v26  ;;  %v7074_v27 = vadd.f32 %v7073_v44, %v7025_v50  ;;  %v10723_v26 = vor.u32 %v11585_v46, %v10720_v45 }
 0x842   : > { %11917 = vtanh.f32 %v8010_v39  ;;  %v11457_v39 = vld [vmem:[#allocation7 + $0xd4] sm:$0xf] }
 0x843   : > { %v8386_v20 = vadd.f32 0.5, %v8258_v57  ;;  %v7120_v48 = vpop.f32.mrf.mxu2  ;;  %v7169_v38 = vpop.f32.mrf.mxu3  ;;  %v11649_v57 = vld [vmem:[#allocation7 + $0x6d4] sm:$0xf]  ;;  %7497 = vmatpush.bf16.msrb.mxu2 %v10723_v26 }
 0x844   : > { %v7121_v15 = vadd.f32 %v7120_v48, %v7072_v1  ;;  %v10211_v1 = vor.u32 %v11457_v39, %v10208_v17  ;;  %v10688_v39 = vld [vmem:[#allocation7 + $0x4b0] sm:$0xf0] }
 0x845   : > { %8514 = vst [vmem:[%s13919_s16 + $0x98] sm:$0xff] %v8386_v20  ;;  %v10976_v20 = vld [vmem:[#allocation7 + $0x6f0] sm:$0xf0] }
 0x846   : > { %v7170_v25 = vadd.f32 %v7169_v38, %v7121_v15  ;;  %v7027_v43 = vpop.f32.mrf.mxu0  ;;  %v7076_v24 = vpop.f32.mrf.mxu1  ;;  %v10979_v38 = vor.u32 %v11649_v57, %v10976_v20  ;;  %7399 = vmatpush.bf16.msrb.mxu0 %v10211_v1 }
 0x847   : > { %v7028_v12 = vadd.f32 %v7027_v43, %v14110_v49 }
 0x848   : > { %v11918_v7 = vpop.eup %11917  ;;  %v8018_v29 = vmul.f32 0.5, %v7170_v25  ;;  %7546 = vmatpush.bf16.msrb.mxu3 %v10979_v38  ;;  %v10176_v38 = vld [vmem:[#allocation7 + $0xb0] sm:$0xf0] }
 0x849   : > { %v8266_v52 = vmul.f32 0.5, %v11918_v7  ;;  %7222 = vmatmul.bf16.gmra.mxu0 %v13805_v35  ;;  %7271 = vmatmul.bf16.gmra.mxu1 %v13807_v23  ;;  %v7077_v22 = vadd.f32 %v7076_v24, %v7028_v12  ;;  %v10464_v7 = vld [vmem:[#allocation7 + $0x2f0] sm:$0xf0] }
 0x84a   : > { %11919 = vtanh.f32 %v8018_v29 }
 0x84b   : > { %v8394_v5 = vadd.f32 0.5, %v8266_v52  ;;  %v7122_v21 = vpop.f32.mrf.mxu2  ;;  %v7171_v30 = vpop.f32.mrf.mxu3 }
 0x84c   : > { %v7123_v53 = vadd.f32 %v7122_v21, %v7074_v27  ;;  %v10467_v21 = vor.u32 %v11521_v2, %v10464_v7 }
 0x84d   : > { %8522 = vst [vmem:[%s13919_s16 + $0xd8] sm:$0xff] %v8394_v5 }
 0x84e   : > { %v7172_v63 = vadd.f32 %v7171_v30, %v7123_v53  ;;  %v7029_v3 = vpop.f32.mrf.mxu0  ;;  %v7078_v33 = vpop.f32.mrf.mxu1  ;;  %7448 = vmatpush.bf16.msrb.mxu1 %v10467_v21  ;;  %v11513_v21 = vld [vmem:[#allocation7 + $0x294] sm:$0xf] }
 0x84f   : > { %v7030_v29 = vadd.f32 %v7029_v3, %v14110_v49  ;;  %v11577_v3 = vld [vmem:[#allocation7 + $0x494] sm:$0xf] }
 0x850   : > { %v11920_v44 = vpop.eup %11919  ;;  %v8026_v48 = vmul.f32 0.5, %v7172_v63  ;;  %7320 = vmatmul.bf16.gmra.mxu2 %v13815_v62  ;;  %7369 = vmatmul.bf16.gmra.mxu3 %v13817_v61 }
 0x851   : > { %v8274_v15 = vmul.f32 0.5, %v11920_v44  ;;  %v7079_v46 = vadd.f32 %v7078_v33, %v7030_v29  ;;  %v10691_v44 = vor.u32 %v11577_v3, %v10688_v39 }
 0x852   : > { %11921 = vtanh.f32 %v8026_v48  ;;  %v11449_v48 = vld [vmem:[#allocation7 + $0x94] sm:$0xf] }
 0x853   : > { %v8402_v4 = vadd.f32 0.5, %v8274_v15  ;;  %v7125_v50 = vpop.f32.mrf.mxu2  ;;  %v7174_v25 = vpop.f32.mrf.mxu3  ;;  %v11641_v15 = vld [vmem:[#allocation7 + $0x694] sm:$0xf]  ;;  %7498 = vmatpush.bf16.msrb.mxu2 %v10691_v44 }
 0x854   : > { %v7126_v43 = vadd.f32 %v7125_v50, %v7077_v22  ;;  %v10179_v22 = vor.u32 %v11449_v48, %v10176_v38  ;;  %v10656_v48 = vld [vmem:[#allocation7 + $0x470] sm:$0xf0] }
 0x855   : > { %8530 = vst [vmem:[%s13919_s16 + $0x118] sm:$0xff] %v8402_v4  ;;  %v10944_v4 = vld [vmem:[#allocation7 + $0x6b0] sm:$0xf0] }
 0x856   : > { %v7175_v52 = vadd.f32 %v7174_v25, %v7126_v43  ;;  %v7032_v27 = vpop.f32.mrf.mxu0  ;;  %v7081_v5 = vpop.f32.mrf.mxu1  ;;  %v10947_v25 = vor.u32 %v11641_v15, %v10944_v4  ;;  %7400 = vmatpush.bf16.msrb.mxu0 %v10179_v22 }
 0x857   : > { %v7033_v17 = vadd.f32 %v7032_v27, %v14110_v49 }
 0x858   : > { %v11922_v30 = vpop.eup %11921  ;;  %v8034_v53 = vmul.f32 0.5, %v7175_v52  ;;  %7547 = vmatpush.bf16.msrb.mxu3 %v10947_v25  ;;  %v10144_v25 = vld [vmem:[#allocation7 + $0x70] sm:$0xf0] }
 0x859   : > { %v8282_v24 = vmul.f32 0.5, %v11922_v30  ;;  %7227 = vmatmul.bf16.gmra.mxu0 %v13825_v34  ;;  %7276 = vmatmul.bf16.gmra.mxu1 %v13827_v36  ;;  %v7082_v2 = vadd.f32 %v7081_v5, %v7033_v17  ;;  %v10432_v30 = vld [vmem:[#allocation7 + $0x2b0] sm:$0xf0] }
 0x85a   : > { %11923 = vtanh.f32 %v8034_v53 }
 0x85b   : > { %v8410_v45 = vadd.f32 0.5, %v8282_v24  ;;  %v7127_v12 = vpop.f32.mrf.mxu2  ;;  %v7176_v63 = vpop.f32.mrf.mxu3 }
 0x85c   : > { %v7128_v26 = vadd.f32 %v7127_v12, %v7079_v46  ;;  %v10435_v12 = vor.u32 %v11513_v21, %v10432_v30  ;;  %v10400_v21 = vld [vmem:[#allocation7 + $0x270] sm:$0xf0] }
 0x85d   : > { %8538 = vst [vmem:[%s13919_s16 + $0x158] sm:$0xff] %v8410_v45 }
 0x85e   : > { %v7177_v57 = vadd.f32 %v7176_v63, %v7128_v26  ;;  %v7034_v1 = vpop.f32.mrf.mxu0  ;;  %v7083_v20 = vpop.f32.mrf.mxu1  ;;  %7449 = vmatpush.bf16.msrb.mxu1 %v10435_v12 }
 0x85f   : > { %v7035_v53 = vadd.f32 %v7034_v1, %v14110_v49  ;;  %v11569_v1 = vld [vmem:[#allocation7 + $0x454] sm:$0xf] }
 0x860   : > { %v11924_v33 = vpop.eup %11923  ;;  %v8042_v50 = vmul.f32 0.5, %v7177_v57  ;;  %7325 = vmatmul.bf16.gmra.mxu2 %v13835_v10  ;;  %7374 = vmatmul.bf16.gmra.mxu3 %v13837_v11 }
 0x861   : > { %v8290_v43 = vmul.f32 0.5, %v11924_v33  ;;  %v7084_v3 = vadd.f32 %v7083_v20, %v7035_v53  ;;  %v10659_v33 = vor.u32 %v11569_v1, %v10656_v48 }
 0x862   : > { %11925 = vtanh.f32 %v8042_v50  ;;  %v11441_v50 = vld [vmem:[#allocation7 + $0x54] sm:$0xf] }
 0x863   : > { %v8418_v7 = vadd.f32 0.5, %v8290_v43  ;;  %v7130_v29 = vpop.f32.mrf.mxu2  ;;  %v7179_v52 = vpop.f32.mrf.mxu3  ;;  %v11633_v43 = vld [vmem:[#allocation7 + $0x654] sm:$0xf]  ;;  %7499 = vmatpush.bf16.msrb.mxu2 %v10659_v33 }
 0x864   : > { %v7131_v27 = vadd.f32 %v7130_v29, %v7082_v2  ;;  %v10147_v2 = vor.u32 %v11441_v50, %v10144_v25 }
 0x865   : > { %8546 = vst [vmem:[%s13919_s16 + $0x198] sm:$0xff] %v8418_v7  ;;  %v10912_v7 = vld [vmem:[#allocation7 + $0x670] sm:$0xf0] }
 0x866   : > { %v7180_v24 = vadd.f32 %v7179_v52, %v7131_v27  ;;  %v7037_v46 = vpop.f32.mrf.mxu0  ;;  %v7086_v45 = vpop.f32.mrf.mxu1  ;;  %v10915_v52 = vor.u32 %v11633_v43, %v10912_v7  ;;  %v11505_v27 = vld [vmem:[#allocation7 + $0x254] sm:$0xf]  ;;  %7401 = vmatpush.bf16.msrb.mxu0 %v10147_v2 }
 0x867   : > { %v7038_v38 = vadd.f32 %v7037_v46, %v14110_v49  ;;  %v10403_v53 = vor.u32 %v11505_v27, %v10400_v21  ;;  %v11561_v43 = vld [vmem:[#allocation7 + $0x414] sm:$0xf] }
 0x868   : > { %v11926_v63 = vpop.eup %11925  ;;  %v8050_v26 = vmul.f32 0.5, %v7180_v24  ;;  %7548 = vmatpush.bf16.msrb.mxu3 %v10915_v52  ;;  %v10624_v2 = vld [vmem:[#allocation7 + $0x430] sm:$0xf0] }
 0x869   : > { %v8298_v5 = vmul.f32 0.5, %v11926_v63  ;;  %7232 = vmatmul.bf16.gmra.mxu0 %v13845_v56  ;;  %7281 = vmatmul.bf16.gmra.mxu1 %v13847_v19  ;;  %v7087_v24 = vadd.f32 %v7086_v45, %v7038_v38  ;;  %v11625_v7 = vld [vmem:[#allocation7 + $0x614] sm:$0xf]  ;;  %v10627_v52 = vor.u32 %v11561_v43, %v10624_v2 }
 0x86a   : > { %11927 = vtanh.f32 %v8050_v26  ;;  %7450 = vmatpush.bf16.msrb.mxu1 %v10403_v53  ;;  %v10880_v27 = vld [vmem:[#allocation7 + $0x630] sm:$0xf0] }
 0x86b   : > { %v8426_v39 = vadd.f32 0.5, %v8298_v5  ;;  %v7132_v17 = vpop.f32.mrf.mxu2  ;;  %v7181_v57 = vpop.f32.mrf.mxu3  ;;  %v11433_v5 = vld [vmem:[#allocation7 + $0x14] sm:$0xf]  ;;  %7500 = vmatpush.bf16.msrb.mxu2 %v10627_v52 }
 0x86c   : > { %v7133_v44 = vadd.f32 %v7132_v17, %v7084_v3  ;;  %v10112_v3 = vld [vmem:[#allocation7 + $0x30] sm:$0xf0] }
 0x86d   : > { %8554 = vst [vmem:[%s13919_s16 + $0x1d8] sm:$0xff] %v8426_v39  ;;  %v11497_v39 = vld [vmem:[#allocation7 + $0x214] sm:$0xf]  ;;  %v10115_v17 = vor.u32 %v11433_v5, %v10112_v3 }
 0x86e   : > { %v7182_v15 = vadd.f32 %v7181_v57, %v7133_v44  ;;  %v7039_v22 = vpop.f32.mrf.mxu0  ;;  %v7088_v4 = vpop.f32.mrf.mxu1  ;;  %v10368_v57 = vld [vmem:[#allocation7 + $0x230] sm:$0xf0] }
 0x86f   : > { %v7040_v44 = vadd.f32 %v7039_v22, %v14110_v49  ;;  %v10371_v33 = vor.u32 %v11497_v39, %v10368_v57  ;;  %7402 = vmatpush.bf16.msrb.mxu0 %v10115_v17 }
 0x870   : > { %v11928_v20 = vpop.eup %11927  ;;  %v8058_v29 = vmul.f32 0.5, %v7182_v15  ;;  %7330 = vmatmul.bf16.gmra.mxu2 %v13855_v9  ;;  %7379 = vmatmul.bf16.gmra.mxu3 %v13857_v51 }
 0x871   : > { %v8306_v30 = vmul.f32 0.5, %v11928_v20  ;;  %7451 = vmatpush.bf16.msrb.mxu1 %v10371_v33  ;;  %v7089_v25 = vadd.f32 %v7088_v4, %v7040_v44 }
 0x872   : > { %11929 = vtanh.f32 %v8058_v29 }
 0x873   : > { %v8434_v46 = vadd.f32 0.5, %v8306_v30  ;;  %v7135_v12 = vpop.f32.mrf.mxu2  ;;  %v7184_v63 = vpop.f32.mrf.mxu3  ;;  %v10883_v30 = vor.u32 %v11625_v7, %v10880_v27 }
 0x874   : > { %v7136_v26 = vadd.f32 %v7135_v12, %v7087_v24 }
 0x875   : > { %8562 = vst [vmem:[%s13919_s16 + $0x218] sm:$0xff] %v8434_v46  ;;  %7549 = vmatpush.bf16.msrb.mxu3 %v10883_v30 }
 0x876   : > { %v7185_v1 = vadd.f32 %v7184_v63, %v7136_v26  ;;  %v7042_v48 = vpop.f32.mrf.mxu0  ;;  %v7091_v15 = vpop.f32.mrf.mxu1 }
 0x877   : > { %v7043_v53 = vadd.f32 %v7042_v48, %v14110_v49 }
 0x878   : > { %v11930_v45 = vpop.eup %11929  ;;  %v8066_v38 = vmul.f32 0.5, %v7185_v1 }
 0x879   : > { %v8314_v50 = vmul.f32 0.5, %v11930_v45  ;;  %7237 = vmatmul.bf16.gmra.mxu0 %v13865_v59  ;;  %7286 = vmatmul.bf16.gmra.mxu1 %v13867_v16  ;;  %v7092_v5 = vadd.f32 %v7091_v15, %v7043_v53  ;;  %v10342_v53 = vld [vmem:[#allocation7 + $0x1d8] sm:$0xf] }
 0x87a   : > { %11931 = vtanh.f32 %v8066_v38 }
 0x87b   : > { %v8442_v22 = vadd.f32 0.5, %v8314_v50  ;;  %v7137_v20 = vpop.f32.mrf.mxu2  ;;  %v7186_v29 = vpop.f32.mrf.mxu3 }
 0x87c   : > { %v7138_v21 = vadd.f32 %v7137_v20, %v7089_v25  ;;  %v11622_v20 = vld [vmem:[#allocation7 + $0x5f4] sm:$0xf0] }
 0x87d   : > { %8570 = vst [vmem:[%s13919_s16 + $0x258] sm:$0xff] %v8442_v22  ;;  %v10854_v22 = vld [vmem:[#allocation7 + $0x5d8] sm:$0xf] }
 0x87e   : > { %v7187_v24 = vadd.f32 %v7186_v29, %v7138_v21  ;;  %v7044_v46 = vpop.f32.mrf.mxu0  ;;  %v7093_v12 = vpop.f32.mrf.mxu1  ;;  %v10855_v30 = vor.u32 %v11622_v20, %v10854_v22  ;;  %v14176_v20 = vld [vmem:[#allocation8 + $0x9] sm:$0xff] }
 0x87f   : > { %v7045_v44 = vadd.f32 %v7044_v46, %v14110_v49  ;;  %v11110_v46 = vld [vmem:[#allocation7 + $0x7d8] sm:$0xf] }
 0x880   : > { %v11932_v4 = vpop.eup %11931  ;;  %v8074_v63 = vmul.f32 0.5, %v7187_v24  ;;  %7335 = vmatmul.bf16.gmra.mxu2 %v13875_v6  ;;  %7384 = vmatmul.bf16.gmra.mxu3 %v13877_v55  ;;  %v11494_v24 = vld [vmem:[#allocation7 + $0x1f4] sm:$0xf0] }
 0x881   : > { %v8322_v26 = vmul.f32 0.5, %v11932_v4  ;;  %v7094_v15 = vadd.f32 %v7093_v12, %v7045_v44  ;;  %v10343_v4 = vor.u32 %v11494_v24, %v10342_v53  ;;  %7689 = vmatpush.bf16.msra.mxu2 %v10855_v30  ;;  %v10822_v53 = vld [vmem:[#allocation7 + $0x598] sm:$0xf] }
 0x882   : > { %11933 = vtanh.f32 %v8074_v63  ;;  %v11686_v63 = vld [vmem:[#allocation7 + $0x7f4] sm:$0xf0] }
 0x883   : > { %v8450_v3 = vadd.f32 0.5, %v8322_v26  ;;  %v7140_v39 = vpop.f32.mrf.mxu2  ;;  %v7189_v17 = vpop.f32.mrf.mxu3  ;;  %7591 = vmatpush.bf16.msra.mxu0 %v10343_v4  ;;  %v11614_v24 = vld [vmem:[#allocation7 + $0x5b4] sm:$0xf0] }
 0x884   : > { %v7141_v57 = vadd.f32 %v7140_v39, %v7092_v5  ;;  %v11111_v5 = vor.u32 %v11686_v63, %v11110_v46 }
 0x885   : > { %8578 = vst [vmem:[%s13919_s16 + $0x298] sm:$0xff] %v8450_v3 }
 0x886   : > { %v7190_v1 = vadd.f32 %v7189_v17, %v7141_v57  ;;  %v7047_v48 = vpop.f32.mrf.mxu0  ;;  %v7096_v33 = vpop.f32.mrf.mxu1  ;;  %7738 = vmatpush.bf16.msra.mxu3 %v11111_v5  ;;  %v11486_v5 = vld [vmem:[#allocation7 + $0x1b4] sm:$0xf0] }
 0x887   : > { %v7048_v29 = vadd.f32 %v7047_v48, %v14110_v49  ;;  %v10598_v48 = vld [vmem:[#allocation7 + $0x3d8] sm:$0xf] }
 0x888   : > { %v11934_v45 = vpop.eup %11933  ;;  %v8082_v38 = vmul.f32 0.5, %v7190_v1 }
 0x889   : > { %v8330_v50 = vmul.f32 0.5, %v11934_v45  ;;  %7242 = vmatmul.bf16.gmra.mxu0 %v13885_v14  ;;  %7291 = vmatmul.bf16.gmra.mxu1 %v13887_v40  ;;  %v7097_v39 = vadd.f32 %v7096_v33, %v7048_v29  ;;  %v11558_v45 = vld [vmem:[#allocation7 + $0x3f4] sm:$0xf0]  ;;  %v14179_v29 = vperm.slane %v14176_v20, 4 }
 0x88a   : > { %11935 = vtanh.f32 %v8082_v38 }
 0x88b   : > { %v8458_v25 = vadd.f32 0.5, %v8330_v50  ;;  %v7142_v43 = vpop.f32.mrf.mxu2  ;;  %v7191_v2 = vpop.f32.mrf.mxu3 }
 0x88c   : > { %v7143_v7 = vadd.f32 %v7142_v43, %v7094_v15  ;;  %v10599_v43 = vor.u32 %v11558_v45, %v10598_v48 }
 0x88d   : > { %8586 = vst [vmem:[%s13919_s16 + $0x2d8] sm:$0xff] %v8458_v25 }
 0x88e   : > { %v7192_v52 = vadd.f32 %v7191_v2, %v7143_v7  ;;  %v7049_v27 = vpop.f32.mrf.mxu0  ;;  %v7098_v21 = vpop.f32.mrf.mxu1  ;;  %7640 = vmatpush.bf16.msra.mxu1 %v10599_v43 }
 0x88f   : > { %v7050_v38 = vadd.f32 %v7049_v27, %v14110_v49 }
 0x890   : > { %v11936_v12 = vpop.eup %11935  ;;  %v8090_v26 = vmul.f32 0.5, %v7192_v52  ;;  %7340 = vmatmul.bf16.gmra.mxu2 %v13895_v0  ;;  %7389 = vmatmul.bf16.gmra.mxu3 %v13897_v58 }
 0x891   : > { %v8338_v3 = vmul.f32 0.5, %v11936_v12  ;;  %v7099_v22 = vadd.f32 %v7098_v21, %v7050_v38  ;;  %v10310_v21 = vld [vmem:[#allocation7 + $0x198] sm:$0xf] }
 0x892   : > { %11937 = vtanh.f32 %v8090_v26  ;;  %v10823_v26 = vor.u32 %v11614_v24, %v10822_v53 }
 0x893   : > { %v8466_v17 = vadd.f32 0.5, %v8338_v3  ;;  %v7145_v57 = vpop.f32.mrf.mxu2  ;;  %v7194_v44 = vpop.f32.mrf.mxu3  ;;  %v11078_v3 = vld [vmem:[#allocation7 + $0x798] sm:$0xf] }
 0x894   : > { %v7146_v1 = vadd.f32 %v7145_v57, %v7097_v39  ;;  %v10311_v39 = vor.u32 %v11486_v5, %v10310_v21  ;;  %7690 = vmatpush.bf16.msra.mxu2 %v10823_v26  ;;  %v11606_v5 = vld [vmem:[#allocation7 + $0x574] sm:$0xf0] }
 0x895   : > { %8594 = vst [vmem:[%s13919_s16 + $0x318] sm:$0xff] %v8466_v17  ;;  %v11678_v17 = vld [vmem:[#allocation7 + $0x7b4] sm:$0xf0] }
 0x896   : > { %v7195_v50 = vadd.f32 %v7194_v44, %v7146_v1  ;;  %v7208_v15 = vpop.f32.mrf.mxu0  ;;  %v7257_v25 = vpop.f32.mrf.mxu1  ;;  %v11079_v1 = vor.u32 %v11678_v17, %v11078_v3  ;;  %7592 = vmatpush.bf16.msra.mxu0 %v10311_v39 }
 0x897   : > { %v7209_v46 = vadd.f32 %v7208_v15, %v14179_v29 }
 0x898   : > { %v11938_v2 = vpop.eup %11937  ;;  %v8098_v7 = vmul.f32 0.5, %v7195_v50  ;;  %7739 = vmatpush.bf16.msra.mxu3 %v11079_v1  ;;  %v10278_v1 = vld [vmem:[#allocation7 + $0x158] sm:$0xf] }
 0x899   : > { %v8346_v33 = vmul.f32 0.5, %v11938_v2  ;;  %7403 = vmatmul.bf16.vlgmr.msrb.gmra.mxu0 %v13745_v54  ;;  %7452 = vmatmul.bf16.vlgmr.msrb.gmra.mxu1 %v13747_v13  ;;  %v7258_v45 = vadd.f32 %v7257_v25, %v7209_v46  ;;  %v10566_v2 = vld [vmem:[#allocation7 + $0x398] sm:$0xf] }
 0x89a   : > { %11939 = vtanh.f32 %v8098_v7  ;;  %v11550_v7 = vld [vmem:[#allocation7 + $0x3b4] sm:$0xf0] }
 0x89b   : > { %v8474_v49 = vadd.f32 0.5, %v8346_v33  ;;  %v7147_v52 = vpop.f32.mrf.mxu2  ;;  %v7196_v27 = vpop.f32.mrf.mxu3 }
 0x89c   : > { %v7148_v30 = vadd.f32 %v7147_v52, %v7099_v22 }
 0x89d   : > { %8602 = vst [vmem:[%s13919_s16 + $0x358] sm:$0xff] %v8474_v49 }
 0x89e   : > { %v7197_v4 = vadd.f32 %v7196_v27, %v7148_v30  ;;  %v7210_v63 = vpop.f32.mrf.mxu0  ;;  %v7259_v12 = vpop.f32.mrf.mxu1  ;;  %v10567_v27 = vor.u32 %v11550_v7, %v10566_v2 }
 0x89f   : > { %v7211_v33 = vadd.f32 %v7210_v63, %v14179_v29  ;;  %v10790_v63 = vld [vmem:[#allocation7 + $0x558] sm:$0xf] }
 0x8a0   : > { %v11940_v57 = vpop.eup %11939  ;;  %v8106_v44 = vmul.f32 0.5, %v7197_v4  ;;  %7501 = vmatmul.bf16.vlgmr.msrb.gmra.mxu2 %v13755_v18  ;;  %7550 = vmatmul.bf16.vlgmr.msrb.gmra.mxu3 %v13757_v8 }
 0x8a1   : > { %v8354_v48 = vmul.f32 0.5, %v11940_v57  ;;  %7641 = vmatpush.bf16.msra.mxu1 %v10567_v27  ;;  %v7260_v24 = vadd.f32 %v7259_v12, %v7211_v33 }
 0x8a2   : > { %11941 = vtanh.f32 %v8106_v44  ;;  %v10791_v44 = vor.u32 %v11606_v5, %v10790_v63 }
 0x8a3   : > { %v8482_v38 = vadd.f32 0.5, %v8354_v48  ;;  %v7306_v50 = vpop.f32.mrf.mxu2  ;;  %v7355_v15 = vpop.f32.mrf.mxu3  ;;  %v11478_v48 = vld [vmem:[#allocation7 + $0x174] sm:$0xf0] }
 0x8a4   : > { %v7307_v43 = vadd.f32 %v7306_v50, %v7258_v45  ;;  %v11046_v45 = vld [vmem:[#allocation7 + $0x758] sm:$0xf]  ;;  %7691 = vmatpush.bf16.msra.mxu2 %v10791_v44 }
 0x8a5   : > { %8610 = vst [vmem:[%s13919_s16 + $0x398] sm:$0xff] %v8482_v38  ;;  %v10279_v38 = vor.u32 %v11478_v48, %v10278_v1  ;;  %v11670_v50 = vld [vmem:[#allocation7 + $0x774] sm:$0xf0] }
 0x8a6   : > { %v7356_v22 = vadd.f32 %v7355_v15, %v7307_v43  ;;  %v7213_v49 = vpop.f32.mrf.mxu0  ;;  %v7262_v52 = vpop.f32.mrf.mxu1  ;;  %v11047_v43 = vor.u32 %v11670_v50, %v11046_v45  ;;  %v11598_v48 = vld [vmem:[#allocation7 + $0x534] sm:$0xf0] }
 0x8a7   : > { %v7214_v3 = vadd.f32 %v7213_v49, %v14179_v29  ;;  %7593 = vmatpush.bf16.msra.mxu0 %v10279_v38 }
 0x8a8   : > { %v11942_v30 = vpop.eup %11941  ;;  %v7987_v53 = vmul.f32 0.5, %v7356_v22  ;;  %7740 = vmatpush.bf16.msra.mxu3 %v11047_v43  ;;  %v10246_v43 = vld [vmem:[#allocation7 + $0x118] sm:$0xf] }
 0x8a9   : > { %v8362_v25 = vmul.f32 0.5, %v11942_v30  ;;  %7408 = vmatmul.bf16.gmra.mxu0 %v13765_v31  ;;  %7457 = vmatmul.bf16.gmra.mxu1 %v13767_v41  ;;  %v7263_v7 = vadd.f32 %v7262_v52, %v7214_v3  ;;  %v10534_v30 = vld [vmem:[#allocation7 + $0x358] sm:$0xf] }
 0x8aa   : > { %11943 = vtanh.f32 %v7987_v53  ;;  %v11542_v53 = vld [vmem:[#allocation7 + $0x374] sm:$0xf0] }
 0x8ab   : > { %v8490_v46 = vadd.f32 0.5, %v8362_v25  ;;  %v7308_v4 = vpop.f32.mrf.mxu2  ;;  %v7357_v26 = vpop.f32.mrf.mxu3 }
 0x8ac   : > { %v7309_v21 = vadd.f32 %v7308_v4, %v7260_v24 }
 0x8ad   : > { %8618 = vst [vmem:[%s13919_s16 + $0x3d8] sm:$0xff] %v8490_v46 }
 0x8ae   : > { %v7358_v39 = vadd.f32 %v7357_v26, %v7309_v21  ;;  %v7215_v17 = vpop.f32.mrf.mxu0  ;;  %v7264_v57 = vpop.f32.mrf.mxu1  ;;  %v10535_v26 = vor.u32 %v11542_v53, %v10534_v30 }
 0x8af   : > { %v7216_v25 = vadd.f32 %v7215_v17, %v14179_v29  ;;  %v10758_v17 = vld [vmem:[#allocation7 + $0x518] sm:$0xf] }
 0x8b0   : > { %v11944_v12 = vpop.eup %11943  ;;  %v7995_v15 = vmul.f32 0.5, %v7358_v39  ;;  %7506 = vmatmul.bf16.gmra.mxu2 %v13775_v32  ;;  %7555 = vmatmul.bf16.gmra.mxu3 %v13777_v37 }
 0x8b1   : > { %v8243_v2 = vmul.f32 0.5, %v11944_v12  ;;  %7642 = vmatpush.bf16.msra.mxu1 %v10535_v26  ;;  %v7265_v5 = vadd.f32 %v7264_v57, %v7216_v25 }
 0x8b2   : > { %11945 = vtanh.f32 %v7995_v15  ;;  %v10759_v15 = vor.u32 %v11598_v48, %v10758_v17 }
 0x8b3   : > { %v8371_v33 = vadd.f32 0.5, %v8243_v2  ;;  %v7311_v22 = vpop.f32.mrf.mxu2  ;;  %v7360_v49 = vpop.f32.mrf.mxu3  ;;  %v11470_v2 = vld [vmem:[#allocation7 + $0x134] sm:$0xf0] }
 0x8b4   : > { %v7312_v27 = vadd.f32 %v7311_v22, %v7263_v7  ;;  %v11014_v7 = vld [vmem:[#allocation7 + $0x718] sm:$0xf]  ;;  %7692 = vmatpush.bf16.msra.mxu2 %v10759_v15 }
 0x8b5   : > { %8499 = vst [vmem:[%s13919_s16 + $0x20] sm:$0xff] %v8371_v33  ;;  %v10247_v33 = vor.u32 %v11470_v2, %v10246_v43  ;;  %v11662_v22 = vld [vmem:[#allocation7 + $0x734] sm:$0xf0] }
 0x8b6   : > { %v7361_v24 = vadd.f32 %v7360_v49, %v7312_v27  ;;  %v7218_v46 = vpop.f32.mrf.mxu0  ;;  %v7267_v4 = vpop.f32.mrf.mxu1  ;;  %v11015_v27 = vor.u32 %v11662_v22, %v11014_v7  ;;  %v11590_v2 = vld [vmem:[#allocation7 + $0x4f4] sm:$0xf0] }
 0x8b7   : > { %v7219_v45 = vadd.f32 %v7218_v46, %v14179_v29  ;;  %7594 = vmatpush.bf16.msra.mxu0 %v10247_v33 }
 0x8b8   : > { %v11946_v21 = vpop.eup %11945  ;;  %v8003_v63 = vmul.f32 0.5, %v7361_v24  ;;  %7741 = vmatpush.bf16.msra.mxu3 %v11015_v27  ;;  %v10214_v27 = vld [vmem:[#allocation7 + $0xd8] sm:$0xf] }
 0x8b9   : > { %v8251_v52 = vmul.f32 0.5, %v11946_v21  ;;  %7413 = vmatmul.bf16.gmra.mxu0 %v13785_v60  ;;  %7462 = vmatmul.bf16.gmra.mxu1 %v13787_v28  ;;  %v7268_v53 = vadd.f32 %v7267_v4, %v7219_v45  ;;  %v10502_v21 = vld [vmem:[#allocation7 + $0x318] sm:$0xf] }
 0x8ba   : > { %11947 = vtanh.f32 %v8003_v63  ;;  %v11534_v63 = vld [vmem:[#allocation7 + $0x334] sm:$0xf0] }
 0x8bb   : > { %v8379_v3 = vadd.f32 0.5, %v8251_v52  ;;  %v7313_v39 = vpop.f32.mrf.mxu2  ;;  %v7362_v44 = vpop.f32.mrf.mxu3 }
 0x8bc   : > { %v7314_v1 = vadd.f32 %v7313_v39, %v7265_v5 }
 0x8bd   : > { %8507 = vst [vmem:[%s13919_s16 + $0x60] sm:$0xff] %v8379_v3 }
 0x8be   : > { %v7363_v38 = vadd.f32 %v7362_v44, %v7314_v1  ;;  %v7220_v50 = vpop.f32.mrf.mxu0  ;;  %v7269_v12 = vpop.f32.mrf.mxu1  ;;  %v10503_v44 = vor.u32 %v11534_v63, %v10502_v21 }
 0x8bf   : > { %v7221_v52 = vadd.f32 %v7220_v50, %v14179_v29  ;;  %v10726_v50 = vld [vmem:[#allocation7 + $0x4d8] sm:$0xf] }
 0x8c0   : > { %v11948_v57 = vpop.eup %11947  ;;  %v8011_v49 = vmul.f32 0.5, %v7363_v38  ;;  %7511 = vmatmul.bf16.gmra.mxu2 %v13795_v47  ;;  %7560 = vmatmul.bf16.gmra.mxu3 %v13797_v42 }
 0x8c1   : > { %v8259_v30 = vmul.f32 0.5, %v11948_v57  ;;  %7643 = vmatpush.bf16.msra.mxu1 %v10503_v44  ;;  %v7270_v48 = vadd.f32 %v7269_v12, %v7221_v52 }
 0x8c2   : > { %11949 = vtanh.f32 %v8011_v49  ;;  %v10727_v49 = vor.u32 %v11590_v2, %v10726_v50 }
 0x8c3   : > { %v8387_v25 = vadd.f32 0.5, %v8259_v30  ;;  %v7316_v24 = vpop.f32.mrf.mxu2  ;;  %v7365_v46 = vpop.f32.mrf.mxu3  ;;  %v11462_v30 = vld [vmem:[#allocation7 + $0xf4] sm:$0xf0] }
 0x8c4   : > { %v7317_v26 = vadd.f32 %v7316_v24, %v7268_v53  ;;  %v10982_v53 = vld [vmem:[#allocation7 + $0x6d8] sm:$0xf]  ;;  %7693 = vmatpush.bf16.msra.mxu2 %v10727_v49 }
 0x8c5   : > { %8515 = vst [vmem:[%s13919_s16 + $0xa0] sm:$0xff] %v8387_v25  ;;  %v10215_v25 = vor.u32 %v11462_v30, %v10214_v27  ;;  %v11654_v24 = vld [vmem:[#allocation7 + $0x6f4] sm:$0xf0] }
 0x8c6   : > { %v7366_v5 = vadd.f32 %v7365_v46, %v7317_v26  ;;  %v7223_v3 = vpop.f32.mrf.mxu0  ;;  %v7272_v39 = vpop.f32.mrf.mxu1  ;;  %v10983_v26 = vor.u32 %v11654_v24, %v10982_v53  ;;  %v11582_v30 = vld [vmem:[#allocation7 + $0x4b4] sm:$0xf0] }
 0x8c7   : > { %v7224_v7 = vadd.f32 %v7223_v3, %v14179_v29  ;;  %7595 = vmatpush.bf16.msra.mxu0 %v10215_v25 }
 0x8c8   : > { %v11950_v1 = vpop.eup %11949  ;;  %v8019_v17 = vmul.f32 0.5, %v7366_v5  ;;  %7742 = vmatpush.bf16.msra.mxu3 %v10983_v26  ;;  %v10182_v26 = vld [vmem:[#allocation7 + $0x98] sm:$0xf] }
 0x8c9   : > { %v8267_v4 = vmul.f32 0.5, %v11950_v1  ;;  %7418 = vmatmul.bf16.gmra.mxu0 %v13805_v35  ;;  %7467 = vmatmul.bf16.gmra.mxu1 %v13807_v23  ;;  %v7273_v63 = vadd.f32 %v7272_v39, %v7224_v7  ;;  %v10470_v1 = vld [vmem:[#allocation7 + $0x2d8] sm:$0xf] }
 0x8ca   : > { %11951 = vtanh.f32 %v8019_v17  ;;  %v11526_v17 = vld [vmem:[#allocation7 + $0x2f4] sm:$0xf0] }
 0x8cb   : > { %v8395_v45 = vadd.f32 0.5, %v8267_v4  ;;  %v7318_v38 = vpop.f32.mrf.mxu2  ;;  %v7367_v15 = vpop.f32.mrf.mxu3 }
 0x8cc   : > { %v7319_v43 = vadd.f32 %v7318_v38, %v7270_v48 }
 0x8cd   : > { %8523 = vst [vmem:[%s13919_s16 + $0xe0] sm:$0xff] %v8395_v45 }
 0x8ce   : > { %v7368_v33 = vadd.f32 %v7367_v15, %v7319_v43  ;;  %v7225_v22 = vpop.f32.mrf.mxu0  ;;  %v7274_v57 = vpop.f32.mrf.mxu1  ;;  %v10471_v15 = vor.u32 %v11526_v17, %v10470_v1 }
 0x8cf   : > { %v7226_v4 = vadd.f32 %v7225_v22, %v14179_v29  ;;  %v10694_v22 = vld [vmem:[#allocation7 + $0x498] sm:$0xf] }
 0x8d0   : > { %v11952_v12 = vpop.eup %11951  ;;  %v8027_v46 = vmul.f32 0.5, %v7368_v33  ;;  %7516 = vmatmul.bf16.gmra.mxu2 %v13815_v62  ;;  %7565 = vmatmul.bf16.gmra.mxu3 %v13817_v61 }
 0x8d1   : > { %v8275_v21 = vmul.f32 0.5, %v11952_v12  ;;  %7644 = vmatpush.bf16.msra.mxu1 %v10471_v15  ;;  %v7275_v2 = vadd.f32 %v7274_v57, %v7226_v4 }
 0x8d2   : > { %11953 = vtanh.f32 %v8027_v46  ;;  %v10695_v46 = vor.u32 %v11582_v30, %v10694_v22 }
 0x8d3   : > { %v8403_v52 = vadd.f32 0.5, %v8275_v21  ;;  %v7321_v5 = vpop.f32.mrf.mxu2  ;;  %v7370_v3 = vpop.f32.mrf.mxu3  ;;  %v11454_v21 = vld [vmem:[#allocation7 + $0xb4] sm:$0xf0] }
 0x8d4   : > { %v7322_v44 = vadd.f32 %v7321_v5, %v7273_v63  ;;  %v10950_v63 = vld [vmem:[#allocation7 + $0x698] sm:$0xf]  ;;  %7694 = vmatpush.bf16.msra.mxu2 %v10695_v46 }
 0x8d5   : > { %8531 = vst [vmem:[%s13919_s16 + $0x120] sm:$0xff] %v8403_v52  ;;  %v10183_v52 = vor.u32 %v11454_v21, %v10182_v26  ;;  %v11646_v5 = vld [vmem:[#allocation7 + $0x6b4] sm:$0xf0] }
 0x8d6   : > { %v7371_v48 = vadd.f32 %v7370_v3, %v7322_v44  ;;  %v7228_v45 = vpop.f32.mrf.mxu0  ;;  %v7277_v38 = vpop.f32.mrf.mxu1  ;;  %v10951_v44 = vor.u32 %v11646_v5, %v10950_v63  ;;  %v11574_v21 = vld [vmem:[#allocation7 + $0x474] sm:$0xf0] }
 0x8d7   : > { %v7229_v53 = vadd.f32 %v7228_v45, %v14179_v29  ;;  %7596 = vmatpush.bf16.msra.mxu0 %v10183_v52 }
 0x8d8   : > { %v11954_v43 = vpop.eup %11953  ;;  %v8035_v50 = vmul.f32 0.5, %v7371_v48  ;;  %7743 = vmatpush.bf16.msra.mxu3 %v10951_v44  ;;  %v10150_v44 = vld [vmem:[#allocation7 + $0x58] sm:$0xf] }
 0x8d9   : > { %v8283_v39 = vmul.f32 0.5, %v11954_v43  ;;  %7423 = vmatmul.bf16.gmra.mxu0 %v13825_v34  ;;  %7472 = vmatmul.bf16.gmra.mxu1 %v13827_v36  ;;  %v7278_v17 = vadd.f32 %v7277_v38, %v7229_v53  ;;  %v10438_v43 = vld [vmem:[#allocation7 + $0x298] sm:$0xf] }
 0x8da   : > { %11955 = vtanh.f32 %v8035_v50  ;;  %v11518_v50 = vld [vmem:[#allocation7 + $0x2b4] sm:$0xf0] }
 0x8db   : > { %v8411_v7 = vadd.f32 0.5, %v8283_v39  ;;  %v7323_v33 = vpop.f32.mrf.mxu2  ;;  %v7372_v49 = vpop.f32.mrf.mxu3 }
 0x8dc   : > { %v7324_v27 = vadd.f32 %v7323_v33, %v7275_v2 }
 0x8dd   : > { %8539 = vst [vmem:[%s13919_s16 + $0x160] sm:$0xff] %v8411_v7 }
 0x8de   : > { %v7373_v25 = vadd.f32 %v7372_v49, %v7324_v27  ;;  %v7230_v24 = vpop.f32.mrf.mxu0  ;;  %v7279_v12 = vpop.f32.mrf.mxu1  ;;  %v10439_v49 = vor.u32 %v11518_v50, %v10438_v43  ;;  %v10406_v43 = vld [vmem:[#allocation7 + $0x258] sm:$0xf] }
 0x8df   : > { %v7231_v39 = vadd.f32 %v7230_v24, %v14179_v29  ;;  %v10662_v24 = vld [vmem:[#allocation7 + $0x458] sm:$0xf] }
 0x8e0   : > { %v11956_v57 = vpop.eup %11955  ;;  %v8043_v3 = vmul.f32 0.5, %v7373_v25  ;;  %7521 = vmatmul.bf16.gmra.mxu2 %v13835_v10  ;;  %7570 = vmatmul.bf16.gmra.mxu3 %v13837_v11  ;;  %v11510_v50 = vld [vmem:[#allocation7 + $0x274] sm:$0xf0] }
 0x8e1   : > { %v8291_v1 = vmul.f32 0.5, %v11956_v57  ;;  %7645 = vmatpush.bf16.msra.mxu1 %v10439_v49  ;;  %v7280_v30 = vadd.f32 %v7279_v12, %v7231_v39 }
 0x8e2   : > { %11957 = vtanh.f32 %v8043_v3  ;;  %v10663_v3 = vor.u32 %v11574_v21, %v10662_v24 }
 0x8e3   : > { %v8419_v4 = vadd.f32 0.5, %v8291_v1  ;;  %v7326_v48 = vpop.f32.mrf.mxu2  ;;  %v7375_v45 = vpop.f32.mrf.mxu3  ;;  %v11446_v1 = vld [vmem:[#allocation7 + $0x74] sm:$0xf0] }
 0x8e4   : > { %v7327_v15 = vadd.f32 %v7326_v48, %v7278_v17  ;;  %v10918_v17 = vld [vmem:[#allocation7 + $0x658] sm:$0xf]  ;;  %7695 = vmatpush.bf16.msra.mxu2 %v10663_v3 }
 0x8e5   : > { %8547 = vst [vmem:[%s13919_s16 + $0x1a0] sm:$0xff] %v8419_v4  ;;  %v10151_v4 = vor.u32 %v11446_v1, %v10150_v44  ;;  %v11638_v48 = vld [vmem:[#allocation7 + $0x674] sm:$0xf0] }
 0x8e6   : > { %v7376_v2 = vadd.f32 %v7375_v45, %v7327_v15  ;;  %v7233_v7 = vpop.f32.mrf.mxu0  ;;  %v7282_v33 = vpop.f32.mrf.mxu1  ;;  %v10919_v15 = vor.u32 %v11638_v48, %v10918_v17  ;;  %v11566_v48 = vld [vmem:[#allocation7 + $0x434] sm:$0xf0] }
 0x8e7   : > { %v7234_v63 = vadd.f32 %v7233_v7, %v14179_v29  ;;  %7597 = vmatpush.bf16.msra.mxu0 %v10151_v4  ;;  %v10630_v4 = vld [vmem:[#allocation7 + $0x418] sm:$0xf] }
 0x8e8   : > { %v11958_v27 = vpop.eup %11957  ;;  %v8051_v22 = vmul.f32 0.5, %v7376_v2  ;;  %v10407_v2 = vor.u32 %v11510_v50, %v10406_v43  ;;  %7744 = vmatpush.bf16.msra.mxu3 %v10919_v15  ;;  %v10631_v43 = vor.u32 %v11566_v48, %v10630_v4  ;;  %v11630_v50 = vld [vmem:[#allocation7 + $0x634] sm:$0xf0] }
 0x8e9   : > { %v8299_v38 = vmul.f32 0.5, %v11958_v27  ;;  %7428 = vmatmul.bf16.gmra.mxu0 %v13845_v56  ;;  %7477 = vmatmul.bf16.gmra.mxu1 %v13847_v19  ;;  %v7283_v7 = vadd.f32 %v7282_v33, %v7234_v63 }
 0x8ea   : > { %11959 = vtanh.f32 %v8051_v22  ;;  %7646 = vmatpush.bf16.msra.mxu1 %v10407_v2  ;;  %7696 = vmatpush.bf16.msra.mxu2 %v10631_v43 }
 0x8eb   : > { %v8427_v53 = vadd.f32 0.5, %v8299_v38  ;;  %v7328_v25 = vpop.f32.mrf.mxu2  ;;  %v7377_v46 = vpop.f32.mrf.mxu3 }
 0x8ec   : > { %v7329_v26 = vadd.f32 %v7328_v25, %v7280_v30  ;;  %v10118_v30 = vld [vmem:[#allocation7 + $0x18] sm:$0xf] }
 0x8ed   : > { %8555 = vst [vmem:[%s13919_s16 + $0x1e0] sm:$0xff] %v8427_v53  ;;  %v11438_v53 = vld [vmem:[#allocation7 + $0x34] sm:$0xf0] }
 0x8ee   : > { %v7378_v52 = vadd.f32 %v7377_v46, %v7329_v26  ;;  %v7235_v5 = vpop.f32.mrf.mxu0  ;;  %v7284_v57 = vpop.f32.mrf.mxu1  ;;  %v10374_v25 = vld [vmem:[#allocation7 + $0x218] sm:$0xf]  ;;  %v10119_v46 = vor.u32 %v11438_v53, %v10118_v30 }
 0x8ef   : > { %v11502_v26 = vld [vmem:[#allocation7 + $0x234] sm:$0xf0]  ;;  %v7236_v24 = vadd.f32 %v7235_v5, %v14179_v29 }
 0x8f0   : > { %v11960_v12 = vpop.eup %11959  ;;  %v8059_v45 = vmul.f32 0.5, %v7378_v52  ;;  %7526 = vmatmul.bf16.gmra.mxu2 %v13855_v9  ;;  %7575 = vmatmul.bf16.gmra.mxu3 %v13857_v51  ;;  %v10375_v44 = vor.u32 %v11502_v26, %v10374_v25 }
 0x8f1   : > { %v8307_v39 = vmul.f32 0.5, %v11960_v12  ;;  %7598 = vmatpush.bf16.msra.mxu0 %v10119_v46  ;;  %v7285_v17 = vadd.f32 %v7284_v57, %v7236_v24  ;;  %v10886_v12 = vld [vmem:[#allocation7 + $0x618] sm:$0xf] }
 0x8f2   : > { %11961 = vtanh.f32 %v8059_v45  ;;  %7647 = vmatpush.bf16.msra.mxu1 %v10375_v44  ;;  %v10887_v2 = vor.u32 %v11630_v50, %v10886_v12 }
 0x8f3   : > { %v8435_v49 = vadd.f32 0.5, %v8307_v39  ;;  %v7331_v27 = vpop.f32.mrf.mxu2  ;;  %v7380_v22 = vpop.f32.mrf.mxu3 }
 0x8f4   : > { %v7332_v38 = vadd.f32 %v7331_v27, %v7283_v7  ;;  %7745 = vmatpush.bf16.msra.mxu3 %v10887_v2 }
 0x8f5   : > { %8563 = vst [vmem:[%s13919_s16 + $0x220] sm:$0xff] %v8435_v49 }
 0x8f6   : > { %v7381_v21 = vadd.f32 %v7380_v22, %v7332_v38  ;;  %v7238_v52 = vpop.f32.mrf.mxu0  ;;  %v7287_v3 = vpop.f32.mrf.mxu1 }
 0x8f7   : > { %v7239_v7 = vadd.f32 %v7238_v52, %v14179_v29 }
 0x8f8   : > { %v11962_v33 = vpop.eup %11961  ;;  %v8067_v63 = vmul.f32 0.5, %v7381_v21 }
 0x8f9   : > { %v8315_v1 = vmul.f32 0.5, %v11962_v33  ;;  %7433 = vmatmul.bf16.gmra.mxu0 %v13865_v59  ;;  %7482 = vmatmul.bf16.gmra.mxu1 %v13867_v16  ;;  %v7288_v53 = vadd.f32 %v7287_v3, %v7239_v7 }
 0x8fa   : > { %11963 = vtanh.f32 %v8067_v63 }
 0x8fb   : > { %v8443_v5 = vadd.f32 0.5, %v8315_v1  ;;  %v7333_v45 = vpop.f32.mrf.mxu2  ;;  %v7382_v15 = vpop.f32.mrf.mxu3 }
 0x8fc   : > { %v7334_v39 = vadd.f32 %v7333_v45, %v7285_v17  ;;  %v11618_v45 = vld [vmem:[#allocation7 + $0x5dc] sm:$0xf] }
 0x8fd   : > { %8571 = vst [vmem:[%s13919_s16 + $0x260] sm:$0xff] %v8443_v5 }
 0x8fe   : > { %v7383_v49 = vadd.f32 %v7382_v15, %v7334_v39  ;;  %v7240_v27 = vpop.f32.mrf.mxu0  ;;  %v7289_v22 = vpop.f32.mrf.mxu1  ;;  %v10856_v15 = vld [vmem:[#allocation7 + $0x5f8] sm:$0xf0] }
 0x8ff   : > { %v7241_v21 = vadd.f32 %v7240_v27, %v14179_v29  ;;  %v10859_v7 = vor.u32 %v11618_v45, %v10856_v15  ;;  %v10344_v27 = vld [vmem:[#allocation7 + $0x1f8] sm:$0xf0] }
 0x900   : > { %v11964_v57 = vpop.eup %11963  ;;  %v8075_v38 = vmul.f32 0.5, %v7383_v49  ;;  %7531 = vmatmul.bf16.gmra.mxu2 %v13875_v6  ;;  %7580 = vmatmul.bf16.gmra.mxu3 %v13877_v55  ;;  %v11490_v49 = vld [vmem:[#allocation7 + $0x1dc] sm:$0xf] }
 0x901   : > { %v8323_v30 = vmul.f32 0.5, %v11964_v57  ;;  %v7290_v3 = vadd.f32 %v7289_v22, %v7241_v21  ;;  %v11682_v57 = vld [vmem:[#allocation7 + $0x7dc] sm:$0xf]  ;;  %7885 = vmatpush.bf16.msrb.mxu2 %v10859_v7 }
 0x902   : > { %11965 = vtanh.f32 %v8075_v38  ;;  %v10347_v38 = vor.u32 %v11490_v49, %v10344_v27  ;;  %v11610_v49 = vld [vmem:[#allocation7 + $0x59c] sm:$0xf] }
 0x903   : > { %v8451_v25 = vadd.f32 0.5, %v8323_v30  ;;  %v7336_v46 = vpop.f32.mrf.mxu2  ;;  %v7385_v26 = vpop.f32.mrf.mxu3  ;;  %v11112_v30 = vld [vmem:[#allocation7 + $0x7f8] sm:$0xf0] }
 0x904   : > { %v7337_v24 = vadd.f32 %v7336_v46, %v7288_v53  ;;  %7787 = vmatpush.bf16.msrb.mxu0 %v10347_v38  ;;  %v10824_v27 = vld [vmem:[#allocation7 + $0x5b8] sm:$0xf0] }
 0x905   : > { %8579 = vst [vmem:[%s13919_s16 + $0x2a0] sm:$0xff] %v8451_v25  ;;  %v11115_v25 = vor.u32 %v11682_v57, %v11112_v30 }
 0x906   : > { %v7386_v52 = vadd.f32 %v7385_v26, %v7337_v24  ;;  %v7243_v44 = vpop.f32.mrf.mxu0  ;;  %v7292_v33 = vpop.f32.mrf.mxu1 }
 0x907   : > { %v7244_v43 = vadd.f32 %v7243_v44, %v14179_v29  ;;  %7934 = vmatpush.bf16.msrb.mxu3 %v11115_v25  ;;  %v11482_v25 = vld [vmem:[#allocation7 + $0x19c] sm:$0xf] }
 0x908   : > { %v11966_v63 = vpop.eup %11965  ;;  %v8083_v1 = vmul.f32 0.5, %v7386_v52 }
 0x909   : > { %v8331_v17 = vmul.f32 0.5, %v11966_v63  ;;  %7438 = vmatmul.bf16.gmra.mxu0 %v13885_v14  ;;  %7487 = vmatmul.bf16.gmra.mxu1 %v13887_v40  ;;  %v7293_v26 = vadd.f32 %v7292_v33, %v7244_v43  ;;  %v11554_v63 = vld [vmem:[#allocation7 + $0x3dc] sm:$0xf]  ;;  %v14246_v43 = vperm.slane %v14176_v20, 5 }
 0x90a   : > { %11967 = vtanh.f32 %v8083_v1  ;;  %v10600_v1 = vld [vmem:[#allocation7 + $0x3f8] sm:$0xf0] }
 0x90b   : > { %v8459_v4 = vadd.f32 0.5, %v8331_v17  ;;  %v7338_v48 = vpop.f32.mrf.mxu2  ;;  %v7387_v12 = vpop.f32.mrf.mxu3 }
 0x90c   : > { %v7339_v5 = vadd.f32 %v7338_v48, %v7290_v3 }
 0x90d   : > { %8587 = vst [vmem:[%s13919_s16 + $0x2e0] sm:$0xff] %v8459_v4 }
 0x90e   : > { %v7388_v50 = vadd.f32 %v7387_v12, %v7339_v5  ;;  %v7245_v39 = vpop.f32.mrf.mxu0  ;;  %v7294_v2 = vpop.f32.mrf.mxu1  ;;  %v10603_v12 = vor.u32 %v11554_v63, %v10600_v1 }
 0x90f   : > { %v7246_v17 = vadd.f32 %v7245_v39, %v14179_v29 }
 0x910   : > { %v11968_v22 = vpop.eup %11967  ;;  %v8091_v53 = vmul.f32 0.5, %v7388_v50  ;;  %7536 = vmatmul.bf16.gmra.mxu2 %v13895_v0  ;;  %7585 = vmatmul.bf16.gmra.mxu3 %v13897_v58 }
 0x911   : > { %v8339_v46 = vmul.f32 0.5, %v11968_v22  ;;  %7836 = vmatpush.bf16.msrb.mxu1 %v10603_v12  ;;  %v7295_v15 = vadd.f32 %v7294_v2, %v7246_v17  ;;  %v11674_v2 = vld [vmem:[#allocation7 + $0x79c] sm:$0xf] }
 0x912   : > { %11969 = vtanh.f32 %v8091_v53  ;;  %v10827_v53 = vor.u32 %v11610_v49, %v10824_v27  ;;  %v11546_v12 = vld [vmem:[#allocation7 + $0x39c] sm:$0xf] }
 0x913   : > { %v8467_v24 = vadd.f32 0.5, %v8339_v46  ;;  %v7341_v21 = vpop.f32.mrf.mxu2  ;;  %v7390_v52 = vpop.f32.mrf.mxu3  ;;  %v10312_v46 = vld [vmem:[#allocation7 + $0x1b8] sm:$0xf0] }
 0x914   : > { %v7342_v44 = vadd.f32 %v7341_v21, %v7293_v26  ;;  %v10315_v26 = vor.u32 %v11482_v25, %v10312_v46  ;;  %7886 = vmatpush.bf16.msrb.mxu2 %v10827_v53  ;;  %v10792_v25 = vld [vmem:[#allocation7 + $0x578] sm:$0xf0] }
 0x915   : > { %8595 = vst [vmem:[%s13919_s16 + $0x320] sm:$0xff] %v8467_v24  ;;  %v11080_v24 = vld [vmem:[#allocation7 + $0x7b8] sm:$0xf0] }
 0x916   : > { %v7391_v3 = vadd.f32 %v7390_v52, %v7342_v44  ;;  %v7404_v4 = vpop.f32.mrf.mxu0  ;;  %v7453_v48 = vpop.f32.mrf.mxu1  ;;  %v11083_v52 = vor.u32 %v11674_v2, %v11080_v24  ;;  %7788 = vmatpush.bf16.msrb.mxu0 %v10315_v26 }
 0x917   : > { %v7405_v57 = vadd.f32 %v7404_v4, %v14246_v43 }
 0x918   : > { %v11970_v5 = vpop.eup %11969  ;;  %v8099_v45 = vmul.f32 0.5, %v7391_v3  ;;  %7935 = vmatpush.bf16.msrb.mxu3 %v11083_v52  ;;  %v10280_v52 = vld [vmem:[#allocation7 + $0x178] sm:$0xf0] }
 0x919   : > { %v8347_v33 = vmul.f32 0.5, %v11970_v5  ;;  %7599 = vmatmul.bf16.vlgmr.msra.gmra.mxu0 %v13745_v54  ;;  %7648 = vmatmul.bf16.vlgmr.msra.gmra.mxu1 %v13747_v13  ;;  %v7454_v63 = vadd.f32 %v7453_v48, %v7405_v57  ;;  %v10568_v5 = vld [vmem:[#allocation7 + $0x3b8] sm:$0xf0] }
 0x91a   : > { %11971 = vtanh.f32 %v8099_v45 }
 0x91b   : > { %v8475_v50 = vadd.f32 0.5, %v8347_v33  ;;  %v7343_v29 = vpop.f32.mrf.mxu2  ;;  %v7392_v39 = vpop.f32.mrf.mxu3 }
 0x91c   : > { %v7344_v7 = vadd.f32 %v7343_v29, %v7295_v15  ;;  %v10571_v29 = vor.u32 %v11546_v12, %v10568_v5 }
 0x91d   : > { %8603 = vst [vmem:[%s13919_s16 + $0x360] sm:$0xff] %v8475_v50 }
 0x91e   : > { %v7393_v38 = vadd.f32 %v7392_v39, %v7344_v7  ;;  %v7406_v30 = vpop.f32.mrf.mxu0  ;;  %v7455_v22 = vpop.f32.mrf.mxu1  ;;  %7837 = vmatpush.bf16.msrb.mxu1 %v10571_v29  ;;  %v11538_v29 = vld [vmem:[#allocation7 + $0x35c] sm:$0xf] }
 0x91f   : > { %v7407_v45 = vadd.f32 %v7406_v30, %v14246_v43  ;;  %v11602_v30 = vld [vmem:[#allocation7 + $0x55c] sm:$0xf] }
 0x920   : > { %v11972_v20 = vpop.eup %11971  ;;  %v8107_v21 = vmul.f32 0.5, %v7393_v38  ;;  %7697 = vmatmul.bf16.vlgmr.msra.gmra.mxu2 %v13755_v18  ;;  %7746 = vmatmul.bf16.vlgmr.msra.gmra.mxu3 %v13757_v8 }
 0x921   : > { %v8355_v44 = vmul.f32 0.5, %v11972_v20  ;;  %v7456_v49 = vadd.f32 %v7455_v22, %v7407_v45  ;;  %v10795_v20 = vor.u32 %v11602_v30, %v10792_v25 }
 0x922   : > { %11973 = vtanh.f32 %v8107_v21  ;;  %v11474_v21 = vld [vmem:[#allocation7 + $0x15c] sm:$0xf] }
 0x923   : > { %v8483_v1 = vadd.f32 0.5, %v8355_v44  ;;  %v7502_v17 = vpop.f32.mrf.mxu2  ;;  %v7551_v3 = vpop.f32.mrf.mxu3  ;;  %v11666_v44 = vld [vmem:[#allocation7 + $0x75c] sm:$0xf]  ;;  %7887 = vmatpush.bf16.msrb.mxu2 %v10795_v20 }
 0x924   : > { %v7503_v4 = vadd.f32 %v7502_v17, %v7454_v63  ;;  %v10283_v63 = vor.u32 %v11474_v21, %v10280_v52  ;;  %v10760_v21 = vld [vmem:[#allocation7 + $0x538] sm:$0xf0] }
 0x925   : > { %8611 = vst [vmem:[%s13919_s16 + $0x3a0] sm:$0xff] %v8483_v1  ;;  %v11048_v1 = vld [vmem:[#allocation7 + $0x778] sm:$0xf0] }
 0x926   : > { %v7552_v33 = vadd.f32 %v7551_v3, %v7503_v4  ;;  %v7409_v15 = vpop.f32.mrf.mxu0  ;;  %v7458_v50 = vpop.f32.mrf.mxu1  ;;  %v11051_v3 = vor.u32 %v11666_v44, %v11048_v1  ;;  %7789 = vmatpush.bf16.msrb.mxu0 %v10283_v63 }
 0x927   : > { %v7410_v46 = vadd.f32 %v7409_v15, %v14246_v43 }
 0x928   : > { %v11974_v39 = vpop.eup %11973  ;;  %v7988_v7 = vmul.f32 0.5, %v7552_v33  ;;  %7936 = vmatpush.bf16.msrb.mxu3 %v11051_v3  ;;  %v10248_v3 = vld [vmem:[#allocation7 + $0x138] sm:$0xf0] }
 0x929   : > { %v8363_v48 = vmul.f32 0.5, %v11974_v39  ;;  %7604 = vmatmul.bf16.gmra.mxu0 %v13765_v31  ;;  %7653 = vmatmul.bf16.gmra.mxu1 %v13767_v41  ;;  %v7459_v12 = vadd.f32 %v7458_v50, %v7410_v46  ;;  %v10536_v39 = vld [vmem:[#allocation7 + $0x378] sm:$0xf0] }
 0x92a   : > { %11975 = vtanh.f32 %v7988_v7 }
 0x92b   : > { %v8491_v27 = vadd.f32 0.5, %v8363_v48  ;;  %v7504_v57 = vpop.f32.mrf.mxu2  ;;  %v7553_v38 = vpop.f32.mrf.mxu3 }
 0x92c   : > { %v7505_v53 = vadd.f32 %v7504_v57, %v7456_v49  ;;  %v10539_v57 = vor.u32 %v11538_v29, %v10536_v39 }
 0x92d   : > { %8619 = vst [vmem:[%s13919_s16 + $0x3e0] sm:$0xff] %v8491_v27 }
 0x92e   : > { %v7554_v2 = vadd.f32 %v7553_v38, %v7505_v53  ;;  %v7411_v26 = vpop.f32.mrf.mxu0  ;;  %v7460_v24 = vpop.f32.mrf.mxu1  ;;  %7838 = vmatpush.bf16.msrb.mxu1 %v10539_v57  ;;  %v11530_v57 = vld [vmem:[#allocation7 + $0x31c] sm:$0xf] }
 0x92f   : > { %v7412_v7 = vadd.f32 %v7411_v26, %v14246_v43  ;;  %v11594_v26 = vld [vmem:[#allocation7 + $0x51c] sm:$0xf] }
 0x930   : > { %v11976_v22 = vpop.eup %11975  ;;  %v7996_v17 = vmul.f32 0.5, %v7554_v2  ;;  %7702 = vmatmul.bf16.gmra.mxu2 %v13775_v32  ;;  %7751 = vmatmul.bf16.gmra.mxu3 %v13777_v37 }
 0x931   : > { %v8244_v4 = vmul.f32 0.5, %v11976_v22  ;;  %v7461_v30 = vadd.f32 %v7460_v24, %v7412_v7  ;;  %v10763_v22 = vor.u32 %v11594_v26, %v10760_v21 }
 0x932   : > { %11977 = vtanh.f32 %v7996_v17  ;;  %v11466_v17 = vld [vmem:[#allocation7 + $0x11c] sm:$0xf] }
 0x933   : > { %v8372_v5 = vadd.f32 0.5, %v8244_v4  ;;  %v7507_v45 = vpop.f32.mrf.mxu2  ;;  %v7556_v33 = vpop.f32.mrf.mxu3  ;;  %v11658_v4 = vld [vmem:[#allocation7 + $0x71c] sm:$0xf]  ;;  %7888 = vmatpush.bf16.msrb.mxu2 %v10763_v22 }
 0x934   : > { %v7508_v15 = vadd.f32 %v7507_v45, %v7459_v12  ;;  %v10251_v12 = vor.u32 %v11466_v17, %v10248_v3  ;;  %v10728_v17 = vld [vmem:[#allocation7 + $0x4f8] sm:$0xf0] }
 0x935   : > { %8500 = vst [vmem:[%s13919_s16 + $0x28] sm:$0xff] %v8372_v5  ;;  %v11016_v5 = vld [vmem:[#allocation7 + $0x738] sm:$0xf0] }
 0x936   : > { %v7557_v48 = vadd.f32 %v7556_v33, %v7508_v15  ;;  %v7414_v49 = vpop.f32.mrf.mxu0  ;;  %v7463_v27 = vpop.f32.mrf.mxu1  ;;  %v11019_v33 = vor.u32 %v11658_v4, %v11016_v5  ;;  %7790 = vmatpush.bf16.msrb.mxu0 %v10251_v12 }
 0x937   : > { %v7415_v52 = vadd.f32 %v7414_v49, %v14246_v43 }
 0x938   : > { %v11978_v38 = vpop.eup %11977  ;;  %v8004_v53 = vmul.f32 0.5, %v7557_v48  ;;  %7937 = vmatpush.bf16.msrb.mxu3 %v11019_v33  ;;  %v10216_v33 = vld [vmem:[#allocation7 + $0xf8] sm:$0xf0] }
 0x939   : > { %v8252_v50 = vmul.f32 0.5, %v11978_v38  ;;  %7609 = vmatmul.bf16.gmra.mxu0 %v13785_v60  ;;  %7658 = vmatmul.bf16.gmra.mxu1 %v13787_v28  ;;  %v7464_v29 = vadd.f32 %v7463_v27, %v7415_v52  ;;  %v10504_v38 = vld [vmem:[#allocation7 + $0x338] sm:$0xf0] }
 0x93a   : > { %11979 = vtanh.f32 %v8004_v53 }
 0x93b   : > { %v8380_v25 = vadd.f32 0.5, %v8252_v50  ;;  %v7509_v46 = vpop.f32.mrf.mxu2  ;;  %v7558_v2 = vpop.f32.mrf.mxu3 }
 0x93c   : > { %v7510_v20 = vadd.f32 %v7509_v46, %v7461_v30  ;;  %v10507_v46 = vor.u32 %v11530_v57, %v10504_v38 }
 0x93d   : > { %8508 = vst [vmem:[%s13919_s16 + $0x68] sm:$0xff] %v8380_v25 }
 0x93e   : > { %v7559_v44 = vadd.f32 %v7558_v2, %v7510_v20  ;;  %v7416_v63 = vpop.f32.mrf.mxu0  ;;  %v7465_v1 = vpop.f32.mrf.mxu1  ;;  %7839 = vmatpush.bf16.msrb.mxu1 %v10507_v46  ;;  %v11522_v46 = vld [vmem:[#allocation7 + $0x2dc] sm:$0xf] }
 0x93f   : > { %v7417_v53 = vadd.f32 %v7416_v63, %v14246_v43  ;;  %v11586_v63 = vld [vmem:[#allocation7 + $0x4dc] sm:$0xf] }
 0x940   : > { %v11980_v24 = vpop.eup %11979  ;;  %v8012_v45 = vmul.f32 0.5, %v7559_v44  ;;  %7707 = vmatmul.bf16.gmra.mxu2 %v13795_v47  ;;  %7756 = vmatmul.bf16.gmra.mxu3 %v13797_v42 }
 0x941   : > { %v8260_v15 = vmul.f32 0.5, %v11980_v24  ;;  %v7466_v26 = vadd.f32 %v7465_v1, %v7417_v53  ;;  %v10731_v24 = vor.u32 %v11586_v63, %v10728_v17 }
 0x942   : > { %11981 = vtanh.f32 %v8012_v45  ;;  %v11458_v45 = vld [vmem:[#allocation7 + $0xdc] sm:$0xf] }
 0x943   : > { %v8388_v39 = vadd.f32 0.5, %v8260_v15  ;;  %v7512_v7 = vpop.f32.mrf.mxu2  ;;  %v7561_v48 = vpop.f32.mrf.mxu3  ;;  %v11650_v15 = vld [vmem:[#allocation7 + $0x6dc] sm:$0xf]  ;;  %7889 = vmatpush.bf16.msrb.mxu2 %v10731_v24 }
 0x944   : > { %v7513_v49 = vadd.f32 %v7512_v7, %v7464_v29  ;;  %v10219_v29 = vor.u32 %v11458_v45, %v10216_v33  ;;  %v10696_v45 = vld [vmem:[#allocation7 + $0x4b8] sm:$0xf0] }
 0x945   : > { %8516 = vst [vmem:[%s13919_s16 + $0xa8] sm:$0xff] %v8388_v39  ;;  %v10984_v39 = vld [vmem:[#allocation7 + $0x6f8] sm:$0xf0] }
 0x946   : > { %v7562_v50 = vadd.f32 %v7561_v48, %v7513_v49  ;;  %v7419_v30 = vpop.f32.mrf.mxu0  ;;  %v7468_v25 = vpop.f32.mrf.mxu1  ;;  %v10987_v48 = vor.u32 %v11650_v15, %v10984_v39  ;;  %7791 = vmatpush.bf16.msrb.mxu0 %v10219_v29 }
 0x947   : > { %v7420_v3 = vadd.f32 %v7419_v30, %v14246_v43 }
 0x948   : > { %v11982_v2 = vpop.eup %11981  ;;  %v8020_v20 = vmul.f32 0.5, %v7562_v50  ;;  %7938 = vmatpush.bf16.msrb.mxu3 %v10987_v48  ;;  %v10184_v48 = vld [vmem:[#allocation7 + $0xb8] sm:$0xf0] }
 0x949   : > { %v8268_v27 = vmul.f32 0.5, %v11982_v2  ;;  %7614 = vmatmul.bf16.gmra.mxu0 %v13805_v35  ;;  %7663 = vmatmul.bf16.gmra.mxu1 %v13807_v23  ;;  %v7469_v57 = vadd.f32 %v7468_v25, %v7420_v3  ;;  %v10472_v2 = vld [vmem:[#allocation7 + $0x2f8] sm:$0xf0] }
 0x94a   : > { %11983 = vtanh.f32 %v8020_v20 }
 0x94b   : > { %v8396_v21 = vadd.f32 0.5, %v8268_v27  ;;  %v7514_v52 = vpop.f32.mrf.mxu2  ;;  %v7563_v44 = vpop.f32.mrf.mxu3 }
 0x94c   : > { %v7515_v22 = vadd.f32 %v7514_v52, %v7466_v26  ;;  %v10475_v52 = vor.u32 %v11522_v46, %v10472_v2 }
 0x94d   : > { %8524 = vst [vmem:[%s13919_s16 + $0xe8] sm:$0xff] %v8396_v21 }
 0x94e   : > { %v7564_v4 = vadd.f32 %v7563_v44, %v7515_v22  ;;  %v7421_v12 = vpop.f32.mrf.mxu0  ;;  %v7470_v5 = vpop.f32.mrf.mxu1  ;;  %7840 = vmatpush.bf16.msrb.mxu1 %v10475_v52  ;;  %v11514_v52 = vld [vmem:[#allocation7 + $0x29c] sm:$0xf] }
 0x94f   : > { %v7422_v20 = vadd.f32 %v7421_v12, %v14246_v43  ;;  %v11578_v12 = vld [vmem:[#allocation7 + $0x49c] sm:$0xf] }
 0x950   : > { %v11984_v1 = vpop.eup %11983  ;;  %v8028_v7 = vmul.f32 0.5, %v7564_v4  ;;  %7712 = vmatmul.bf16.gmra.mxu2 %v13815_v62  ;;  %7761 = vmatmul.bf16.gmra.mxu3 %v13817_v61 }
 0x951   : > { %v8276_v49 = vmul.f32 0.5, %v11984_v1  ;;  %v7471_v63 = vadd.f32 %v7470_v5, %v7422_v20  ;;  %v10699_v1 = vor.u32 %v11578_v12, %v10696_v45 }
 0x952   : > { %11985 = vtanh.f32 %v8028_v7  ;;  %v11450_v7 = vld [vmem:[#allocation7 + $0x9c] sm:$0xf] }
 0x953   : > { %v8404_v38 = vadd.f32 0.5, %v8276_v49  ;;  %v7517_v53 = vpop.f32.mrf.mxu2  ;;  %v7566_v50 = vpop.f32.mrf.mxu3  ;;  %v11642_v49 = vld [vmem:[#allocation7 + $0x69c] sm:$0xf]  ;;  %7890 = vmatpush.bf16.msrb.mxu2 %v10699_v1 }
 0x954   : > { %v7518_v30 = vadd.f32 %v7517_v53, %v7469_v57  ;;  %v10187_v57 = vor.u32 %v11450_v7, %v10184_v48  ;;  %v10664_v7 = vld [vmem:[#allocation7 + $0x478] sm:$0xf0] }
 0x955   : > { %8532 = vst [vmem:[%s13919_s16 + $0x128] sm:$0xff] %v8404_v38  ;;  %v10952_v38 = vld [vmem:[#allocation7 + $0x6b8] sm:$0xf0] }
 0x956   : > { %v7567_v27 = vadd.f32 %v7566_v50, %v7518_v30  ;;  %v7424_v26 = vpop.f32.mrf.mxu0  ;;  %v7473_v21 = vpop.f32.mrf.mxu1  ;;  %v10955_v50 = vor.u32 %v11642_v49, %v10952_v38  ;;  %7792 = vmatpush.bf16.msrb.mxu0 %v10187_v57 }
 0x957   : > { %v7425_v33 = vadd.f32 %v7424_v26, %v14246_v43 }
 0x958   : > { %v11986_v44 = vpop.eup %11985  ;;  %v8036_v22 = vmul.f32 0.5, %v7567_v27  ;;  %7939 = vmatpush.bf16.msrb.mxu3 %v10955_v50  ;;  %v10152_v50 = vld [vmem:[#allocation7 + $0x78] sm:$0xf0] }
 0x959   : > { %v8284_v25 = vmul.f32 0.5, %v11986_v44  ;;  %7619 = vmatmul.bf16.gmra.mxu0 %v13825_v34  ;;  %7668 = vmatmul.bf16.gmra.mxu1 %v13827_v36  ;;  %v7474_v46 = vadd.f32 %v7473_v21, %v7425_v33  ;;  %v10440_v44 = vld [vmem:[#allocation7 + $0x2b8] sm:$0xf0] }
 0x95a   : > { %11987 = vtanh.f32 %v8036_v22 }
 0x95b   : > { %v8412_v17 = vadd.f32 0.5, %v8284_v25  ;;  %v7519_v3 = vpop.f32.mrf.mxu2  ;;  %v7568_v4 = vpop.f32.mrf.mxu3 }
 0x95c   : > { %v7520_v24 = vadd.f32 %v7519_v3, %v7471_v63  ;;  %v10443_v3 = vor.u32 %v11514_v52, %v10440_v44  ;;  %v10408_v52 = vld [vmem:[#allocation7 + $0x278] sm:$0xf0] }
 0x95d   : > { %8540 = vst [vmem:[%s13919_s16 + $0x168] sm:$0xff] %v8412_v17 }
 0x95e   : > { %v7569_v15 = vadd.f32 %v7568_v4, %v7520_v24  ;;  %v7426_v29 = vpop.f32.mrf.mxu0  ;;  %v7475_v39 = vpop.f32.mrf.mxu1  ;;  %7841 = vmatpush.bf16.msrb.mxu1 %v10443_v3 }
 0x95f   : > { %v7427_v22 = vadd.f32 %v7426_v29, %v14246_v43  ;;  %v11570_v29 = vld [vmem:[#allocation7 + $0x45c] sm:$0xf] }
 0x960   : > { %v11988_v5 = vpop.eup %11987  ;;  %v8044_v53 = vmul.f32 0.5, %v7569_v15  ;;  %7717 = vmatmul.bf16.gmra.mxu2 %v13835_v10  ;;  %7766 = vmatmul.bf16.gmra.mxu3 %v13837_v11 }
 0x961   : > { %v8292_v30 = vmul.f32 0.5, %v11988_v5  ;;  %v7476_v12 = vadd.f32 %v7475_v39, %v7427_v22  ;;  %v10667_v5 = vor.u32 %v11570_v29, %v10664_v7 }
 0x962   : > { %11989 = vtanh.f32 %v8044_v53  ;;  %v11442_v53 = vld [vmem:[#allocation7 + $0x5c] sm:$0xf] }
 0x963   : > { %v8420_v2 = vadd.f32 0.5, %v8292_v30  ;;  %v7522_v20 = vpop.f32.mrf.mxu2  ;;  %v7571_v27 = vpop.f32.mrf.mxu3  ;;  %v11634_v30 = vld [vmem:[#allocation7 + $0x65c] sm:$0xf]  ;;  %7891 = vmatpush.bf16.msrb.mxu2 %v10667_v5 }
 0x964   : > { %v7523_v26 = vadd.f32 %v7522_v20, %v7474_v46  ;;  %v10155_v46 = vor.u32 %v11442_v53, %v10152_v50 }
 0x965   : > { %8548 = vst [vmem:[%s13919_s16 + $0x1a8] sm:$0xff] %v8420_v2  ;;  %v10920_v2 = vld [vmem:[#allocation7 + $0x678] sm:$0xf0] }
 0x966   : > { %v7572_v25 = vadd.f32 %v7571_v27, %v7523_v26  ;;  %v7429_v63 = vpop.f32.mrf.mxu0  ;;  %v7478_v17 = vpop.f32.mrf.mxu1  ;;  %v10923_v27 = vor.u32 %v11634_v30, %v10920_v2  ;;  %v11506_v26 = vld [vmem:[#allocation7 + $0x25c] sm:$0xf]  ;;  %7793 = vmatpush.bf16.msrb.mxu0 %v10155_v46 }
 0x967   : > { %v7430_v48 = vadd.f32 %v7429_v63, %v14246_v43  ;;  %v10411_v22 = vor.u32 %v11506_v26, %v10408_v52  ;;  %v11562_v30 = vld [vmem:[#allocation7 + $0x41c] sm:$0xf] }
 0x968   : > { %v11990_v4 = vpop.eup %11989  ;;  %v8052_v24 = vmul.f32 0.5, %v7572_v25  ;;  %7940 = vmatpush.bf16.msrb.mxu3 %v10923_v27  ;;  %v10632_v46 = vld [vmem:[#allocation7 + $0x438] sm:$0xf0] }
 0x969   : > { %v8300_v21 = vmul.f32 0.5, %v11990_v4  ;;  %7624 = vmatmul.bf16.gmra.mxu0 %v13845_v56  ;;  %7673 = vmatmul.bf16.gmra.mxu1 %v13847_v19  ;;  %v7479_v25 = vadd.f32 %v7478_v17, %v7430_v48  ;;  %v11626_v2 = vld [vmem:[#allocation7 + $0x61c] sm:$0xf]  ;;  %v10635_v27 = vor.u32 %v11562_v30, %v10632_v46 }
 0x96a   : > { %11991 = vtanh.f32 %v8052_v24  ;;  %7842 = vmatpush.bf16.msrb.mxu1 %v10411_v22  ;;  %v10888_v26 = vld [vmem:[#allocation7 + $0x638] sm:$0xf0] }
 0x96b   : > { %v8428_v45 = vadd.f32 0.5, %v8300_v21  ;;  %v7524_v33 = vpop.f32.mrf.mxu2  ;;  %v7573_v15 = vpop.f32.mrf.mxu3  ;;  %v11434_v21 = vld [vmem:[#allocation7 + $0x1c] sm:$0xf]  ;;  %7892 = vmatpush.bf16.msrb.mxu2 %v10635_v27 }
 0x96c   : > { %v7525_v1 = vadd.f32 %v7524_v33, %v7476_v12  ;;  %v10120_v12 = vld [vmem:[#allocation7 + $0x38] sm:$0xf0] }
 0x96d   : > { %8556 = vst [vmem:[%s13919_s16 + $0x1e8] sm:$0xff] %v8428_v45  ;;  %v11498_v45 = vld [vmem:[#allocation7 + $0x21c] sm:$0xf]  ;;  %v10123_v33 = vor.u32 %v11434_v21, %v10120_v12 }
 0x96e   : > { %v7574_v49 = vadd.f32 %v7573_v15, %v7525_v1  ;;  %v7431_v57 = vpop.f32.mrf.mxu0  ;;  %v7480_v38 = vpop.f32.mrf.mxu1  ;;  %v10376_v15 = vld [vmem:[#allocation7 + $0x238] sm:$0xf0] }
 0x96f   : > { %v7432_v1 = vadd.f32 %v7431_v57, %v14246_v43  ;;  %v10379_v5 = vor.u32 %v11498_v45, %v10376_v15  ;;  %7794 = vmatpush.bf16.msrb.mxu0 %v10123_v33 }
 0x970   : > { %v11992_v39 = vpop.eup %11991  ;;  %v8060_v20 = vmul.f32 0.5, %v7574_v49  ;;  %7722 = vmatmul.bf16.gmra.mxu2 %v13855_v9  ;;  %7771 = vmatmul.bf16.gmra.mxu3 %v13857_v51 }
 0x971   : > { %v8308_v44 = vmul.f32 0.5, %v11992_v39  ;;  %7843 = vmatpush.bf16.msrb.mxu1 %v10379_v5  ;;  %v7481_v50 = vadd.f32 %v7480_v38, %v7432_v1 }
 0x972   : > { %11993 = vtanh.f32 %v8060_v20 }
 0x973   : > { %v8436_v63 = vadd.f32 0.5, %v8308_v44  ;;  %v7527_v3 = vpop.f32.mrf.mxu2  ;;  %v7576_v4 = vpop.f32.mrf.mxu3  ;;  %v10891_v44 = vor.u32 %v11626_v2, %v10888_v26 }
 0x974   : > { %v7528_v24 = vadd.f32 %v7527_v3, %v7479_v25 }
 0x975   : > { %8564 = vst [vmem:[%s13919_s16 + $0x228] sm:$0xff] %v8436_v63  ;;  %7941 = vmatpush.bf16.msrb.mxu3 %v10891_v44 }
 0x976   : > { %v7577_v29 = vadd.f32 %v7576_v4, %v7528_v24  ;;  %v7434_v7 = vpop.f32.mrf.mxu0  ;;  %v7483_v49 = vpop.f32.mrf.mxu1 }
 0x977   : > { %v7435_v22 = vadd.f32 %v7434_v7, %v14246_v43 }
 0x978   : > { %v11994_v17 = vpop.eup %11993  ;;  %v8068_v48 = vmul.f32 0.5, %v7577_v29 }
 0x979   : > { %v8316_v53 = vmul.f32 0.5, %v11994_v17  ;;  %7629 = vmatmul.bf16.gmra.mxu0 %v13865_v59  ;;  %7678 = vmatmul.bf16.gmra.mxu1 %v13867_v16  ;;  %v7484_v21 = vadd.f32 %v7483_v49, %v7435_v22 }
 0x97a   : > { %11995 = vtanh.f32 %v8068_v48 }
 0x97b   : > { %v8444_v57 = vadd.f32 0.5, %v8316_v53  ;;  %v7529_v39 = vpop.f32.mrf.mxu2  ;;  %v7578_v20 = vpop.f32.mrf.mxu3 }
 0x97c   : > { %v7530_v52 = vadd.f32 %v7529_v39, %v7481_v50 }
 0x97d   : > { %8572 = vst [vmem:[%s13919_s16 + $0x268] sm:$0xff] %v8444_v57 }
 0x97e   : > { %v7579_v25 = vadd.f32 %v7578_v20, %v7530_v52  ;;  %v7436_v63 = vpop.f32.mrf.mxu0  ;;  %v7485_v3 = vpop.f32.mrf.mxu1 }
 0x97f   : > { %v7437_v1 = vadd.f32 %v7436_v63, %v14246_v43 }
 0x980   : > { %v11996_v38 = vpop.eup %11995  ;;  %v8076_v4 = vmul.f32 0.5, %v7579_v25  ;;  %7727 = vmatmul.bf16.gmra.mxu2 %v13875_v6  ;;  %7776 = vmatmul.bf16.gmra.mxu3 %v13877_v55 }
 0x981   : > { %v8324_v24 = vmul.f32 0.5, %v11996_v38  ;;  %v7486_v49 = vadd.f32 %v7485_v3, %v7437_v1 }
 0x982   : > { %11997 = vtanh.f32 %v8076_v4 }
 0x983   : > { %v8452_v12 = vadd.f32 0.5, %v8324_v24  ;;  %v7532_v45 = vpop.f32.mrf.mxu2  ;;  %v7581_v33 = vpop.f32.mrf.mxu3 }
 0x984   : > { %v7533_v15 = vadd.f32 %v7532_v45, %v7484_v21 }
 0x985   : > { %8580 = vst [vmem:[%s13919_s16 + $0x2a8] sm:$0xff] %v8452_v12 }
 0x986   : > { %v7582_v29 = vadd.f32 %v7581_v33, %v7533_v15  ;;  %v7439_v7 = vpop.f32.mrf.mxu0  ;;  %v7488_v5 = vpop.f32.mrf.mxu1 }
 0x987   : > { %v7440_v57 = vadd.f32 %v7439_v7, %v14246_v43 }
 0x988   : > { %v11998_v17 = vpop.eup %11997  ;;  %v8084_v48 = vmul.f32 0.5, %v7582_v29  ;;  %v14312_v29 = vld [vmem:[#allocation8 + $0x9] sm:$0xff] }
 0x989   : > { %v8332_v53 = vmul.f32 0.5, %v11998_v17  ;;  %7634 = vmatmul.bf16.gmra.mxu0 %v13885_v14  ;;  %7683 = vmatmul.bf16.gmra.mxu1 %v13887_v40  ;;  %v7489_v22 = vadd.f32 %v7488_v5, %v7440_v57  ;;  %v14315_v7 = vperm.slane %v14312_v29, 6 }
 0x98a   : > { %11999 = vtanh.f32 %v8084_v48 }
 0x98b   : > { %v8460_v50 = vadd.f32 0.5, %v8332_v53  ;;  %v7534_v30 = vpop.f32.mrf.mxu2  ;;  %v7583_v46 = vpop.f32.mrf.mxu3 }
 0x98c   : > { %v7535_v2 = vadd.f32 %v7534_v30, %v7486_v49 }
 0x98d   : > { %8588 = vst [vmem:[%s13919_s16 + $0x2e8] sm:$0xff] %v8460_v50 }
 0x98e   : > { %v7584_v39 = vadd.f32 %v7583_v46, %v7535_v2  ;;  %v7441_v20 = vpop.f32.mrf.mxu0  ;;  %v7490_v27 = vpop.f32.mrf.mxu1 }
 0x98f   : > { %v7442_v4 = vadd.f32 %v7441_v20, %v14246_v43 }
 0x990   : > { %v12000_v26 = vpop.eup %11999  ;;  %v8092_v52 = vmul.f32 0.5, %v7584_v39  ;;  %7732 = vmatmul.bf16.gmra.mxu2 %v13895_v0  ;;  %7781 = vmatmul.bf16.gmra.mxu3 %v13897_v58 }
 0x991   : > { %v8340_v44 = vmul.f32 0.5, %v12000_v26  ;;  %v7491_v1 = vadd.f32 %v7490_v27, %v7442_v4 }
 0x992   : > { %12001 = vtanh.f32 %v8092_v52 }
 0x993   : > { %v8468_v25 = vadd.f32 0.5, %v8340_v44  ;;  %v7537_v63 = vpop.f32.mrf.mxu2  ;;  %v7586_v3 = vpop.f32.mrf.mxu3 }
 0x994   : > { %v7538_v38 = vadd.f32 %v7537_v63, %v7489_v22 }
 0x995   : > { %8596 = vst [vmem:[%s13919_s16 + $0x328] sm:$0xff] %v8468_v25 }
 0x996   : > { %v7587_v24 = vadd.f32 %v7586_v3, %v7538_v38  ;;  %v7600_v21 = vpop.f32.mrf.mxu0  ;;  %v7649_v12 = vpop.f32.mrf.mxu1 }
 0x997   : > { %v7601_v53 = vadd.f32 %v7600_v21, %v14315_v7 }
 0x998   : > { %v12002_v45 = vpop.eup %12001  ;;  %v8100_v33 = vmul.f32 0.5, %v7587_v24 }
 0x999   : > { %v8348_v15 = vmul.f32 0.5, %v12002_v45  ;;  %7795 = vmatmul.bf16.vlgmr.msrb.gmra.mxu0 %v13745_v54  ;;  %7844 = vmatmul.bf16.vlgmr.msrb.gmra.mxu1 %v13747_v13  ;;  %v7650_v2 = vadd.f32 %v7649_v12, %v7601_v53 }
 0x99a   : > { %12003 = vtanh.f32 %v8100_v33 }
 0x99b   : > { %v8476_v5 = vadd.f32 0.5, %v8348_v15  ;;  %v7539_v43 = vpop.f32.mrf.mxu2  ;;  %v7588_v17 = vpop.f32.mrf.mxu3 }
 0x99c   : > { %v7540_v48 = vadd.f32 %v7539_v43, %v7491_v1 }
 0x99d   : > { %8604 = vst [vmem:[%s13919_s16 + $0x368] sm:$0xff] %v8476_v5 }
 0x99e   : > { %v7589_v49 = vadd.f32 %v7588_v17, %v7540_v48  ;;  %v7602_v50 = vpop.f32.mrf.mxu0  ;;  %v7651_v54 = vpop.f32.mrf.mxu1 }
 0x99f   : > { %v7603_v26 = vadd.f32 %v7602_v50, %v14315_v7 }
 0x9a0   : > { %v12004_v30 = vpop.eup %12003  ;;  %v8108_v13 = vmul.f32 0.5, %v7589_v49  ;;  %7893 = vmatmul.bf16.vlgmr.msrb.gmra.mxu2 %v13755_v18  ;;  %7942 = vmatmul.bf16.vlgmr.msrb.gmra.mxu3 %v13757_v8 }
 0x9a1   : > { %v8356_v46 = vmul.f32 0.5, %v12004_v30  ;;  %v7652_v18 = vadd.f32 %v7651_v54, %v7603_v26 }
 0x9a2   : > { %12005 = vtanh.f32 %v8108_v13 }
 0x9a3   : > { %v8484_v57 = vadd.f32 0.5, %v8356_v46  ;;  %v7698_v39 = vpop.f32.mrf.mxu2  ;;  %v7747_v20 = vpop.f32.mrf.mxu3 }
 0x9a4   : > { %v7699_v27 = vadd.f32 %v7698_v39, %v7650_v2 }
 0x9a5   : > { %8612 = vst [vmem:[%s13919_s16 + $0x3a8] sm:$0xff] %v8484_v57 }
 0x9a6   : > { %v7748_v52 = vadd.f32 %v7747_v20, %v7699_v27  ;;  %v7605_v44 = vpop.f32.mrf.mxu0  ;;  %v7654_v22 = vpop.f32.mrf.mxu1 }
 0x9a7   : > { %v7606_v21 = vadd.f32 %v7605_v44, %v14315_v7 }
 0x9a8   : > { %v12006_v25 = vpop.eup %12005  ;;  %v7989_v63 = vmul.f32 0.5, %v7748_v52 }
 0x9a9   : > { %v8364_v3 = vmul.f32 0.5, %v12006_v25  ;;  %7800 = vmatmul.bf16.gmra.mxu0 %v13765_v31  ;;  %7849 = vmatmul.bf16.gmra.mxu1 %v13767_v41  ;;  %v7655_v41 = vadd.f32 %v7654_v22, %v7606_v21 }
 0x9aa   : > { %12007 = vtanh.f32 %v7989_v63 }
 0x9ab   : > { %v8492_v8 = vadd.f32 0.5, %v8364_v3  ;;  %v7700_v38 = vpop.f32.mrf.mxu2  ;;  %v7749_v4 = vpop.f32.mrf.mxu3 }
 0x9ac   : > { %v7701_v24 = vadd.f32 %v7700_v38, %v7652_v18 }
 0x9ad   : > { %8620 = vst [vmem:[%s13919_s16 + $0x3e8] sm:$0xff] %v8492_v8 }
 0x9ae   : > { %v7750_v12 = vadd.f32 %v7749_v4, %v7701_v24  ;;  %v7607_v45 = vpop.f32.mrf.mxu0  ;;  %v7656_v33 = vpop.f32.mrf.mxu1 }
 0x9af   : > { %v7608_v53 = vadd.f32 %v7607_v45, %v14315_v7 }
 0x9b0   : > { %v12008_v15 = vpop.eup %12007  ;;  %v7997_v1 = vmul.f32 0.5, %v7750_v12  ;;  %7898 = vmatmul.bf16.gmra.mxu2 %v13775_v32  ;;  %7947 = vmatmul.bf16.gmra.mxu3 %v13777_v37 }
 0x9b1   : > { %v8245_v31 = vmul.f32 0.5, %v12008_v15  ;;  %v7657_v32 = vadd.f32 %v7656_v33, %v7608_v53 }
 0x9b2   : > { %12009 = vtanh.f32 %v7997_v1 }
 0x9b3   : > { %v8373_v5 = vadd.f32 0.5, %v8245_v31  ;;  %v7703_v43 = vpop.f32.mrf.mxu2  ;;  %v7752_v17 = vpop.f32.mrf.mxu3 }
 0x9b4   : > { %v7704_v48 = vadd.f32 %v7703_v43, %v7655_v41 }
 0x9b5   : > { %8501 = vst [vmem:[%s13919_s16 + $0x30] sm:$0xff] %v8373_v5 }
 0x9b6   : > { %v7753_v49 = vadd.f32 %v7752_v17, %v7704_v48  ;;  %v7610_v50 = vpop.f32.mrf.mxu0  ;;  %v7659_v54 = vpop.f32.mrf.mxu1 }
 0x9b7   : > { %v7611_v20 = vadd.f32 %v7610_v50, %v14315_v7 }
 0x9b8   : > { %v12010_v30 = vpop.eup %12009  ;;  %v8005_v13 = vmul.f32 0.5, %v7753_v49 }
 0x9b9   : > { %v8253_v46 = vmul.f32 0.5, %v12010_v30  ;;  %7805 = vmatmul.bf16.gmra.mxu0 %v13785_v60  ;;  %7854 = vmatmul.bf16.gmra.mxu1 %v13787_v28  ;;  %v7660_v28 = vadd.f32 %v7659_v54, %v7611_v20 }
 0x9ba   : > { %12011 = vtanh.f32 %v8005_v13 }
 0x9bb   : > { %v8381_v37 = vadd.f32 0.5, %v8253_v46  ;;  %v7705_v2 = vpop.f32.mrf.mxu2  ;;  %v7754_v57 = vpop.f32.mrf.mxu3 }
 0x9bc   : > { %v7706_v39 = vadd.f32 %v7705_v2, %v7657_v32 }
 0x9bd   : > { %8509 = vst [vmem:[%s13919_s16 + $0x70] sm:$0xff] %v8381_v37 }
 0x9be   : > { %v7755_v27 = vadd.f32 %v7754_v57, %v7706_v39  ;;  %v7612_v26 = vpop.f32.mrf.mxu0  ;;  %v7661_v52 = vpop.f32.mrf.mxu1 }
 0x9bf   : > { %v7613_v8 = vadd.f32 %v7612_v26, %v14315_v7 }
 0x9c0   : > { %v12012_v44 = vpop.eup %12011  ;;  %v8013_v22 = vmul.f32 0.5, %v7755_v27  ;;  %7903 = vmatmul.bf16.gmra.mxu2 %v13795_v47  ;;  %7952 = vmatmul.bf16.gmra.mxu3 %v13797_v42 }
 0x9c1   : > { %v8261_v60 = vmul.f32 0.5, %v12012_v44  ;;  %v7662_v47 = vadd.f32 %v7661_v52, %v7613_v8 }
 0x9c2   : > { %12013 = vtanh.f32 %v8013_v22 }
 0x9c3   : > { %v8389_v25 = vadd.f32 0.5, %v8261_v60  ;;  %v7708_v63 = vpop.f32.mrf.mxu2  ;;  %v7757_v3 = vpop.f32.mrf.mxu3 }
 0x9c4   : > { %v7709_v18 = vadd.f32 %v7708_v63, %v7660_v28 }
 0x9c5   : > { %8517 = vst [vmem:[%s13919_s16 + $0xb0] sm:$0xff] %v8389_v25 }
 0x9c6   : > { %v7758_v38 = vadd.f32 %v7757_v3, %v7709_v18  ;;  %v7615_v4 = vpop.f32.mrf.mxu0  ;;  %v7664_v24 = vpop.f32.mrf.mxu1 }
 0x9c7   : > { %v7616_v31 = vadd.f32 %v7615_v4, %v14315_v7 }
 0x9c8   : > { %v12014_v21 = vpop.eup %12013  ;;  %v8021_v12 = vmul.f32 0.5, %v7758_v38 }
 0x9c9   : > { %v8269_v45 = vmul.f32 0.5, %v12014_v21  ;;  %7810 = vmatmul.bf16.gmra.mxu0 %v13805_v35  ;;  %7859 = vmatmul.bf16.gmra.mxu1 %v13807_v23  ;;  %v7665_v23 = vadd.f32 %v7664_v24, %v7616_v31 }
 0x9ca   : > { %12015 = vtanh.f32 %v8021_v12 }
 0x9cb   : > { %v8397_v42 = vadd.f32 0.5, %v8269_v45  ;;  %v7710_v33 = vpop.f32.mrf.mxu2  ;;  %v7759_v15 = vpop.f32.mrf.mxu3 }
 0x9cc   : > { %v7711_v1 = vadd.f32 %v7710_v33, %v7662_v47 }
 0x9cd   : > { %8525 = vst [vmem:[%s13919_s16 + $0xf0] sm:$0xff] %v8397_v42 }
 0x9ce   : > { %v7760_v41 = vadd.f32 %v7759_v15, %v7711_v1  ;;  %v7617_v5 = vpop.f32.mrf.mxu0  ;;  %v7666_v43 = vpop.f32.mrf.mxu1 }
 0x9cf   : > { %v7618_v30 = vadd.f32 %v7617_v5, %v14315_v7 }
 0x9d0   : > { %v12016_v17 = vpop.eup %12015  ;;  %v8029_v48 = vmul.f32 0.5, %v7760_v41  ;;  %7908 = vmatmul.bf16.gmra.mxu2 %v13815_v62  ;;  %7957 = vmatmul.bf16.gmra.mxu3 %v13817_v61 }
 0x9d1   : > { %v8277_v35 = vmul.f32 0.5, %v12016_v17  ;;  %v7667_v62 = vadd.f32 %v7666_v43, %v7618_v30 }
 0x9d2   : > { %12017 = vtanh.f32 %v8029_v48 }
 0x9d3   : > { %v8405_v53 = vadd.f32 0.5, %v8277_v35  ;;  %v7713_v49 = vpop.f32.mrf.mxu2  ;;  %v7762_v50 = vpop.f32.mrf.mxu3 }
 0x9d4   : > { %v7714_v54 = vadd.f32 %v7713_v49, %v7665_v23 }
 0x9d5   : > { %8533 = vst [vmem:[%s13919_s16 + $0x130] sm:$0xff] %v8405_v53 }
 0x9d6   : > { %v7763_v13 = vadd.f32 %v7762_v50, %v7714_v54  ;;  %v7620_v46 = vpop.f32.mrf.mxu0  ;;  %v7669_v32 = vpop.f32.mrf.mxu1 }
 0x9d7   : > { %v7621_v26 = vadd.f32 %v7620_v46, %v14315_v7 }
 0x9d8   : > { %v12018_v37 = vpop.eup %12017  ;;  %v8037_v2 = vmul.f32 0.5, %v7763_v13 }
 0x9d9   : > { %v8285_v57 = vmul.f32 0.5, %v12018_v37  ;;  %7815 = vmatmul.bf16.gmra.mxu0 %v13825_v34  ;;  %7864 = vmatmul.bf16.gmra.mxu1 %v13827_v36  ;;  %v7670_v36 = vadd.f32 %v7669_v32, %v7621_v26 }
 0x9da   : > { %12019 = vtanh.f32 %v8037_v2 }
 0x9db   : > { %v8413_v61 = vadd.f32 0.5, %v8285_v57  ;;  %v7715_v39 = vpop.f32.mrf.mxu2  ;;  %v7764_v20 = vpop.f32.mrf.mxu3 }
 0x9dc   : > { %v7716_v27 = vadd.f32 %v7715_v39, %v7667_v62 }
 0x9dd   : > { %8541 = vst [vmem:[%s13919_s16 + $0x170] sm:$0xff] %v8413_v61 }
 0x9de   : > { %v7765_v52 = vadd.f32 %v7764_v20, %v7716_v27  ;;  %v7622_v44 = vpop.f32.mrf.mxu0  ;;  %v7671_v22 = vpop.f32.mrf.mxu1 }
 0x9df   : > { %v7623_v8 = vadd.f32 %v7622_v44, %v14315_v7 }
 0x9e0   : > { %v12020_v60 = vpop.eup %12019  ;;  %v8045_v28 = vmul.f32 0.5, %v7765_v52  ;;  %7913 = vmatmul.bf16.gmra.mxu2 %v13835_v10  ;;  %7962 = vmatmul.bf16.gmra.mxu3 %v13837_v11 }
 0x9e1   : > { %v8293_v34 = vmul.f32 0.5, %v12020_v60  ;;  %v7672_v10 = vadd.f32 %v7671_v22, %v7623_v8 }
 0x9e2   : > { %12021 = vtanh.f32 %v8045_v28 }
 0x9e3   : > { %v8421_v25 = vadd.f32 0.5, %v8293_v34  ;;  %v7718_v63 = vpop.f32.mrf.mxu2  ;;  %v7767_v3 = vpop.f32.mrf.mxu3 }
 0x9e4   : > { %v7719_v18 = vadd.f32 %v7718_v63, %v7670_v36 }
 0x9e5   : > { %8549 = vst [vmem:[%s13919_s16 + $0x1b0] sm:$0xff] %v8421_v25 }
 0x9e6   : > { %v7768_v38 = vadd.f32 %v7767_v3, %v7719_v18  ;;  %v7625_v4 = vpop.f32.mrf.mxu0  ;;  %v7674_v24 = vpop.f32.mrf.mxu1 }
 0x9e7   : > { %v7626_v15 = vadd.f32 %v7625_v4, %v14315_v7 }
 0x9e8   : > { %v12022_v21 = vpop.eup %12021  ;;  %v8053_v12 = vmul.f32 0.5, %v7768_v38 }
 0x9e9   : > { %v8301_v45 = vmul.f32 0.5, %v12022_v21  ;;  %7820 = vmatmul.bf16.gmra.mxu0 %v13845_v56  ;;  %7869 = vmatmul.bf16.gmra.mxu1 %v13847_v19  ;;  %v7675_v19 = vadd.f32 %v7674_v24, %v7626_v15 }
 0x9ea   : > { %12023 = vtanh.f32 %v8053_v12 }
 0x9eb   : > { %v8429_v11 = vadd.f32 0.5, %v8301_v45  ;;  %v7720_v47 = vpop.f32.mrf.mxu2  ;;  %v7769_v42 = vpop.f32.mrf.mxu3 }
 0x9ec   : > { %v7721_v33 = vadd.f32 %v7720_v47, %v7672_v10 }
 0x9ed   : > { %8557 = vst [vmem:[%s13919_s16 + $0x1f0] sm:$0xff] %v8429_v11 }
 0x9ee   : > { %v7770_v1 = vadd.f32 %v7769_v42, %v7721_v33  ;;  %v7627_v31 = vpop.f32.mrf.mxu0  ;;  %v7676_v41 = vpop.f32.mrf.mxu1 }
 0x9ef   : > { %v7628_v53 = vadd.f32 %v7627_v31, %v14315_v7 }
 0x9f0   : > { %v12024_v5 = vpop.eup %12023  ;;  %v8061_v43 = vmul.f32 0.5, %v7770_v1  ;;  %7918 = vmatmul.bf16.gmra.mxu2 %v13855_v9  ;;  %7967 = vmatmul.bf16.gmra.mxu3 %v13857_v51 }
 0x9f1   : > { %v8309_v56 = vmul.f32 0.5, %v12024_v5  ;;  %v7677_v9 = vadd.f32 %v7676_v41, %v7628_v53 }
 0x9f2   : > { %12025 = vtanh.f32 %v8061_v43 }
 0x9f3   : > { %v8437_v17 = vadd.f32 0.5, %v8309_v56  ;;  %v7723_v48 = vpop.f32.mrf.mxu2  ;;  %v7772_v35 = vpop.f32.mrf.mxu3 }
 0x9f4   : > { %v7724_v23 = vadd.f32 %v7723_v48, %v7675_v19 }
 0x9f5   : > { %8565 = vst [vmem:[%s13919_s16 + $0x230] sm:$0xff] %v8437_v17 }
 0x9f6   : > { %v7773_v49 = vadd.f32 %v7772_v35, %v7724_v23  ;;  %v7630_v50 = vpop.f32.mrf.mxu0  ;;  %v7679_v54 = vpop.f32.mrf.mxu1 }
 0x9f7   : > { %v7631_v57 = vadd.f32 %v7630_v50, %v14315_v7 }
 0x9f8   : > { %v12026_v30 = vpop.eup %12025  ;;  %v8069_v13 = vmul.f32 0.5, %v7773_v49 }
 0x9f9   : > { %v8317_v46 = vmul.f32 0.5, %v12026_v30  ;;  %7825 = vmatmul.bf16.gmra.mxu0 %v13865_v59  ;;  %7874 = vmatmul.bf16.gmra.mxu1 %v13867_v16  ;;  %v7680_v16 = vadd.f32 %v7679_v54, %v7631_v57 }
 0x9fa   : > { %12027 = vtanh.f32 %v8069_v13 }
 0x9fb   : > { %v8445_v51 = vadd.f32 0.5, %v8317_v46  ;;  %v7725_v32 = vpop.f32.mrf.mxu2  ;;  %v7774_v37 = vpop.f32.mrf.mxu3 }
 0x9fc   : > { %v7726_v2 = vadd.f32 %v7725_v32, %v7677_v9 }
 0x9fd   : > { %8573 = vst [vmem:[%s13919_s16 + $0x270] sm:$0xff] %v8445_v51 }
 0x9fe   : > { %v7775_v62 = vadd.f32 %v7774_v37, %v7726_v2  ;;  %v7632_v61 = vpop.f32.mrf.mxu0  ;;  %v7681_v39 = vpop.f32.mrf.mxu1 }
 0x9ff   : > { %v7633_v60 = vadd.f32 %v7632_v61, %v14315_v7 }
 0xa00   : > { %v12028_v20 = vpop.eup %12027  ;;  %v8077_v27 = vmul.f32 0.5, %v7775_v62  ;;  %7923 = vmatmul.bf16.gmra.mxu2 %v13875_v6  ;;  %7972 = vmatmul.bf16.gmra.mxu3 %v13877_v55 }
 0xa01   : > { %v8325_v59 = vmul.f32 0.5, %v12028_v20  ;;  %v7682_v6 = vadd.f32 %v7681_v39, %v7633_v60 }
 0xa02   : > { %12029 = vtanh.f32 %v8077_v27 }
 0xa03   : > { %v8453_v26 = vadd.f32 0.5, %v8325_v59  ;;  %v7728_v52 = vpop.f32.mrf.mxu2  ;;  %v7777_v44 = vpop.f32.mrf.mxu3 }
 0xa04   : > { %v7729_v22 = vadd.f32 %v7728_v52, %v7680_v16 }
 0xa05   : > { %8581 = vst [vmem:[%s13919_s16 + $0x2b0] sm:$0xff] %v8453_v26 }
 0xa06   : > { %v7778_v28 = vadd.f32 %v7777_v44, %v7729_v22  ;;  %v7635_v34 = vpop.f32.mrf.mxu0  ;;  %v7684_v36 = vpop.f32.mrf.mxu1 }
 0xa07   : > { %v7636_v4 = vadd.f32 %v7635_v34, %v14315_v7 }
 0xa08   : > { %v12030_v25 = vpop.eup %12029  ;;  %v8085_v63 = vmul.f32 0.5, %v7778_v28 }
 0xa09   : > { %v8333_v3 = vmul.f32 0.5, %v12030_v25  ;;  %7830 = vmatmul.bf16.gmra.mxu0 %v13885_v14  ;;  %7879 = vmatmul.bf16.gmra.mxu1 %v13887_v40  ;;  %v7685_v40 = vadd.f32 %v7684_v36, %v7636_v4 }
 0xa0a   : > { %12031 = vtanh.f32 %v8085_v63 }
 0xa0b   : > { %v8461_v55 = vadd.f32 0.5, %v8333_v3  ;;  %v7730_v18 = vpop.f32.mrf.mxu2  ;;  %v7779_v8 = vpop.f32.mrf.mxu3 }
 0xa0c   : > { %v7731_v38 = vadd.f32 %v7730_v18, %v7682_v6 }
 0xa0d   : > { %8589 = vst [vmem:[%s13919_s16 + $0x2f0] sm:$0xff] %v8461_v55 }
 0xa0e   : > { %v7780_v24 = vadd.f32 %v7779_v8, %v7731_v38  ;;  %v7637_v21 = vpop.f32.mrf.mxu0  ;;  %v7686_v12 = vpop.f32.mrf.mxu1 }
 0xa0f   : > { %v7638_v15 = vadd.f32 %v7637_v21, %v14315_v7 }
 0xa10   : > { %v12032_v45 = vpop.eup %12031  ;;  %v8093_v10 = vmul.f32 0.5, %v7780_v24  ;;  %7928 = vmatmul.bf16.gmra.mxu2 %v13895_v0  ;;  %7977 = vmatmul.bf16.gmra.mxu3 %v13897_v58  ;;  %v14380_v58 = vperm.slane %v14312_v29, 7 }
 0xa11   : > { %v8341_v14 = vmul.f32 0.5, %v12032_v45  ;;  %v7687_v0 = vadd.f32 %v7686_v12, %v7638_v15 }
 0xa12   : > { %12033 = vtanh.f32 %v8093_v10 }
 0xa13   : > { %v8469_v11 = vadd.f32 0.5, %v8341_v14  ;;  %v7733_v47 = vpop.f32.mrf.mxu2  ;;  %v7782_v42 = vpop.f32.mrf.mxu3 }
 0xa14   : > { %v7734_v33 = vadd.f32 %v7733_v47, %v7685_v40 }
 0xa15   : > { %8597 = vst [vmem:[%s13919_s16 + $0x330] sm:$0xff] %v8469_v11 }
 0xa16   : > { %v7783_v1 = vadd.f32 %v7782_v42, %v7734_v33  ;;  %v7796_v31 = vpop.f32.mrf.mxu0  ;;  %v7845_v41 = vpop.f32.mrf.mxu1 }
 0xa17   : > { %v7797_v23 = vadd.f32 %v7796_v31, %v14380_v58 }
 0xa18   : > { %v12034_v5 = vpop.eup %12033  ;;  %v8101_v43 = vmul.f32 0.5, %v7783_v1 }
 0xa19   : > { %v8349_v56 = vmul.f32 0.5, %v12034_v5  ;;  %v7846_v13 = vadd.f32 %v7845_v41, %v7797_v23 }
 0xa1a   : > { %12035 = vtanh.f32 %v8101_v43 }
 0xa1b   : > { %v8477_v19 = vadd.f32 0.5, %v8349_v56  ;;  %v7735_v17 = vpop.f32.mrf.mxu2  ;;  %v7784_v48 = vpop.f32.mrf.mxu3 }
 0xa1c   : > { %v7736_v35 = vadd.f32 %v7735_v17, %v7687_v0 }
 0xa1d   : > { %8605 = vst [vmem:[%s13919_s16 + $0x370] sm:$0xff] %v8477_v19 }
 0xa1e   : > { %v7785_v7 = vadd.f32 %v7784_v48, %v7736_v35  ;;  %v7798_v53 = vpop.f32.mrf.mxu0  ;;  %v7847_v49 = vpop.f32.mrf.mxu1 }
 0xa1f   : > { %v7799_v32 = vadd.f32 %v7798_v53, %v14380_v58 }
 0xa20   : > { %v12036_v50 = vpop.eup %12035  ;;  %v8109_v54 = vmul.f32 0.5, %v7785_v7 }
 0xa21   : > { %v8357_v30 = vmul.f32 0.5, %v12036_v50  ;;  %v7848_v20 = vadd.f32 %v7847_v49, %v7799_v32 }
 0xa22   : > { %12037 = vtanh.f32 %v8109_v54 }
 0xa23   : > { %v8485_v46 = vadd.f32 0.5, %v8357_v30  ;;  %v7894_v29 = vpop.f32.mrf.mxu2  ;;  %v7943_v9 = vpop.f32.mrf.mxu3 }
 0xa24   : > { %v7895_v51 = vadd.f32 %v7894_v29, %v7846_v13 }
 0xa25   : > { %8613 = vst [vmem:[%s13919_s16 + $0x3b0] sm:$0xff] %v8485_v46 }
 0xa26   : > { %v7944_v37 = vadd.f32 %v7943_v9, %v7895_v51  ;;  %v7801_v2 = vpop.f32.mrf.mxu0  ;;  %v7850_v57 = vpop.f32.mrf.mxu1 }
 0xa27   : > { %v7802_v52 = vadd.f32 %v7801_v2, %v14380_v58 }
 0xa28   : > { %v12038_v62 = vpop.eup %12037  ;;  %v7990_v61 = vmul.f32 0.5, %v7944_v37 }
 0xa29   : > { %v8365_v39 = vmul.f32 0.5, %v12038_v62  ;;  %v7851_v25 = vadd.f32 %v7850_v57, %v7802_v52 }
 0xa2a   : > { %12039 = vtanh.f32 %v7990_v61 }
 0xa2b   : > { %v8493_v27 = vadd.f32 0.5, %v8365_v39  ;;  %v7896_v59 = vpop.f32.mrf.mxu2  ;;  %v7945_v16 = vpop.f32.mrf.mxu3 }
 0xa2c   : > { %v7897_v26 = vadd.f32 %v7896_v59, %v7848_v20 }
 0xa2d   : > { %8621 = vst [vmem:[%s13919_s16 + $0x3f0] sm:$0xff] %v8493_v27 }
 0xa2e   : > { %v7946_v44 = vadd.f32 %v7945_v16, %v7897_v26  ;;  %v7803_v22 = vpop.f32.mrf.mxu0  ;;  %v7852_v60 = vpop.f32.mrf.mxu1 }
 0xa30   : > { %v12040_v28 = vpop.eup %12039  ;;  %v7998_v34 = vmul.f32 0.5, %v7946_v44 }
 0xa31   : > { %v8246_v36 = vmul.f32 0.5, %v12040_v28 }
 0xa32   : > { %12041 = vtanh.f32 %v7998_v34 }
 0xa33   : > { %v8374_v63 = vadd.f32 0.5, %v8246_v36  ;;  %v7899_v3 = vpop.f32.mrf.mxu2  ;;  %v7948_v6 = vpop.f32.mrf.mxu3 }
 0xa34   : > { %12224 = shalt.err (!%p12221_p12)
}
 0xa35   : > { %s12315_s24 = smov 128   ;;  %s12316_s13 = smov 8   ;;  %v7900_v55 = vadd.f32 %v7899_v3, %v7851_v25  ;;  %8502 = vst [vmem:[%s13919_s16 + $0x38] sm:$0xff] %v8374_v63  ;;  %v7804_v18 = vadd.f32 %v7803_v22, %v14380_v58 }
 0xa36   : > { %11705 = dma.vmem_to_hbm [thread:$0]  (%p12446_p7), %s8676_s14, 2048, %s8678_s17, %s8645_s19, %s12315_s24, %s12315_s24, %s12316_s13   ;;  %v7806_v38 = vpop.f32.mrf.mxu0  ;;  %v7855_v4 = vpop.f32.mrf.mxu1 }
 0xa37   : > { %v7949_v8 = vadd.f32 %v7948_v6, %v7900_v55  ;;  %v7853_v45 = vadd.f32 %v7852_v60, %v7804_v18  ;;  %v7807_v47 = vadd.f32 %v7806_v38, %v14380_v58  ;;  %s11688_s14 = sshll.u32 %s12384_s9, 10  ;;  %s8658_s5 = sshll.u32 %s13919_s16, 4  ;;  %s8659_s5 = int_to_ptr.vmem [resolvable:$true] %s8658_s5 }
 0xa38   : > { %v12042_v24 = vpop.eup %12041  ;;  %s8657_s15 = scalar_lea.hbm %s14475_s7, %s11688_s14  ;;  %s8640_s10 = scalar_lea.sflag [#allocation4], %s12474_s26 }
 0xa39   : > { %v8006_v21 = vmul.f32 0.5, %v7949_v8  ;;  %v8254_v12 = vmul.f32 0.5, %v12042_v24  ;;  %v7856_v5 = vadd.f32 %v7855_v4, %v7807_v47  ;;  %s8660_s18 = sshll.u32 %s8657_s15, 4  ;;  %s12245_s24 = scalar_lea.hbm %s14475_s7, 2048  ;;  %s8661_s18 = int_to_ptr.hbm [resolvable:$true] %s8660_s18 }
 0xa3a   : > { %s12239_s11 = sshra.s32 %s8661_s18, 4  ;;  %s12240_s11 = int_to_ptr.hbm [resolvable:$true] %s12239_s11 }
 0xa3b   : > { %12043 = vtanh.f32 %v8006_v21  ;;  %v8382_v10 = vadd.f32 0.5, %v8254_v12  ;;  %v7901_v14 = vpop.f32.mrf.mxu2  ;;  %v7950_v40 = vpop.f32.mrf.mxu3  ;;  %s12241_s2 = scalar_lea.hbm %s12240_s11, 1024  ;;  %p12246_p5 = scmp.lt.s32.totalorder %s12240_s11, %s14475_s7 }
 0xa3c   : > { %v7902_v11 = vadd.f32 %v7901_v14, %v7853_v45  ;;  %p12242_p13 = scmp.ne.s32.totalorder %s12240_s11, %s12241_s2  ;;  %p12247_p1 = scmp.lt.s32.totalorder %s12245_s24, %s12241_s2 }
 0xa3d   : > { %8510 = vst [vmem:[%s13919_s16 + $0x78] sm:$0xff] %v8382_v10 }
 0xa3e   : > { %v7951_v42 = vadd.f32 %v7950_v40, %v7902_v11  ;;  %v7808_v33 = vpop.f32.mrf.mxu0  ;;  %v7857_v15 = vpop.f32.mrf.mxu1  ;;  %p12243_p0 = pnand %p12242_p13, %p12446_p7  ;;  %p12248_p4 = por %p12247_p1, %p12246_p5 }
 0xa3f   : > { %v7809_v17 = vadd.f32 %v7808_v33, %v14380_v58 }
 0xa40   : > { %v8014_v31 = vmul.f32 0.5, %v7951_v42  ;;  %p12244_p3 = pneg %p12243_p0 }
 0xa41   : > { %v12044_v1 = vpop.eup %12043  ;;  %v7858_v50 = vadd.f32 %v7857_v15, %v7809_v17 }
 0xa42   : > { %v8262_v41 = vmul.f32 0.5, %v12044_v1  ;;  %12045 = vtanh.f32 %v8014_v31  ;;  %p12249_p8 = pnand %p12248_p4, %p12244_p3 }
 0xa43   : > { %v7904_v56 = vpop.f32.mrf.mxu2  ;;  %v7953_v0 = vpop.f32.mrf.mxu3 }
 0xa44   : > { %v8390_v43 = vadd.f32 0.5, %v8262_v41  ;;  %v7905_v19 = vadd.f32 %v7904_v56, %v7856_v5 }
 0xa46   : > { %8518 = vst [vmem:[%s13919_s16 + $0xb8] sm:$0xff] %v8390_v43  ;;  %v7954_v48 = vadd.f32 %v7953_v0, %v7905_v19  ;;  %v7811_v35 = vpop.f32.mrf.mxu0  ;;  %v7860_v23 = vpop.f32.mrf.mxu1 }
 0xa47   : > { %v7812_v29 = vadd.f32 %v7811_v35, %v14380_v58 }
 0xa48   : > { %v12046_v7 = vpop.eup %12045  ;;  %v8022_v53 = vmul.f32 0.5, %v7954_v48 }
 0xa49   : > { %v8270_v49 = vmul.f32 0.5, %v12046_v7  ;;  %v7861_v62 = vadd.f32 %v7860_v23, %v7812_v29 }
 0xa4a   : > { %12047 = vtanh.f32 %v8022_v53 }
 0xa4b   : > { %v8398_v54 = vadd.f32 0.5, %v8270_v49  ;;  %v7906_v30 = vpop.f32.mrf.mxu2  ;;  %v7955_v13 = vpop.f32.mrf.mxu3 }
 0xa4c   : > { %v7907_v46 = vadd.f32 %v7906_v30, %v7858_v50 }
 0xa4d   : > { %8526 = vst [vmem:[%s13919_s16 + $0xf8] sm:$0xff] %v8398_v54 }
 0xa4e   : > { %v7956_v9 = vadd.f32 %v7955_v13, %v7907_v46  ;;  %v7813_v51 = vpop.f32.mrf.mxu0  ;;  %v7862_v32 = vpop.f32.mrf.mxu1 }
 0xa4f   : > { %v7814_v59 = vadd.f32 %v7813_v51, %v14380_v58 }
 0xa50   : > { %v12048_v37 = vpop.eup %12047  ;;  %v8030_v2 = vmul.f32 0.5, %v7956_v9 }
 0xa51   : > { %v8278_v57 = vmul.f32 0.5, %v12048_v37  ;;  %v7863_v28 = vadd.f32 %v7862_v32, %v7814_v59 }
 0xa52   : > { %12049 = vtanh.f32 %v8030_v2 }
 0xa53   : > { %v8406_v61 = vadd.f32 0.5, %v8278_v57  ;;  %v7909_v39 = vpop.f32.mrf.mxu2  ;;  %v7958_v20 = vpop.f32.mrf.mxu3 }
 0xa54   : > { %v7910_v27 = vadd.f32 %v7909_v39, %v7861_v62 }
 0xa55   : > { %8534 = vst [vmem:[%s13919_s16 + $0x138] sm:$0xff] %v8406_v61 }
 0xa56   : > { %v7959_v16 = vadd.f32 %v7958_v20, %v7910_v27  ;;  %v7816_v26 = vpop.f32.mrf.mxu0  ;;  %v7865_v52 = vpop.f32.mrf.mxu1 }
 0xa57   : > { %v7817_v3 = vadd.f32 %v7816_v26, %v14380_v58 }
 0xa58   : > { %v12050_v44 = vpop.eup %12049  ;;  %v8038_v22 = vmul.f32 0.5, %v7959_v16 }
 0xa59   : > { %v8286_v60 = vmul.f32 0.5, %v12050_v44  ;;  %v7866_v24 = vadd.f32 %v7865_v52, %v7817_v3 }
 0xa5a   : > { %12051 = vtanh.f32 %v8038_v22 }
 0xa5b   : > { %v8414_v34 = vadd.f32 0.5, %v8286_v60  ;;  %v7911_v36 = vpop.f32.mrf.mxu2  ;;  %v7960_v25 = vpop.f32.mrf.mxu3 }
 0xa5c   : > { %v7912_v63 = vadd.f32 %v7911_v36, %v7863_v28 }
 0xa5d   : > { %8542 = vst [vmem:[%s13919_s16 + $0x178] sm:$0xff] %v8414_v34 }
 0xa5e   : > { %v7961_v6 = vadd.f32 %v7960_v25, %v7912_v63  ;;  %v7818_v55 = vpop.f32.mrf.mxu0  ;;  %v7867_v18 = vpop.f32.mrf.mxu1 }
 0xa5f   : > { %v7819_v14 = vadd.f32 %v7818_v55, %v14380_v58 }
 0xa60   : > { %v12052_v8 = vpop.eup %12051  ;;  %v8046_v38 = vmul.f32 0.5, %v7961_v6 }
 0xa61   : > { %v8294_v4 = vmul.f32 0.5, %v12052_v8  ;;  %v7868_v1 = vadd.f32 %v7867_v18, %v7819_v14 }
 0xa62   : > { %12053 = vtanh.f32 %v8046_v38 }
 0xa63   : > { %v8422_v21 = vadd.f32 0.5, %v8294_v4  ;;  %v7914_v12 = vpop.f32.mrf.mxu2  ;;  %v7963_v45 = vpop.f32.mrf.mxu3 }
 0xa64   : > { %v7915_v10 = vadd.f32 %v7914_v12, %v7866_v24 }
 0xa65   : > { %8550 = vst [vmem:[%s13919_s16 + $0x1b8] sm:$0xff] %v8422_v21 }
 0xa66   : > { %v7964_v40 = vadd.f32 %v7963_v45, %v7915_v10  ;;  %v7821_v11 = vpop.f32.mrf.mxu0  ;;  %v7870_v47 = vpop.f32.mrf.mxu1 }
 0xa67   : > { %v7822_v56 = vadd.f32 %v7821_v11, %v14380_v58 }
 0xa68   : > { %v12054_v42 = vpop.eup %12053  ;;  %v8054_v33 = vmul.f32 0.5, %v7964_v40 }
 0xa69   : > { %v8302_v15 = vmul.f32 0.5, %v12054_v42  ;;  %v7871_v7 = vadd.f32 %v7870_v47, %v7822_v56 }
 0xa6a   : > { %12055 = vtanh.f32 %v8054_v33 }
 0xa6b   : > { %v8430_v31 = vadd.f32 0.5, %v8302_v15  ;;  %v7916_v41 = vpop.f32.mrf.mxu2  ;;  %v7965_v5 = vpop.f32.mrf.mxu3 }
 0xa6c   : > { %v7917_v43 = vadd.f32 %v7916_v41, %v7868_v1 }
 0xa6d   : > { %8558 = vst [vmem:[%s13919_s16 + $0x1f8] sm:$0xff] %v8430_v31 }
 0xa6e   : > { %v7966_v0 = vadd.f32 %v7965_v5, %v7917_v43  ;;  %v7823_v19 = vpop.f32.mrf.mxu0  ;;  %v7872_v35 = vpop.f32.mrf.mxu1 }
 0xa6f   : > { %v7824_v30 = vadd.f32 %v7823_v19, %v14380_v58 }
 0xa70   : > { %v12056_v17 = vpop.eup %12055  ;;  %v8062_v48 = vmul.f32 0.5, %v7966_v0 }
 0xa71   : > { %v8310_v23 = vmul.f32 0.5, %v12056_v17  ;;  %v7873_v32 = vadd.f32 %v7872_v35, %v7824_v30 }
 0xa72   : > { %12057 = vtanh.f32 %v8062_v48 }
 0xa73   : > { %v8438_v53 = vadd.f32 0.5, %v8310_v23  ;;  %v7919_v49 = vpop.f32.mrf.mxu2  ;;  %v7968_v50 = vpop.f32.mrf.mxu3 }
 0xa74   : > { %v7920_v54 = vadd.f32 %v7919_v49, %v7871_v7 }
 0xa75   : > { %8566 = vst [vmem:[%s13919_s16 + $0x238] sm:$0xff] %v8438_v53 }
 0xa76   : > { %v7969_v13 = vadd.f32 %v7968_v50, %v7920_v54  ;;  %v7826_v46 = vpop.f32.mrf.mxu0  ;;  %v7875_v37 = vpop.f32.mrf.mxu1 }
 0xa77   : > { %v7827_v39 = vadd.f32 %v7826_v46, %v14380_v58 }
 0xa78   : > { %v12058_v29 = vpop.eup %12057  ;;  %v8070_v9 = vmul.f32 0.5, %v7969_v13 }
 0xa79   : > { %v8318_v51 = vmul.f32 0.5, %v12058_v29  ;;  %v7876_v52 = vadd.f32 %v7875_v37, %v7827_v39 }
 0xa7a   : > { %12059 = vtanh.f32 %v8070_v9 }
 0xa7b   : > { %v8446_v2 = vadd.f32 0.5, %v8318_v51  ;;  %v7921_v57 = vpop.f32.mrf.mxu2  ;;  %v7970_v62 = vpop.f32.mrf.mxu3 }
 0xa7c   : > { %v7922_v61 = vadd.f32 %v7921_v57, %v7873_v32 }
 0xa7d   : > { %8574 = vst [vmem:[%s13919_s16 + $0x278] sm:$0xff] %v8446_v2 }
 0xa7e   : > { %v7971_v20 = vadd.f32 %v7970_v62, %v7922_v61  ;;  %v7828_v27 = vpop.f32.mrf.mxu0  ;;  %v7877_v34 = vpop.f32.mrf.mxu1 }
 0xa7f   : > { %v7829_v36 = vadd.f32 %v7828_v27, %v14380_v58 }
 0xa80   : > { %v12060_v59 = vpop.eup %12059  ;;  %v8078_v16 = vmul.f32 0.5, %v7971_v20 }
 0xa81   : > { %v8326_v26 = vmul.f32 0.5, %v12060_v59  ;;  %v7878_v18 = vadd.f32 %v7877_v34, %v7829_v36 }
 0xa82   : > { %12061 = vtanh.f32 %v8078_v16 }
 0xa83   : > { %v8454_v44 = vadd.f32 0.5, %v8326_v26  ;;  %v7924_v22 = vpop.f32.mrf.mxu2  ;;  %v7973_v60 = vpop.f32.mrf.mxu3 }
 0xa84   : > { %v7925_v28 = vadd.f32 %v7924_v22, %v7876_v52 }
 0xa85   : > { %8582 = vst [vmem:[%s13919_s16 + $0x2b8] sm:$0xff] %v8454_v44 }
 0xa86   : > { %v7974_v25 = vadd.f32 %v7973_v60, %v7925_v28  ;;  %v7831_v6 = vpop.f32.mrf.mxu0  ;;  %v7880_v45 = vpop.f32.mrf.mxu1 }
 0xa87   : > { %v7832_v21 = vadd.f32 %v7831_v6, %v14380_v58 }
 0xa88   : > { %v12062_v63 = vpop.eup %12061  ;;  %v8086_v3 = vmul.f32 0.5, %v7974_v25 }
 0xa89   : > { %v8334_v55 = vmul.f32 0.5, %v12062_v63  ;;  %v7881_v11 = vadd.f32 %v7880_v45, %v7832_v21 }
 0xa8a   : > { %12063 = vtanh.f32 %v8086_v3 }
 0xa8b   : > { %v8462_v8 = vadd.f32 0.5, %v8334_v55  ;;  %v7926_v38 = vpop.f32.mrf.mxu2  ;;  %v7975_v4 = vpop.f32.mrf.mxu3 }
 0xa8c   : > { %v7927_v24 = vadd.f32 %v7926_v38, %v7878_v18 }
 0xa8d   : > { %8590 = vst [vmem:[%s13919_s16 + $0x2f8] sm:$0xff] %v8462_v8 }
 0xa8e   : > { %v7976_v12 = vadd.f32 %v7975_v4, %v7927_v24  ;;  %v7833_v47 = vpop.f32.mrf.mxu0  ;;  %v7882_v0 = vpop.f32.mrf.mxu1 }
 0xa8f   : > { %v7834_v31 = vadd.f32 %v7833_v47, %v14380_v58 }
 0xa90   : > { %v12064_v10 = vpop.eup %12063  ;;  %v8094_v14 = vmul.f32 0.5, %v7976_v12 }
 0xa91   : > { %v8342_v40 = vmul.f32 0.5, %v12064_v10  ;;  %v7883_v19 = vadd.f32 %v7882_v0, %v7834_v31 }
 0xa92   : > { %12065 = vtanh.f32 %v8094_v14 }
 0xa93   : > { %v8470_v42 = vadd.f32 0.5, %v8342_v40  ;;  %v7929_v33 = vpop.f32.mrf.mxu2  ;;  %v7978_v15 = vpop.f32.mrf.mxu3 }
 0xa94   : > { %v7930_v1 = vadd.f32 %v7929_v33, %v7881_v11 }
 0xa95   : > { %8598 = vst [vmem:[%s13919_s16 + $0x338] sm:$0xff] %v8470_v42 }
 0xa96   : > { %v7979_v41 = vadd.f32 %v7978_v15, %v7930_v1 }
 0xa98   : > { %v12066_v5 = vpop.eup %12065  ;;  %v8102_v43 = vmul.f32 0.5, %v7979_v41 }
 0xa99   : > { %v8350_v56 = vmul.f32 0.5, %v12066_v5 }
 0xa9a   : > { %12067 = vtanh.f32 %v8102_v43 }
 0xa9b   : > { %v8478_v17 = vadd.f32 0.5, %v8350_v56  ;;  %v7931_v48 = vpop.f32.mrf.mxu2  ;;  %v7980_v23 = vpop.f32.mrf.mxu3 }
 0xa9c   : > { %v7932_v35 = vadd.f32 %v7931_v48, %v7883_v19 }
 0xa9d   : > { %8606 = vst [vmem:[%s13919_s16 + $0x378] sm:$0xff] %v8478_v17 }
 0xa9e   : > { %v7981_v7 = vadd.f32 %v7980_v23, %v7932_v35 }
 0xaa0   : > { %v12068_v53 = vpop.eup %12067  ;;  %v8110_v58 = vmul.f32 0.5, %v7981_v7 }
 0xaa1   : > { %v8358_v49 = vmul.f32 0.5, %v12068_v53 }
 0xaa2   : > { %12069 = vtanh.f32 %v8110_v58 }
 0xaa3   : > { %v8486_v50 = vadd.f32 0.5, %v8358_v49 }
 0xaa5   : > { %8614 = vst [vmem:[%s13919_s16 + $0x3b8] sm:$0xff] %v8486_v50 }
 0xaa8   : > { %v12070_v54 = vpop.eup %12069 }
 0xaa9   : > { %v8366_v30 = vmul.f32 0.5, %v12070_v54 }
 0xaab   : > { %v8494_v13 = vadd.f32 0.5, %v8366_v30 }
 0xaad   : > { %8622 = vst [vmem:[%s13919_s16 + $0x3f8] sm:$0xff] %v8494_v13 }
 0xaae   : > { %12252 = shalt.err (!%p12249_p8)
}
 0xaaf   : > { %s12317_s26 = smov 1024  }
 0xab0   : > { %11704 = dma.vmem_to_hbm [thread:$0]  (%p12446_p7), %s8659_s5, 16384, %s8661_s18, %s8640_s10, %s12317_s26, %s12317_s26, %s12314_s23  }
 0xab1 PF: > { %s8692_s16 = sand.u32 1, %s12291_s27   ;;  %p14743_p11 = scmp.ge.s32.totalorder %s12303_s30, 2 }
 0xab2   : > { %s8693_s17 = scalar_lea.sflag [#allocation4], %s8692_s16 }
 0xab3   : > { %p11723_p9 = pnand %p14743_p11, %p12398_p6 }
 0xab5   : > { %p11724_p2 = pneg %p11723_p9 }
 0xab7   : > { %12282 = dma.done.wait (%p11724_p2), %s8693_s17, 16384  }
 0xab8   : > { %12284 = vsyncadd (%p11724_p2), %s8693_s17, 4294950912  ;;  %s8703_s19 = scalar_lea.sflag [#allocation12], %s8692_s16 }
 0xab9   : > { %12286 = dma.done.wait (%p11724_p2), %s8703_s19, 2048  }
 0xaba   : > { %12288 = vsyncadd (%p11724_p2), %s8703_s19, 4294965248  ;;  %p27_p7 = scmp.ge.s32.totalorder %s12432_s21, 4   ;;  %s14744_s27 = smov %s12295_s28 }
 0xabb   : > { %s14745_s28 = smov %s12299_s29  ;;  %s14746_s29 = smov %s12442_s22 }
 0xabc   : > { %s14747_s30 = smov %s12432_s21  ;;  %29 = sbr.rel (!%p27_p7) target bundleno = 12 (0xc), region = 125 }
 0xac1   :  { %8709 = vsyncpa [#allocation3], 1 }
 0xac2   :  { %8711 = vsyncpa [#allocation3 + $0x1], 1 }
 0xac3   :  { %8712 = vsyncpa [#allocation6], 1 }
 0xac4   :  { %8713 = vsyncpa [#allocation9], 1 }
 0xac5   :  { %8714 = vsyncpa [#allocation4], 1 }
 0xac6   :  { %8716 = vsyncpa [#allocation4 + $0x1], 1 }
 0xac7   :  { %8717 = vsyncpa [#allocation12], 1 }
 0xac8   :  { %8719 = vsyncpa [#allocation12 + $0x1], 1 }

</bundles_post_ra>
